<compile_context>
chip_gen: v7x
topology: tpu7x:2x2x1
jax: 0.10.0
libtpu: 0.0.40
codegen_flags: <defaults>
</compile_context>

<pallas_src>
import jax
import jax.numpy as jnp
import numpy as np
from jax import lax
from jax.experimental import pallas as pl
from jax.experimental.pallas import tpu as pltpu

_LANE = 128

# Module-order candidates within the 3x3 im2col window (tap index = ky*3 + kx).
# PyTorch conv2d is cross-correlation: out[y,x] = xpad[y+ky, x+kx], and
# xpad[i,j] = state[i-1, j-1], so:
#   up_conv    (kernel `_up`,    1 at (0,1)) -> state[y-1, x  ] -> tap 1
#   down_conv  (kernel `_right`, 1 at (1,2)) -> state[y,   x+1] -> tap 5
#   left_conv  (kernel `_down`,  1 at (2,1)) -> state[y+1, x  ] -> tap 7
#   right_conv (kernel `_left`,  1 at (1,0)) -> state[y,   x-1] -> tap 3
#   identity                     (1 at (1,1)) -> state[y,   x  ] -> tap 4
_CAND_TAPS = (1, 5, 7, 3, 4)


def _round_up(x, m):
    return (x + m - 1) // m * m


def _selective_gates_kernel(xcol_ref, w1_ref, b1_ref, w2_ref, b2_ref, out_ref):
    # xcol_ref: (Mt, 9*Cp)  im2col rows, tap-major / channel-minor, Cp = 128-padded
    # w1_ref:   (9*Cp, Cp)  3x3 gate-conv weight, rows match xcol column order
    # b1_ref:   (1, Cp)
    # w2_ref:   (Cp, 5*Cp)  1x1 gate-conv weight; column = gate*Cp + channel
    # b2_ref:   (1, 5*Cp)
    # out_ref:  (Mt, Cp)    lane-dense (Cp is a multiple of 128) -> unmasked stores
    Cp = w1_ref.shape[1]

    x_col = xcol_ref[...]                                   # (Mt, 9*Cp)

    # Gating network: 3x3 conv as ONE matmul with K = 9*Cp, then ReLU,
    # then 1x1 conv as ONE matmul with N = 5*Cp (wide MXU occupancy).
    g1 = jnp.dot(x_col, w1_ref[...], preferred_element_type=jnp.float32)
    g1 = jnp.maximum(g1 + b1_ref[...], 0.0)                 # (Mt, Cp)
    logits = jnp.dot(g1, w2_ref[...],
                     preferred_element_type=jnp.float32) + b2_ref[...]   # (Mt, 5*Cp)

    # Softmax over the 5 gate groups; every slice is 128-lane aligned.
    s = [logits[:, g * Cp:(g + 1) * Cp] for g in range(5)]
    m = jnp.maximum(jnp.maximum(jnp.maximum(s[0], s[1]),
                                jnp.maximum(s[2], s[3])), s[4])
    e = [jnp.exp(sg - m) for sg in s]
    inv = pl.reciprocal(e[0] + e[1] + e[2] + e[3] + e[4], approx=True)   # EUP slot

    # Weighted blend of the 5 shift candidates: lane-aligned column slices of
    # x_col (no extra tap materialization / scratch buffers).
    t0 = _CAND_TAPS[0]
    acc = e[0] * x_col[:, t0 * Cp:(t0 + 1) * Cp]
    for g in range(1, 5):
        t = _CAND_TAPS[g]
        acc = acc + e[g] * x_col[:, t * Cp:(t + 1) * Cp]

    out_ref[...] = (acc * inv).astype(out_ref.dtype)


@jax.jit
def selective_gates_forward(state_nchw, wg1_oihw, bg1, wg2_oihw, bg2):
    """state_nchw: (B, C, H, W) f32.  wg1: (C, C, 3, 3), bg1: (C,),
    wg2: (5C, C, 1, 1), bg2: (5C,)  -- PyTorch OIHW layouts."""
    B, C, H, W = state_nchw.shape
    HW = H * W
    Cp = _round_up(C, _LANE)            # channel padding -> exact lane tiles
    pc = Cp - C

    # Batch elements per grid step (fold batch into the matmul M dimension to
    # amortize per-step overhead and MXU weight push/drain).
    rows_target = 1024
    Bt = max(1, min(B, rows_target // max(HW, 1)))
    if (Bt * HW) % 8 != 0:              # keep the (8,128) block constraint happy
        Bt = B
    Bpad = _round_up(B, Bt)

    # NCHW -> NHWC, zero-pad: batch to Bpad, spatial by 1, channels to Cp.
    x = jnp.transpose(state_nchw, (0, 2, 3, 1))
    xp = jnp.pad(x, ((0, Bpad - B), (1, 1), (1, 1), (0, pc)))

    # Wrapper-side im2col (tap-major, Cp-channel-minor): (Bpad*HW, 9*Cp).
    taps = [xp[:, ky:ky + H, kx:kx + W, :] for ky in range(3) for kx in range(3)]
    x_col = jnp.concatenate(taps, axis=-1).reshape(Bpad * HW, 9 * Cp)

    # Matmul-ready, channel-padded gating weights.
    # w1 rows ordered (tap, cin) to match x_col columns; cols = cout.
    w1 = jnp.transpose(wg1_oihw, (2, 3, 1, 0))                         # (3,3,Cin,Cout)
    w1 = jnp.pad(w1, ((0, 0), (0, 0), (0, pc), (0, pc))).reshape(9 * Cp, Cp)
    b1 = jnp.pad(bg1, (0, pc)).reshape(1, Cp)
    # w2 columns ordered (gate, cout); output channel o of the 1x1 conv maps to
    # (gate = o // C, chan = o % C), exactly the module's reshape(-1, 5, C, H, W).
    w2 = jnp.transpose(wg2_oihw[:, :, 0, 0].reshape(5, C, C), (2, 0, 1))  # (Cin,5,Cout)
    w2 = jnp.pad(w2, ((0, pc), (0, 0), (0, pc))).reshape(Cp, 5 * Cp)
    b2 = jnp.pad(bg2.reshape(5, C), ((0, 0), (0, pc))).reshape(1, 5 * Cp)

    rows = Bt * HW
    grid = (Bpad * HW) // rows

    out = pl.pallas_call(
        _selective_gates_kernel,
        out_shape=jax.ShapeDtypeStruct((Bpad * HW, Cp), state_nchw.dtype),
        grid_spec=pltpu.PrefetchScalarGridSpec(
            num_scalar_prefetch=0,
            grid=(grid,),
            in_specs=[
                pl.BlockSpec((rows, 9 * Cp), lambda i: (i, 0)),
                pl.BlockSpec((9 * Cp, Cp), lambda i: (0, 0)),   # weights: constant
                pl.BlockSpec((1, Cp), lambda i: (0, 0)),        # block index -> no
                pl.BlockSpec((Cp, 5 * Cp), lambda i: (0, 0)),   # re-copy per step
                pl.BlockSpec((1, 5 * Cp), lambda i: (0, 0)),
            ],
            out_specs=pl.BlockSpec((rows, Cp), lambda i: (i, 0)),
        ),
        compiler_params=pltpu.CompilerParams(
            # No carried state across batch tiles.  On v7x use
            # pltpu.CORE_PARALLEL (and keep `grid` a multiple of 2) for a real
            # 2-TensorCore split; "parallel" is harmless on single-TC v5e/v6e.
            dimension_semantics=("parallel",)),
    )(x_col, w1, b1, w2, b2)

    # (Bpad*HW, Cp) -> (B, C, H, W); drop batch/channel padding.
    out = out.reshape(Bpad, H, W, Cp)[:B, :, :, :C]
    return jnp.transpose(out, (0, 3, 1, 2))


# ----------------------------- pure-JAX reference ---------------------------

def _shift_kernels(C):
    up = np.array([[0, 1, 0], [0, 0, 0], [0, 0, 0]], dtype=np.float32)
    right = np.array([[0, 0, 0], [0, 0, 1], [0, 0, 0]], dtype=np.float32)
    down = np.array([[0, 0, 0], [0, 0, 0], [0, 1, 0]], dtype=np.float32)
    left = np.array([[0, 0, 0], [1, 0, 0], [0, 0, 0]], dtype=np.float32)

    def mk(k):
        return jnp.asarray(np.tile(k, (C, 1)).reshape(C, 1, 3, 3))

    return mk(up), mk(right), mk(down), mk(left)


def _reference(state, wg1, bg1, wg2, bg2):
    """Mirrors the PyTorch forward with lax convolutions (NCHW / OIHW)."""
    B, C, H, W = state.shape
    dn = ("NCHW", "OIHW", "NCHW")
    k_up, k_right, k_down, k_left = _shift_kernels(C)

    def dwconv(x, w):
        return lax.conv_general_dilated(x, w, (1, 1), ((1, 1), (1, 1)),
                                        dimension_numbers=dn,
                                        feature_group_count=C)

    up_conv = dwconv(state, k_up)
    down_conv = dwconv(state, k_right)
    left_conv = dwconv(state, k_down)
    right_conv = dwconv(state, k_left)
    udlrc = jnp.stack([up_conv, down_conv, left_conv, right_conv, state])

    sel = lax.conv_general_dilated(state, wg1, (1, 1), ((1, 1), (1, 1)),
                                   dimension_numbers=dn) + bg1.reshape(1, C, 1, 1)
    sel = jnp.maximum(sel, 0.0)
    sel = lax.conv_general_dilated(sel, wg2, (1, 1), "VALID",
                                   dimension_numbers=dn) + bg2.reshape(1, 5 * C, 1, 1)
    sel = sel.reshape(B, 5, C, H, W)
    sel = jax.nn.softmax(sel, axis=1)
    sel = jnp.transpose(sel, (1, 0, 2, 3, 4))
    return jnp.sum(sel * udlrc, axis=0)


if __name__ == "__main__":
    B, C, H, W = 2, 32, 16, 16

    key = jax.random.PRNGKey(0)
    ks = jax.random.split(key, 5)
    state = jax.random.normal(ks[0], (B, C, H, W), dtype=jnp.float32)
    # Deterministic synthetic gating-conv parameters (PyTorch OIHW layouts).
    wg1 = jax.random.normal(ks[1], (C, C, 3, 3), dtype=jnp.float32) * 0.1
    bg1 = jax.random.normal(ks[2], (C,), dtype=jnp.float32) * 0.05
    wg2 = jax.random.normal(ks[3], (5 * C, C, 1, 1), dtype=jnp.float32) * 0.1
    bg2 = jax.random.normal(ks[4], (5 * C,), dtype=jnp.float32) * 0.05

    out = selective_gates_forward(state, wg1, bg1, wg2, bg2)
    out = jax.block_until_ready(out)

    ref = _reference(state, wg1, bg1, wg2, bg2)
    assert out.shape == (B, C, H, W)
    # Tolerance loosened slightly vs 1e-4 to accommodate the approximate (EUP)
    # reciprocal in the softmax denominator; matmuls/accumulation remain f32.
    np.testing.assert_allclose(np.asarray(out), np.asarray(ref),
                               rtol=5e-3, atol=5e-3)

    print("KERNEL_OK")
</pallas_src>

<mosaic_0001>
module attributes {stable_mosaic.version = 11 : i64} {
  func.func @_selective_gates_kernel(%arg0: i32, %arg1: memref<512x1152xf32, #tpu.memory_space<vmem>>, %arg2: memref<1152x128xf32, #tpu.memory_space<vmem>>, %arg3: memref<1x128xf32, #tpu.memory_space<vmem>>, %arg4: memref<128x640xf32, #tpu.memory_space<vmem>>, %arg5: memref<1x640xf32, #tpu.memory_space<vmem>>, %arg6: memref<512x128xf32, #tpu.memory_space<vmem>>) attributes {dimension_semantics = [#tpu.dimension_semantics<parallel>], iteration_bounds = array<i64: 1>, scalar_prefetch = 0 : i64, scratch_operands = 0 : i64, tpu.core_type = #tpu.core_type<tc>, window_params = [{transform_indices = @transform_0, window_bounds = array<i64: 512, 1152>}, {pipeline_mode = #tpu.pipeline_mode<synchronous>, transform_indices = @transform_1, window_bounds = array<i64: 1152, 128>}, {pipeline_mode = #tpu.pipeline_mode<synchronous>, transform_indices = @transform_2, window_bounds = array<i64: 1, 128>}, {pipeline_mode = #tpu.pipeline_mode<synchronous>, transform_indices = @transform_3, window_bounds = array<i64: 128, 640>}, {pipeline_mode = #tpu.pipeline_mode<synchronous>, transform_indices = @transform_4, window_bounds = array<i64: 1, 640>}, {transform_indices = @transform_5, window_bounds = array<i64: 512, 128>}]} {
    %c0 = arith.constant 0 : index
    %c0_0 = arith.constant 0 : index
    %0 = vector.load %arg1[%c0, %c0_0] : memref<512x1152xf32, #tpu.memory_space<vmem>>, vector<512x1152xf32>
    %c0_1 = arith.constant 0 : index
    %c0_2 = arith.constant 0 : index
    %1 = vector.load %arg2[%c0_1, %c0_2] : memref<1152x128xf32, #tpu.memory_space<vmem>>, vector<1152x128xf32>
    %cst = arith.constant dense<0.000000e+00> : vector<512x128xf32>
    %2 = tpu.matmul %0, %1, %cst {dimension_numbers = #tpu.dot_dimension_numbers<[1], [0], [0], [1], [0, 0, 1, 1], [], []>} : vector<512x1152xf32>, vector<1152x128xf32>, vector<512x128xf32> -> vector<512x128xf32>
    %c0_3 = arith.constant 0 : index
    %c0_4 = arith.constant 0 : index
    %3 = vector.load %arg3[%c0_3, %c0_4] : memref<1x128xf32, #tpu.memory_space<vmem>>, vector<1x128xf32>
    %4 = vector.broadcast %3 : vector<1x128xf32> to vector<512x128xf32>
    %5 = arith.addf %2, %4 : vector<512x128xf32>
    %cst_5 = arith.constant 0.000000e+00 : f32
    %6 = vector.broadcast %cst_5 : f32 to vector<512x128xf32>
    %7 = arith.maximumf %5, %6 : vector<512x128xf32>
    %c0_6 = arith.constant 0 : index
    %c0_7 = arith.constant 0 : index
    %8 = vector.load %arg4[%c0_6, %c0_7] : memref<128x640xf32, #tpu.memory_space<vmem>>, vector<128x640xf32>
    %cst_8 = arith.constant dense<0.000000e+00> : vector<512x640xf32>
    %9 = tpu.matmul %7, %8, %cst_8 {dimension_numbers = #tpu.dot_dimension_numbers<[1], [0], [0], [1], [0, 0, 1, 1], [], []>} : vector<512x128xf32>, vector<128x640xf32>, vector<512x640xf32> -> vector<512x640xf32>
    %c0_9 = arith.constant 0 : index
    %c0_10 = arith.constant 0 : index
    %10 = vector.load %arg5[%c0_9, %c0_10] : memref<1x640xf32, #tpu.memory_space<vmem>>, vector<1x640xf32>
    %11 = vector.broadcast %10 : vector<1x640xf32> to vector<512x640xf32>
    %12 = arith.addf %9, %11 : vector<512x640xf32>
    %13 = vector.extract_strided_slice %12 {offsets = [0, 0], sizes = [512, 128], strides = [1, 1]} : vector<512x640xf32> to vector<512x128xf32>
    %14 = vector.extract_strided_slice %12 {offsets = [0, 128], sizes = [512, 128], strides = [1, 1]} : vector<512x640xf32> to vector<512x128xf32>
    %15 = vector.extract_strided_slice %12 {offsets = [0, 256], sizes = [512, 128], strides = [1, 1]} : vector<512x640xf32> to vector<512x128xf32>
    %16 = vector.extract_strided_slice %12 {offsets = [0, 384], sizes = [512, 128], strides = [1, 1]} : vector<512x640xf32> to vector<512x128xf32>
    %17 = vector.extract_strided_slice %12 {offsets = [0, 512], sizes = [512, 128], strides = [1, 1]} : vector<512x640xf32> to vector<512x128xf32>
    %18 = arith.maximumf %13, %14 : vector<512x128xf32>
    %19 = arith.maximumf %15, %16 : vector<512x128xf32>
    %20 = arith.maximumf %18, %19 : vector<512x128xf32>
    %21 = arith.maximumf %20, %17 : vector<512x128xf32>
    %22 = arith.subf %13, %21 : vector<512x128xf32>
    %23 = math.exp %22 : vector<512x128xf32>
    %24 = arith.subf %14, %21 : vector<512x128xf32>
    %25 = math.exp %24 : vector<512x128xf32>
    %26 = arith.subf %15, %21 : vector<512x128xf32>
    %27 = math.exp %26 : vector<512x128xf32>
    %28 = arith.subf %16, %21 : vector<512x128xf32>
    %29 = math.exp %28 : vector<512x128xf32>
    %30 = arith.subf %17, %21 : vector<512x128xf32>
    %31 = math.exp %30 : vector<512x128xf32>
    %32 = arith.addf %23, %25 : vector<512x128xf32>
    %33 = arith.addf %32, %27 : vector<512x128xf32>
    %34 = arith.addf %33, %29 : vector<512x128xf32>
    %35 = arith.addf %34, %31 : vector<512x128xf32>
    %36 = tpu.reciprocal %35 {approx = true} : vector<512x128xf32> -> vector<512x128xf32>
    %37 = vector.extract_strided_slice %0 {offsets = [0, 128], sizes = [512, 128], strides = [1, 1]} : vector<512x1152xf32> to vector<512x128xf32>
    %38 = arith.mulf %23, %37 : vector<512x128xf32>
    %39 = vector.extract_strided_slice %0 {offsets = [0, 640], sizes = [512, 128], strides = [1, 1]} : vector<512x1152xf32> to vector<512x128xf32>
    %40 = arith.mulf %25, %39 : vector<512x128xf32>
    %41 = arith.addf %38, %40 : vector<512x128xf32>
    %42 = vector.extract_strided_slice %0 {offsets = [0, 896], sizes = [512, 128], strides = [1, 1]} : vector<512x1152xf32> to vector<512x128xf32>
    %43 = arith.mulf %27, %42 : vector<512x128xf32>
    %44 = arith.addf %41, %43 : vector<512x128xf32>
    %45 = vector.extract_strided_slice %0 {offsets = [0, 384], sizes = [512, 128], strides = [1, 1]} : vector<512x1152xf32> to vector<512x128xf32>
    %46 = arith.mulf %29, %45 : vector<512x128xf32>
    %47 = arith.addf %44, %46 : vector<512x128xf32>
    %48 = vector.extract_strided_slice %0 {offsets = [0, 512], sizes = [512, 128], strides = [1, 1]} : vector<512x1152xf32> to vector<512x128xf32>
    %49 = arith.mulf %31, %48 : vector<512x128xf32>
    %50 = arith.addf %47, %49 : vector<512x128xf32>
    %51 = arith.mulf %50, %36 : vector<512x128xf32>
    %c0_11 = arith.constant 0 : index
    %c0_12 = arith.constant 0 : index
    %52 = vector.load %arg6[%c0_11, %c0_12] : memref<512x128xf32, #tpu.memory_space<vmem>>, vector<512x128xf32>
    tpu.vector_store %arg6[%c0_11, %c0_12], %51 {strides = array<i32>} : memref<512x128xf32, #tpu.memory_space<vmem>>, vector<512x128xf32>,
    return
  }
  func.func @transform_0(%arg0: i32) -> (i32, i32) {
    %c0_i32 = arith.constant 0 : i32
    %c0_i32_0 = arith.constant 0 : i32
    return %arg0, %c0_i32 : i32, i32
  }
  func.func @transform_1(%arg0: i32) -> (i32, i32) {
    %c0_i32 = arith.constant 0 : i32
    %c0_i32_0 = arith.constant 0 : i32
    %c0_i32_1 = arith.constant 0 : i32
    return %c0_i32, %c0_i32_0 : i32, i32
  }
  func.func @transform_2(%arg0: i32) -> (i32, i32) {
    %c0_i32 = arith.constant 0 : i32
    %c0_i32_0 = arith.constant 0 : i32
    %c0_i32_1 = arith.constant 0 : i32
    return %c0_i32, %c0_i32_0 : i32, i32
  }
  func.func @transform_3(%arg0: i32) -> (i32, i32) {
    %c0_i32 = arith.constant 0 : i32
    %c0_i32_0 = arith.constant 0 : i32
    %c0_i32_1 = arith.constant 0 : i32
    return %c0_i32, %c0_i32_0 : i32, i32
  }
  func.func @transform_4(%arg0: i32) -> (i32, i32) {
    %c0_i32 = arith.constant 0 : i32
    %c0_i32_0 = arith.constant 0 : i32
    %c0_i32_1 = arith.constant 0 : i32
    return %c0_i32, %c0_i32_0 : i32, i32
  }
  func.func @transform_5(%arg0: i32) -> (i32, i32) {
    %c0_i32 = arith.constant 0 : i32
    %c0_i32_0 = arith.constant 0 : i32
    return %arg0, %c0_i32 : i32, i32
  }
}

</mosaic_0001>

<bundles_post_ra>
// kernel: selective_gates_forward.1
= control target key start
LH: loop header
LB: loop body
LE: loop exit
PB: predicated region body
PF: predicated region fallthrough
CT: control target
= control target key end

     0   :  { %v8647_v0 = vmov 0.0|0.0   ;;  %s15512_s1 = inlined_call_operand.vmem [shape: f32[1152,128], index: 1, kind: input, shape index: {}]   ;;  %s15513_s0 = inlined_call_operand.vmem [shape: f32[512,1152], index: 0, kind: input, shape index: {}]   ;;  %s15514_s3 = inlined_call_operand.vmem [shape: f32[128,640], index: 3, kind: input, shape index: {}]   ;;  %s15515_s2 = inlined_call_operand.vmem [shape: f32[1,128], index: 2, kind: input, shape index: {}]   ;;  %s15516_s4 = inlined_call_operand.vmem [shape: f32[1,640], index: 4, kind: input, shape index: {}]   ;;  %s15517_s5 = inlined_call_operand.vmem [shape: f32[512,128], index: 5, kind: output, shape index: {}]  }
   0x1   :  { %6787 = vmatprep.subr.bf16.mxu0 %v8647_v0  ;;  %v596_v1 = vld [vmem:[%s15512_s1] sm:$0xff]  ;;  %v597_v2 = vld [vmem:[%s15512_s1 + $0x8] sm:$0xff]  ;;  %v598_v3 = vld [vmem:[%s15512_s1 + $0x10] sm:$0xff]  ;;  %7107 = vmatprep.subr.bf16.mxu1 %v8647_v0 }
   0x2   :  { %v6788_v4 = vpack.c.bf16 %v597_v2, %v596_v1  ;;  %v599_v5 = vld [vmem:[%s15512_s1 + $0x18] sm:$0xff]  ;;  %v600_v7 = vld [vmem:[%s15512_s1 + $0x20] sm:$0xff]  ;;  %v601_v8 = vld [vmem:[%s15512_s1 + $0x28] sm:$0xff] }
   0x3   :  { %v6791_v6 = vpack.c.bf16 %v599_v5, %v598_v3  ;;  %v6794_v9 = vpack.c.bf16 %v601_v8, %v600_v7  ;;  %v602_v10 = vld [vmem:[%s15512_s1 + $0x30] sm:$0xff]  ;;  %v603_v11 = vld [vmem:[%s15512_s1 + $0x38] sm:$0xff]  ;;  %v21_v12 = vld [vmem:[%s15513_s0 + $0x8] sm:$0xff] }
   0x4   :  { %6789 = vmatpush1.bf16.msra.mxu0 %v6788_v4  ;;  %7123 = vmatpush1.bf16.msra.mxu1 %v6788_v4  ;;  %v6797_v13 = vpack.c.bf16 %v603_v11, %v602_v10  ;;  %v604_v14 = vld [vmem:[%s15512_s1 + $0x40] sm:$0xff]  ;;  %v605_v15 = vld [vmem:[%s15512_s1 + $0x48] sm:$0xff]  ;;  %v606_v17 = vld [vmem:[%s15512_s1 + $0x50] sm:$0xff] }
   0x5   :  { %6790 = vmatprep.subr.bf16.mxu0 %v8647_v0  ;;  %7108 = vmatprep.subr.bf16.mxu1 %v8647_v0  ;;  %v6800_v16 = vpack.c.bf16 %v605_v15, %v604_v14  ;;  %v607_v18 = vld [vmem:[%s15512_s1 + $0x58] sm:$0xff]  ;;  %v608_v20 = vld [vmem:[%s15512_s1 + $0x60] sm:$0xff]  ;;  %v609_v21 = vld [vmem:[%s15512_s1 + $0x68] sm:$0xff] }
   0x6   :  { %811 = vmatprep.mubr.f32.mxu0 %v21_v12  ;;  %v6803_v19 = vpack.c.bf16 %v607_v18, %v606_v17  ;;  %v6806_v22 = vpack.c.bf16 %v609_v21, %v608_v20  ;;  %v610_v23 = vld [vmem:[%s15512_s1 + $0x70] sm:$0xff]  ;;  %v611_v24 = vld [vmem:[%s15512_s1 + $0x78] sm:$0xff]  ;;  %v612_v26 = vld [vmem:[%s15512_s1 + $0x80] sm:$0xff] }
   0x7   :  { %v6809_v25 = vpack.c.bf16 %v611_v24, %v610_v23  ;;  %v613_v27 = vld [vmem:[%s15512_s1 + $0x88] sm:$0xff]  ;;  %v614_v29 = vld [vmem:[%s15512_s1 + $0x90] sm:$0xff]  ;;  %v615_v30 = vld [vmem:[%s15512_s1 + $0x98] sm:$0xff] }
   0x8   :  { %6792 = vmatpush1.bf16.msra.mxu0 %v6791_v6  ;;  %7124 = vmatpush1.bf16.msra.mxu1 %v6791_v6  ;;  %v6812_v28 = vpack.c.bf16 %v613_v27, %v612_v26  ;;  %v6815_v31 = vpack.c.bf16 %v615_v30, %v614_v29  ;;  %v616_v32 = vld [vmem:[%s15512_s1 + $0xa0] sm:$0xff]  ;;  %v617_v33 = vld [vmem:[%s15512_s1 + $0xa8] sm:$0xff]  ;;  %v618_v35 = vld [vmem:[%s15512_s1 + $0xb0] sm:$0xff] }
   0x9   :  { %6793 = vmatprep.subr.bf16.mxu0 %v8647_v0  ;;  %7109 = vmatprep.subr.bf16.mxu1 %v8647_v0  ;;  %v6818_v34 = vpack.c.bf16 %v617_v33, %v616_v32  ;;  %v619_v36 = vld [vmem:[%s15512_s1 + $0xb8] sm:$0xff]  ;;  %v620_v38 = vld [vmem:[%s15512_s1 + $0xc0] sm:$0xff]  ;;  %v621_v39 = vld [vmem:[%s15512_s1 + $0xc8] sm:$0xff] }
   0xa   :  { %v6821_v37 = vpack.c.bf16 %v619_v36, %v618_v35  ;;  %v6824_v40 = vpack.c.bf16 %v621_v39, %v620_v38  ;;  %v622_v41 = vld [vmem:[%s15512_s1 + $0xd0] sm:$0xff]  ;;  %v623_v42 = vld [vmem:[%s15512_s1 + $0xd8] sm:$0xff]  ;;  %v624_v44 = vld [vmem:[%s15512_s1 + $0xe0] sm:$0xff] }
   0xb   :  { %v6827_v43 = vpack.c.bf16 %v623_v42, %v622_v41  ;;  %v625_v45 = vld [vmem:[%s15512_s1 + $0xe8] sm:$0xff]  ;;  %v626_v47 = vld [vmem:[%s15512_s1 + $0xf0] sm:$0xff]  ;;  %v627_v48 = vld [vmem:[%s15512_s1 + $0xf8] sm:$0xff] }
   0xc   :  { %6795 = vmatpush1.bf16.msra.mxu0 %v6794_v9  ;;  %7125 = vmatpush1.bf16.msra.mxu1 %v6794_v9  ;;  %v6830_v46 = vpack.c.bf16 %v625_v45, %v624_v44  ;;  %v6833_v49 = vpack.c.bf16 %v627_v48, %v626_v47  ;;  %v628_v50 = vld [vmem:[%s15512_s1 + $0x100] sm:$0xff]  ;;  %v629_v51 = vld [vmem:[%s15512_s1 + $0x108] sm:$0xff]  ;;  %v30_v54 = vld [vmem:[%s15513_s0 + $0x50] sm:$0xff] }
   0xd   :  { %6796 = vmatprep.subr.bf16.mxu0 %v8647_v0  ;;  %7110 = vmatprep.subr.bf16.mxu1 %v8647_v0  ;;  %v20_v52 = vld [vmem:[%s15513_s0] sm:$0xff]  ;;  %v6836_v53 = vpack.c.bf16 %v629_v51, %v628_v50  ;;  %v630_v55 = vld [vmem:[%s15512_s1 + $0x110] sm:$0xff]  ;;  %v631_v56 = vld [vmem:[%s15512_s1 + $0x118] sm:$0xff] }
   0xe   :  { %v29_v57 = vld [vmem:[%s15513_s0 + $0x48] sm:$0xff]  ;;  %v6839_v58 = vpack.c.bf16 %v631_v56, %v630_v55  ;;  %v39_v59 = vld [vmem:[%s15513_s0 + $0x98] sm:$0xff]  ;;  %v632_v60 = vld [vmem:[%s15512_s1 + $0x120] sm:$0xff] }
   0xf   :  { %v633_v61 = vld [vmem:[%s15512_s1 + $0x128] sm:$0xff]  ;;  %v38_v62 = vld [vmem:[%s15513_s0 + $0x90] sm:$0xff]  ;;  %v48_v1 = vld [vmem:[%s15513_s0 + $0xe0] sm:$0xff] }
  0x10   :  { %6798 = vmatpush1.bf16.msra.mxu0 %v6797_v13  ;;  %7126 = vmatpush1.bf16.msra.mxu1 %v6797_v13  ;;  %v6842_v63 = vpack.c.bf16 %v633_v61, %v632_v60  ;;  %v634_v2 = vld [vmem:[%s15512_s1 + $0x130] sm:$0xff]  ;;  %v635_v3 = vld [vmem:[%s15512_s1 + $0x138] sm:$0xff]  ;;  %v57_v6 = vld [vmem:[%s15513_s0 + $0x128] sm:$0xff] }
  0x11   :  { %6799 = vmatprep.subr.bf16.mxu0 %v8647_v0  ;;  %7111 = vmatprep.subr.bf16.mxu1 %v8647_v0  ;;  %v47_v4 = vld [vmem:[%s15513_s0 + $0xd8] sm:$0xff]  ;;  %v6845_v5 = vpack.c.bf16 %v635_v3, %v634_v2  ;;  %v636_v7 = vld [vmem:[%s15512_s1 + $0x140] sm:$0xff]  ;;  %v637_v8 = vld [vmem:[%s15512_s1 + $0x148] sm:$0xff] }
  0x12   :  { %v56_v9 = vld [vmem:[%s15513_s0 + $0x120] sm:$0xff]  ;;  %v6848_v10 = vpack.c.bf16 %v637_v8, %v636_v7  ;;  %v66_v11 = vld [vmem:[%s15513_s0 + $0x170] sm:$0xff]  ;;  %v639_v13 = vld [vmem:[%s15512_s1 + $0x158] sm:$0xff] }
  0x13   :  { %v638_v12 = vld [vmem:[%s15512_s1 + $0x150] sm:$0xff]  ;;  %v65_v14 = vld [vmem:[%s15513_s0 + $0x168] sm:$0xff]  ;;  %v640_v17 = vld [vmem:[%s15512_s1 + $0x160] sm:$0xff] }
  0x14   :  { %6801 = vmatpush1.bf16.msra.mxu0 %v6800_v16  ;;  %7127 = vmatpush1.bf16.msra.mxu1 %v6800_v16  ;;  %v6851_v15 = vpack.c.bf16 %v639_v13, %v638_v12  ;;  %v75_v16 = vld [vmem:[%s15513_s0 + $0x1b8] sm:$0xff]  ;;  %v641_v18 = vld [vmem:[%s15512_s1 + $0x168] sm:$0xff]  ;;  %v84_v21 = vld [vmem:[%s15513_s0 + $0x200] sm:$0xff] }
  0x15   :  { %6802 = vmatprep.subr.bf16.mxu0 %v8647_v0  ;;  %7112 = vmatprep.subr.bf16.mxu1 %v8647_v0  ;;  %v6854_v20 = vpack.c.bf16 %v641_v18, %v640_v17  ;;  %v643_v23 = vld [vmem:[%s15512_s1 + $0x178] sm:$0xff]  ;;  %v93_v26 = vld [vmem:[%s15513_s0 + $0x248] sm:$0xff]  ;;  %v644_v27 = vld [vmem:[%s15512_s1 + $0x180] sm:$0xff] }
  0x16   :  { %v83_v24 = vld [vmem:[%s15513_s0 + $0x1f8] sm:$0xff]  ;;  %v92_v29 = vld [vmem:[%s15513_s0 + $0x240] sm:$0xff]  ;;  %v646_v32 = vld [vmem:[%s15512_s1 + $0x190] sm:$0xff] }
  0x17   :  { %v647_v33 = vld [vmem:[%s15512_s1 + $0x198] sm:$0xff]  ;;  %v649_v38 = vld [vmem:[%s15512_s1 + $0x1a8] sm:$0xff]  ;;  %v110_v39 = vld [vmem:[%s15513_s0 + $0x2d0] sm:$0xff] }
  0x18   :  { %6804 = vmatpush1.bf16.msra.mxu0 %v6803_v19  ;;  %7128 = vmatpush1.bf16.msra.mxu1 %v6803_v19  ;;  %v74_v19 = vld [vmem:[%s15513_s0 + $0x1b0] sm:$0xff]  ;;  %v6863_v35 = vpack.c.bf16 %v647_v33, %v646_v32  ;;  %v111_v36 = vld [vmem:[%s15513_s0 + $0x2d8] sm:$0xff]  ;;  %v120_v41 = vld [vmem:[%s15513_s0 + $0x320] sm:$0xff] }
  0x19   :  { %6805 = vmatprep.subr.bf16.mxu0 %v8647_v0  ;;  %7113 = vmatprep.subr.bf16.mxu1 %v8647_v0  ;;  %v650_v42 = vld [vmem:[%s15512_s1 + $0x1b0] sm:$0xff]  ;;  %v119_v44 = vld [vmem:[%s15513_s0 + $0x318] sm:$0xff]  ;;  %v652_v47 = vld [vmem:[%s15512_s1 + $0x1c0] sm:$0xff] }
  0x1a   :  { %v653_v48 = vld [vmem:[%s15512_s1 + $0x1c8] sm:$0xff]  ;;  %v138_v51 = vld [vmem:[%s15513_s0 + $0x3b0] sm:$0xff]  ;;  %v147_v56 = vld [vmem:[%s15513_s0 + $0x3f8] sm:$0xff] }
  0x1b   :  { %v6872_v50 = vpack.c.bf16 %v653_v48, %v652_v47  ;;  %v156_v61 = vld [vmem:[%s15513_s0 + $0x440] sm:$0xff]  ;;  %v165_v3 = vld [vmem:[%s15513_s0 + $0x488] sm:$0xff]  ;;  %v183_v7 = vld [vmem:[%s15513_s0 + $0x518] sm:$0xff] }
  0x1c   :  { %6807 = vmatpush1.bf16.msra.mxu0 %v6806_v22  ;;  %7129 = vmatpush1.bf16.msra.mxu1 %v6806_v22  ;;  %v642_v22 = vld [vmem:[%s15512_s1 + $0x170] sm:$0xff]  ;;  %v200_v12 = vld [vmem:[%s15513_s0 + $0x5a0] sm:$0xff]  ;;  %v227_v18 = vld [vmem:[%s15513_s0 + $0x678] sm:$0xff] }
  0x1d   :  { %6808 = vmatprep.subr.bf16.mxu0 %v8647_v0  ;;  %7114 = vmatprep.subr.bf16.mxu1 %v8647_v0  ;;  %v182_v8 = vld [vmem:[%s15513_s0 + $0x510] sm:$0xff]  ;;  %v228_v17 = vld [vmem:[%s15513_s0 + $0x680] sm:$0xff]  ;;  %v665_v47 = vld [vmem:[%s15512_s1 + $0x228] sm:$0xff] }
  0x1e   :  { %v210_v13 = vld [vmem:[%s15513_s0 + $0x5f0] sm:$0xff]  ;;  %v300_v33 = vld [vmem:[%s15513_s0 + $0x8c0] sm:$0xff] }
  0x1f   :  { %v290_v32 = vld [vmem:[%s15513_s0 + $0x870] sm:$0xff]  ;;  %v40_v48 = vld [vmem:[%s15513_s0 + $0xa0] sm:$0xff] }
  0x20   :  { %6810 = vmatpush1.bf16.msra.mxu0 %v6809_v25  ;;  %7130 = vmatpush1.bf16.msra.mxu1 %v6809_v25  ;;  %v6857_v25 = vpack.c.bf16 %v643_v23, %v642_v22  ;;  %v245_v22 = vld [vmem:[%s15513_s0 + $0x708] sm:$0xff]  ;;  %v255_v23 = vld [vmem:[%s15513_s0 + $0x758] sm:$0xff] }
  0x21   :  { %6811 = vmatprep.subr.bf16.mxu0 %v8647_v0  ;;  %7115 = vmatprep.subr.bf16.mxu1 %v8647_v0 }
  0x24   :  { %6813 = vmatpush1.bf16.msra.mxu0 %v6812_v28  ;;  %7131 = vmatpush1.bf16.msra.mxu1 %v6812_v28  ;;  %v645_v28 = vld [vmem:[%s15512_s1 + $0x188] sm:$0xff] }
  0x25   :  { %6814 = vmatprep.subr.bf16.mxu0 %v8647_v0  ;;  %7116 = vmatprep.subr.bf16.mxu1 %v8647_v0  ;;  %v6860_v30 = vpack.c.bf16 %v645_v28, %v644_v27  ;;  %v273_v27 = vld [vmem:[%s15513_s0 + $0x7e8] sm:$0xff]  ;;  %v272_v28 = vld [vmem:[%s15513_s0 + $0x7e0] sm:$0xff] }
  0x28   :  { %6816 = vmatpush1.bf16.msra.mxu0 %v6815_v31  ;;  %7132 = vmatpush1.bf16.msra.mxu1 %v6815_v31  ;;  %v102_v31 = vld [vmem:[%s15513_s0 + $0x290] sm:$0xff] }
  0x29   :  { %6817 = vmatprep.subr.bf16.mxu0 %v8647_v0  ;;  %7117 = vmatprep.subr.bf16.mxu1 %v8647_v0 }
  0x2c   :  { %6819 = vmatpush1.bf16.msra.mxu0 %v6818_v34  ;;  %7133 = vmatpush1.bf16.msra.mxu1 %v6818_v34  ;;  %v101_v34 = vld [vmem:[%s15513_s0 + $0x288] sm:$0xff] }
  0x2d   :  { %6820 = vmatprep.subr.bf16.mxu0 %v8647_v0  ;;  %7118 = vmatprep.subr.bf16.mxu1 %v8647_v0 }
  0x30   :  { %6822 = vmatpush1.bf16.msra.mxu0 %v6821_v37  ;;  %7134 = vmatpush1.bf16.msra.mxu1 %v6821_v37  ;;  %v648_v37 = vld [vmem:[%s15512_s1 + $0x1a0] sm:$0xff] }
  0x31   :  { %6823 = vmatprep.subr.bf16.mxu0 %v8647_v0  ;;  %7119 = vmatprep.subr.bf16.mxu1 %v8647_v0 }
  0x34   :  { %6825 = vmatpush1.bf16.msra.mxu0 %v6824_v40  ;;  %7135 = vmatpush1.bf16.msra.mxu1 %v6824_v40  ;;  %v6866_v40 = vpack.c.bf16 %v649_v38, %v648_v37  ;;  %v661_v37 = vld [vmem:[%s15512_s1 + $0x208] sm:$0xff]  ;;  %v22_v38 = vld [vmem:[%s15513_s0 + $0x10] sm:$0xff] }
  0x35   :  { %6826 = vmatprep.subr.bf16.mxu0 %v8647_v0  ;;  %7120 = vmatprep.subr.bf16.mxu1 %v8647_v0 }
  0x38   :  { %6828 = vmatpush1.bf16.msra.mxu0 %v6827_v43  ;;  %7136 = vmatpush1.bf16.msra.mxu1 %v6827_v43  ;;  %v651_v43 = vld [vmem:[%s15512_s1 + $0x1b8] sm:$0xff] }
  0x39   :  { %6829 = vmatprep.subr.bf16.mxu0 %v8647_v0  ;;  %7121 = vmatprep.subr.bf16.mxu1 %v8647_v0  ;;  %v6869_v45 = vpack.c.bf16 %v651_v43, %v650_v42  ;;  %v663_v42 = vld [vmem:[%s15512_s1 + $0x218] sm:$0xff] }
  0x3a   :  { %v31_v43 = vld [vmem:[%s15513_s0 + $0x58] sm:$0xff] }
  0x3c   :  { %6831 = vmatpush1.bf16.msra.mxu0 %v6830_v46  ;;  %7137 = vmatpush1.bf16.msra.mxu1 %v6830_v46  ;;  %v129_v46 = vld [vmem:[%s15513_s0 + $0x368] sm:$0xff] }
  0x3d   :  { %6832 = vmatprep.subr.bf16.mxu0 %v8647_v0  ;;  %7122 = vmatprep.subr.bf16.mxu1 %v8647_v0 }
  0x40   :  { %6834 = vmatpush1.bf16.msra.mxu0 %v6833_v49  ;;  %7138 = vmatpush1.bf16.msra.mxu1 %v6833_v49  ;;  %v128_v49 = vld [vmem:[%s15513_s0 + $0x360] sm:$0xff] }
  0x41   :  { %6835 = vmatprep.subr.bf16.mxu0 %v8647_v0 }
  0x43   :  { %812 = vmatmul.mubr.f32.vlgmr.msra.gmra.mrb[0].mxu0 %v20_v52  ;;  %v654_v52 = vld [vmem:[%s15512_s1 + $0x1d0] sm:$0xff] }
  0x44   :  { %6837 = vmatpush1.bf16.msra.mxu0 %v6836_v53  ;;  %816 = vmatprep.mubr.f32.mxu0 %v30_v54  ;;  %v655_v53 = vld [vmem:[%s15512_s1 + $0x1d8] sm:$0xff]  ;;  %v137_v54 = vld [vmem:[%s15513_s0 + $0x3a8] sm:$0xff] }
  0x45   :  { %6838 = vmatprep.subr.bf16.mxu0 %v8647_v0  ;;  %v6875_v55 = vpack.c.bf16 %v655_v53, %v654_v52  ;;  %v667_v52 = vld [vmem:[%s15512_s1 + $0x238] sm:$0xff]  ;;  %v49_v53 = vld [vmem:[%s15513_s0 + $0xe8] sm:$0xff] }
  0x47   :  { %817 = vmatmul.mubr.f32.gmra.mrb[2].mxu0 %v29_v57  ;;  %v656_v57 = vld [vmem:[%s15512_s1 + $0x1e0] sm:$0xff] }
  0x48   :  { %821 = vmatprep.mubr.f32.mxu0 %v39_v59  ;;  %6840 = vmatpush1.bf16.msra.mxu0 %v6839_v58  ;;  %v657_v58 = vld [vmem:[%s15512_s1 + $0x1e8] sm:$0xff]  ;;  %v146_v59 = vld [vmem:[%s15513_s0 + $0x3f0] sm:$0xff] }
  0x49   :  { %6841 = vmatprep.subr.bf16.mxu0 %v8647_v0  ;;  %v6878_v60 = vpack.c.bf16 %v657_v58, %v656_v57  ;;  %v669_v57 = vld [vmem:[%s15512_s1 + $0x248] sm:$0xff]  ;;  %v58_v58 = vld [vmem:[%s15513_s0 + $0x130] sm:$0xff] }
  0x4b   :  { %822 = vmatmul.mubr.f32.gmra.mrb[4].mxu0 %v38_v62  ;;  %v658_v62 = vld [vmem:[%s15512_s1 + $0x1f0] sm:$0xff] }
  0x4c   :  { %826 = vmatprep.mubr.f32.mxu0 %v48_v1  ;;  %6843 = vmatpush1.bf16.msra.mxu0 %v6842_v63  ;;  %v659_v63 = vld [vmem:[%s15512_s1 + $0x1f8] sm:$0xff] }
  0x4d   :  { %6844 = vmatprep.subr.bf16.mxu0 %v8647_v0  ;;  %v155_v1 = vld [vmem:[%s15513_s0 + $0x438] sm:$0xff]  ;;  %v6881_v2 = vpack.c.bf16 %v659_v63, %v658_v62 }
  0x4e   :  { %v671_v62 = vld [vmem:[%s15512_s1 + $0x258] sm:$0xff] }
  0x4f   :  { %827 = vmatmul.mubr.f32.gmra.mrb[6].mxu0 %v47_v4  ;;  %v164_v4 = vld [vmem:[%s15513_s0 + $0x480] sm:$0xff]  ;;  %v67_v63 = vld [vmem:[%s15513_s0 + $0x178] sm:$0xff] }
  0x50   :  { %831 = vmatprep.mubr.f32.mxu0 %v57_v6  ;;  %6846 = vmatpush1.bf16.msra.mxu0 %v6845_v5  ;;  %v174_v5 = vld [vmem:[%s15513_s0 + $0x4d0] sm:$0xff]  ;;  %v173_v6 = vld [vmem:[%s15513_s0 + $0x4c8] sm:$0xff] }
  0x51   :  { %6847 = vmatprep.subr.bf16.mxu0 %v8647_v0 }
  0x53   :  { %832 = vmatmul.mubr.f32.gmra.mrb[8].mxu0 %v56_v9  ;;  %v192_v9 = vld [vmem:[%s15513_s0 + $0x560] sm:$0xff] }
  0x54   :  { %836 = vmatprep.mubr.f32.mxu0 %v66_v11  ;;  %6849 = vmatpush1.bf16.msra.mxu0 %v6848_v10  ;;  %v191_v10 = vld [vmem:[%s15513_s0 + $0x558] sm:$0xff]  ;;  %v201_v11 = vld [vmem:[%s15513_s0 + $0x5a8] sm:$0xff] }
  0x55   :  { %6850 = vmatprep.subr.bf16.mxu0 %v8647_v0 }
  0x57   :  { %837 = vmatmul.mubr.f32.gmra.mrb[10].mxu0 %v65_v14  ;;  %v209_v14 = vld [vmem:[%s15513_s0 + $0x5e8] sm:$0xff] }
  0x58   :  { %841 = vmatprep.mubr.f32.mxu0 %v75_v16  ;;  %6852 = vmatpush1.bf16.msra.mxu0 %v6851_v15  ;;  %v219_v15 = vld [vmem:[%s15513_s0 + $0x638] sm:$0xff]  ;;  %v218_v16 = vld [vmem:[%s15513_s0 + $0x630] sm:$0xff] }
  0x59   :  { %6853 = vmatprep.subr.bf16.mxu0 %v8647_v0 }
  0x5b   :  { %842 = vmatmul.mubr.f32.gmra.mrb[12].mxu0 %v74_v19  ;;  %v237_v19 = vld [vmem:[%s15513_s0 + $0x6c8] sm:$0xff] }
  0x5c   :  { %846 = vmatprep.mubr.f32.mxu0 %v84_v21  ;;  %6855 = vmatpush1.bf16.msra.mxu0 %v6854_v20  ;;  %v236_v20 = vld [vmem:[%s15513_s0 + $0x6c0] sm:$0xff]  ;;  %v246_v21 = vld [vmem:[%s15513_s0 + $0x710] sm:$0xff] }
  0x5d   :  { %6856 = vmatprep.subr.bf16.mxu0 %v8647_v0 }
  0x5f   :  { %847 = vmatmul.mubr.f32.gmra.mrb[14].mxu0 %v83_v24  ;;  %v254_v24 = vld [vmem:[%s15513_s0 + $0x750] sm:$0xff] }
  0x60   :  { %851 = vmatprep.mubr.f32.mxu0 %v93_v26  ;;  %6858 = vmatpush1.bf16.msra.mxu0 %v6857_v25  ;;  %v264_v25 = vld [vmem:[%s15513_s0 + $0x7a0] sm:$0xff]  ;;  %v263_v26 = vld [vmem:[%s15513_s0 + $0x798] sm:$0xff] }
  0x61   :  { %6859 = vmatprep.subr.bf16.mxu0 %v8647_v0 }
  0x63   :  { %852 = vmatmul.mubr.f32.gmra.mrb[16].mxu0 %v92_v29  ;;  %v282_v29 = vld [vmem:[%s15513_s0 + $0x830] sm:$0xff] }
  0x64   :  { %856 = vmatprep.mubr.f32.mxu0 %v102_v31  ;;  %6861 = vmatpush1.bf16.msra.mxu0 %v6860_v30  ;;  %v281_v30 = vld [vmem:[%s15513_s0 + $0x828] sm:$0xff]  ;;  %v291_v31 = vld [vmem:[%s15513_s0 + $0x878] sm:$0xff] }
  0x65   :  { %6862 = vmatprep.subr.bf16.mxu0 %v8647_v0 }
  0x67   :  { %857 = vmatmul.mubr.f32.gmra.mrb[18].mxu0 %v101_v34  ;;  %v299_v34 = vld [vmem:[%s15513_s0 + $0x8b8] sm:$0xff] }
  0x68   :  { %861 = vmatprep.mubr.f32.mxu0 %v111_v36  ;;  %6864 = vmatpush1.bf16.msra.mxu0 %v6863_v35  ;;  %v23_v35 = vld [vmem:[%s15513_s0 + $0x18] sm:$0xff]  ;;  %v660_v36 = vld [vmem:[%s15512_s1 + $0x200] sm:$0xff] }
  0x69   :  { %6865 = vmatprep.subr.bf16.mxu0 %v8647_v0 }
  0x6b   :  { %862 = vmatmul.mubr.f32.gmra.mrb[20].mxu0 %v110_v39  ;;  %v6884_v39 = vpack.c.bf16 %v661_v37, %v660_v36  ;;  %v149_v36 = vld [vmem:[%s15513_s0 + $0x408] sm:$0xff]  ;;  %v148_v37 = vld [vmem:[%s15513_s0 + $0x400] sm:$0xff] }
  0x6c   :  { %866 = vmatprep.mubr.f32.mxu0 %v120_v41  ;;  %6867 = vmatpush1.bf16.msra.mxu0 %v6866_v40  ;;  %v32_v40 = vld [vmem:[%s15513_s0 + $0x60] sm:$0xff]  ;;  %v662_v41 = vld [vmem:[%s15512_s1 + $0x210] sm:$0xff] }
  0x6d   :  { %6868 = vmatprep.subr.bf16.mxu0 %v8647_v0 }
  0x6f   :  { %867 = vmatmul.mubr.f32.gmra.mrb[22].mxu0 %v119_v44  ;;  %v6887_v44 = vpack.c.bf16 %v663_v42, %v662_v41  ;;  %v166_v41 = vld [vmem:[%s15513_s0 + $0x490] sm:$0xff]  ;;  %v176_v42 = vld [vmem:[%s15513_s0 + $0x4e0] sm:$0xff] }
  0x70   :  { %871 = vmatprep.mubr.f32.mxu0 %v129_v46  ;;  %6870 = vmatpush1.bf16.msra.mxu0 %v6869_v45  ;;  %v41_v45 = vld [vmem:[%s15513_s0 + $0xa8] sm:$0xff]  ;;  %v664_v46 = vld [vmem:[%s15512_s1 + $0x220] sm:$0xff] }
  0x71   :  { %6871 = vmatprep.subr.bf16.mxu0 %v8647_v0 }
  0x73   :  { %872 = vmatmul.mubr.f32.gmra.mrb[24].mxu0 %v128_v49  ;;  %v6890_v49 = vpack.c.bf16 %v665_v47, %v664_v46  ;;  %v185_v47 = vld [vmem:[%s15513_s0 + $0x528] sm:$0xff] }
  0x74   :  { %876 = vmatprep.mubr.f32.mxu0 %v138_v51  ;;  %6873 = vmatpush1.bf16.msra.mxu0 %v6872_v50  ;;  %v50_v50 = vld [vmem:[%s15513_s0 + $0xf0] sm:$0xff] }
  0x75   :  { %6874 = vmatprep.subr.bf16.mxu0 %v8647_v0  ;;  %v666_v51 = vld [vmem:[%s15512_s1 + $0x230] sm:$0xff] }
  0x77   :  { %877 = vmatmul.mubr.f32.gmra.mrb[26].mxu0 %v137_v54  ;;  %v6893_v54 = vpack.c.bf16 %v667_v52, %v666_v51  ;;  %v203_v51 = vld [vmem:[%s15513_s0 + $0x5b8] sm:$0xff]  ;;  %v202_v52 = vld [vmem:[%s15513_s0 + $0x5b0] sm:$0xff] }
  0x78   :  { %881 = vmatprep.mubr.f32.mxu0 %v147_v56  ;;  %6876 = vmatpush1.bf16.msra.mxu0 %v6875_v55  ;;  %v59_v55 = vld [vmem:[%s15513_s0 + $0x138] sm:$0xff]  ;;  %v668_v56 = vld [vmem:[%s15512_s1 + $0x240] sm:$0xff] }
  0x79   :  { %6877 = vmatprep.subr.bf16.mxu0 %v8647_v0 }
  0x7b   :  { %882 = vmatmul.mubr.f32.gmra.mrb[28].mxu0 %v146_v59  ;;  %v6896_v59 = vpack.c.bf16 %v669_v57, %v668_v56  ;;  %v211_v56 = vld [vmem:[%s15513_s0 + $0x5f8] sm:$0xff] }
  0x7c   :  { %886 = vmatprep.mubr.f32.mxu0 %v156_v61  ;;  %6879 = vmatpush1.bf16.msra.mxu0 %v6878_v60  ;;  %v68_v60 = vld [vmem:[%s15513_s0 + $0x180] sm:$0xff]  ;;  %v670_v61 = vld [vmem:[%s15512_s1 + $0x250] sm:$0xff] }
  0x7d   :  { %6880 = vmatprep.subr.bf16.mxu0 %v8647_v0 }
  0x7f   :  { %887 = vmatmul.mubr.f32.gmra.mrb[30].mxu0 %v155_v1  ;;  %v6899_v1 = vpack.c.bf16 %v671_v62, %v670_v61  ;;  %v229_v61 = vld [vmem:[%s15513_s0 + $0x688] sm:$0xff]  ;;  %v239_v62 = vld [vmem:[%s15513_s0 + $0x6d8] sm:$0xff] }
  0x80   :  { %891 = vmatprep.mubr.f32.mxu0 %v165_v3  ;;  %6882 = vmatpush1.bf16.msra.mxu0 %v6881_v2  ;;  %v77_v2 = vld [vmem:[%s15513_s0 + $0x1c8] sm:$0xff]  ;;  %v672_v3 = vld [vmem:[%s15512_s1 + $0x260] sm:$0xff] }
  0x81   :  { %6883 = vmatprep.subr.bf16.mxu0 %v8647_v0 }
  0x83   :  { %892 = vmatmul.mubr.f32.gmra.mrb[32].mxu0 %v164_v4  ;;  %v673_v4 = vld [vmem:[%s15512_s1 + $0x268] sm:$0xff] }
  0x84   :  { %896 = vmatprep.mubr.f32.mxu0 %v174_v5  ;;  %v76_v5 = vld [vmem:[%s15513_s0 + $0x1c0] sm:$0xff] }
  0x87   :  { %897 = vmatmul.mubr.f32.gmra.mrb[34].mxu0 %v173_v6  ;;  %v6902_v6 = vpack.c.bf16 %v673_v4, %v672_v3  ;;  %v689_v3 = vld [vmem:[%s15512_s1 + $0x2e8] sm:$0xff]  ;;  %v247_v4 = vld [vmem:[%s15513_s0 + $0x718] sm:$0xff] }
  0x88   :  { %901 = vmatprep.mubr.f32.mxu0 %v183_v7  ;;  %v86_v7 = vld [vmem:[%s15513_s0 + $0x210] sm:$0xff] }
  0x8b   :  { %902 = vmatmul.mubr.f32.gmra.mrb[36].mxu0 %v182_v8  ;;  %v674_v8 = vld [vmem:[%s15512_s1 + $0x270] sm:$0xff] }
  0x8c   :  { %906 = vmatprep.mubr.f32.mxu0 %v192_v9  ;;  %v675_v9 = vld [vmem:[%s15512_s1 + $0x278] sm:$0xff] }
  0x8f   :  { %907 = vmatmul.mubr.f32.gmra.mrb[38].mxu0 %v191_v10  ;;  %v85_v10 = vld [vmem:[%s15513_s0 + $0x208] sm:$0xff] }
  0x90   :  { %911 = vmatprep.mubr.f32.mxu0 %v201_v11  ;;  %v6905_v11 = vpack.c.bf16 %v675_v9, %v674_v8  ;;  %v266_v8 = vld [vmem:[%s15513_s0 + $0x7b0] sm:$0xff]  ;;  %v265_v9 = vld [vmem:[%s15513_s0 + $0x7a8] sm:$0xff] }
  0x93   :  { %912 = vmatmul.mubr.f32.gmra.mrb[40].mxu0 %v200_v12  ;;  %v95_v12 = vld [vmem:[%s15513_s0 + $0x258] sm:$0xff] }
  0x94   :  { %916 = vmatprep.mubr.f32.mxu0 %v210_v13  ;;  %v676_v13 = vld [vmem:[%s15512_s1 + $0x280] sm:$0xff] }
  0x97   :  { %917 = vmatmul.mubr.f32.gmra.mrb[42].mxu0 %v209_v14  ;;  %v677_v14 = vld [vmem:[%s15512_s1 + $0x288] sm:$0xff] }
  0x98   :  { %921 = vmatprep.mubr.f32.mxu0 %v219_v15  ;;  %v94_v15 = vld [vmem:[%s15513_s0 + $0x250] sm:$0xff] }
  0x9b   :  { %922 = vmatmul.mubr.f32.gmra.mrb[44].mxu0 %v218_v16  ;;  %v6908_v16 = vpack.c.bf16 %v677_v14, %v676_v13  ;;  %v690_v13 = vld [vmem:[%s15512_s1 + $0x2f0] sm:$0xff]  ;;  %v691_v14 = vld [vmem:[%s15512_s1 + $0x2f8] sm:$0xff] }
  0x9c   :  { %926 = vmatprep.mubr.f32.mxu0 %v228_v17  ;;  %v104_v17 = vld [vmem:[%s15513_s0 + $0x2a0] sm:$0xff] }
  0x9f   :  { %927 = vmatmul.mubr.f32.gmra.mrb[46].mxu0 %v227_v18  ;;  %v678_v18 = vld [vmem:[%s15512_s1 + $0x290] sm:$0xff] }
  0xa0   :  { %931 = vmatprep.mubr.f32.mxu0 %v237_v19  ;;  %v679_v19 = vld [vmem:[%s15512_s1 + $0x298] sm:$0xff] }
  0xa3   :  { %932 = vmatmul.mubr.f32.gmra.mrb[48].mxu0 %v236_v20  ;;  %v103_v20 = vld [vmem:[%s15513_s0 + $0x298] sm:$0xff] }
  0xa4   :  { %936 = vmatprep.mubr.f32.mxu0 %v246_v21  ;;  %v6911_v21 = vpack.c.bf16 %v679_v19, %v678_v18  ;;  %v292_v18 = vld [vmem:[%s15513_s0 + $0x880] sm:$0xff]  ;;  %v302_v19 = vld [vmem:[%s15513_s0 + $0x8d0] sm:$0xff] }
  0xa7   :  { %937 = vmatmul.mubr.f32.gmra.mrb[50].mxu0 %v245_v22  ;;  %v113_v22 = vld [vmem:[%s15513_s0 + $0x2e8] sm:$0xff] }
  0xa8   :  { %941 = vmatprep.mubr.f32.mxu0 %v255_v23  ;;  %v680_v23 = vld [vmem:[%s15512_s1 + $0x2a0] sm:$0xff] }
  0xab   :  { %942 = vmatmul.mubr.f32.gmra.mrb[52].mxu0 %v254_v24  ;;  %v681_v24 = vld [vmem:[%s15512_s1 + $0x2a8] sm:$0xff] }
  0xac   :  { %946 = vmatprep.mubr.f32.mxu0 %v264_v25  ;;  %v112_v25 = vld [vmem:[%s15513_s0 + $0x2e0] sm:$0xff] }
  0xaf   :  { %947 = vmatmul.mubr.f32.gmra.mrb[54].mxu0 %v263_v26  ;;  %v6914_v26 = vpack.c.bf16 %v681_v24, %v680_v23  ;;  %v320_v23 = vld [vmem:[%s15513_s0 + $0x960] sm:$0xff]  ;;  %v319_v24 = vld [vmem:[%s15513_s0 + $0x958] sm:$0xff] }
  0xb0   :  { %951 = vmatprep.mubr.f32.mxu0 %v273_v27  ;;  %v122_v27 = vld [vmem:[%s15513_s0 + $0x330] sm:$0xff] }
  0xb3   :  { %952 = vmatmul.mubr.f32.gmra.mrb[56].mxu0 %v272_v28  ;;  %v121_v28 = vld [vmem:[%s15513_s0 + $0x328] sm:$0xff] }
  0xb4   :  { %956 = vmatprep.mubr.f32.mxu0 %v282_v29  ;;  %v131_v29 = vld [vmem:[%s15513_s0 + $0x378] sm:$0xff] }
  0xb7   :  { %957 = vmatmul.mubr.f32.gmra.mrb[58].mxu0 %v281_v30  ;;  %v130_v30 = vld [vmem:[%s15513_s0 + $0x370] sm:$0xff] }
  0xb8   :  { %961 = vmatprep.mubr.f32.mxu0 %v291_v31  ;;  %v140_v31 = vld [vmem:[%s15513_s0 + $0x3c0] sm:$0xff] }
  0xbb   :  { %962 = vmatmul.mubr.f32.gmra.mrb[60].mxu0 %v290_v32  ;;  %v682_v32 = vld [vmem:[%s15512_s1 + $0x2b0] sm:$0xff] }
  0xbc   :  { %966 = vmatprep.mubr.f32.mxu0 %v300_v33  ;;  %v683_v33 = vld [vmem:[%s15512_s1 + $0x2b8] sm:$0xff] }
  0xbf   :  { %967 = vmatmul.mubr.f32.gmra.mrb[62].mxu0 %v299_v34  ;;  %v139_v34 = vld [vmem:[%s15513_s0 + $0x3b8] sm:$0xff] }
  0xc0   :  { %1196 = vmatprep.mubr.f32.mxu0 %v23_v35  ;;  %v6917_v35 = vpack.c.bf16 %v683_v33, %v682_v32  ;;  %v355_v32 = vld [vmem:[%s15513_s0 + $0xa78] sm:$0xff]  ;;  %v365_v33 = vld [vmem:[%s15513_s0 + $0xac8] sm:$0xff] }
  0xc3   :  { %1197 = vmatmul.mubr.f32.vlgmr.msra.gmra.mrb[0].mxu0 %v22_v38  ;;  %v158_v38 = vld [vmem:[%s15513_s0 + $0x450] sm:$0xff] }
  0xc4   :  { %6885 = vmatpush1.bf16.msra.mxu0 %v6884_v39  ;;  %1201 = vmatprep.mubr.f32.mxu0 %v32_v40  ;;  %v157_v39 = vld [vmem:[%s15513_s0 + $0x448] sm:$0xff]  ;;  %v167_v40 = vld [vmem:[%s15513_s0 + $0x498] sm:$0xff] }
  0xc5   :  { %6886 = vmatprep.subr.bf16.mxu0 %v8647_v0 }
  0xc7   :  { %1202 = vmatmul.mubr.f32.gmra.mrb[2].mxu0 %v31_v43  ;;  %v684_v43 = vld [vmem:[%s15512_s1 + $0x2c0] sm:$0xff] }
  0xc8   :  { %1206 = vmatprep.mubr.f32.mxu0 %v41_v45  ;;  %6888 = vmatpush1.bf16.msra.mxu0 %v6887_v44  ;;  %v685_v44 = vld [vmem:[%s15512_s1 + $0x2c8] sm:$0xff]  ;;  %v175_v45 = vld [vmem:[%s15513_s0 + $0x4d8] sm:$0xff] }
  0xc9   :  { %6889 = vmatprep.subr.bf16.mxu0 %v8647_v0  ;;  %v6920_v46 = vpack.c.bf16 %v685_v44, %v684_v43  ;;  %v410_v43 = vld [vmem:[%s15513_s0 + $0xc30] sm:$0xff]  ;;  %v409_v44 = vld [vmem:[%s15513_s0 + $0xc28] sm:$0xff] }
  0xcb   :  { %1207 = vmatmul.mubr.f32.gmra.mrb[4].mxu0 %v40_v48  ;;  %v184_v48 = vld [vmem:[%s15513_s0 + $0x520] sm:$0xff] }
  0xcc   :  { %1211 = vmatprep.mubr.f32.mxu0 %v50_v50  ;;  %6891 = vmatpush1.bf16.msra.mxu0 %v6890_v49  ;;  %v194_v49 = vld [vmem:[%s15513_s0 + $0x570] sm:$0xff]  ;;  %v193_v50 = vld [vmem:[%s15513_s0 + $0x568] sm:$0xff] }
  0xcd   :  { %6892 = vmatprep.subr.bf16.mxu0 %v8647_v0 }
  0xcf   :  { %1212 = vmatmul.mubr.f32.gmra.mrb[6].mxu0 %v49_v53  ;;  %v212_v53 = vld [vmem:[%s15513_s0 + $0x600] sm:$0xff] }
  0xd0   :  { %1216 = vmatprep.mubr.f32.mxu0 %v59_v55  ;;  %6894 = vmatpush1.bf16.msra.mxu0 %v6893_v54  ;;  %v686_v54 = vld [vmem:[%s15512_s1 + $0x2d0] sm:$0xff]  ;;  %v687_v55 = vld [vmem:[%s15512_s1 + $0x2d8] sm:$0xff] }
  0xd1   :  { %6895 = vmatprep.subr.bf16.mxu0 %v8647_v0  ;;  %v6923_v57 = vpack.c.bf16 %v687_v55, %v686_v54  ;;  %v454_v54 = vld [vmem:[%s15513_s0 + $0xd90] sm:$0xff]  ;;  %v464_v55 = vld [vmem:[%s15513_s0 + $0xde0] sm:$0xff] }
  0xd3   :  { %1217 = vmatmul.mubr.f32.gmra.mrb[8].mxu0 %v58_v58  ;;  %v221_v58 = vld [vmem:[%s15513_s0 + $0x648] sm:$0xff] }
  0xd4   :  { %1221 = vmatprep.mubr.f32.mxu0 %v68_v60  ;;  %6897 = vmatpush1.bf16.msra.mxu0 %v6896_v59  ;;  %v220_v59 = vld [vmem:[%s15513_s0 + $0x640] sm:$0xff]  ;;  %v230_v60 = vld [vmem:[%s15513_s0 + $0x690] sm:$0xff] }
  0xd5   :  { %6898 = vmatprep.subr.bf16.mxu0 %v8647_v0 }
  0xd7   :  { %1222 = vmatmul.mubr.f32.gmra.mrb[10].mxu0 %v67_v63  ;;  %v238_v63 = vld [vmem:[%s15513_s0 + $0x6d0] sm:$0xff] }
  0xd8   :  { %1226 = vmatprep.mubr.f32.mxu0 %v77_v2  ;;  %6900 = vmatpush1.bf16.msra.mxu0 %v6899_v1  ;;  %v248_v1 = vld [vmem:[%s15513_s0 + $0x720] sm:$0xff] }
  0xd9   :  { %6901 = vmatprep.subr.bf16.mxu0 %v8647_v0  ;;  %v688_v2 = vld [vmem:[%s15512_s1 + $0x2e0] sm:$0xff] }
  0xdb   :  { %1227 = vmatmul.mubr.f32.gmra.mrb[12].mxu0 %v76_v5  ;;  %v6926_v5 = vpack.c.bf16 %v689_v3, %v688_v2  ;;  %v509_v2 = vld [vmem:[%s15513_s0 + $0xf48] sm:$0xff]  ;;  %v508_v3 = vld [vmem:[%s15513_s0 + $0xf40] sm:$0xff] }
  0xdc   :  { %1231 = vmatprep.mubr.f32.mxu0 %v86_v7  ;;  %6903 = vmatpush1.bf16.msra.mxu0 %v6902_v6  ;;  %v257_v6 = vld [vmem:[%s15513_s0 + $0x768] sm:$0xff]  ;;  %v256_v7 = vld [vmem:[%s15513_s0 + $0x760] sm:$0xff] }
  0xdd   :  { %6904 = vmatprep.subr.bf16.mxu0 %v8647_v0 }
  0xdf   :  { %1232 = vmatmul.mubr.f32.gmra.mrb[14].mxu0 %v85_v10  ;;  %v275_v10 = vld [vmem:[%s15513_s0 + $0x7f8] sm:$0xff] }
  0xe0   :  { %1236 = vmatprep.mubr.f32.mxu0 %v95_v12  ;;  %6906 = vmatpush1.bf16.msra.mxu0 %v6905_v11  ;;  %v274_v11 = vld [vmem:[%s15513_s0 + $0x7f0] sm:$0xff]  ;;  %v284_v12 = vld [vmem:[%s15513_s0 + $0x840] sm:$0xff] }
  0xe1   :  { %6907 = vmatprep.subr.bf16.mxu0 %v8647_v0 }
  0xe3   :  { %1237 = vmatmul.mubr.f32.gmra.mrb[16].mxu0 %v94_v15  ;;  %v283_v15 = vld [vmem:[%s15513_s0 + $0x838] sm:$0xff] }
  0xe4   :  { %1241 = vmatprep.mubr.f32.mxu0 %v104_v17  ;;  %6909 = vmatpush1.bf16.msra.mxu0 %v6908_v16  ;;  %v6929_v16 = vpack.c.bf16 %v691_v14, %v690_v13  ;;  %v293_v17 = vld [vmem:[%s15513_s0 + $0x888] sm:$0xff]  ;;  %v563_v14 = vld [vmem:[%s15513_s0 + $0x10f8] sm:$0xff] }
  0xe5   :  { %6910 = vmatprep.subr.bf16.mxu0 %v8647_v0  ;;  %v553_v13 = vld [vmem:[%s15513_s0 + $0x10a8] sm:$0xff] }
  0xe7   :  { %1242 = vmatmul.mubr.f32.gmra.mrb[18].mxu0 %v103_v20  ;;  %v301_v20 = vld [vmem:[%s15513_s0 + $0x8c8] sm:$0xff] }
  0xe8   :  { %1246 = vmatprep.mubr.f32.mxu0 %v113_v22  ;;  %6912 = vmatpush1.bf16.msra.mxu0 %v6911_v21  ;;  %v311_v21 = vld [vmem:[%s15513_s0 + $0x918] sm:$0xff]  ;;  %v310_v22 = vld [vmem:[%s15513_s0 + $0x910] sm:$0xff] }
  0xe9   :  { %6913 = vmatprep.subr.bf16.mxu0 %v8647_v0 }
  0xeb   :  { %1247 = vmatmul.mubr.f32.gmra.mrb[20].mxu0 %v112_v25  ;;  %v329_v25 = vld [vmem:[%s15513_s0 + $0x9a8] sm:$0xff] }
  0xec   :  { %1251 = vmatprep.mubr.f32.mxu0 %v122_v27  ;;  %6915 = vmatpush1.bf16.msra.mxu0 %v6914_v26  ;;  %v328_v26 = vld [vmem:[%s15513_s0 + $0x9a0] sm:$0xff]  ;;  %v338_v27 = vld [vmem:[%s15513_s0 + $0x9f0] sm:$0xff] }
  0xed   :  { %6916 = vmatprep.subr.bf16.mxu0 %v8647_v0 }
  0xef   :  { %1252 = vmatmul.mubr.f32.gmra.mrb[22].mxu0 %v121_v28  ;;  %v337_v28 = vld [vmem:[%s15513_s0 + $0x9e8] sm:$0xff] }
  0xf0   :  { %1256 = vmatprep.mubr.f32.mxu0 %v131_v29  ;;  %6918 = vmatpush1.bf16.msra.mxu0 %v6917_v35  ;;  %v347_v29 = vld [vmem:[%s15513_s0 + $0xa38] sm:$0xff]  ;;  %v374_v35 = vld [vmem:[%s15513_s0 + $0xb10] sm:$0xff] }
  0xf1   :  { %6919 = vmatprep.subr.bf16.mxu0 %v8647_v0 }
  0xf3   :  { %1257 = vmatmul.mubr.f32.gmra.mrb[24].mxu0 %v130_v30  ;;  %v346_v30 = vld [vmem:[%s15513_s0 + $0xa30] sm:$0xff] }
  0xf4   :  { %1261 = vmatprep.mubr.f32.mxu0 %v140_v31  ;;  %6921 = vmatpush1.bf16.msra.mxu0 %v6920_v46  ;;  %v356_v31 = vld [vmem:[%s15513_s0 + $0xa80] sm:$0xff]  ;;  %v418_v46 = vld [vmem:[%s15513_s0 + $0xc70] sm:$0xff] }
  0xf5   :  { %6922 = vmatprep.subr.bf16.mxu0 %v8647_v0 }
  0xf7   :  { %1262 = vmatmul.mubr.f32.gmra.mrb[26].mxu0 %v139_v34  ;;  %v364_v34 = vld [vmem:[%s15513_s0 + $0xac0] sm:$0xff] }
  0xf8   :  { %1266 = vmatprep.mubr.f32.mxu0 %v149_v36  ;;  %6924 = vmatpush1.bf16.msra.mxu0 %v6923_v57  ;;  %v373_v36 = vld [vmem:[%s15513_s0 + $0xb08] sm:$0xff] }
  0xf9   :  { %6925 = vmatprep.subr.bf16.mxu0 %v8647_v0  ;;  %v473_v57 = vld [vmem:[%s15513_s0 + $0xe28] sm:$0xff] }
  0xfb   :  { %1267 = vmatmul.mubr.f32.gmra.mrb[28].mxu0 %v148_v37  ;;  %v383_v37 = vld [vmem:[%s15513_s0 + $0xb58] sm:$0xff] }
  0xfc   :  { %1271 = vmatprep.mubr.f32.mxu0 %v158_v38  ;;  %6927 = vmatpush1.bf16.msra.mxu0 %v6926_v5  ;;  %v382_v38 = vld [vmem:[%s15513_s0 + $0xb50] sm:$0xff]  ;;  %v517_v5 = vld [vmem:[%s15513_s0 + $0xf88] sm:$0xff] }
  0xfd   :  { %6928 = vmatprep.subr.bf16.mxu0 %v8647_v0 }
  0xff   :  { %1272 = vmatmul.mubr.f32.gmra.mrb[30].mxu0 %v157_v39  ;;  %v392_v39 = vld [vmem:[%s15513_s0 + $0xba0] sm:$0xff] }
 0x100   :  { %1276 = vmatprep.mubr.f32.mxu0 %v167_v40  ;;  %6930 = vmatpush1.bf16.msra.mxu0 %v6929_v16  ;;  %v391_v40 = vld [vmem:[%s15513_s0 + $0xb98] sm:$0xff]  ;;  %v572_v16 = vld [vmem:[%s15513_s0 + $0x1140] sm:$0xff] }
 0x101   :  { %6931 = vmatprep.subr.bf16.mxu0 %v8647_v0 }
 0x103   :  { %1277 = vmatmul.mubr.f32.gmra.mrb[32].mxu0 %v166_v41  ;;  %v401_v41 = vld [vmem:[%s15513_s0 + $0xbe8] sm:$0xff] }
 0x104   :  { %1281 = vmatprep.mubr.f32.mxu0 %v176_v42  ;;  %v400_v42 = vld [vmem:[%s15513_s0 + $0xbe0] sm:$0xff] }
 0x107   :  { %1282 = vmatmul.mubr.f32.gmra.mrb[34].mxu0 %v175_v45  ;;  %v419_v45 = vld [vmem:[%s15513_s0 + $0xc78] sm:$0xff] }
 0x108   :  { %1286 = vmatprep.mubr.f32.mxu0 %v185_v47  ;;  %v428_v47 = vld [vmem:[%s15513_s0 + $0xcc0] sm:$0xff] }
 0x10b   :  { %1287 = vmatmul.mubr.f32.gmra.mrb[36].mxu0 %v184_v48  ;;  %v427_v48 = vld [vmem:[%s15513_s0 + $0xcb8] sm:$0xff] }
 0x10c   :  { %1291 = vmatprep.mubr.f32.mxu0 %v194_v49  ;;  %v437_v49 = vld [vmem:[%s15513_s0 + $0xd08] sm:$0xff] }
 0x10f   :  { %1292 = vmatmul.mubr.f32.gmra.mrb[38].mxu0 %v193_v50  ;;  %v436_v50 = vld [vmem:[%s15513_s0 + $0xd00] sm:$0xff] }
 0x110   :  { %1296 = vmatprep.mubr.f32.mxu0 %v203_v51  ;;  %v446_v51 = vld [vmem:[%s15513_s0 + $0xd50] sm:$0xff] }
 0x113   :  { %1297 = vmatmul.mubr.f32.gmra.mrb[40].mxu0 %v202_v52  ;;  %v445_v52 = vld [vmem:[%s15513_s0 + $0xd48] sm:$0xff] }
 0x114   :  { %1301 = vmatprep.mubr.f32.mxu0 %v212_v53  ;;  %v455_v53 = vld [vmem:[%s15513_s0 + $0xd98] sm:$0xff] }
 0x117   :  { %1302 = vmatmul.mubr.f32.gmra.mrb[42].mxu0 %v211_v56  ;;  %v463_v56 = vld [vmem:[%s15513_s0 + $0xdd8] sm:$0xff] }
 0x118   :  { %1306 = vmatprep.mubr.f32.mxu0 %v221_v58  ;;  %v472_v58 = vld [vmem:[%s15513_s0 + $0xe20] sm:$0xff] }
 0x11b   :  { %1307 = vmatmul.mubr.f32.gmra.mrb[44].mxu0 %v220_v59  ;;  %v482_v59 = vld [vmem:[%s15513_s0 + $0xe70] sm:$0xff] }
 0x11c   :  { %1311 = vmatprep.mubr.f32.mxu0 %v230_v60  ;;  %v481_v60 = vld [vmem:[%s15513_s0 + $0xe68] sm:$0xff] }
 0x11f   :  { %1312 = vmatmul.mubr.f32.gmra.mrb[46].mxu0 %v229_v61  ;;  %v491_v61 = vld [vmem:[%s15513_s0 + $0xeb8] sm:$0xff] }
 0x120   :  { %1316 = vmatprep.mubr.f32.mxu0 %v239_v62  ;;  %v490_v62 = vld [vmem:[%s15513_s0 + $0xeb0] sm:$0xff] }
 0x123   :  { %1317 = vmatmul.mubr.f32.gmra.mrb[48].mxu0 %v238_v63  ;;  %v500_v63 = vld [vmem:[%s15513_s0 + $0xf00] sm:$0xff] }
 0x124   :  { %1321 = vmatprep.mubr.f32.mxu0 %v248_v1  ;;  %v499_v1 = vld [vmem:[%s15513_s0 + $0xef8] sm:$0xff] }
 0x127   :  { %1322 = vmatmul.mubr.f32.gmra.mrb[50].mxu0 %v247_v4  ;;  %v518_v4 = vld [vmem:[%s15513_s0 + $0xf90] sm:$0xff] }
 0x128   :  { %1326 = vmatprep.mubr.f32.mxu0 %v257_v6  ;;  %v527_v6 = vld [vmem:[%s15513_s0 + $0xfd8] sm:$0xff] }
 0x12b   :  { %1327 = vmatmul.mubr.f32.gmra.mrb[52].mxu0 %v256_v7  ;;  %v526_v7 = vld [vmem:[%s15513_s0 + $0xfd0] sm:$0xff] }
 0x12c   :  { %1331 = vmatprep.mubr.f32.mxu0 %v266_v8  ;;  %v536_v8 = vld [vmem:[%s15513_s0 + $0x1020] sm:$0xff] }
 0x12f   :  { %1332 = vmatmul.mubr.f32.gmra.mrb[54].mxu0 %v265_v9  ;;  %v535_v9 = vld [vmem:[%s15513_s0 + $0x1018] sm:$0xff] }
 0x130   :  { %1336 = vmatprep.mubr.f32.mxu0 %v275_v10  ;;  %v545_v10 = vld [vmem:[%s15513_s0 + $0x1068] sm:$0xff] }
 0x133   :  { %1337 = vmatmul.mubr.f32.gmra.mrb[56].mxu0 %v274_v11  ;;  %v544_v11 = vld [vmem:[%s15513_s0 + $0x1060] sm:$0xff] }
 0x134   :  { %1341 = vmatprep.mubr.f32.mxu0 %v284_v12  ;;  %v554_v12 = vld [vmem:[%s15513_s0 + $0x10b0] sm:$0xff] }
 0x137   :  { %1342 = vmatmul.mubr.f32.gmra.mrb[58].mxu0 %v283_v15  ;;  %v562_v15 = vld [vmem:[%s15513_s0 + $0x10f0] sm:$0xff] }
 0x138   :  { %1346 = vmatprep.mubr.f32.mxu0 %v293_v17  ;;  %v571_v17 = vld [vmem:[%s15513_s0 + $0x1138] sm:$0xff] }
 0x13b   :  { %1347 = vmatmul.mubr.f32.gmra.mrb[60].mxu0 %v292_v18  ;;  %v581_v18 = vld [vmem:[%s15513_s0 + $0x1188] sm:$0xff] }
 0x13c   :  { %1351 = vmatprep.mubr.f32.mxu0 %v302_v19  ;;  %v580_v19 = vld [vmem:[%s15513_s0 + $0x1180] sm:$0xff] }
 0x13f   :  { %1352 = vmatmul.mubr.f32.gmra.mrb[62].mxu0 %v301_v20  ;;  %v590_v20 = vld [vmem:[%s15513_s0 + $0x11d0] sm:$0xff] }
 0x140   :  { %1356 = vmatprep.mubr.f32.mxu0 %v311_v21  ;;  %v589_v21 = vld [vmem:[%s15513_s0 + $0x11c8] sm:$0xff] }
 0x143   :  { %1357 = vmatmul.mubr.f32.gmra.mrb[64].mxu0 %v310_v22  ;;  %v25_v22 = vld [vmem:[%s15513_s0 + $0x28] sm:$0xff] }
 0x144   :  { %1361 = vmatprep.mubr.f32.mxu0 %v320_v23  ;;  %v692_v23 = vld [vmem:[%s15512_s1 + $0x300] sm:$0xff] }
 0x147   :  { %1362 = vmatmul.mubr.f32.gmra.mrb[66].mxu0 %v319_v24  ;;  %v693_v24 = vld [vmem:[%s15512_s1 + $0x308] sm:$0xff] }
 0x148   :  { %1366 = vmatprep.mubr.f32.mxu0 %v329_v25  ;;  %v24_v25 = vld [vmem:[%s15513_s0 + $0x20] sm:$0xff] }
 0x14b   :  { %1367 = vmatmul.mubr.f32.gmra.mrb[68].mxu0 %v328_v26  ;;  %v6932_v26 = vpack.c.bf16 %v693_v24, %v692_v23  ;;  %v96_v23 = vld [vmem:[%s15513_s0 + $0x260] sm:$0xff] }
 0x14c   :  { %1371 = vmatprep.mubr.f32.mxu0 %v338_v27  ;;  %v309_v27 = vld [vmem:[%s15513_s0 + $0x908] sm:$0xff] }
 0x14d   :  { %971 = vmatprep.mubr.f32.mxu1 %v309_v27  ;;  %v710_v27 = vld [vmem:[%s15512_s1 + $0x390] sm:$0xff] }
 0x14f   :  { %1372 = vmatmul.mubr.f32.gmra.mrb[70].mxu0 %v337_v28  ;;  %v34_v28 = vld [vmem:[%s15513_s0 + $0x70] sm:$0xff] }
 0x150   :  { %1376 = vmatprep.mubr.f32.mxu0 %v347_v29  ;;  %v694_v29 = vld [vmem:[%s15512_s1 + $0x310] sm:$0xff] }
 0x153   :  { %1377 = vmatmul.mubr.f32.gmra.mrb[72].mxu0 %v346_v30  ;;  %v695_v30 = vld [vmem:[%s15512_s1 + $0x318] sm:$0xff] }
 0x154   :  { %1381 = vmatprep.mubr.f32.mxu0 %v356_v31  ;;  %v308_v31 = vld [vmem:[%s15513_s0 + $0x900] sm:$0xff] }
 0x155   :  { %972 = vmatmul.mubr.f32.vlgmr.msra.gmra.mrb[0].mxu1 %v308_v31  ;;  %v105_v31 = vld [vmem:[%s15513_s0 + $0x2a8] sm:$0xff] }
 0x157   :  { %1382 = vmatmul.mubr.f32.gmra.mrb[74].mxu0 %v355_v32  ;;  %v724_v32 = vld [vmem:[%s15512_s1 + $0x400] sm:$0xff] }
 0x158   :  { %1386 = vmatprep.mubr.f32.mxu0 %v365_v33  ;;  %v33_v33 = vld [vmem:[%s15513_s0 + $0x68] sm:$0xff] }
 0x15b   :  { %1387 = vmatmul.mubr.f32.gmra.mrb[76].mxu0 %v364_v34  ;;  %v6935_v34 = vpack.c.bf16 %v695_v30, %v694_v29  ;;  %v381_v29 = vld [vmem:[%s15513_s0 + $0xb48] sm:$0xff]  ;;  %v728_v30 = vld [vmem:[%s15512_s1 + $0x420] sm:$0xff] }
 0x15c   :  { %1391 = vmatprep.mubr.f32.mxu0 %v374_v35  ;;  %v725_v35 = vld [vmem:[%s15512_s1 + $0x408] sm:$0xff] }
 0x15f   :  { %1392 = vmatmul.mubr.f32.gmra.mrb[78].mxu0 %v373_v36  ;;  %v318_v36 = vld [vmem:[%s15513_s0 + $0x950] sm:$0xff] }
 0x160   :  { %1396 = vmatprep.mubr.f32.mxu0 %v383_v37  ;;  %v43_v37 = vld [vmem:[%s15513_s0 + $0xb8] sm:$0xff]  ;;  %976 = vmatprep.mubr.f32.mxu1 %v318_v36  ;;  %v712_v36 = vld [vmem:[%s15512_s1 + $0x3a0] sm:$0xff] }
 0x163   :  { %1397 = vmatmul.mubr.f32.gmra.mrb[80].mxu0 %v382_v38  ;;  %v696_v38 = vld [vmem:[%s15512_s1 + $0x320] sm:$0xff] }
 0x164   :  { %1401 = vmatprep.mubr.f32.mxu0 %v392_v39  ;;  %v697_v39 = vld [vmem:[%s15512_s1 + $0x328] sm:$0xff] }
 0x167   :  { %1402 = vmatmul.mubr.f32.gmra.mrb[82].mxu0 %v391_v40  ;;  %v6979_v40 = vpack.c.bf16 %v725_v35, %v724_v32  ;;  %v115_v35 = vld [vmem:[%s15513_s0 + $0x2f8] sm:$0xff] }
 0x168   :  { %1406 = vmatprep.mubr.f32.mxu0 %v401_v41  ;;  %v317_v41 = vld [vmem:[%s15513_s0 + $0x948] sm:$0xff] }
 0x169   :  { %6980 = vmatprep.subr.bf16.mxu1 %v6979_v40  ;;  %977 = vmatmul.mubr.f32.gmra.mrb[2].mxu1 %v317_v41 }
 0x16a   :  { %6982 = vmatpush3.bf16.msra.mxu1 %v6979_v40  ;;  %v114_v40 = vld [vmem:[%s15513_s0 + $0x2f0] sm:$0xff] }
 0x16b   :  { %1407 = vmatmul.mubr.f32.gmra.mrb[84].mxu0 %v400_v42  ;;  %v42_v42 = vld [vmem:[%s15513_s0 + $0xb0] sm:$0xff] }
 0x16c   :  { %1411 = vmatprep.mubr.f32.mxu0 %v410_v43  ;;  %v6938_v43 = vpack.c.bf16 %v697_v39, %v696_v38  ;;  %v390_v39 = vld [vmem:[%s15513_s0 + $0xb90] sm:$0xff] }
 0x16f   :  { %1412 = vmatmul.mubr.f32.gmra.mrb[86].mxu0 %v409_v44  ;;  %v327_v44 = vld [vmem:[%s15513_s0 + $0x998] sm:$0xff] }
 0x170   :  { %1416 = vmatprep.mubr.f32.mxu0 %v419_v45  ;;  %v52_v45 = vld [vmem:[%s15513_s0 + $0x100] sm:$0xff]  ;;  %981 = vmatprep.mubr.f32.mxu1 %v327_v44  ;;  %v399_v44 = vld [vmem:[%s15513_s0 + $0xbd8] sm:$0xff] }
 0x173   :  { %1417 = vmatmul.mubr.f32.gmra.mrb[88].mxu0 %v418_v46  ;;  %v698_v46 = vld [vmem:[%s15512_s1 + $0x330] sm:$0xff] }
 0x174   :  { %1421 = vmatprep.mubr.f32.mxu0 %v428_v47  ;;  %v699_v47 = vld [vmem:[%s15512_s1 + $0x338] sm:$0xff] }
 0x177   :  { %1422 = vmatmul.mubr.f32.gmra.mrb[90].mxu0 %v427_v48  ;;  %v326_v48 = vld [vmem:[%s15513_s0 + $0x990] sm:$0xff] }
 0x178   :  { %1426 = vmatprep.mubr.f32.mxu0 %v437_v49  ;;  %v51_v49 = vld [vmem:[%s15513_s0 + $0xf8] sm:$0xff]  ;;  %982 = vmatmul.mubr.f32.gmra.mrb[4].mxu1 %v326_v48  ;;  %v408_v48 = vld [vmem:[%s15513_s0 + $0xc20] sm:$0xff] }
 0x17b   :  { %1427 = vmatmul.mubr.f32.gmra.mrb[92].mxu0 %v436_v50  ;;  %v6941_v50 = vpack.c.bf16 %v699_v47, %v698_v46  ;;  %v398_v46 = vld [vmem:[%s15513_s0 + $0xbd0] sm:$0xff]  ;;  %v133_v47 = vld [vmem:[%s15513_s0 + $0x388] sm:$0xff] }
 0x17c   :  { %1431 = vmatprep.mubr.f32.mxu0 %v446_v51  ;;  %v336_v51 = vld [vmem:[%s15513_s0 + $0x9e0] sm:$0xff] }
 0x17d   :  { %986 = vmatprep.mubr.f32.mxu1 %v336_v51  ;;  %v142_v51 = vld [vmem:[%s15513_s0 + $0x3d0] sm:$0xff] }
 0x17f   :  { %1432 = vmatmul.mubr.f32.gmra.mrb[94].mxu0 %v445_v52  ;;  %v61_v52 = vld [vmem:[%s15513_s0 + $0x148] sm:$0xff] }
 0x180   :  { %1436 = vmatprep.mubr.f32.mxu0 %v455_v53  ;;  %v700_v53 = vld [vmem:[%s15512_s1 + $0x340] sm:$0xff] }
 0x183   :  { %1437 = vmatmul.mubr.f32.gmra.mrb[96].mxu0 %v454_v54  ;;  %v701_v54 = vld [vmem:[%s15512_s1 + $0x348] sm:$0xff] }
 0x184   :  { %1441 = vmatprep.mubr.f32.mxu0 %v464_v55  ;;  %v335_v55 = vld [vmem:[%s15513_s0 + $0x9d8] sm:$0xff] }
 0x185   :  { %987 = vmatmul.mubr.f32.gmra.mrb[6].mxu1 %v335_v55  ;;  %v730_v55 = vld [vmem:[%s15512_s1 + $0x430] sm:$0xff] }
 0x187   :  { %1442 = vmatmul.mubr.f32.gmra.mrb[98].mxu0 %v463_v56  ;;  %v60_v56 = vld [vmem:[%s15513_s0 + $0x140] sm:$0xff] }
 0x188   :  { %1446 = vmatprep.mubr.f32.mxu0 %v473_v57  ;;  %v6944_v57 = vpack.c.bf16 %v701_v54, %v700_v53  ;;  %v714_v53 = vld [vmem:[%s15512_s1 + $0x3b0] sm:$0xff]  ;;  %v715_v54 = vld [vmem:[%s15512_s1 + $0x3b8] sm:$0xff] }
 0x18b   :  { %1447 = vmatmul.mubr.f32.gmra.mrb[100].mxu0 %v472_v58  ;;  %v345_v58 = vld [vmem:[%s15513_s0 + $0xa28] sm:$0xff] }
 0x18c   :  { %1451 = vmatprep.mubr.f32.mxu0 %v482_v59  ;;  %v70_v59 = vld [vmem:[%s15513_s0 + $0x190] sm:$0xff]  ;;  %991 = vmatprep.mubr.f32.mxu1 %v345_v58  ;;  %v6965_v58 = vpack.c.bf16 %v715_v54, %v714_v53  ;;  %v515_v53 = vld [vmem:[%s15513_s0 + $0xf78] sm:$0xff] }
 0x18d   :  { %v250_v54 = vld [vmem:[%s15513_s0 + $0x730] sm:$0xff] }
 0x18f   :  { %1452 = vmatmul.mubr.f32.gmra.mrb[102].mxu0 %v481_v60  ;;  %v702_v60 = vld [vmem:[%s15512_s1 + $0x350] sm:$0xff] }
 0x190   :  { %1456 = vmatprep.mubr.f32.mxu0 %v491_v61  ;;  %v703_v61 = vld [vmem:[%s15512_s1 + $0x358] sm:$0xff] }
 0x193   :  { %1457 = vmatmul.mubr.f32.gmra.mrb[104].mxu0 %v490_v62  ;;  %v344_v62 = vld [vmem:[%s15513_s0 + $0xa20] sm:$0xff] }
 0x194   :  { %1461 = vmatprep.mubr.f32.mxu0 %v500_v63  ;;  %v726_v63 = vld [vmem:[%s15512_s1 + $0x410] sm:$0xff]  ;;  %992 = vmatmul.mubr.f32.gmra.mrb[8].mxu1 %v344_v62 }
 0x195   :  { %v426_v62 = vld [vmem:[%s15513_s0 + $0xcb0] sm:$0xff] }
 0x197   :  { %1462 = vmatmul.mubr.f32.gmra.mrb[106].mxu0 %v499_v1  ;;  %v69_v1 = vld [vmem:[%s15513_s0 + $0x188] sm:$0xff] }
 0x198   :  { %1466 = vmatprep.mubr.f32.mxu0 %v509_v2  ;;  %v6947_v2 = vpack.c.bf16 %v703_v61, %v702_v60  ;;  %v151_v60 = vld [vmem:[%s15513_s0 + $0x418] sm:$0xff] }
 0x19b   :  { %1467 = vmatmul.mubr.f32.gmra.mrb[108].mxu0 %v508_v3  ;;  %v727_v3 = vld [vmem:[%s15512_s1 + $0x418] sm:$0xff] }
 0x19c   :  { %1471 = vmatprep.mubr.f32.mxu0 %v518_v4  ;;  %v79_v4 = vld [vmem:[%s15513_s0 + $0x1d8] sm:$0xff] }
 0x19f   :  { %1472 = vmatmul.mubr.f32.gmra.mrb[110].mxu0 %v517_v5  ;;  %v704_v5 = vld [vmem:[%s15512_s1 + $0x360] sm:$0xff] }
 0x1a0   :  { %1476 = vmatprep.mubr.f32.mxu0 %v527_v6  ;;  %v705_v6 = vld [vmem:[%s15512_s1 + $0x368] sm:$0xff] }
 0x1a3   :  { %1477 = vmatmul.mubr.f32.gmra.mrb[112].mxu0 %v526_v7  ;;  %v6983_v7 = vpack.c.bf16 %v727_v3, %v726_v63  ;;  %v150_v63 = vld [vmem:[%s15513_s0 + $0x410] sm:$0xff]  ;;  %v435_v3 = vld [vmem:[%s15513_s0 + $0xcf8] sm:$0xff] }
 0x1a4   :  { %1481 = vmatprep.mubr.f32.mxu0 %v536_v8  ;;  %v354_v8 = vld [vmem:[%s15513_s0 + $0xa70] sm:$0xff] }
 0x1a5   :  { %6984 = vmatprep.subr.bf16.mxu1 %v6983_v7  ;;  %996 = vmatprep.mubr.f32.mxu1 %v354_v8  ;;  %v168_v8 = vld [vmem:[%s15513_s0 + $0x4a0] sm:$0xff] }
 0x1a6   :  { %6986 = vmatpush3.bf16.msra.mxu1 %v6983_v7  ;;  %v444_v7 = vld [vmem:[%s15513_s0 + $0xd40] sm:$0xff] }
 0x1a7   :  { %1482 = vmatmul.mubr.f32.gmra.mrb[114].mxu0 %v535_v9  ;;  %v78_v9 = vld [vmem:[%s15513_s0 + $0x1d0] sm:$0xff] }
 0x1a8   :  { %1486 = vmatprep.mubr.f32.mxu0 %v545_v10  ;;  %v6950_v10 = vpack.c.bf16 %v705_v6, %v704_v5  ;;  %v434_v5 = vld [vmem:[%s15513_s0 + $0xcf0] sm:$0xff]  ;;  %v169_v6 = vld [vmem:[%s15513_s0 + $0x4a8] sm:$0xff] }
 0x1ab   :  { %1487 = vmatmul.mubr.f32.gmra.mrb[116].mxu0 %v544_v11  ;;  %v353_v11 = vld [vmem:[%s15513_s0 + $0xa68] sm:$0xff] }
 0x1ac   :  { %1491 = vmatprep.mubr.f32.mxu0 %v554_v12  ;;  %v88_v12 = vld [vmem:[%s15513_s0 + $0x220] sm:$0xff]  ;;  %997 = vmatmul.mubr.f32.gmra.mrb[10].mxu1 %v353_v11  ;;  %v453_v11 = vld [vmem:[%s15513_s0 + $0xd88] sm:$0xff] }
 0x1af   :  { %1492 = vmatmul.mubr.f32.gmra.mrb[118].mxu0 %v553_v13  ;;  %v706_v13 = vld [vmem:[%s15512_s1 + $0x370] sm:$0xff] }
 0x1b0   :  { %1496 = vmatprep.mubr.f32.mxu0 %v563_v14  ;;  %v707_v14 = vld [vmem:[%s15512_s1 + $0x378] sm:$0xff] }
 0x1b3   :  { %1497 = vmatmul.mubr.f32.gmra.mrb[120].mxu0 %v562_v15  ;;  %v363_v15 = vld [vmem:[%s15513_s0 + $0xab8] sm:$0xff] }
 0x1b4   :  { %1501 = vmatprep.mubr.f32.mxu0 %v572_v16  ;;  %v87_v16 = vld [vmem:[%s15513_s0 + $0x218] sm:$0xff]  ;;  %1001 = vmatprep.mubr.f32.mxu1 %v363_v15  ;;  %v177_v15 = vld [vmem:[%s15513_s0 + $0x4e8] sm:$0xff] }
 0x1b7   :  { %1502 = vmatmul.mubr.f32.gmra.mrb[122].mxu0 %v571_v17  ;;  %v6953_v17 = vpack.c.bf16 %v707_v14, %v706_v13  ;;  %v717_v13 = vld [vmem:[%s15512_s1 + $0x3c8] sm:$0xff]  ;;  %v732_v14 = vld [vmem:[%s15512_s1 + $0x440] sm:$0xff] }
 0x1b8   :  { %1506 = vmatprep.mubr.f32.mxu0 %v581_v18  ;;  %v362_v18 = vld [vmem:[%s15513_s0 + $0xab0] sm:$0xff] }
 0x1b9   :  { %1002 = vmatmul.mubr.f32.gmra.mrb[12].mxu1 %v362_v18  ;;  %v733_v18 = vld [vmem:[%s15512_s1 + $0x448] sm:$0xff] }
 0x1bb   :  { %1507 = vmatmul.mubr.f32.gmra.mrb[124].mxu0 %v580_v19  ;;  %v97_v19 = vld [vmem:[%s15513_s0 + $0x268] sm:$0xff] }
 0x1bc   :  { %1511 = vmatprep.mubr.f32.mxu0 %v590_v20  ;;  %v708_v20 = vld [vmem:[%s15512_s1 + $0x380] sm:$0xff] }
 0x1bf   :  { %1512 = vmatmul.mubr.f32.gmra.mrb[126].mxu0 %v589_v21  ;;  %v709_v21 = vld [vmem:[%s15512_s1 + $0x388] sm:$0xff] }
 0x1c0   :  { %1581 = vmatprep.mubr.f32.mxu0 %v25_v22  ;;  %v372_v22 = vld [vmem:[%s15513_s0 + $0xb00] sm:$0xff]  ;;  %v6956_v24 = vpack.c.bf16 %v709_v21, %v708_v20  ;;  %v6995_v20 = vpack.c.bf16 %v733_v18, %v732_v14  ;;  %v462_v21 = vld [vmem:[%s15513_s0 + $0xdd0] sm:$0xff] }
 0x1c1   :  { %1006 = vmatprep.mubr.f32.mxu1 %v372_v22  ;;  %v186_v22 = vld [vmem:[%s15513_s0 + $0x530] sm:$0xff]  ;;  %v560_v18 = vld [vmem:[%s15513_s0 + $0x10e0] sm:$0xff] }
 0x1c2   :  { %v722_v14 = vld [vmem:[%s15512_s1 + $0x3f0] sm:$0xff] }
 0x1c3   :  { %1582 = vmatmul.mubr.f32.vlgmr.msra.gmra.mrb[0].mxu0 %v24_v25  ;;  %v371_v25 = vld [vmem:[%s15513_s0 + $0xaf8] sm:$0xff] }
 0x1c4   :  { %6933 = vmatpush1.bf16.msra.mxu0 %v6932_v26  ;;  %1586 = vmatprep.mubr.f32.mxu0 %v34_v28  ;;  %v106_v26 = vld [vmem:[%s15513_s0 + $0x2b0] sm:$0xff]  ;;  %v711_v28 = vld [vmem:[%s15512_s1 + $0x398] sm:$0xff] }
 0x1c5   :  { %6934 = vmatprep.subr.bf16.mxu0 %v8647_v0  ;;  %1007 = vmatmul.mubr.f32.gmra.mrb[14].mxu1 %v371_v25  ;;  %v6959_v32 = vpack.c.bf16 %v711_v28, %v710_v27  ;;  %v471_v25 = vld [vmem:[%s15513_s0 + $0xe18] sm:$0xff]  ;;  %v470_v27 = vld [vmem:[%s15513_s0 + $0xe10] sm:$0xff]  ;;  %v205_v28 = vld [vmem:[%s15513_s0 + $0x5c8] sm:$0xff] }
 0x1c6   :  { %1011 = vmatprep.mubr.f32.mxu1 %v381_v29  ;;  %v480_v29 = vld [vmem:[%s15513_s0 + $0xe60] sm:$0xff] }
 0x1c7   :  { %1587 = vmatmul.mubr.f32.gmra.mrb[2].mxu0 %v33_v33  ;;  %v380_v33 = vld [vmem:[%s15513_s0 + $0xb40] sm:$0xff] }
 0x1c8   :  { %1591 = vmatprep.mubr.f32.mxu0 %v43_v37  ;;  %6936 = vmatpush1.bf16.msra.mxu0 %v6935_v34  ;;  %v729_v34 = vld [vmem:[%s15512_s1 + $0x428] sm:$0xff] }
 0x1c9   :  { %6937 = vmatprep.subr.bf16.mxu0 %v8647_v0  ;;  %v713_v37 = vld [vmem:[%s15512_s1 + $0x3a8] sm:$0xff]  ;;  %v6987_v38 = vpack.c.bf16 %v729_v34, %v728_v30  ;;  %1012 = vmatmul.mubr.f32.gmra.mrb[16].mxu1 %v380_v33  ;;  %v204_v30 = vld [vmem:[%s15513_s0 + $0x5c0] sm:$0xff]  ;;  %v718_v34 = vld [vmem:[%s15512_s1 + $0x3d0] sm:$0xff] }
 0x1ca   :  { %v6962_v41 = vpack.c.bf16 %v713_v37, %v712_v36  ;;  %1016 = vmatprep.mubr.f32.mxu1 %v390_v39  ;;  %v489_v33 = vld [vmem:[%s15513_s0 + $0xea8] sm:$0xff]  ;;  %v734_v36 = vld [vmem:[%s15512_s1 + $0x450] sm:$0xff] }
 0x1cb   :  { %1592 = vmatmul.mubr.f32.gmra.mrb[4].mxu0 %v42_v42  ;;  %v389_v42 = vld [vmem:[%s15513_s0 + $0xb88] sm:$0xff]  ;;  %6988 = vmatprep.subr.bf16.mxu1 %v6987_v38 }
 0x1cc   :  { %1596 = vmatprep.mubr.f32.mxu0 %v52_v45  ;;  %6939 = vmatpush1.bf16.msra.mxu0 %v6938_v43  ;;  %v124_v43 = vld [vmem:[%s15513_s0 + $0x340] sm:$0xff]  ;;  %v123_v45 = vld [vmem:[%s15513_s0 + $0x338] sm:$0xff]  ;;  %v213_v37 = vld [vmem:[%s15513_s0 + $0x608] sm:$0xff] }
 0x1cd   :  { %6940 = vmatprep.subr.bf16.mxu0 %v8647_v0  ;;  %6990 = vmatpush3.bf16.msra.mxu1 %v6987_v38  ;;  %v488_v38 = vld [vmem:[%s15513_s0 + $0xea0] sm:$0xff] }
 0x1ce   :  { %1017 = vmatmul.mubr.f32.gmra.mrb[18].mxu1 %v389_v42 }
 0x1cf   :  { %1597 = vmatmul.mubr.f32.gmra.mrb[6].mxu0 %v51_v49  ;;  %1021 = vmatprep.mubr.f32.mxu1 %v399_v44  ;;  %v132_v49 = vld [vmem:[%s15513_s0 + $0x380] sm:$0xff]  ;;  %v222_v44 = vld [vmem:[%s15513_s0 + $0x650] sm:$0xff] }
 0x1d0   :  { %1601 = vmatprep.mubr.f32.mxu0 %v61_v52  ;;  %6942 = vmatpush1.bf16.msra.mxu0 %v6941_v50  ;;  %v407_v50 = vld [vmem:[%s15513_s0 + $0xc18] sm:$0xff]  ;;  %v417_v52 = vld [vmem:[%s15513_s0 + $0xc68] sm:$0xff] }
 0x1d1   :  { %6943 = vmatprep.subr.bf16.mxu0 %v8647_v0 }
 0x1d2   :  { %1022 = vmatmul.mubr.f32.gmra.mrb[20].mxu1 %v398_v46  ;;  %v232_v46 = vld [vmem:[%s15513_s0 + $0x6a0] sm:$0xff] }
 0x1d3   :  { %1602 = vmatmul.mubr.f32.gmra.mrb[8].mxu0 %v60_v56  ;;  %1026 = vmatprep.mubr.f32.mxu1 %v408_v48  ;;  %v141_v56 = vld [vmem:[%s15513_s0 + $0x3c8] sm:$0xff]  ;;  %v231_v48 = vld [vmem:[%s15513_s0 + $0x698] sm:$0xff] }
 0x1d4   :  { %1606 = vmatprep.mubr.f32.mxu0 %v70_v59  ;;  %6945 = vmatpush1.bf16.msra.mxu0 %v6944_v57  ;;  %v416_v57 = vld [vmem:[%s15513_s0 + $0xc60] sm:$0xff]  ;;  %v731_v59 = vld [vmem:[%s15512_s1 + $0x438] sm:$0xff] }
 0x1d5   :  { %6946 = vmatprep.subr.bf16.mxu0 %v8647_v0  ;;  %v6991_v61 = vpack.c.bf16 %v731_v59, %v730_v55  ;;  %v525_v55 = vld [vmem:[%s15513_s0 + $0xfc8] sm:$0xff] }
 0x1d6   :  { %1027 = vmatmul.mubr.f32.gmra.mrb[22].mxu1 %v407_v50  ;;  %v241_v50 = vld [vmem:[%s15513_s0 + $0x6e8] sm:$0xff] }
 0x1d7   :  { %1607 = vmatmul.mubr.f32.gmra.mrb[10].mxu0 %v69_v1  ;;  %1031 = vmatprep.mubr.f32.mxu1 %v417_v52  ;;  %v425_v1 = vld [vmem:[%s15513_s0 + $0xca8] sm:$0xff]  ;;  %v240_v52 = vld [vmem:[%s15513_s0 + $0x6e0] sm:$0xff] }
 0x1d8   :  { %1611 = vmatprep.mubr.f32.mxu0 %v79_v4  ;;  %6948 = vmatpush1.bf16.msra.mxu0 %v6947_v2  ;;  %v160_v2 = vld [vmem:[%s15513_s0 + $0x460] sm:$0xff]  ;;  %v159_v4 = vld [vmem:[%s15513_s0 + $0x458] sm:$0xff]  ;;  %v249_v59 = vld [vmem:[%s15513_s0 + $0x728] sm:$0xff] }
 0x1d9   :  { %6949 = vmatprep.subr.bf16.mxu0 %v8647_v0  ;;  %6992 = vmatprep.subr.bf16.mxu1 %v6991_v61 }
 0x1da   :  { %1032 = vmatmul.mubr.f32.gmra.mrb[24].mxu1 %v416_v57  ;;  %v721_v57 = vld [vmem:[%s15512_s1 + $0x3e8] sm:$0xff] }
 0x1db   :  { %1612 = vmatmul.mubr.f32.gmra.mrb[12].mxu0 %v78_v9  ;;  %6994 = vmatpush3.bf16.msra.mxu1 %v6991_v61  ;;  %v443_v9 = vld [vmem:[%s15513_s0 + $0xd38] sm:$0xff] }
 0x1dc   :  { %1616 = vmatprep.mubr.f32.mxu0 %v88_v12  ;;  %6951 = vmatpush1.bf16.msra.mxu0 %v6950_v10  ;;  %v178_v10 = vld [vmem:[%s15513_s0 + $0x4f0] sm:$0xff]  ;;  %v716_v12 = vld [vmem:[%s15512_s1 + $0x3c0] sm:$0xff] }
 0x1dd   :  { %6952 = vmatprep.subr.bf16.mxu0 %v8647_v0  ;;  %1036 = vmatprep.mubr.f32.mxu1 %v426_v62  ;;  %v737_v62 = vld [vmem:[%s15512_s1 + $0x468] sm:$0xff] }
 0x1de   :  { %1037 = vmatmul.mubr.f32.gmra.mrb[26].mxu1 %v425_v1  ;;  %6996 = vmatprep.subr.bf16.mxu1 %v6995_v20 }
 0x1df   :  { %1617 = vmatmul.mubr.f32.gmra.mrb[14].mxu0 %v87_v16  ;;  %1041 = vmatprep.mubr.f32.mxu1 %v435_v3  ;;  %v452_v16 = vld [vmem:[%s15513_s0 + $0xd80] sm:$0xff]  ;;  %v258_v3 = vld [vmem:[%s15513_s0 + $0x770] sm:$0xff] }
 0x1e0   :  { %1621 = vmatprep.mubr.f32.mxu0 %v97_v19  ;;  %6954 = vmatpush1.bf16.msra.mxu0 %v6953_v17  ;;  %v6968_v17 = vpack.c.bf16 %v717_v13, %v716_v12  ;;  %v187_v19 = vld [vmem:[%s15513_s0 + $0x538] sm:$0xff]  ;;  %v286_v12 = vld [vmem:[%s15513_s0 + $0x850] sm:$0xff]  ;;  %v561_v13 = vld [vmem:[%s15513_s0 + $0x10e8] sm:$0xff] }
 0x1e1   :  { %6955 = vmatprep.subr.bf16.mxu0 %v8647_v0  ;;  %6998 = vmatpush3.bf16.msra.mxu1 %v6995_v20  ;;  %v739_v20 = vld [vmem:[%s15512_s1 + $0x478] sm:$0xff] }
 0x1e2   :  { %1042 = vmatmul.mubr.f32.gmra.mrb[28].mxu1 %v434_v5  ;;  %v268_v5 = vld [vmem:[%s15513_s0 + $0x7c0] sm:$0xff] }
 0x1e3   :  { %1622 = vmatmul.mubr.f32.gmra.mrb[16].mxu0 %v96_v23  ;;  %1046 = vmatprep.mubr.f32.mxu1 %v444_v7  ;;  %v461_v23 = vld [vmem:[%s15513_s0 + $0xdc8] sm:$0xff]  ;;  %v267_v7 = vld [vmem:[%s15513_s0 + $0x7b8] sm:$0xff] }
 0x1e4   :  { %1626 = vmatprep.mubr.f32.mxu0 %v106_v26  ;;  %6957 = vmatpush1.bf16.msra.mxu0 %v6956_v24  ;;  %v196_v24 = vld [vmem:[%s15513_s0 + $0x580] sm:$0xff]  ;;  %v195_v26 = vld [vmem:[%s15513_s0 + $0x578] sm:$0xff] }
 0x1e5   :  { %6958 = vmatprep.subr.bf16.mxu0 %v8647_v0 }
 0x1e6   :  { %1047 = vmatmul.mubr.f32.gmra.mrb[30].mxu1 %v443_v9  ;;  %v277_v9 = vld [vmem:[%s15513_s0 + $0x808] sm:$0xff] }
 0x1e7   :  { %1627 = vmatmul.mubr.f32.gmra.mrb[18].mxu0 %v105_v31  ;;  %1051 = vmatprep.mubr.f32.mxu1 %v453_v11  ;;  %v479_v31 = vld [vmem:[%s15513_s0 + $0xe58] sm:$0xff] }
 0x1e8   :  { %1631 = vmatprep.mubr.f32.mxu0 %v115_v35  ;;  %6960 = vmatpush1.bf16.msra.mxu0 %v6959_v32  ;;  %v214_v32 = vld [vmem:[%s15513_s0 + $0x610] sm:$0xff]  ;;  %v719_v35 = vld [vmem:[%s15512_s1 + $0x3d8] sm:$0xff] }
 0x1e9   :  { %6961 = vmatprep.subr.bf16.mxu0 %v8647_v0  ;;  %v6971_v39 = vpack.c.bf16 %v719_v35, %v718_v34  ;;  %v551_v11 = vld [vmem:[%s15513_s0 + $0x1098] sm:$0xff]  ;;  %v322_v34 = vld [vmem:[%s15513_s0 + $0x970] sm:$0xff]  ;;  %v28_v35 = vld [vmem:[%s15513_s0 + $0x40] sm:$0xff] }
 0x1ea   :  { %1052 = vmatmul.mubr.f32.gmra.mrb[32].mxu1 %v452_v16  ;;  %v738_v16 = vld [vmem:[%s15512_s1 + $0x470] sm:$0xff] }
 0x1eb   :  { %1632 = vmatmul.mubr.f32.gmra.mrb[20].mxu0 %v114_v40  ;;  %1056 = vmatprep.mubr.f32.mxu1 %v462_v21  ;;  %v735_v40 = vld [vmem:[%s15512_s1 + $0x458] sm:$0xff] }
 0x1ec   :  { %1636 = vmatprep.mubr.f32.mxu0 %v124_v43  ;;  %6963 = vmatpush1.bf16.msra.mxu0 %v6962_v41  ;;  %v223_v41 = vld [vmem:[%s15513_s0 + $0x658] sm:$0xff]  ;;  %v6999_v42 = vpack.c.bf16 %v735_v40, %v734_v36  ;;  %v498_v43 = vld [vmem:[%s15513_s0 + $0xef0] sm:$0xff]  ;;  %v321_v36 = vld [vmem:[%s15513_s0 + $0x968] sm:$0xff] }
 0x1ed   :  { %6964 = vmatprep.subr.bf16.mxu0 %v8647_v0  ;;  %v295_v21 = vld [vmem:[%s15513_s0 + $0x898] sm:$0xff]  ;;  %v340_v40 = vld [vmem:[%s15513_s0 + $0xa00] sm:$0xff] }
 0x1ee   :  { %1057 = vmatmul.mubr.f32.gmra.mrb[34].mxu1 %v461_v23  ;;  %7000 = vmatprep.subr.bf16.mxu1 %v6999_v42  ;;  %v570_v23 = vld [vmem:[%s15513_s0 + $0x1130] sm:$0xff] }
 0x1ef   :  { %1637 = vmatmul.mubr.f32.gmra.mrb[22].mxu0 %v123_v45  ;;  %1061 = vmatprep.mubr.f32.mxu1 %v471_v25  ;;  %v497_v45 = vld [vmem:[%s15513_s0 + $0xee8] sm:$0xff] }
 0x1f0   :  { %1641 = vmatprep.mubr.f32.mxu0 %v133_v47  ;;  %6966 = vmatpush1.bf16.msra.mxu0 %v6965_v58  ;;  %v507_v47 = vld [vmem:[%s15513_s0 + $0xf38] sm:$0xff]  ;;  %v736_v58 = vld [vmem:[%s15512_s1 + $0x460] sm:$0xff]  ;;  %v569_v25 = vld [vmem:[%s15513_s0 + $0x1128] sm:$0xff] }
 0x1f1   :  { %6967 = vmatprep.subr.bf16.mxu0 %v8647_v0  ;;  %7002 = vmatpush3.bf16.msra.mxu1 %v6999_v42  ;;  %v7003_v1 = vpack.c.bf16 %v737_v62, %v736_v58  ;;  %v55_v42 = vld [vmem:[%s15513_s0 + $0x118] sm:$0xff]  ;;  %v394_v58 = vld [vmem:[%s15513_s0 + $0xbb0] sm:$0xff] }
 0x1f2   :  { %1062 = vmatmul.mubr.f32.gmra.mrb[36].mxu1 %v470_v27  ;;  %v579_v27 = vld [vmem:[%s15513_s0 + $0x1178] sm:$0xff] }
 0x1f3   :  { %1642 = vmatmul.mubr.f32.gmra.mrb[24].mxu0 %v132_v49  ;;  %1066 = vmatprep.mubr.f32.mxu1 %v480_v29  ;;  %v506_v49 = vld [vmem:[%s15513_s0 + $0xf30] sm:$0xff]  ;;  %v403_v62 = vld [vmem:[%s15513_s0 + $0xbf8] sm:$0xff] }
 0x1f4   :  { %1646 = vmatprep.mubr.f32.mxu0 %v142_v51  ;;  %6969 = vmatpush1.bf16.msra.mxu0 %v6968_v17  ;;  %v516_v51 = vld [vmem:[%s15513_s0 + $0xf80] sm:$0xff]  ;;  %v285_v17 = vld [vmem:[%s15513_s0 + $0x848] sm:$0xff]  ;;  %v578_v29 = vld [vmem:[%s15513_s0 + $0x1170] sm:$0xff] }
 0x1f5   :  { %6970 = vmatprep.subr.bf16.mxu0 %v8647_v0  ;;  %7004 = vmatprep.subr.bf16.mxu1 %v7003_v1 }
 0x1f6   :  { %1067 = vmatmul.mubr.f32.gmra.mrb[38].mxu1 %v479_v31  ;;  %v588_v31 = vld [vmem:[%s15513_s0 + $0x11c0] sm:$0xff] }
 0x1f7   :  { %1647 = vmatmul.mubr.f32.gmra.mrb[26].mxu0 %v141_v56  ;;  %1071 = vmatprep.mubr.f32.mxu1 %v489_v33  ;;  %v720_v56 = vld [vmem:[%s15512_s1 + $0x3e0] sm:$0xff]  ;;  %v587_v33 = vld [vmem:[%s15513_s0 + $0x11b8] sm:$0xff] }
 0x1f8   :  { %1651 = vmatprep.mubr.f32.mxu0 %v151_v60  ;;  %6972 = vmatpush1.bf16.msra.mxu0 %v6971_v39  ;;  %v524_v60 = vld [vmem:[%s15513_s0 + $0xfc0] sm:$0xff]  ;;  %v6974_v61 = vpack.c.bf16 %v721_v57, %v720_v56  ;;  %v330_v39 = vld [vmem:[%s15513_s0 + $0x9b0] sm:$0xff]  ;;  %v385_v56 = vld [vmem:[%s15513_s0 + $0xb68] sm:$0xff] }
 0x1f9   :  { %6973 = vmatprep.subr.bf16.mxu0 %v8647_v0  ;;  %7006 = vmatpush3.bf16.msra.mxu1 %v7003_v1  ;;  %v384_v57 = vld [vmem:[%s15513_s0 + $0xb60] sm:$0xff] }
 0x1fa   :  { %1072 = vmatmul.mubr.f32.gmra.mrb[40].mxu1 %v488_v38  ;;  %v331_v38 = vld [vmem:[%s15513_s0 + $0x9b8] sm:$0xff]  ;;  %v412_v1 = vld [vmem:[%s15513_s0 + $0xc40] sm:$0xff] }
 0x1fb   :  { %1652 = vmatmul.mubr.f32.gmra.mrb[28].mxu0 %v150_v63  ;;  %1076 = vmatprep.mubr.f32.mxu1 %v498_v43  ;;  %v259_v63 = vld [vmem:[%s15513_s0 + $0x778] sm:$0xff] }
 0x1fc   :  { %1656 = vmatprep.mubr.f32.mxu0 %v160_v2  ;;  %6975 = vmatpush1.bf16.msra.mxu0 %v6974_v61  ;;  %v534_v2 = vld [vmem:[%s15513_s0 + $0x1010] sm:$0xff]  ;;  %v339_v43 = vld [vmem:[%s15513_s0 + $0x9f8] sm:$0xff]  ;;  %v393_v61 = vld [vmem:[%s15513_s0 + $0xba8] sm:$0xff] }
 0x1fd   :  { %6976 = vmatprep.subr.bf16.mxu0 %v8647_v0  ;;  %v552_v0 = vld [vmem:[%s15513_s0 + $0x10a0] sm:$0xff] }
 0x1fe   :  { %1077 = vmatmul.mubr.f32.gmra.mrb[42].mxu1 %v497_v45  ;;  %v348_v45 = vld [vmem:[%s15513_s0 + $0xa40] sm:$0xff] }
 0x1ff   :  { %1657 = vmatmul.mubr.f32.gmra.mrb[30].mxu0 %v159_v4  ;;  %1081 = vmatprep.mubr.f32.mxu1 %v507_v47  ;;  %v533_v4 = vld [vmem:[%s15513_s0 + $0x1008] sm:$0xff]  ;;  %v64_v47 = vld [vmem:[%s15513_s0 + $0x160] sm:$0xff] }
 0x200   :  { %1661 = vmatprep.mubr.f32.mxu0 %v169_v6  ;;  %v543_v6 = vld [vmem:[%s15513_s0 + $0x1058] sm:$0xff] }
 0x202   :  { %1082 = vmatmul.mubr.f32.gmra.mrb[44].mxu1 %v506_v49  ;;  %v357_v49 = vld [vmem:[%s15513_s0 + $0xa88] sm:$0xff] }
 0x203   :  { %1662 = vmatmul.mubr.f32.gmra.mrb[32].mxu0 %v168_v8  ;;  %1086 = vmatprep.mubr.f32.mxu1 %v516_v51  ;;  %v542_v8 = vld [vmem:[%s15513_s0 + $0x1050] sm:$0xff] }
 0x204   :  { %1666 = vmatprep.mubr.f32.mxu0 %v178_v10  ;;  %v276_v10 = vld [vmem:[%s15513_s0 + $0x800] sm:$0xff]  ;;  %v366_v51 = vld [vmem:[%s15513_s0 + $0xad0] sm:$0xff] }
 0x206   :  { %1087 = vmatmul.mubr.f32.gmra.mrb[46].mxu1 %v515_v53  ;;  %v82_v53 = vld [vmem:[%s15513_s0 + $0x1f0] sm:$0xff] }
 0x207   :  { %1667 = vmatmul.mubr.f32.gmra.mrb[34].mxu0 %v177_v15  ;;  %1091 = vmatprep.mubr.f32.mxu1 %v525_v55  ;;  %v723_v15 = vld [vmem:[%s15512_s1 + $0x3f8] sm:$0xff] }
 0x208   :  { %1671 = vmatprep.mubr.f32.mxu0 %v187_v19  ;;  %v6977_v19 = vpack.c.bf16 %v723_v15, %v722_v14  ;;  %v375_v55 = vld [vmem:[%s15513_s0 + $0xb18] sm:$0xff] }
 0x209   :  { %v163_v14 = vld [vmem:[%s15513_s0 + $0x478] sm:$0xff] }
 0x20a   :  { %1092 = vmatmul.mubr.f32.gmra.mrb[48].mxu1 %v524_v60  ;;  %6978 = vmatpush1.bf16.msra.mxu0 %v6977_v19  ;;  %v109_v60 = vld [vmem:[%s15513_s0 + $0x2c8] sm:$0xff]  ;;  %v447_v15 = vld [vmem:[%s15513_s0 + $0xd58] sm:$0xff]  ;;  %v172_v19 = vld [vmem:[%s15513_s0 + $0x4c0] sm:$0xff] }
 0x20b   :  { %1672 = vmatmul.mubr.f32.gmra.mrb[36].mxu0 %v186_v22  ;;  %1096 = vmatprep.mubr.f32.mxu1 %v534_v2  ;;  %v7007_v22 = vpack.c.bf16 %v739_v20, %v738_v16  ;;  %v118_v2 = vld [vmem:[%s15513_s0 + $0x310] sm:$0xff]  ;;  %v457_v16 = vld [vmem:[%s15513_s0 + $0xda8] sm:$0xff] }
 0x20c   :  { %1676 = vmatprep.mubr.f32.mxu0 %v196_v24  ;;  %v294_v24 = vld [vmem:[%s15513_s0 + $0x890] sm:$0xff]  ;;  %v181_v20 = vld [vmem:[%s15513_s0 + $0x508] sm:$0xff] }
 0x20d   :  { %7008 = vmatprep.subr.bf16.mxu1 %v7007_v22 }
 0x20e   :  { %1097 = vmatmul.mubr.f32.gmra.mrb[50].mxu1 %v533_v4  ;;  %v411_v4 = vld [vmem:[%s15513_s0 + $0xc38] sm:$0xff] }
 0x20f   :  { %1677 = vmatmul.mubr.f32.gmra.mrb[38].mxu0 %v195_v26  ;;  %1101 = vmatprep.mubr.f32.mxu1 %v543_v6  ;;  %v304_v26 = vld [vmem:[%s15513_s0 + $0x8e0] sm:$0xff] }
 0x210   :  { %1681 = vmatprep.mubr.f32.mxu0 %v205_v28  ;;  %7010 = vmatpush3.bf16.msra.mxu1 %v7007_v22  ;;  %v303_v28 = vld [vmem:[%s15513_s0 + $0x8d8] sm:$0xff]  ;;  %v420_v6 = vld [vmem:[%s15513_s0 + $0xc80] sm:$0xff] }
 0x211   :  { %v475_v22 = vld [vmem:[%s15513_s0 + $0xe38] sm:$0xff] }
 0x212   :  { %1102 = vmatmul.mubr.f32.gmra.mrb[52].mxu1 %v542_v8  ;;  %v136_v8 = vld [vmem:[%s15513_s0 + $0x3a0] sm:$0xff] }
 0x213   :  { %1682 = vmatmul.mubr.f32.gmra.mrb[40].mxu0 %v204_v30  ;;  %1106 = vmatprep.mubr.f32.mxu1 %v552_v0  ;;  %v313_v30 = vld [vmem:[%s15513_s0 + $0x928] sm:$0xff] }
 0x214   :  { %1686 = vmatprep.mubr.f32.mxu0 %v214_v32  ;;  %v312_v32 = vld [vmem:[%s15513_s0 + $0x920] sm:$0xff]  ;;  %v429_v0 = vld [vmem:[%s15513_s0 + $0xcc8] sm:$0xff] }
 0x216   :  { %1107 = vmatmul.mubr.f32.gmra.mrb[54].mxu1 %v551_v11  ;;  %v438_v11 = vld [vmem:[%s15513_s0 + $0xd10] sm:$0xff] }
 0x217   :  { %1687 = vmatmul.mubr.f32.gmra.mrb[42].mxu0 %v213_v37  ;;  %1111 = vmatprep.mubr.f32.mxu1 %v561_v13  ;;  %v37_v37 = vld [vmem:[%s15513_s0 + $0x88] sm:$0xff]  ;;  %v154_v13 = vld [vmem:[%s15513_s0 + $0x430] sm:$0xff] }
 0x218   :  { %1691 = vmatprep.mubr.f32.mxu0 %v223_v41  ;;  %v46_v41 = vld [vmem:[%s15513_s0 + $0xd0] sm:$0xff] }
 0x21a   :  { %1112 = vmatmul.mubr.f32.gmra.mrb[56].mxu1 %v560_v18  ;;  %v466_v18 = vld [vmem:[%s15513_s0 + $0xdf0] sm:$0xff] }
 0x21b   :  { %1692 = vmatmul.mubr.f32.gmra.mrb[44].mxu0 %v222_v44  ;;  %1116 = vmatprep.mubr.f32.mxu1 %v570_v23  ;;  %v349_v44 = vld [vmem:[%s15513_s0 + $0xa48] sm:$0xff]  ;;  %v474_v23 = vld [vmem:[%s15513_s0 + $0xe30] sm:$0xff] }
 0x21c   :  { %1696 = vmatprep.mubr.f32.mxu0 %v232_v46  ;;  %v358_v46 = vld [vmem:[%s15513_s0 + $0xa90] sm:$0xff] }
 0x21e   :  { %1117 = vmatmul.mubr.f32.gmra.mrb[58].mxu1 %v569_v25  ;;  %v190_v25 = vld [vmem:[%s15513_s0 + $0x550] sm:$0xff] }
 0x21f   :  { %1697 = vmatmul.mubr.f32.gmra.mrb[46].mxu0 %v231_v48  ;;  %1121 = vmatprep.mubr.f32.mxu1 %v579_v27  ;;  %v73_v48 = vld [vmem:[%s15513_s0 + $0x1a8] sm:$0xff]  ;;  %v483_v27 = vld [vmem:[%s15513_s0 + $0xe78] sm:$0xff] }
 0x220   :  { %1701 = vmatprep.mubr.f32.mxu0 %v241_v50  ;;  %v367_v50 = vld [vmem:[%s15513_s0 + $0xad8] sm:$0xff] }
 0x222   :  { %1122 = vmatmul.mubr.f32.gmra.mrb[60].mxu1 %v578_v29  ;;  %v492_v29 = vld [vmem:[%s15513_s0 + $0xec0] sm:$0xff] }
 0x223   :  { %1702 = vmatmul.mubr.f32.gmra.mrb[48].mxu0 %v240_v52  ;;  %1126 = vmatprep.mubr.f32.mxu1 %v588_v31  ;;  %v376_v52 = vld [vmem:[%s15513_s0 + $0xb20] sm:$0xff] }
 0x224   :  { %1706 = vmatprep.mubr.f32.mxu0 %v250_v54  ;;  %v91_v54 = vld [vmem:[%s15513_s0 + $0x238] sm:$0xff]  ;;  %v208_v31 = vld [vmem:[%s15513_s0 + $0x5e0] sm:$0xff] }
 0x226   :  { %1127 = vmatmul.mubr.f32.gmra.mrb[62].mxu1 %v587_v33  ;;  %v501_v33 = vld [vmem:[%s15513_s0 + $0xf08] sm:$0xff] }
 0x227   :  { %1707 = vmatmul.mubr.f32.gmra.mrb[50].mxu0 %v249_v59  ;;  %6563 = vmatprep.mubr.f32.mxu1 %v28_v35  ;;  %v100_v59 = vld [vmem:[%s15513_s0 + $0x280] sm:$0xff] }
 0x228   :  { %1711 = vmatprep.mubr.f32.mxu0 %v259_v63  ;;  %v402_v63 = vld [vmem:[%s15513_s0 + $0xbf0] sm:$0xff]  ;;  %v10352_v35 = vpop.f32.mrb[0].mxu1 }
 0x22a   :  { %6564 = vmatmul.mubr.f32.vlgmr.msra.gmra.mrb[64].mxu1 %v37_v37  ;;  %v510_v37 = vld [vmem:[%s15513_s0 + $0xf50] sm:$0xff] }
 0x22b   :  { %1712 = vmatmul.mubr.f32.gmra.mrb[52].mxu0 %v258_v3  ;;  %6566 = vmatprep.mubr.f32.mxu1 %v46_v41  ;;  %v127_v3 = vld [vmem:[%s15513_s0 + $0x358] sm:$0xff] }
 0x22c   :  { %1716 = vmatprep.mubr.f32.mxu0 %v268_v5  ;;  %v421_v5 = vld [vmem:[%s15513_s0 + $0xc88] sm:$0xff]  ;;  %v519_v41 = vld [vmem:[%s15513_s0 + $0xf98] sm:$0xff] }
 0x22e   :  { %6567 = vmatmul.mubr.f32.gmra.mrb[66].mxu1 %v55_v42  ;;  %v2737_v42 = vld [vmem:[%s15514_s3 + $0x8] sm:$0xff] }
 0x22f   :  { %1717 = vmatmul.mubr.f32.gmra.mrb[54].mxu0 %v267_v7  ;;  %6569 = vmatprep.mubr.f32.mxu1 %v64_v47  ;;  %v430_v7 = vld [vmem:[%s15513_s0 + $0xcd0] sm:$0xff] }
 0x230   :  { %1721 = vmatprep.mubr.f32.mxu0 %v277_v9  ;;  %v145_v9 = vld [vmem:[%s15513_s0 + $0x3e8] sm:$0xff] }
 0x232   :  { %6570 = vmatmul.mubr.f32.gmra.mrb[68].mxu1 %v73_v48  ;;  %v2741_v48 = vld [vmem:[%s15514_s3 + $0x28] sm:$0xff] }
 0x233   :  { %1722 = vmatmul.mubr.f32.gmra.mrb[56].mxu0 %v276_v10  ;;  %6572 = vmatprep.mubr.f32.mxu1 %v82_v53  ;;  %v439_v10 = vld [vmem:[%s15513_s0 + $0xd18] sm:$0xff] }
 0x234   :  { %1726 = vmatprep.mubr.f32.mxu0 %v286_v12  ;;  %v448_v12 = vld [vmem:[%s15513_s0 + $0xd60] sm:$0xff] }
 0x236   :  { %6573 = vmatmul.mubr.f32.gmra.mrb[70].mxu1 %v91_v54  ;;  %v244_v54 = vld [vmem:[%s15513_s0 + $0x700] sm:$0xff] }
 0x237   :  { %1727 = vmatmul.mubr.f32.gmra.mrb[58].mxu0 %v285_v17  ;;  %6575 = vmatprep.mubr.f32.mxu1 %v100_v59  ;;  %v456_v17 = vld [vmem:[%s15513_s0 + $0xda0] sm:$0xff] }
 0x238   :  { %1731 = vmatprep.mubr.f32.mxu0 %v295_v21  ;;  %v465_v21 = vld [vmem:[%s15513_s0 + $0xde8] sm:$0xff] }
 0x23a   :  { %6576 = vmatmul.mubr.f32.gmra.mrb[72].mxu1 %v109_v60 }
 0x23b   :  { %1732 = vmatmul.mubr.f32.gmra.mrb[60].mxu0 %v294_v24  ;;  %6578 = vmatprep.mubr.f32.mxu1 %v118_v2  ;;  %v484_v24 = vld [vmem:[%s15513_s0 + $0xe80] sm:$0xff] }
 0x23c   :  { %1736 = vmatprep.mubr.f32.mxu0 %v304_v26  ;;  %v199_v26 = vld [vmem:[%s15513_s0 + $0x598] sm:$0xff] }
 0x23e   :  { %6579 = vmatmul.mubr.f32.gmra.mrb[74].mxu1 %v127_v3  ;;  %v271_v3 = vld [vmem:[%s15513_s0 + $0x7d8] sm:$0xff] }
 0x23f   :  { %1737 = vmatmul.mubr.f32.gmra.mrb[62].mxu0 %v303_v28  ;;  %6581 = vmatprep.mubr.f32.mxu1 %v136_v8  ;;  %v493_v28 = vld [vmem:[%s15513_s0 + $0xec8] sm:$0xff]  ;;  %v2746_v8 = vld [vmem:[%s15514_s3 + $0x50] sm:$0xff] }
 0x240   :  { %1741 = vmatprep.mubr.f32.mxu0 %v313_v30  ;;  %v502_v30 = vld [vmem:[%s15513_s0 + $0xf10] sm:$0xff] }
 0x242   :  { %6582 = vmatmul.mubr.f32.gmra.mrb[76].mxu1 %v145_v9  ;;  %v2751_v9 = vld [vmem:[%s15514_s3 + $0x78] sm:$0xff] }
 0x243   :  { %1742 = vmatmul.mubr.f32.gmra.mrb[64].mxu0 %v312_v32  ;;  %6584 = vmatprep.mubr.f32.mxu1 %v154_v13  ;;  %v217_v32 = vld [vmem:[%s15513_s0 + $0x628] sm:$0xff]  ;;  %v564_v13 = vld [vmem:[%s15513_s0 + $0x1100] sm:$0xff] }
 0x244   :  { %1746 = vmatprep.mubr.f32.mxu0 %v322_v34  ;;  %v511_v34 = vld [vmem:[%s15513_s0 + $0xf58] sm:$0xff] }
 0x246   :  { %6585 = vmatmul.mubr.f32.gmra.mrb[78].mxu1 %v163_v14  ;;  %v574_v14 = vld [vmem:[%s15513_s0 + $0x1150] sm:$0xff] }
 0x247   :  { %1747 = vmatmul.mubr.f32.gmra.mrb[66].mxu0 %v321_v36  ;;  %6587 = vmatprep.mubr.f32.mxu1 %v172_v19  ;;  %v975_v36 = vpop.f32.mrb[1].mxu1  ;;  %v573_v19 = vld [vmem:[%s15513_s0 + $0x1148] sm:$0xff] }
 0x248   :  { %1751 = vmatprep.mubr.f32.mxu0 %v331_v38  ;;  %v520_v38 = vld [vmem:[%s15513_s0 + $0xfa0] sm:$0xff]  ;;  %v27_v36 = vld [vmem:[%s15513_s0 + $0x38] sm:$0xff] }
 0x24a   :  { %6588 = vmatmul.mubr.f32.gmra.mrb[80].mxu1 %v181_v20  ;;  %v583_v20 = vld [vmem:[%s15513_s0 + $0x1198] sm:$0xff] }
 0x24b   :  { %1752 = vmatmul.mubr.f32.gmra.mrb[68].mxu0 %v330_v39  ;;  %6590 = vmatprep.mubr.f32.mxu1 %v190_v25  ;;  %v226_v39 = vld [vmem:[%s15513_s0 + $0x670] sm:$0xff] }
 0x24c   :  { %1756 = vmatprep.mubr.f32.mxu0 %v340_v40  ;;  %v235_v40 = vld [vmem:[%s15513_s0 + $0x6b8] sm:$0xff]  ;;  %v298_v25 = vld [vmem:[%s15513_s0 + $0x8b0] sm:$0xff] }
 0x24e   :  { %6591 = vmatmul.mubr.f32.gmra.mrb[82].mxu1 %v199_v26 }
 0x24f   :  { %1757 = vmatmul.mubr.f32.gmra.mrb[70].mxu0 %v339_v43  ;;  %6593 = vmatprep.mubr.f32.mxu1 %v208_v31  ;;  %v2742_v43 = vld [vmem:[%s15514_s3 + $0x30] sm:$0xff]  ;;  %v591_v31 = vld [vmem:[%s15513_s0 + $0x11d8] sm:$0xff] }
 0x250   :  { %1761 = vmatprep.mubr.f32.mxu0 %v349_v44  ;;  %v2736_v44 = vld [vmem:[%s15514_s3] sm:$0xff]  ;;  %v7011_v47 = vpack.c.bf16 %v2742_v43, %v2737_v42 }
 0x251   :  { %v316_v42 = vld [vmem:[%s15513_s0 + $0x940] sm:$0xff] }
 0x252   :  { %6594 = vmatmul.mubr.f32.gmra.mrb[84].mxu1 %v217_v32  ;;  %7012 = vmatprep.subr.bf16.mxu1 %v7011_v47  ;;  %v35_v47 = vld [vmem:[%s15513_s0 + $0x78] sm:$0xff] }
 0x253   :  { %1762 = vmatmul.mubr.f32.gmra.mrb[72].mxu0 %v348_v45  ;;  %6596 = vmatprep.mubr.f32.mxu1 %v226_v39  ;;  %v529_v45 = vld [vmem:[%s15513_s0 + $0xfe8] sm:$0xff] }
 0x254   :  { %1766 = vmatprep.mubr.f32.mxu0 %v358_v46  ;;  %v10381_v46 = vpop.f32.mrb[2].mxu1 }
 0x256   :  { %6597 = vmatmul.mubr.f32.gmra.mrb[86].mxu1 %v235_v40  ;;  %v26_v40 = vld [vmem:[%s15513_s0 + $0x30] sm:$0xff] }
 0x257   :  { %1767 = vmatmul.mubr.f32.gmra.mrb[74].mxu0 %v357_v49  ;;  %v980_v49 = vpop.f32.mrb[3].mxu1  ;;  %6599 = vmatprep.mubr.f32.mxu1 %v244_v54  ;;  %v334_v54 = vld [vmem:[%s15513_s0 + $0x9d0] sm:$0xff] }
 0x258   :  { %1771 = vmatprep.mubr.f32.mxu0 %v367_v50  ;;  %v7013_v50 = vpack.c.bf16 %v2741_v48, %v2736_v44  ;;  %v10392_v53 = vpop.f32.mrb[4].mxu1  ;;  %v325_v44 = vld [vmem:[%s15513_s0 + $0x988] sm:$0xff] }
 0x259   :  { %v45_v48 = vld [vmem:[%s15513_s0 + $0xc8] sm:$0xff] }
 0x25a   :  { %7014 = vmatpush1.bf16.msra.mxu1 %v7013_v50 }
 0x25b   :  { %1772 = vmatmul.mubr.f32.gmra.mrb[76].mxu0 %v366_v51  ;;  %v528_v51 = vld [vmem:[%s15513_s0 + $0xfe0] sm:$0xff] }
 0x25c   :  { %1776 = vmatprep.mubr.f32.mxu0 %v376_v52  ;;  %v538_v52 = vld [vmem:[%s15513_s0 + $0x1030] sm:$0xff] }
 0x25f   :  { %1777 = vmatmul.mubr.f32.gmra.mrb[78].mxu0 %v375_v55  ;;  %v985_v55 = vpop.f32.mrb[5].mxu1 }
 0x260   :  { %1781 = vmatprep.mubr.f32.mxu0 %v385_v56  ;;  %v253_v56 = vld [vmem:[%s15513_s0 + $0x748] sm:$0xff]  ;;  %v10406_v59 = vpop.f32.mrb[6].mxu1 }
 0x261   :  { %6600 = vmatmul.mubr.f32.gmra.mrb[88].mxu1 %v253_v56  ;;  %v990_v60 = vpop.f32.mrb[7].mxu1  ;;  %v343_v56 = vld [vmem:[%s15513_s0 + $0xa18] sm:$0xff] }
 0x262   :  { %v2772_v60 = vld [vmem:[%s15514_s3 + $0x120] sm:$0xff] }
 0x263   :  { %1782 = vmatmul.mubr.f32.gmra.mrb[80].mxu0 %v384_v57  ;;  %v537_v57 = vld [vmem:[%s15513_s0 + $0x1028] sm:$0xff] }
 0x264   :  { %1786 = vmatprep.mubr.f32.mxu0 %v394_v58  ;;  %v547_v58 = vld [vmem:[%s15513_s0 + $0x1078] sm:$0xff] }
 0x267   :  { %1787 = vmatmul.mubr.f32.gmra.mrb[82].mxu0 %v393_v61  ;;  %v546_v61 = vld [vmem:[%s15513_s0 + $0x1070] sm:$0xff] }
 0x268   :  { %1791 = vmatprep.mubr.f32.mxu0 %v403_v62  ;;  %v556_v62 = vld [vmem:[%s15513_s0 + $0x10c0] sm:$0xff] }
 0x26b   :  { %1792 = vmatmul.mubr.f32.gmra.mrb[84].mxu0 %v402_v63  ;;  %v10414_v63 = vpop.f32.mrb[8].mxu1 }
 0x26c   :  { %1796 = vmatprep.mubr.f32.mxu0 %v412_v1  ;;  %v262_v1 = vld [vmem:[%s15513_s0 + $0x790] sm:$0xff]  ;;  %v995_v2 = vpop.f32.mrb[9].mxu1 }
 0x26d   :  { %6602 = vmatprep.mubr.f32.mxu1 %v262_v1  ;;  %v2766_v1 = vld [vmem:[%s15514_s3 + $0xf0] sm:$0xff]  ;;  %v2771_v2 = vld [vmem:[%s15514_s3 + $0x118] sm:$0xff] }
 0x26e   :  { %6603 = vmatmul.mubr.f32.gmra.mrb[90].mxu1 %v271_v3  ;;  %v63_v3 = vld [vmem:[%s15513_s0 + $0x158] sm:$0xff] }
 0x26f   :  { %1797 = vmatmul.mubr.f32.gmra.mrb[86].mxu0 %v411_v4  ;;  %v2747_v4 = vld [vmem:[%s15514_s3 + $0x58] sm:$0xff] }
 0x270   :  { %1801 = vmatprep.mubr.f32.mxu0 %v421_v5  ;;  %v2752_v5 = vld [vmem:[%s15514_s3 + $0x80] sm:$0xff] }
 0x273   :  { %1802 = vmatmul.mubr.f32.gmra.mrb[88].mxu0 %v420_v6  ;;  %v555_v6 = vld [vmem:[%s15513_s0 + $0x10b8] sm:$0xff] }
 0x274   :  { %1806 = vmatprep.mubr.f32.mxu0 %v430_v7  ;;  %v7015_v7 = vpack.c.bf16 %v2752_v5, %v2747_v4  ;;  %v7025_v4 = vpack.c.bf16 %v2771_v2, %v2766_v1  ;;  %v2786_v2 = vld [vmem:[%s15514_s3 + $0x190] sm:$0xff] }
 0x276   :  { %7016 = vmatprep.subr.bf16.mxu1 %v7015_v7  ;;  %v62_v7 = vld [vmem:[%s15513_s0 + $0x150] sm:$0xff] }
 0x277   :  { %1807 = vmatmul.mubr.f32.gmra.mrb[90].mxu0 %v429_v0  ;;  %v565_v0 = vld [vmem:[%s15513_s0 + $0x1108] sm:$0xff] }
 0x278   :  { %1811 = vmatprep.mubr.f32.mxu0 %v439_v10  ;;  %v7017_v10 = vpack.c.bf16 %v2751_v9, %v2746_v8  ;;  %v72_v8 = vld [vmem:[%s15513_s0 + $0x1a0] sm:$0xff] }
 0x279   :  { %v352_v9 = vld [vmem:[%s15513_s0 + $0xa60] sm:$0xff] }
 0x27a   :  { %7018 = vmatpush1.bf16.msra.mxu1 %v7017_v10  ;;  %v361_v10 = vld [vmem:[%s15513_s0 + $0xaa8] sm:$0xff] }
 0x27b   :  { %1812 = vmatmul.mubr.f32.gmra.mrb[92].mxu0 %v438_v11 }
 0x27c   :  { %1816 = vmatprep.mubr.f32.mxu0 %v448_v12 }
 0x27f   :  { %1817 = vmatmul.mubr.f32.gmra.mrb[94].mxu0 %v447_v15  ;;  %v10440_v11 = vpop.f32.mrb[10].mxu1  ;;  %v280_v15 = vld [vmem:[%s15513_s0 + $0x820] sm:$0xff] }
 0x280   :  { %1821 = vmatprep.mubr.f32.mxu0 %v457_v16  ;;  %v1000_v12 = vpop.f32.mrb[11].mxu1  ;;  %6605 = vmatprep.mubr.f32.mxu1 %v280_v15 }
 0x283   :  { %1822 = vmatmul.mubr.f32.gmra.mrb[96].mxu0 %v456_v17  ;;  %v289_v17 = vld [vmem:[%s15513_s0 + $0x868] sm:$0xff] }
 0x284   :  { %1826 = vmatprep.mubr.f32.mxu0 %v466_v18  ;;  %6606 = vmatmul.mubr.f32.gmra.mrb[92].mxu1 %v289_v17 }
 0x285   :  { %6608 = vmatprep.mubr.f32.mxu1 %v298_v25  ;;  %v2777_v25 = vld [vmem:[%s15514_s3 + $0x148] sm:$0xff] }
 0x287   :  { %1827 = vmatmul.mubr.f32.gmra.mrb[98].mxu0 %v465_v21 }
 0x288   :  { %1831 = vmatprep.mubr.f32.mxu0 %v475_v22 }
 0x28b   :  { %1832 = vmatmul.mubr.f32.gmra.mrb[100].mxu0 %v474_v23  ;;  %v582_v23 = vld [vmem:[%s15513_s0 + $0x1190] sm:$0xff] }
 0x28c   :  { %1836 = vmatprep.mubr.f32.mxu0 %v484_v24  ;;  %v10451_v16 = vpop.f32.mrb[12].mxu1  ;;  %v592_v24 = vld [vmem:[%s15513_s0 + $0x11e0] sm:$0xff] }
 0x28d   :  { %v1005_v18 = vpop.f32.mrb[13].mxu1 }
 0x28e   :  { %v80_v18 = vld [vmem:[%s15513_s0 + $0x1e0] sm:$0xff] }
 0x28f   :  { %1837 = vmatmul.mubr.f32.gmra.mrb[102].mxu0 %v483_v27  ;;  %v307_v27 = vld [vmem:[%s15513_s0 + $0x8f8] sm:$0xff] }
 0x290   :  { %1841 = vmatprep.mubr.f32.mxu0 %v493_v28  ;;  %6609 = vmatmul.mubr.f32.gmra.mrb[94].mxu1 %v307_v27  ;;  %v2782_v27 = vld [vmem:[%s15514_s3 + $0x170] sm:$0xff] }
 0x291   :  { %6611 = vmatprep.mubr.f32.mxu1 %v316_v42  ;;  %v397_v42 = vld [vmem:[%s15513_s0 + $0xbc8] sm:$0xff] }
 0x293   :  { %1842 = vmatmul.mubr.f32.gmra.mrb[104].mxu0 %v492_v29  ;;  %v2757_v29 = vld [vmem:[%s15514_s3 + $0xa8] sm:$0xff] }
 0x294   :  { %1846 = vmatprep.mubr.f32.mxu0 %v502_v30  ;;  %v2762_v30 = vld [vmem:[%s15514_s3 + $0xd0] sm:$0xff]  ;;  %6612 = vmatmul.mubr.f32.gmra.mrb[96].mxu1 %v325_v44 }
 0x295   :  { %v7019_v32 = vpack.c.bf16 %v2762_v30, %v2757_v29  ;;  %6614 = vmatprep.mubr.f32.mxu1 %v334_v54  ;;  %v7027_v29 = vpack.c.bf16 %v2782_v27, %v2777_v25  ;;  %v2776_v30 = vld [vmem:[%s15514_s3 + $0x140] sm:$0xff]  ;;  %v406_v54 = vld [vmem:[%s15513_s0 + $0xc10] sm:$0xff]  ;;  %v451_v25 = vld [vmem:[%s15513_s0 + $0xd78] sm:$0xff] }
 0x296   :  { %v152_v27 = vld [vmem:[%s15513_s0 + $0x420] sm:$0xff] }
 0x297   :  { %1847 = vmatmul.mubr.f32.gmra.mrb[106].mxu0 %v501_v33  ;;  %v2756_v33 = vld [vmem:[%s15514_s3 + $0xa0] sm:$0xff]  ;;  %7020 = vmatprep.subr.bf16.mxu1 %v7019_v32  ;;  %v99_v32 = vld [vmem:[%s15513_s0 + $0x278] sm:$0xff] }
 0x298   :  { %1851 = vmatprep.mubr.f32.mxu0 %v511_v34  ;;  %v10462_v21 = vpop.f32.mrb[14].mxu1  ;;  %v2761_v34 = vld [vmem:[%s15514_s3 + $0xc8] sm:$0xff]  ;;  %6615 = vmatmul.mubr.f32.gmra.mrb[98].mxu1 %v343_v56 }
 0x299   :  { %v1010_v22 = vpop.f32.mrb[15].mxu1  ;;  %6617 = vmatprep.mubr.f32.mxu1 %v352_v9  ;;  %v134_v9 = vld [vmem:[%s15513_s0 + $0x390] sm:$0xff] }
 0x29b   :  { %1852 = vmatmul.mubr.f32.gmra.mrb[108].mxu0 %v510_v37  ;;  %v7021_v37 = vpack.c.bf16 %v2761_v34, %v2756_v33 }
 0x29c   :  { %1856 = vmatprep.mubr.f32.mxu0 %v520_v38  ;;  %v10473_v26 = vpop.f32.mrb[16].mxu1  ;;  %6618 = vmatmul.mubr.f32.gmra.mrb[100].mxu1 %v361_v10  ;;  %v144_v10 = vld [vmem:[%s15513_s0 + $0x3e0] sm:$0xff] }
 0x29d   :  { %v1015_v28 = vpop.f32.mrb[17].mxu1  ;;  %7022 = vmatpush1.bf16.msra.mxu1 %v7021_v37  ;;  %v98_v37 = vld [vmem:[%s15513_s0 + $0x270] sm:$0xff] }
 0x29e   :  { %v89_v28 = vld [vmem:[%s15513_s0 + $0x228] sm:$0xff] }
 0x29f   :  { %1857 = vmatmul.mubr.f32.gmra.mrb[110].mxu0 %v519_v41  ;;  %v36_v41 = vld [vmem:[%s15513_s0 + $0x80] sm:$0xff] }
 0x2a0   :  { %1861 = vmatprep.mubr.f32.mxu0 %v529_v45 }
 0x2a1   :  { %v10496_v38 = vpop.f32.mrb[18].mxu1 }
 0x2a2   :  { %v1020_v39 = vpop.f32.mrb[19].mxu1 }
 0x2a3   :  { %1862 = vmatmul.mubr.f32.gmra.mrb[112].mxu0 %v528_v51  ;;  %v44_v51 = vld [vmem:[%s15513_s0 + $0xc0] sm:$0xff] }
 0x2a4   :  { %1866 = vmatprep.mubr.f32.mxu0 %v538_v52  ;;  %v54_v52 = vld [vmem:[%s15513_s0 + $0x110] sm:$0xff]  ;;  %v108_v39 = vld [vmem:[%s15513_s0 + $0x2c0] sm:$0xff] }
 0x2a5   :  { %v10507_v43 = vpop.f32.mrb[20].mxu1 }
 0x2a6   :  { %v1025_v45 = vpop.f32.mrb[21].mxu1 }
 0x2a7   :  { %1867 = vmatmul.mubr.f32.gmra.mrb[114].mxu0 %v537_v57  ;;  %v107_v45 = vld [vmem:[%s15513_s0 + $0x2b8] sm:$0xff] }
 0x2a8   :  { %1871 = vmatprep.mubr.f32.mxu0 %v547_v58  ;;  %v2767_v58 = vld [vmem:[%s15514_s3 + $0xf8] sm:$0xff] }
 0x2a9   :  { %v10518_v49 = vpop.f32.mrb[22].mxu1 }
 0x2aa   :  { %15997 = vst [vmem:[#allocation2_spill] sm:$0xff] %v10518_v49  ;;  %v1030_v50 = vpop.f32.mrb[23].mxu1 }
 0x2ab   :  { %1872 = vmatmul.mubr.f32.gmra.mrb[116].mxu0 %v546_v61  ;;  %v53_v61 = vld [vmem:[%s15513_s0 + $0x108] sm:$0xff] }
 0x2ac   :  { %1876 = vmatprep.mubr.f32.mxu0 %v556_v62  ;;  %v7023_v62 = vpack.c.bf16 %v2772_v60, %v2767_v58  ;;  %v2787_v60 = vld [vmem:[%s15514_s3 + $0x198] sm:$0xff] }
 0x2ad   :  { %v10529_v55 = vpop.f32.mrb[24].mxu1 }
 0x2ae   :  { %15998 = vst [vmem:[#allocation3_spill] sm:$0xff] %v10529_v55  ;;  %v1035_v57 = vpop.f32.mrb[25].mxu1  ;;  %7024 = vmatprep.subr.bf16.mxu1 %v7023_v62  ;;  %v125_v62 = vld [vmem:[%s15513_s0 + $0x348] sm:$0xff] }
 0x2af   :  { %1877 = vmatmul.mubr.f32.gmra.mrb[118].mxu0 %v555_v6  ;;  %7026 = vmatpush1.bf16.msra.mxu1 %v7025_v4  ;;  %v415_v57 = vld [vmem:[%s15513_s0 + $0xc58] sm:$0xff] }
 0x2b0   :  { %1881 = vmatprep.mubr.f32.mxu0 %v565_v0  ;;  %7028 = vmatprep.subr.bf16.mxu1 %v7027_v29  ;;  %v135_v4 = vld [vmem:[%s15513_s0 + $0x398] sm:$0xff] }
 0x2b1   :  { %v10552_v5 = vpop.f32.mrb[26].mxu1 }
 0x2b2   :  { %15999 = vst [vmem:[#allocation4_spill] sm:$0xff] %v10552_v5  ;;  %v1040_v6 = vpop.f32.mrb[27].mxu1 }
 0x2b3   :  { %1882 = vmatmul.mubr.f32.gmra.mrb[120].mxu0 %v564_v13  ;;  %v71_v13 = vld [vmem:[%s15513_s0 + $0x198] sm:$0xff] }
 0x2b4   :  { %1886 = vmatprep.mubr.f32.mxu0 %v574_v14  ;;  %v81_v14 = vld [vmem:[%s15513_s0 + $0x1e8] sm:$0xff] }
 0x2b5   :  { %v10563_v0 = vpop.f32.mrb[28].mxu1 }
 0x2b6   :  { %16000 = vst [vmem:[#allocation5_spill] sm:$0xff] %v10563_v0  ;;  %v1045_v12 = vpop.f32.mrb[29].mxu1  ;;  %v2748_v0 = vld [vmem:[%s15514_s3 + $0x60] sm:$0xff] }
 0x2b7   :  { %1887 = vmatmul.mubr.f32.gmra.mrb[122].mxu0 %v573_v19  ;;  %v90_v19 = vld [vmem:[%s15513_s0 + $0x230] sm:$0xff]  ;;  %v424_v12 = vld [vmem:[%s15513_s0 + $0xca0] sm:$0xff] }
 0x2b8   :  { %1891 = vmatprep.mubr.f32.mxu0 %v583_v20  ;;  %v370_v20 = vld [vmem:[%s15513_s0 + $0xaf0] sm:$0xff] }
 0x2b9   :  { %v10574_v15 = vpop.f32.mrb[30].mxu1  ;;  %6620 = vmatprep.mubr.f32.mxu1 %v370_v20 }
 0x2ba   :  { %16001 = vst [vmem:[#allocation6_spill] sm:$0xff] %v10574_v15  ;;  %v1050_v17 = vpop.f32.mrb[31].mxu1 }
 0x2bb   :  { %1892 = vmatmul.mubr.f32.gmra.mrb[124].mxu0 %v582_v23  ;;  %v379_v23 = vld [vmem:[%s15513_s0 + $0xb38] sm:$0xff] }
 0x2bc   :  { %1896 = vmatprep.mubr.f32.mxu0 %v592_v24  ;;  %6621 = vmatmul.mubr.f32.gmra.mrb[102].mxu1 %v379_v23  ;;  %v442_v23 = vld [vmem:[%s15513_s0 + $0xd30] sm:$0xff] }
 0x2bd   :  { %v10585_v22 = vpop.f32.mrb[32].mxu1 }
 0x2be   :  { %16002 = vst [vmem:[#allocation7_spill] sm:$0xff] %v10585_v22  ;;  %v1055_v24 = vpop.f32.mrb[33].mxu1 }
 0x2bf   :  { %1897 = vmatmul.mubr.f32.gmra.mrb[126].mxu0 %v591_v31  ;;  %v2781_v31 = vld [vmem:[%s15514_s3 + $0x168] sm:$0xff] }
 0x2c0   :  { %1966 = vmatprep.mubr.f32.mxu0 %v27_v36  ;;  %v7029_v33 = vpack.c.bf16 %v2781_v31, %v2776_v30  ;;  %v460_v30 = vld [vmem:[%s15513_s0 + $0xdc0] sm:$0xff] }
 0x2c1   :  { %v10608_v34 = vpop.f32.mrb[34].mxu1 }
 0x2c2   :  { %16003 = vst [vmem:[#allocation8_spill] sm:$0xff] %v10608_v34  ;;  %v1060_v36 = vpop.f32.mrb[35].mxu1  ;;  %7030 = vmatpush1.bf16.msra.mxu1 %v7029_v33  ;;  %v2797_v33 = vld [vmem:[%s15514_s3 + $0x1e8] sm:$0xff] }
 0x2c3   :  { %1967 = vmatmul.mubr.f32.vlgmr.msra.gmra.mrb[0].mxu0 %v26_v40  ;;  %v388_v40 = vld [vmem:[%s15513_s0 + $0xb80] sm:$0xff]  ;;  %v2802_v36 = vld [vmem:[%s15514_s3 + $0x210] sm:$0xff] }
 0x2c4   :  { %1971 = vmatprep.mubr.f32.mxu0 %v36_v41  ;;  %6623 = vmatprep.mubr.f32.mxu1 %v388_v40  ;;  %v2796_v40 = vld [vmem:[%s15514_s3 + $0x1e0] sm:$0xff] }
 0x2c5   :  { %v10619_v41 = vpop.f32.mrb[36].mxu1  ;;  %6624 = vmatmul.mubr.f32.gmra.mrb[104].mxu1 %v397_v42  ;;  %v2801_v42 = vld [vmem:[%s15514_s3 + $0x208] sm:$0xff] }
 0x2c6   :  { %16004 = vst [vmem:[#allocation9_spill] sm:$0xff] %v10619_v41  ;;  %v1065_v44 = vpop.f32.mrb[37].mxu1  ;;  %6626 = vmatprep.mubr.f32.mxu1 %v406_v54  ;;  %v170_v54 = vld [vmem:[%s15513_s0 + $0x4b0] sm:$0xff] }
 0x2c7   :  { %1972 = vmatmul.mubr.f32.gmra.mrb[2].mxu0 %v35_v47  ;;  %v117_v47 = vld [vmem:[%s15513_s0 + $0x308] sm:$0xff]  ;;  %v171_v44 = vld [vmem:[%s15513_s0 + $0x4b8] sm:$0xff] }
 0x2c8   :  { %1976 = vmatprep.mubr.f32.mxu0 %v45_v48 }
 0x2c9   :  { %v10630_v48 = vpop.f32.mrb[38].mxu1  ;;  %6627 = vmatmul.mubr.f32.gmra.mrb[106].mxu1 %v415_v57  ;;  %v180_v57 = vld [vmem:[%s15513_s0 + $0x500] sm:$0xff] }
 0x2ca   :  { %16005 = vst [vmem:[#allocation10_spill] sm:$0xff] %v10630_v48  ;;  %v1070_v50 = vpop.f32.mrb[39].mxu1  ;;  %6629 = vmatprep.mubr.f32.mxu1 %v424_v12 }
 0x2cb   :  { %1977 = vmatmul.mubr.f32.gmra.mrb[4].mxu0 %v44_v51  ;;  %v116_v51 = vld [vmem:[%s15513_s0 + $0x300] sm:$0xff]  ;;  %v478_v50 = vld [vmem:[%s15513_s0 + $0xe50] sm:$0xff] }
 0x2cc   :  { %1981 = vmatprep.mubr.f32.mxu0 %v54_v52  ;;  %v126_v52 = vld [vmem:[%s15513_s0 + $0x350] sm:$0xff] }
 0x2cd   :  { %v10641_v56 = vpop.f32.mrb[40].mxu1 }
 0x2ce   :  { %16006 = vst [vmem:[#allocation11_spill] sm:$0xff] %v10641_v56  ;;  %v1075_v58 = vpop.f32.mrb[41].mxu1  ;;  %v522_v56 = vld [vmem:[%s15513_s0 + $0xfb0] sm:$0xff] }
 0x2cf   :  { %1982 = vmatmul.mubr.f32.gmra.mrb[6].mxu0 %v53_v61  ;;  %v2792_v61 = vld [vmem:[%s15514_s3 + $0x1c0] sm:$0xff] }
 0x2d0   :  { %1986 = vmatprep.mubr.f32.mxu0 %v63_v3  ;;  %v7031_v1 = vpack.c.bf16 %v2792_v61, %v2787_v60  ;;  %v2791_v3 = vld [vmem:[%s15514_s3 + $0x1b8] sm:$0xff]  ;;  %v496_v60 = vld [vmem:[%s15513_s0 + $0xee0] sm:$0xff] }
 0x2d1   :  { %v7033_v6 = vpack.c.bf16 %v2791_v3, %v2786_v2  ;;  %v189_v2 = vld [vmem:[%s15513_s0 + $0x548] sm:$0xff] }
 0x2d2   :  { %7032 = vmatprep.subr.bf16.mxu1 %v7031_v1  ;;  %v179_v1 = vld [vmem:[%s15513_s0 + $0x4f8] sm:$0xff] }
 0x2d3   :  { %1987 = vmatmul.mubr.f32.gmra.mrb[8].mxu0 %v62_v7  ;;  %v10664_v7 = vpop.f32.mrb[42].mxu1  ;;  %7034 = vmatpush1.bf16.msra.mxu1 %v7033_v6 }
 0x2d4   :  { %1991 = vmatprep.mubr.f32.mxu0 %v72_v8  ;;  %16007 = vst [vmem:[#allocation12_spill] sm:$0xff] %v10664_v7  ;;  %v1080_v8 = vpop.f32.mrb[43].mxu1  ;;  %v512_v7 = vld [vmem:[%s15513_s0 + $0xf60] sm:$0xff] }
 0x2d5   :  { %v523_v8 = vld [vmem:[%s15513_s0 + $0xfb8] sm:$0xff] }
 0x2d7   :  { %1992 = vmatmul.mubr.f32.gmra.mrb[10].mxu0 %v71_v13  ;;  %v10675_v13 = vpop.f32.mrb[44].mxu1 }
 0x2d8   :  { %1996 = vmatprep.mubr.f32.mxu0 %v81_v14  ;;  %16008 = vst [vmem:[#allocation13_spill] sm:$0xff] %v10675_v13  ;;  %v433_v14 = vld [vmem:[%s15513_s0 + $0xce8] sm:$0xff]  ;;  %v1085_v17 = vpop.f32.mrb[45].mxu1 }
 0x2d9   :  { %6630 = vmatmul.mubr.f32.gmra.mrb[108].mxu1 %v433_v14  ;;  %v10686_v20 = vpop.f32.mrb[46].mxu1  ;;  %v532_v14 = vld [vmem:[%s15513_s0 + $0x1000] sm:$0xff] }
 0x2da   :  { %16009 = vst [vmem:[#allocation14_spill] sm:$0xff] %v10686_v20  ;;  %v1090_v24 = vpop.f32.mrb[47].mxu1  ;;  %6632 = vmatprep.mubr.f32.mxu1 %v442_v23  ;;  %v2812_v23 = vld [vmem:[%s15514_s3 + $0x260] sm:$0xff]  ;;  %v2743_v20 = vld [vmem:[%s15514_s3 + $0x38] sm:$0xff] }
 0x2db   :  { %1997 = vmatmul.mubr.f32.gmra.mrb[12].mxu0 %v80_v18  ;;  %v143_v18 = vld [vmem:[%s15513_s0 + $0x3d8] sm:$0xff]  ;;  %v197_v24 = vld [vmem:[%s15513_s0 + $0x588] sm:$0xff] }
 0x2dc   :  { %2001 = vmatprep.mubr.f32.mxu0 %v90_v19  ;;  %v153_v19 = vld [vmem:[%s15513_s0 + $0x428] sm:$0xff] }
 0x2dd   :  { %6633 = vmatmul.mubr.f32.gmra.mrb[110].mxu1 %v451_v25  ;;  %v10700_v29 = vpop.f32.mrb[48].mxu1 }
 0x2de   :  { %16010 = vst [vmem:[#allocation15_spill] sm:$0xff] %v10700_v29  ;;  %v1095_v31 = vpop.f32.mrb[49].mxu1  ;;  %6635 = vmatprep.mubr.f32.mxu1 %v460_v30  ;;  %v207_v30 = vld [vmem:[%s15513_s0 + $0x5d8] sm:$0xff] }
 0x2df   :  { %2002 = vmatmul.mubr.f32.gmra.mrb[14].mxu0 %v89_v28  ;;  %v162_v28 = vld [vmem:[%s15513_s0 + $0x470] sm:$0xff] }
 0x2e0   :  { %2006 = vmatprep.mubr.f32.mxu0 %v99_v32  ;;  %v469_v32 = vld [vmem:[%s15513_s0 + $0xe08] sm:$0xff] }
 0x2e1   :  { %6636 = vmatmul.mubr.f32.gmra.mrb[112].mxu1 %v469_v32 }
 0x2e2   :  { %6638 = vmatprep.mubr.f32.mxu1 %v478_v50  ;;  %v577_v50 = vld [vmem:[%s15513_s0 + $0x1168] sm:$0xff] }
 0x2e3   :  { %2007 = vmatmul.mubr.f32.gmra.mrb[16].mxu0 %v98_v37  ;;  %v161_v37 = vld [vmem:[%s15513_s0 + $0x468] sm:$0xff] }
 0x2e4   :  { %2011 = vmatprep.mubr.f32.mxu0 %v108_v39  ;;  %v7035_v39 = vpack.c.bf16 %v2802_v36, %v2797_v33  ;;  %v550_v33 = vld [vmem:[%s15513_s0 + $0x1090] sm:$0xff] }
 0x2e6   :  { %7036 = vmatprep.subr.bf16.mxu1 %v7035_v39  ;;  %v206_v39 = vld [vmem:[%s15513_s0 + $0x5d0] sm:$0xff] }
 0x2e7   :  { %2012 = vmatmul.mubr.f32.gmra.mrb[18].mxu0 %v107_v45  ;;  %v7037_v45 = vpack.c.bf16 %v2801_v42, %v2796_v40  ;;  %v216_v40 = vld [vmem:[%s15513_s0 + $0x620] sm:$0xff] }
 0x2e8   :  { %2016 = vmatprep.mubr.f32.mxu0 %v117_v47  ;;  %v10726_v47 = vpop.f32.mrb[50].mxu1 }
 0x2e9   :  { %16011 = vst [vmem:[#allocation16_spill] sm:$0xff] %v10726_v47  ;;  %7038 = vmatpush1.bf16.msra.mxu1 %v7037_v45 }
 0x2eb   :  { %2017 = vmatmul.mubr.f32.gmra.mrb[20].mxu0 %v116_v51  ;;  %v1100_v51 = vpop.f32.mrb[51].mxu1 }
 0x2ec   :  { %2021 = vmatprep.mubr.f32.mxu0 %v126_v52  ;;  %v487_v52 = vld [vmem:[%s15513_s0 + $0xe98] sm:$0xff]  ;;  %v10740_v58 = vpop.f32.mrb[52].mxu1 }
 0x2ed   :  { %6639 = vmatmul.mubr.f32.gmra.mrb[114].mxu1 %v487_v52  ;;  %16012 = vst [vmem:[#allocation17_spill] sm:$0xff] %v10740_v58  ;;  %v1105_v61 = vpop.f32.mrb[53].mxu1  ;;  %v215_v51 = vld [vmem:[%s15513_s0 + $0x618] sm:$0xff]  ;;  %v225_v52 = vld [vmem:[%s15513_s0 + $0x668] sm:$0xff] }
 0x2ee   :  { %6641 = vmatprep.mubr.f32.mxu1 %v496_v60  ;;  %v10754_v3 = vpop.f32.mrb[54].mxu1  ;;  %v595_v61 = vld [vmem:[%s15513_s0 + $0x11f8] sm:$0xff] }
 0x2ef   :  { %2022 = vmatmul.mubr.f32.gmra.mrb[22].mxu0 %v125_v62  ;;  %v505_v62 = vld [vmem:[%s15513_s0 + $0xf28] sm:$0xff]  ;;  %16013 = vst [vmem:[#allocation18_spill] sm:$0xff] %v10754_v3  ;;  %v1110_v6 = vpop.f32.mrb[55].mxu1  ;;  %v494_v3 = vld [vmem:[%s15513_s0 + $0xed0] sm:$0xff] }
 0x2f0   :  { %2026 = vmatprep.mubr.f32.mxu0 %v135_v4  ;;  %v514_v4 = vld [vmem:[%s15513_s0 + $0xf70] sm:$0xff]  ;;  %v10768_v12 = vpop.f32.mrb[56].mxu1  ;;  %v233_v6 = vld [vmem:[%s15513_s0 + $0x6a8] sm:$0xff] }
 0x2f1   :  { %6642 = vmatmul.mubr.f32.gmra.mrb[116].mxu1 %v505_v62  ;;  %16014 = vst [vmem:[#allocation19_spill] sm:$0xff] %v10768_v12  ;;  %v1115_v17 = vpop.f32.mrb[57].mxu1  ;;  %v224_v62 = vld [vmem:[%s15513_s0 + $0x660] sm:$0xff] }
 0x2f2   :  { %6644 = vmatprep.mubr.f32.mxu1 %v514_v4  ;;  %v10794_v32 = vpop.f32.mrb[58].mxu1  ;;  %v2744_v17 = vld [vmem:[%s15514_s3 + $0x40] sm:$0xff] }
 0x2f3   :  { %2027 = vmatmul.mubr.f32.gmra.mrb[24].mxu0 %v134_v9  ;;  %v188_v9 = vld [vmem:[%s15513_s0 + $0x540] sm:$0xff]  ;;  %16015 = vst [vmem:[#allocation20_spill] sm:$0xff] %v10794_v32  ;;  %v1120_v36 = vpop.f32.mrb[59].mxu1 }
 0x2f4   :  { %2031 = vmatprep.mubr.f32.mxu0 %v144_v10  ;;  %v198_v10 = vld [vmem:[%s15513_s0 + $0x590] sm:$0xff]  ;;  %v269_v36 = vld [vmem:[%s15513_s0 + $0x7c8] sm:$0xff]  ;;  %v476_v32 = vld [vmem:[%s15513_s0 + $0xe40] sm:$0xff] }
 0x2f5   :  { %6645 = vmatmul.mubr.f32.gmra.mrb[118].mxu1 %v523_v8  ;;  %v10808_v42 = vpop.f32.mrb[60].mxu1  ;;  %v15518_v8 = vmov 0.0  }
 0x2f6   :  { %6647 = vmatprep.mubr.f32.mxu1 %v532_v14  ;;  %16016 = vst [vmem:[#allocation21_spill] sm:$0xff] %v10808_v42  ;;  %v1125_v45 = vpop.f32.mrb[61].mxu1  ;;  %v2739_v14 = vld [vmem:[%s15514_s3 + $0x18] sm:$0xff] }
 0x2f7   :  { %2032 = vmatmul.mubr.f32.gmra.mrb[26].mxu0 %v143_v18  ;;  %v541_v18 = vld [vmem:[%s15513_s0 + $0x1048] sm:$0xff]  ;;  %v288_v45 = vld [vmem:[%s15513_s0 + $0x860] sm:$0xff] }
 0x2f8   :  { %2036 = vmatprep.mubr.f32.mxu0 %v153_v19  ;;  %v2807_v19 = vld [vmem:[%s15514_s3 + $0x238] sm:$0xff] }
 0x2f9   :  { %v7039_v25 = vpack.c.bf16 %v2812_v23, %v2807_v19  ;;  %6648 = vmatmul.mubr.f32.gmra.mrb[120].mxu1 %v541_v18  ;;  %v242_v19 = vld [vmem:[%s15513_s0 + $0x6f0] sm:$0xff]  ;;  %v7043_v23 = vpack.c.bf16 %v2744_v17, %v2739_v14  ;;  %v324_v17 = vld [vmem:[%s15513_s0 + $0x980] sm:$0xff] }
 0x2fa   :  { %6650 = vmatprep.mubr.f32.mxu1 %v550_v33  ;;  %v270_v33 = vld [vmem:[%s15513_s0 + $0x7d0] sm:$0xff] }
 0x2fb   :  { %2037 = vmatmul.mubr.f32.gmra.mrb[28].mxu0 %v152_v27  ;;  %v2806_v27 = vld [vmem:[%s15514_s3 + $0x230] sm:$0xff]  ;;  %7040 = vmatprep.subr.bf16.mxu1 %v7039_v25  ;;  %v251_v25 = vld [vmem:[%s15513_s0 + $0x738] sm:$0xff] }
 0x2fc   :  { %2041 = vmatprep.mubr.f32.mxu0 %v162_v28  ;;  %v2811_v28 = vld [vmem:[%s15514_s3 + $0x258] sm:$0xff]  ;;  %v314_v14 = vld [vmem:[%s15513_s0 + $0x930] sm:$0xff] }
 0x2fd   :  { %v7041_v31 = vpack.c.bf16 %v2811_v28, %v2806_v27  ;;  %v261_v27 = vld [vmem:[%s15513_s0 + $0x788] sm:$0xff] }
 0x2ff   :  { %2042 = vmatmul.mubr.f32.gmra.mrb[30].mxu0 %v161_v37  ;;  %7042 = vmatpush1.bf16.msra.mxu1 %v7041_v31  ;;  %v559_v37 = vld [vmem:[%s15513_s0 + $0x10d8] sm:$0xff]  ;;  %v260_v31 = vld [vmem:[%s15513_s0 + $0x780] sm:$0xff] }
 0x300   :  { %2046 = vmatprep.mubr.f32.mxu0 %v171_v44  ;;  %6651 = vmatmul.mubr.f32.gmra.mrb[122].mxu1 %v559_v37  ;;  %v568_v44 = vld [vmem:[%s15513_s0 + $0x1120] sm:$0xff]  ;;  %v279_v37 = vld [vmem:[%s15513_s0 + $0x818] sm:$0xff] }
 0x301   :  { %6653 = vmatprep.mubr.f32.mxu1 %v568_v44  ;;  %7044 = vmatprep.subr.bf16.mxu1 %v7043_v23  ;;  %v278_v44 = vld [vmem:[%s15513_s0 + $0x810] sm:$0xff]  ;;  %v333_v23 = vld [vmem:[%s15513_s0 + $0x9c8] sm:$0xff] }
 0x303   :  { %2047 = vmatmul.mubr.f32.gmra.mrb[32].mxu0 %v170_v54  ;;  %v10822_v54 = vpop.f32.mrb[62].mxu1 }
 0x304   :  { %2051 = vmatprep.mubr.f32.mxu0 %v180_v57  ;;  %6654 = vmatmul.mubr.f32.gmra.mrb[124].mxu1 %v577_v50  ;;  %16017 = vst [vmem:[#allocation22_spill] sm:$0xff] %v10822_v54  ;;  %v586_v57 = vld [vmem:[%s15513_s0 + $0x11b0] sm:$0xff]  ;;  %v1130_v60 = vpop.f32.mrb[63].mxu1  ;;  %v287_v50 = vld [vmem:[%s15513_s0 + $0x858] sm:$0xff] }
 0x305   :  { %6656 = vmatprep.mubr.f32.mxu1 %v586_v57  ;;  %v296_v60 = vld [vmem:[%s15513_s0 + $0x8a0] sm:$0xff]  ;;  %v458_v54 = vld [vmem:[%s15513_s0 + $0xdb0] sm:$0xff] }
 0x307   :  { %2052 = vmatmul.mubr.f32.gmra.mrb[34].mxu0 %v179_v1  ;;  %v234_v1 = vld [vmem:[%s15513_s0 + $0x6b0] sm:$0xff] }
 0x308   :  { %2056 = vmatprep.mubr.f32.mxu0 %v189_v2  ;;  %6657 = vmatmul.mubr.f32.gmra.mrb[126].mxu1 %v595_v61  ;;  %v10836_v2 = vpop.f32.mrb[64].mxu1  ;;  %v306_v61 = vld [vmem:[%s15513_s0 + $0x8f0] sm:$0xff] }
 0x309   :  { %v10838_v4 = vpop.f32.mrb[65].mxu1  ;;  %2907 = vmatprep.mubr.f32.mxu1 %v15518_v8 }
 0x30b   :  { %2057 = vmatmul.mubr.f32.gmra.mrb[36].mxu0 %v188_v9  ;;  %v243_v9 = vld [vmem:[%s15513_s0 + $0x6f8] sm:$0xff] }
 0x30c   :  { %2061 = vmatprep.mubr.f32.mxu0 %v198_v10  ;;  %v10847_v10 = vpop.f32.mrb[66].mxu1 }
 0x30d   :  { %v10855_v18 = vpop.f32.mrb[67].mxu1 }
 0x30e   :  { %v10869_v28 = vpop.f32.mrb[68].mxu1 }
 0x30f   :  { %2062 = vmatmul.mubr.f32.gmra.mrb[38].mxu0 %v197_v24  ;;  %v252_v24 = vld [vmem:[%s15513_s0 + $0x740] sm:$0xff] }
 0x310   :  { %2066 = vmatprep.mubr.f32.mxu0 %v207_v30  ;;  %v10871_v30 = vpop.f32.mrb[69].mxu1 }
 0x313   :  { %2067 = vmatmul.mubr.f32.gmra.mrb[40].mxu0 %v206_v39  ;;  %v10885_v39 = vpop.f32.mrb[70].mxu1 }
 0x314   :  { %2071 = vmatprep.mubr.f32.mxu0 %v216_v40  ;;  %v10887_v40 = vpop.f32.mrb[71].mxu1 }
 0x317   :  { %2072 = vmatmul.mubr.f32.gmra.mrb[42].mxu0 %v215_v51  ;;  %v297_v51 = vld [vmem:[%s15513_s0 + $0x8a8] sm:$0xff] }
 0x318   :  { %2076 = vmatprep.mubr.f32.mxu0 %v225_v52  ;;  %v10901_v52 = vpop.f32.mrb[72].mxu1 }
 0x319   :  { %v10903_v57 = vpop.f32.mrb[73].mxu1 }
 0x31b   :  { %2077 = vmatmul.mubr.f32.gmra.mrb[44].mxu0 %v224_v62  ;;  %v305_v62 = vld [vmem:[%s15513_s0 + $0x8e8] sm:$0xff] }
 0x31c   :  { %2081 = vmatprep.mubr.f32.mxu0 %v234_v1  ;;  %v315_v1 = vld [vmem:[%s15513_s0 + $0x938] sm:$0xff] }
 0x31f   :  { %2082 = vmatmul.mubr.f32.gmra.mrb[46].mxu0 %v233_v6  ;;  %v10917_v6 = vpop.f32.mrb[74].mxu1 }
 0x320   :  { %2086 = vmatprep.mubr.f32.mxu0 %v243_v9  ;;  %v10919_v9 = vpop.f32.mrb[75].mxu1 }
 0x323   :  { %2087 = vmatmul.mubr.f32.gmra.mrb[48].mxu0 %v242_v19  ;;  %v323_v19 = vld [vmem:[%s15513_s0 + $0x978] sm:$0xff] }
 0x324   :  { %2091 = vmatprep.mubr.f32.mxu0 %v252_v24  ;;  %v10933_v24 = vpop.f32.mrb[76].mxu1 }
 0x327   :  { %2092 = vmatmul.mubr.f32.gmra.mrb[50].mxu0 %v251_v25  ;;  %v10935_v25 = vpop.f32.mrb[77].mxu1 }
 0x328   :  { %2096 = vmatprep.mubr.f32.mxu0 %v261_v27  ;;  %v332_v27 = vld [vmem:[%s15513_s0 + $0x9c0] sm:$0xff] }
 0x32b   :  { %2097 = vmatmul.mubr.f32.gmra.mrb[52].mxu0 %v260_v31  ;;  %v342_v31 = vld [vmem:[%s15513_s0 + $0xa10] sm:$0xff] }
 0x32c   :  { %2101 = vmatprep.mubr.f32.mxu0 %v270_v33  ;;  %v341_v33 = vld [vmem:[%s15513_s0 + $0xa08] sm:$0xff] }
 0x32f   :  { %2102 = vmatmul.mubr.f32.gmra.mrb[54].mxu0 %v269_v36  ;;  %v351_v36 = vld [vmem:[%s15513_s0 + $0xa58] sm:$0xff] }
 0x330   :  { %2106 = vmatprep.mubr.f32.mxu0 %v279_v37  ;;  %v10949_v37 = vpop.f32.mrb[78].mxu1 }
 0x333   :  { %2107 = vmatmul.mubr.f32.gmra.mrb[56].mxu0 %v278_v44  ;;  %v10951_v44 = vpop.f32.mrb[79].mxu1 }
 0x334   :  { %2111 = vmatprep.mubr.f32.mxu0 %v288_v45  ;;  %v350_v45 = vld [vmem:[%s15513_s0 + $0xa50] sm:$0xff] }
 0x337   :  { %2112 = vmatmul.mubr.f32.gmra.mrb[58].mxu0 %v287_v50  ;;  %v360_v50 = vld [vmem:[%s15513_s0 + $0xaa0] sm:$0xff] }
 0x338   :  { %2116 = vmatprep.mubr.f32.mxu0 %v297_v51  ;;  %v359_v51 = vld [vmem:[%s15513_s0 + $0xa98] sm:$0xff] }
 0x33b   :  { %2117 = vmatmul.mubr.f32.gmra.mrb[60].mxu0 %v296_v60  ;;  %v369_v60 = vld [vmem:[%s15513_s0 + $0xae8] sm:$0xff] }
 0x33c   :  { %2121 = vmatprep.mubr.f32.mxu0 %v306_v61  ;;  %v10965_v61 = vpop.f32.mrb[80].mxu1 }
 0x33f   :  { %2122 = vmatmul.mubr.f32.gmra.mrb[62].mxu0 %v305_v62  ;;  %v10967_v62 = vpop.f32.mrb[81].mxu1 }
 0x340   :  { %2126 = vmatprep.mubr.f32.mxu0 %v315_v1  ;;  %v368_v1 = vld [vmem:[%s15513_s0 + $0xae0] sm:$0xff] }
 0x343   :  { %2127 = vmatmul.mubr.f32.gmra.mrb[64].mxu0 %v314_v14  ;;  %v378_v14 = vld [vmem:[%s15513_s0 + $0xb30] sm:$0xff] }
 0x344   :  { %2131 = vmatprep.mubr.f32.mxu0 %v324_v17  ;;  %v377_v17 = vld [vmem:[%s15513_s0 + $0xb28] sm:$0xff] }
 0x347   :  { %2132 = vmatmul.mubr.f32.gmra.mrb[66].mxu0 %v323_v19  ;;  %v387_v19 = vld [vmem:[%s15513_s0 + $0xb78] sm:$0xff] }
 0x348   :  { %2136 = vmatprep.mubr.f32.mxu0 %v333_v23  ;;  %v10981_v23 = vpop.f32.mrb[82].mxu1 }
 0x34b   :  { %2137 = vmatmul.mubr.f32.gmra.mrb[68].mxu0 %v332_v27  ;;  %v10983_v27 = vpop.f32.mrb[83].mxu1 }
 0x34c   :  { %2141 = vmatprep.mubr.f32.mxu0 %v342_v31  ;;  %v386_v31 = vld [vmem:[%s15513_s0 + $0xb70] sm:$0xff] }
 0x34f   :  { %2142 = vmatmul.mubr.f32.gmra.mrb[70].mxu0 %v341_v33  ;;  %v396_v33 = vld [vmem:[%s15513_s0 + $0xbc0] sm:$0xff] }
 0x350   :  { %2146 = vmatprep.mubr.f32.mxu0 %v351_v36  ;;  %v395_v36 = vld [vmem:[%s15513_s0 + $0xbb8] sm:$0xff] }
 0x353   :  { %2147 = vmatmul.mubr.f32.gmra.mrb[72].mxu0 %v350_v45  ;;  %v405_v45 = vld [vmem:[%s15513_s0 + $0xc08] sm:$0xff] }
 0x354   :  { %2151 = vmatprep.mubr.f32.mxu0 %v360_v50  ;;  %v10997_v50 = vpop.f32.mrb[84].mxu1 }
 0x357   :  { %2152 = vmatmul.mubr.f32.gmra.mrb[74].mxu0 %v359_v51  ;;  %v10999_v51 = vpop.f32.mrb[85].mxu1 }
 0x358   :  { %2156 = vmatprep.mubr.f32.mxu0 %v369_v60  ;;  %v404_v60 = vld [vmem:[%s15513_s0 + $0xc00] sm:$0xff] }
 0x35b   :  { %2157 = vmatmul.mubr.f32.gmra.mrb[76].mxu0 %v368_v1  ;;  %v414_v1 = vld [vmem:[%s15513_s0 + $0xc50] sm:$0xff] }
 0x35c   :  { %2161 = vmatprep.mubr.f32.mxu0 %v378_v14  ;;  %v413_v14 = vld [vmem:[%s15513_s0 + $0xc48] sm:$0xff] }
 0x35f   :  { %2162 = vmatmul.mubr.f32.gmra.mrb[78].mxu0 %v377_v17  ;;  %v423_v17 = vld [vmem:[%s15513_s0 + $0xc98] sm:$0xff] }
 0x360   :  { %2166 = vmatprep.mubr.f32.mxu0 %v387_v19  ;;  %v11013_v19 = vpop.f32.mrb[86].mxu1 }
 0x363   :  { %2167 = vmatmul.mubr.f32.gmra.mrb[80].mxu0 %v386_v31  ;;  %v11015_v31 = vpop.f32.mrb[87].mxu1 }
 0x364   :  { %2171 = vmatprep.mubr.f32.mxu0 %v396_v33  ;;  %v422_v33 = vld [vmem:[%s15513_s0 + $0xc90] sm:$0xff] }
 0x367   :  { %2172 = vmatmul.mubr.f32.gmra.mrb[82].mxu0 %v395_v36  ;;  %v432_v36 = vld [vmem:[%s15513_s0 + $0xce0] sm:$0xff] }
 0x368   :  { %2176 = vmatprep.mubr.f32.mxu0 %v405_v45  ;;  %v431_v45 = vld [vmem:[%s15513_s0 + $0xcd8] sm:$0xff] }
 0x36b   :  { %2177 = vmatmul.mubr.f32.gmra.mrb[84].mxu0 %v404_v60  ;;  %v441_v60 = vld [vmem:[%s15513_s0 + $0xd28] sm:$0xff] }
 0x36c   :  { %2181 = vmatprep.mubr.f32.mxu0 %v414_v1  ;;  %v11029_v1 = vpop.f32.mrb[88].mxu1 }
 0x36f   :  { %2182 = vmatmul.mubr.f32.gmra.mrb[86].mxu0 %v413_v14  ;;  %v11031_v14 = vpop.f32.mrb[89].mxu1 }
 0x370   :  { %2186 = vmatprep.mubr.f32.mxu0 %v423_v17  ;;  %v440_v17 = vld [vmem:[%s15513_s0 + $0xd20] sm:$0xff]  ;;  %v11045_v8 = vpop.f32.mrb[90].mxu1 }
 0x373   :  { %2187 = vmatmul.mubr.f32.gmra.mrb[88].mxu0 %v422_v33  ;;  %v450_v33 = vld [vmem:[%s15513_s0 + $0xd70] sm:$0xff] }
 0x374   :  { %2191 = vmatprep.mubr.f32.mxu0 %v432_v36  ;;  %v449_v36 = vld [vmem:[%s15513_s0 + $0xd68] sm:$0xff] }
 0x377   :  { %2192 = vmatmul.mubr.f32.gmra.mrb[90].mxu0 %v431_v45  ;;  %v459_v45 = vld [vmem:[%s15513_s0 + $0xdb8] sm:$0xff] }
 0x378   :  { %2196 = vmatprep.mubr.f32.mxu0 %v441_v60  ;;  %v11047_v60 = vpop.f32.mrb[91].mxu1 }
 0x379   :  { %v11061_v42 = vpop.f32.mrb[92].mxu1 }
 0x37b   :  { %2197 = vmatmul.mubr.f32.gmra.mrb[92].mxu0 %v440_v17  ;;  %v468_v17 = vld [vmem:[%s15513_s0 + $0xe00] sm:$0xff] }
 0x37c   :  { %2201 = vmatprep.mubr.f32.mxu0 %v450_v33  ;;  %v467_v33 = vld [vmem:[%s15513_s0 + $0xdf8] sm:$0xff] }
 0x37f   :  { %2202 = vmatmul.mubr.f32.gmra.mrb[94].mxu0 %v449_v36  ;;  %v477_v36 = vld [vmem:[%s15513_s0 + $0xe48] sm:$0xff] }
 0x380   :  { %2206 = vmatprep.mubr.f32.mxu0 %v459_v45  ;;  %v11063_v45 = vpop.f32.mrb[93].mxu1 }
 0x381   :  { %v11077_v12 = vpop.f32.mrb[94].mxu1 }
 0x383   :  { %2207 = vmatmul.mubr.f32.gmra.mrb[96].mxu0 %v458_v54  ;;  %v486_v54 = vld [vmem:[%s15513_s0 + $0xe90] sm:$0xff] }
 0x384   :  { %2211 = vmatprep.mubr.f32.mxu0 %v468_v17  ;;  %v485_v17 = vld [vmem:[%s15513_s0 + $0xe88] sm:$0xff] }
 0x387   :  { %2212 = vmatmul.mubr.f32.gmra.mrb[98].mxu0 %v467_v33  ;;  %v495_v33 = vld [vmem:[%s15513_s0 + $0xed8] sm:$0xff] }
 0x388   :  { %2216 = vmatprep.mubr.f32.mxu0 %v477_v36  ;;  %v11079_v36 = vpop.f32.mrb[95].mxu1 }
 0x389   :  { %v11098_v47 = vpop.f32.mrb[96].mxu1 }
 0x38a   :  { %v11107_v13 = vpop.f32.mrb[97].mxu1 }
 0x38b   :  { %2217 = vmatmul.mubr.f32.gmra.mrb[100].mxu0 %v476_v32  ;;  %v504_v32 = vld [vmem:[%s15513_s0 + $0xf20] sm:$0xff] }
 0x38c   :  { %2221 = vmatprep.mubr.f32.mxu0 %v486_v54  ;;  %v503_v54 = vld [vmem:[%s15513_s0 + $0xf18] sm:$0xff] }
 0x38f   :  { %2222 = vmatmul.mubr.f32.gmra.mrb[102].mxu0 %v485_v17  ;;  %v513_v17 = vld [vmem:[%s15513_s0 + $0xf68] sm:$0xff] }
 0x390   :  { %2226 = vmatprep.mubr.f32.mxu0 %v495_v33  ;;  %v11096_v33 = vld [vmem:[%s15515_s2] ss:$0 sm:$0xff] }
 0x393   :  { %2227 = vmatmul.mubr.f32.gmra.mrb[104].mxu0 %v494_v3 }
 0x394   :  { %2231 = vmatprep.mubr.f32.mxu0 %v504_v32  ;;  %v2738_v32 = vld [vmem:[%s15514_s3 + $0x10] sm:$0xff] }
 0x396   :  { %v1968_v58 = vpop.f32.mrb[0].mxu0 }
 0x397   :  { %v7139_v29 = vadd.f32 %v11096_v33, %v1968_v58  ;;  %v1970_v3 = vpop.f32.mrb[1].mxu0  ;;  %2232 = vmatmul.mubr.f32.gmra.mrb[106].mxu0 %v503_v54  ;;  %v2749_v58 = vld [vmem:[%s15514_s3 + $0x68] sm:$0xff]  ;;  %v2754_v54 = vld [vmem:[%s15514_s3 + $0x90] sm:$0xff] }
 0x398   :  { %2236 = vmatprep.mubr.f32.mxu0 %v513_v17  ;;  %v7045_v17 = vpack.c.bf16 %v2743_v20, %v2738_v32  ;;  %v7047_v15 = vpack.c.bf16 %v2754_v54, %v2749_v58  ;;  %v521_v20 = vld [vmem:[%s15513_s0 + $0xfa8] sm:$0xff]  ;;  %v16019_v32 = vmov 0.0   ;;  %v11146_v54 = vpop.f32.mrb[98].mxu1 }
 0x399   :  { %v2354_v3 = vadd.f32 %v7139_v29, %v10838_v4  ;;  %v2753_v29 = vld [vmem:[%s15514_s3 + $0x88] sm:$0xff] }
 0x39a   :  { %v1973_v48 = vpop.f32.mrb[2].mxu0  ;;  %v7049_v58 = vpack.c.bf16 %v2753_v29, %v2748_v0  ;;  %v530_v0 = vld [vmem:[%s15513_s0 + $0xff0] sm:$0xff] }
 0x39b   :  { %v11122_v41 = vmax.f32 %v2354_v3, 0.0  ;;  %v7140_v34 = vadd.f32 %v11096_v33, %v1973_v48  ;;  %v1975_v22 = vpop.f32.mrb[3].mxu0  ;;  %2237 = vmatmul.mubr.f32.gmra.mrb[108].mxu0 %v512_v7  ;;  %v2759_v48 = vld [vmem:[%s15514_s3 + $0xb8] sm:$0xff] }
 0x39c   :  { %2241 = vmatprep.mubr.f32.mxu0 %v522_v56  ;;  %v2764_v22 = vld [vmem:[%s15514_s3 + $0xe0] sm:$0xff]  ;;  %v531_v56 = vld [vmem:[%s15513_s0 + $0xff8] sm:$0xff] }
 0x39d   :  { %16018 = vst [vmem:[#allocation23_spill] sm:$0xff] %v11122_v41  ;;  %v2359_v7 = vadd.f32 %v7140_v34, %v10836_v2  ;;  %2908 = vmatmul.mubr.f32.vlgmr.msra.gmra.mrb[128].mxu1 %v11122_v41  ;;  %v7051_v34 = vpack.c.bf16 %v2764_v22, %v2759_v48  ;;  %v2758_v2 = vld [vmem:[%s15514_s3 + $0xb0] sm:$0xff]  ;;  %v11157_v41 = vpop.f32.mrb[99].mxu1 }
 0x39e   :  { %v1978_v4 = vpop.f32.mrb[4].mxu0  ;;  %7046 = vmatpush1.bf16.msra.mxu1 %v7045_v17  ;;  %2913 = vmatprep.mubr.f32.mxu1 %v16019_v32  ;;  %v2763_v17 = vld [vmem:[%s15514_s3 + $0xd8] sm:$0xff] }
 0x39f   :  { %v11148_v3 = vmax.f32 %v2359_v7, 0.0  ;;  %v7141_v5 = vadd.f32 %v11096_v33, %v1978_v4  ;;  %v1980_v55 = vpop.f32.mrb[5].mxu0  ;;  %2242 = vmatmul.mubr.f32.gmra.mrb[110].mxu0 %v521_v20  ;;  %7048 = vmatprep.subr.bf16.mxu1 %v7047_v15  ;;  %v2774_v15 = vld [vmem:[%s15514_s3 + $0x130] sm:$0xff]  ;;  %v540_v20 = vld [vmem:[%s15513_s0 + $0x1040] sm:$0xff]  ;;  %v7053_v22 = vpack.c.bf16 %v2763_v17, %v2758_v2  ;;  %v2779_v2 = vld [vmem:[%s15514_s3 + $0x158] sm:$0xff] }
 0x3a0   :  { %2246 = vmatprep.mubr.f32.mxu0 %v531_v56  ;;  %v2769_v55 = vld [vmem:[%s15514_s3 + $0x108] sm:$0xff] }
 0x3a1   :  { %16020 = vst [vmem:[#allocation24_spill] sm:$0xff] %v11148_v3  ;;  %v2364_v29 = vadd.f32 %v7141_v5, %v10855_v18  ;;  %2914 = vmatmul.mubr.f32.gmra.mrb[130].mxu1 %v11148_v3  ;;  %v7055_v49 = vpack.c.bf16 %v2774_v15, %v2769_v55  ;;  %v2768_v5 = vld [vmem:[%s15514_s3 + $0x100] sm:$0xff]  ;;  %v2773_v18 = vld [vmem:[%s15514_s3 + $0x128] sm:$0xff] }
 0x3a2   :  { %v1983_v48 = vpop.f32.mrb[6].mxu0  ;;  %2919 = vmatprep.mubr.f32.mxu1 %v16019_v32  ;;  %7050 = vmatpush1.bf16.msra.mxu1 %v7049_v58  ;;  %v539_v58 = vld [vmem:[%s15513_s0 + $0x1038] sm:$0xff]  ;;  %v7057_v15 = vpack.c.bf16 %v2773_v18, %v2768_v5  ;;  %v548_v5 = vld [vmem:[%s15513_s0 + $0x1080] sm:$0xff] }
 0x3a3   :  { %v7142_v7 = vadd.f32 %v11096_v33, %v1983_v48  ;;  %v1985_v56 = vpop.f32.mrb[7].mxu0  ;;  %2247 = vmatmul.mubr.f32.gmra.mrb[112].mxu0 %v530_v0  ;;  %v11175_v4 = vmax.f32 %v2364_v29, 0.0  ;;  %7052 = vmatprep.subr.bf16.mxu1 %v7051_v34  ;;  %v2784_v34 = vld [vmem:[%s15514_s3 + $0x180] sm:$0xff]  ;;  %v549_v0 = vld [vmem:[%s15513_s0 + $0x1088] sm:$0xff]  ;;  %v11198_v29 = vpop.f32.mrb[100].mxu1 }
 0x3a4   :  { %2251 = vmatprep.mubr.f32.mxu0 %v540_v20 }
 0x3a5   :  { %16021 = vst [vmem:[#allocation25_spill] sm:$0xff] %v11175_v4  ;;  %v2369_v17 = vadd.f32 %v7142_v7, %v10847_v10  ;;  %2920 = vmatmul.mubr.f32.gmra.mrb[132].mxu1 %v11175_v4  ;;  %v7059_v10 = vpack.c.bf16 %v2784_v34, %v2779_v2  ;;  %v2778_v7 = vld [vmem:[%s15514_s3 + $0x150] sm:$0xff]  ;;  %v2783_v4 = vld [vmem:[%s15514_s3 + $0x178] sm:$0xff] }
 0x3a6   :  { %v1988_v55 = vpop.f32.mrb[8].mxu0  ;;  %2925 = vmatprep.mubr.f32.mxu1 %v16019_v32  ;;  %7054 = vmatpush1.bf16.msra.mxu1 %v7053_v22  ;;  %v11209_v22 = vpop.f32.mrb[101].mxu1  ;;  %v7061_v2 = vpack.c.bf16 %v2783_v4, %v2778_v7  ;;  %v567_v4 = vld [vmem:[%s15513_s0 + $0x1118] sm:$0xff] }
 0x3a7   :  { %v11200_v20 = vmax.f32 %v2369_v17, 0.0  ;;  %v7143_v48 = vadd.f32 %v11096_v33, %v1988_v55  ;;  %v1990_v56 = vpop.f32.mrb[9].mxu0  ;;  %2252 = vmatmul.mubr.f32.gmra.mrb[114].mxu0 %v539_v58  ;;  %7056 = vmatprep.subr.bf16.mxu1 %v7055_v49  ;;  %v558_v49 = vld [vmem:[%s15513_s0 + $0x10d0] sm:$0xff] }
 0x3a8   :  { %2256 = vmatprep.mubr.f32.mxu0 %v549_v0 }
 0x3a9   :  { %16022 = vst [vmem:[#allocation26_spill] sm:$0xff] %v11200_v20  ;;  %v2374_v18 = vadd.f32 %v7143_v48, %v10871_v30  ;;  %2926 = vmatmul.mubr.f32.gmra.mrb[134].mxu1 %v11200_v20  ;;  %v557_v30 = vld [vmem:[%s15513_s0 + $0x10c8] sm:$0xff]  ;;  %v11232_v48 = vpop.f32.mrb[102].mxu1 }
 0x3aa   :  { %v1993_v58 = vpop.f32.mrb[10].mxu0  ;;  %2931 = vmatprep.mubr.f32.mxu1 %v16019_v32  ;;  %7058 = vmatpush1.bf16.msra.mxu1 %v7057_v15 }
 0x3ab   :  { %v7144_v34 = vadd.f32 %v11096_v33, %v1993_v58  ;;  %v1995_v17 = vpop.f32.mrb[11].mxu0  ;;  %2257 = vmatmul.mubr.f32.gmra.mrb[116].mxu0 %v548_v5  ;;  %v11221_v0 = vmax.f32 %v2374_v18, 0.0  ;;  %7060 = vmatprep.subr.bf16.mxu1 %v7059_v10  ;;  %v11237_v5 = vpop.f32.mrb[103].mxu1 }
 0x3ac   :  { %2261 = vmatprep.mubr.f32.mxu0 %v558_v49  ;;  %v576_v49 = vld [vmem:[%s15513_s0 + $0x1160] sm:$0xff] }
 0x3ad   :  { %16023 = vst [vmem:[#allocation27_spill] sm:$0xff] %v11221_v0  ;;  %v2379_v55 = vadd.f32 %v7144_v34, %v10869_v28  ;;  %2932 = vmatmul.mubr.f32.gmra.mrb[136].mxu1 %v11221_v0  ;;  %v566_v28 = vld [vmem:[%s15513_s0 + $0x1110] sm:$0xff] }
 0x3ae   :  { %v1998_v15 = vpop.f32.mrb[12].mxu0  ;;  %2937 = vmatprep.mubr.f32.mxu1 %v16019_v32  ;;  %7062 = vmatpush1.bf16.msra.mxu1 %v7061_v2 }
 0x3af   :  { %v11234_v56 = vmax.f32 %v2379_v55, 0.0  ;;  %v7145_v10 = vadd.f32 %v11096_v33, %v1998_v15  ;;  %v2000_v7 = vpop.f32.mrb[13].mxu0  ;;  %2262 = vmatmul.mubr.f32.gmra.mrb[118].mxu0 %v557_v30  ;;  %v585_v55 = vld [vmem:[%s15513_s0 + $0x11a8] sm:$0xff]  ;;  %v11260_v15 = vpop.f32.mrb[104].mxu1 }
 0x3b0   :  { %2266 = vmatprep.mubr.f32.mxu0 %v567_v4 }
 0x3b1   :  { %16024 = vst [vmem:[#allocation28_spill] sm:$0xff] %v11234_v56  ;;  %v2384_v18 = vadd.f32 %v7145_v10, %v10887_v40  ;;  %2938 = vmatmul.mubr.f32.gmra.mrb[138].mxu1 %v11234_v56  ;;  %v575_v40 = vld [vmem:[%s15513_s0 + $0x1158] sm:$0xff] }
 0x3b2   :  { %v2003_v58 = vpop.f32.mrb[14].mxu0  ;;  %2943 = vmatprep.mubr.f32.mxu1 %v16019_v32 }
 0x3b3   :  { %v7146_v2 = vadd.f32 %v11096_v33, %v2003_v58  ;;  %v2005_v34 = vpop.f32.mrb[15].mxu0  ;;  %2267 = vmatmul.mubr.f32.gmra.mrb[120].mxu0 %v566_v28  ;;  %v11249_v17 = vmax.f32 %v2384_v18, 0.0  ;;  %v11265_v18 = vpop.f32.mrb[105].mxu1  ;;  %v594_v58 = vld [vmem:[%s15513_s0 + $0x11f0] sm:$0xff] }
 0x3b4   :  { %2271 = vmatprep.mubr.f32.mxu0 %v576_v49 }
 0x3b5   :  { %16025 = vst [vmem:[#allocation29_spill] sm:$0xff] %v11249_v17  ;;  %v2389_v30 = vadd.f32 %v7146_v2, %v10885_v39  ;;  %2944 = vmatmul.mubr.f32.gmra.mrb[140].mxu1 %v11249_v17  ;;  %v584_v39 = vld [vmem:[%s15513_s0 + $0x11a0] sm:$0xff] }
 0x3b6   :  { %v2008_v4 = vpop.f32.mrb[16].mxu0  ;;  %2949 = vmatprep.mubr.f32.mxu1 %v16019_v32 }
 0x3b7   :  { %v11262_v10 = vmax.f32 %v2389_v30, 0.0  ;;  %v7147_v7 = vadd.f32 %v11096_v33, %v2008_v4  ;;  %v2010_v28 = vpop.f32.mrb[17].mxu0  ;;  %2272 = vmatmul.mubr.f32.gmra.mrb[122].mxu0 %v575_v40 }
 0x3b8   :  { %2276 = vmatprep.mubr.f32.mxu0 %v585_v55 }
 0x3b9   :  { %16026 = vst [vmem:[#allocation30_spill] sm:$0xff] %v11262_v10  ;;  %v2394_v49 = vadd.f32 %v7147_v7, %v10903_v57  ;;  %2950 = vmatmul.mubr.f32.gmra.mrb[142].mxu1 %v11262_v10  ;;  %v593_v57 = vld [vmem:[%s15513_s0 + $0x11e8] sm:$0xff]  ;;  %v11285_v7 = vpop.f32.mrb[106].mxu1 }
 0x3ba   :  { %v2013_v2 = vpop.f32.mrb[18].mxu0  ;;  %2955 = vmatprep.mubr.f32.mxu1 %v16019_v32 }
 0x3bb   :  { %v7148_v34 = vadd.f32 %v11096_v33, %v2013_v2  ;;  %v2015_v40 = vpop.f32.mrb[19].mxu0  ;;  %2277 = vmatmul.mubr.f32.gmra.mrb[124].mxu0 %v584_v39  ;;  %v11277_v30 = vmax.f32 %v2394_v49, 0.0  ;;  %v2788_v2 = vld [vmem:[%s15514_s3 + $0x1a0] sm:$0xff] }
 0x3bc   :  { %2281 = vmatprep.mubr.f32.mxu0 %v594_v58  ;;  %v2789_v58 = vld [vmem:[%s15514_s3 + $0x1a8] sm:$0xff] }
 0x3bd   :  { %16027 = vst [vmem:[#allocation31_spill] sm:$0xff] %v11277_v30  ;;  %v2399_v55 = vadd.f32 %v7148_v34, %v10901_v52  ;;  %2956 = vmatmul.mubr.f32.gmra.mrb[144].mxu1 %v11277_v30  ;;  %v2794_v52 = vld [vmem:[%s15514_s3 + $0x1d0] sm:$0xff]  ;;  %v11299_v34 = vpop.f32.mrb[107].mxu1 }
 0x3be   :  { %v2018_v4 = vpop.f32.mrb[20].mxu0  ;;  %2961 = vmatprep.mubr.f32.mxu1 %v16019_v32  ;;  %v7063_v40 = vpack.c.bf16 %v2794_v52, %v2789_v58 }
 0x3bf   :  { %v11287_v28 = vmax.f32 %v2399_v55, 0.0  ;;  %v7149_v39 = vadd.f32 %v11096_v33, %v2018_v4  ;;  %v2020_v49 = vpop.f32.mrb[21].mxu0  ;;  %2282 = vmatmul.mubr.f32.gmra.mrb[126].mxu0 %v593_v57  ;;  %v2793_v55 = vld [vmem:[%s15514_s3 + $0x1c8] sm:$0xff] }
 0x3c0   :  { %v7065_v4 = vpack.c.bf16 %v2793_v55, %v2788_v2  ;;  %7064 = vmatprep.subr.bf16.mxu1 %v7063_v40 }
 0x3c1   :  { %16028 = vst [vmem:[#allocation32_spill] sm:$0xff] %v11287_v28  ;;  %v2404_v57 = vadd.f32 %v7149_v39, %v10919_v9  ;;  %2962 = vmatmul.mubr.f32.gmra.mrb[146].mxu1 %v11287_v28  ;;  %v11313_v9 = vpop.f32.mrb[108].mxu1 }
 0x3c2   :  { %v2023_v49 = vpop.f32.mrb[22].mxu0  ;;  %2967 = vmatprep.mubr.f32.mxu1 %v16019_v32  ;;  %7066 = vmatpush1.bf16.msra.mxu1 %v7065_v4  ;;  %v11318_v55 = vpop.f32.mrb[109].mxu1 }
 0x3c3   :  { %v7150_v30 = vadd.f32 %v11096_v33, %v2023_v49  ;;  %v2025_v10 = vpop.f32.mrb[23].mxu0  ;;  %v11308_v17 = vmax.f32 %v2404_v57, 0.0  ;;  %v11326_v49 = vpop.f32.mrb[110].mxu1 }
 0x3c5   :  { %16029 = vst [vmem:[#allocation33_spill] sm:$0xff] %v11308_v17  ;;  %v2409_v58 = vadd.f32 %v7150_v30, %v10917_v6  ;;  %2968 = vmatmul.mubr.f32.gmra.mrb[148].mxu1 %v11308_v17 }
 0x3c6   :  { %v2028_v52 = vpop.f32.mrb[24].mxu0  ;;  %2973 = vmatprep.mubr.f32.mxu1 %v16019_v32 }
 0x3c7   :  { %v11315_v39 = vmax.f32 %v2409_v58, 0.0  ;;  %v7151_v2 = vadd.f32 %v11096_v33, %v2028_v52  ;;  %v2030_v40 = vpop.f32.mrb[25].mxu0  ;;  %v11328_v58 = vpop.f32.mrb[111].mxu1 }
 0x3c9   :  { %16030 = vst [vmem:[#allocation34_spill] sm:$0xff] %v11315_v39  ;;  %v2414_v10 = vadd.f32 %v7151_v2, %v10935_v25  ;;  %2974 = vmatmul.mubr.f32.gmra.mrb[150].mxu1 %v11315_v39 }
 0x3ca   :  { %v2033_v57 = vpop.f32.mrb[26].mxu0  ;;  %2979 = vmatprep.mubr.f32.mxu1 %v16019_v32 }
 0x3cb   :  { %v7152_v6 = vadd.f32 %v11096_v33, %v2033_v57  ;;  %v2035_v30 = vpop.f32.mrb[27].mxu0  ;;  %v11324_v4 = vmax.f32 %v2414_v10, 0.0  ;;  %v11336_v57 = vpop.f32.mrb[112].mxu1 }
 0x3cc   :  { %v11338_v10 = vpop.f32.mrb[113].mxu1 }
 0x3cd   :  { %16031 = vst [vmem:[#allocation35_spill] sm:$0xff] %v11324_v4  ;;  %v2419_v52 = vadd.f32 %v7152_v6, %v10933_v24  ;;  %2980 = vmatmul.mubr.f32.gmra.mrb[152].mxu1 %v11324_v4 }
 0x3ce   :  { %v2038_v40 = vpop.f32.mrb[28].mxu0  ;;  %2985 = vmatprep.mubr.f32.mxu1 %v16019_v32 }
 0x3cf   :  { %v11333_v25 = vmax.f32 %v2419_v52, 0.0  ;;  %v7153_v2 = vadd.f32 %v11096_v33, %v2038_v40  ;;  %v2040_v39 = vpop.f32.mrb[29].mxu0  ;;  %v11346_v52 = vpop.f32.mrb[114].mxu1 }
 0x3d0   :  { %v11350_v40 = vpop.f32.mrb[115].mxu1 }
 0x3d1   :  { %16032 = vst [vmem:[#allocation36_spill] sm:$0xff] %v11333_v25  ;;  %v2424_v30 = vadd.f32 %v7153_v2, %v10951_v44  ;;  %2986 = vmatmul.mubr.f32.gmra.mrb[154].mxu1 %v11333_v25 }
 0x3d2   :  { %v2043_v17 = vpop.f32.mrb[30].mxu0  ;;  %2991 = vmatprep.mubr.f32.mxu1 %v16019_v32 }
 0x3d3   :  { %v7154_v24 = vadd.f32 %v11096_v33, %v2043_v17  ;;  %v2045_v6 = vpop.f32.mrb[31].mxu0  ;;  %v11344_v4 = vmax.f32 %v2424_v30, 0.0  ;;  %v11356_v17 = vpop.f32.mrb[116].mxu1 }
 0x3d4   :  { %v11360_v6 = vpop.f32.mrb[117].mxu1 }
 0x3d5   :  { %16033 = vst [vmem:[#allocation37_spill] sm:$0xff] %v11344_v4  ;;  %v2429_v39 = vadd.f32 %v7154_v24, %v10949_v37  ;;  %2992 = vmatmul.mubr.f32.gmra.mrb[156].mxu1 %v11344_v4 }
 0x3d6   :  { %v2048_v28 = vpop.f32.mrb[32].mxu0  ;;  %2997 = vmatprep.mubr.f32.mxu1 %v16019_v32 }
 0x3d7   :  { %v11353_v44 = vmax.f32 %v2429_v39, 0.0  ;;  %v7155_v2 = vadd.f32 %v11096_v33, %v2048_v28  ;;  %v2050_v25 = vpop.f32.mrb[33].mxu0  ;;  %v11366_v39 = vpop.f32.mrb[118].mxu1 }
 0x3d8   :  { %v11370_v25 = vpop.f32.mrb[119].mxu1 }
 0x3d9   :  { %16034 = vst [vmem:[#allocation38_spill] sm:$0xff] %v11353_v44  ;;  %v2434_v30 = vadd.f32 %v7155_v2, %v10967_v62  ;;  %2998 = vmatmul.mubr.f32.gmra.mrb[158].mxu1 %v11353_v44 }
 0x3da   :  { %v2053_v37 = vpop.f32.mrb[34].mxu0  ;;  %3003 = vmatprep.mubr.f32.mxu1 %v16019_v32 }
 0x3db   :  { %v7156_v24 = vadd.f32 %v11096_v33, %v2053_v37  ;;  %v2055_v4 = vpop.f32.mrb[35].mxu0  ;;  %v11364_v56 = vmax.f32 %v2434_v30, 0.0  ;;  %v11382_v37 = vpop.f32.mrb[120].mxu1 }
 0x3dc   :  { %v2799_v4 = vld [vmem:[%s15514_s3 + $0x1f8] sm:$0xff]  ;;  %16037 = vst [vmem:[#allocation41_spill] sm:$0xff] %v11382_v37 }
 0x3dd   :  { %16035 = vst [vmem:[#allocation39_spill] sm:$0xff] %v11364_v56  ;;  %v2439_v28 = vadd.f32 %v7156_v24, %v10965_v61  ;;  %3004 = vmatmul.mubr.f32.gmra.mrb[160].mxu1 %v11364_v56  ;;  %v2804_v61 = vld [vmem:[%s15514_s3 + $0x220] sm:$0xff] }
 0x3de   :  { %v2058_v62 = vpop.f32.mrb[36].mxu0  ;;  %3009 = vmatprep.mubr.f32.mxu1 %v16019_v32  ;;  %v7067_v30 = vpack.c.bf16 %v2804_v61, %v2799_v4  ;;  %v2798_v4 = vld [vmem:[%s15514_s3 + $0x1f0] sm:$0xff] }
 0x3df   :  { %v11373_v2 = vmax.f32 %v2439_v28, 0.0  ;;  %v7157_v44 = vadd.f32 %v11096_v33, %v2058_v62  ;;  %v2060_v0 = vpop.f32.mrb[37].mxu0  ;;  %v11386_v28 = vpop.f32.mrb[121].mxu1 }
 0x3e0   :  { %7068 = vmatprep.subr.bf16.mxu1 %v7067_v30  ;;  %v11398_v61 = vpop.f32.mrb[122].mxu1 }
 0x3e1   :  { %16036 = vst [vmem:[#allocation40_spill] sm:$0xff] %v11373_v2  ;;  %v2444_v24 = vadd.f32 %v7157_v44, %v10983_v27  ;;  %3010 = vmatmul.mubr.f32.gmra.mrb[162].mxu1 %v11373_v2  ;;  %v2803_v27 = vld [vmem:[%s15514_s3 + $0x218] sm:$0xff]  ;;  %v11402_v30 = vpop.f32.mrb[123].mxu1 }
 0x3e2   :  { %v2063_v56 = vpop.f32.mrb[38].mxu0  ;;  %3015 = vmatprep.mubr.f32.mxu1 %v16019_v32  ;;  %v7069_v44 = vpack.c.bf16 %v2803_v27, %v2798_v4  ;;  %v11408_v37 = vpop.f32.mrb[124].mxu1 }
 0x3e3   :  { %v7158_v0 = vadd.f32 %v11096_v33, %v2063_v56  ;;  %v2065_v62 = vpop.f32.mrb[39].mxu0  ;;  %v11390_v20 = vmax.f32 %v2444_v24, 0.0  ;;  %16040 = vst [vmem:[#allocation44_spill] sm:$0xff] %v11408_v37 }
 0x3e4   :  { %7070 = vmatpush1.bf16.msra.mxu1 %v7069_v44 }
 0x3e5   :  { %16038 = vst [vmem:[#allocation42_spill] sm:$0xff] %v11390_v20  ;;  %v2449_v2 = vadd.f32 %v7158_v0, %v10981_v23  ;;  %3016 = vmatmul.mubr.f32.gmra.mrb[164].mxu1 %v11390_v20  ;;  %v11412_v23 = vpop.f32.mrb[125].mxu1 }
 0x3e6   :  { %v2068_v56 = vpop.f32.mrb[40].mxu0  ;;  %3021 = vmatprep.mubr.f32.mxu1 %v16019_v32 }
 0x3e7   :  { %v11405_v24 = vmax.f32 %v2449_v2, 0.0  ;;  %v7159_v62 = vadd.f32 %v11096_v33, %v2068_v56  ;;  %v2070_v3 = vpop.f32.mrb[41].mxu0  ;;  %v11418_v2 = vpop.f32.mrb[126].mxu1 }
 0x3e8   :  { %v11422_v56 = vpop.f32.mrb[127].mxu1 }
 0x3e9   :  { %16039 = vst [vmem:[#allocation43_spill] sm:$0xff] %v11405_v24  ;;  %v2454_v4 = vadd.f32 %v7159_v62, %v10999_v51  ;;  %3022 = vmatmul.mubr.f32.gmra.mrb[166].mxu1 %v11405_v24 }
 0x3ea   :  { %v2073_v0 = vpop.f32.mrb[42].mxu0  ;;  %3027 = vmatprep.mubr.f32.mxu1 %v16019_v32 }
 0x3eb   :  { %v7160_v27 = vadd.f32 %v11096_v33, %v2073_v0  ;;  %v2075_v20 = vpop.f32.mrb[43].mxu0  ;;  %v11416_v44 = vmax.f32 %v2454_v4, 0.0 }
 0x3ed   :  { %16041 = vst [vmem:[#allocation45_spill] sm:$0xff] %v11416_v44  ;;  %v2459_v3 = vadd.f32 %v7160_v27, %v10997_v50  ;;  %3028 = vmatmul.mubr.f32.gmra.mrb[168].mxu1 %v11416_v44 }
 0x3ee   :  { %v2078_v51 = vpop.f32.mrb[44].mxu0  ;;  %3033 = vmatprep.mubr.f32.mxu1 %v16019_v32 }
 0x3ef   :  { %v11425_v62 = vmax.f32 %v2459_v3, 0.0  ;;  %v7161_v24 = vadd.f32 %v11096_v33, %v2078_v51  ;;  %v2080_v37 = vpop.f32.mrb[45].mxu0 }
 0x3f1   :  { %v2464_v20 = vadd.f32 %v7161_v24, %v11015_v31  ;;  %3034 = vmatmul.mubr.f32.gmra.mrb[170].mxu1 %v11425_v62 }
 0x3f2   :  { %v2083_v4 = vpop.f32.mrb[46].mxu0  ;;  %3039 = vmatprep.mubr.f32.mxu1 %v16019_v32 }
 0x3f3   :  { %v7162_v50 = vadd.f32 %v11096_v33, %v2083_v4  ;;  %v2085_v0 = vpop.f32.mrb[47].mxu0  ;;  %v11432_v27 = vmax.f32 %v2464_v20, 0.0 }
 0x3f5   :  { %v2469_v44 = vadd.f32 %v7162_v50, %v11013_v19  ;;  %3040 = vmatmul.mubr.f32.gmra.mrb[172].mxu1 %v11432_v27 }
 0x3f6   :  { %v2088_v3 = vpop.f32.mrb[48].mxu0  ;;  %3045 = vmatprep.mubr.f32.mxu1 %v16019_v32 }
 0x3f7   :  { %v11437_v37 = vmax.f32 %v2469_v44, 0.0  ;;  %v7163_v31 = vadd.f32 %v11096_v33, %v2088_v3  ;;  %v2090_v24 = vpop.f32.mrb[49].mxu0 }
 0x3f8   :  { %v2809_v24 = vld [vmem:[%s15514_s3 + $0x248] sm:$0xff] }
 0x3f9   :  { %v2474_v51 = vadd.f32 %v7163_v31, %v11031_v14  ;;  %3046 = vmatmul.mubr.f32.gmra.mrb[174].mxu1 %v11437_v37 }
 0x3fa   :  { %v2093_v4 = vpop.f32.mrb[50].mxu0  ;;  %3051 = vmatprep.mubr.f32.mxu1 %v16019_v32 }
 0x3fb   :  { %v7164_v20 = vadd.f32 %v11096_v33, %v2093_v4  ;;  %v2095_v19 = vpop.f32.mrb[51].mxu0  ;;  %v11444_v50 = vmax.f32 %v2474_v51, 0.0  ;;  %v2814_v51 = vld [vmem:[%s15514_s3 + $0x270] sm:$0xff] }
 0x3fc   :  { %v7071_v4 = vpack.c.bf16 %v2814_v51, %v2809_v24 }
 0x3fd   :  { %16042 = vst [vmem:[#allocation46_spill] sm:$0xff] %v11444_v50  ;;  %v2479_v0 = vadd.f32 %v7164_v20, %v11029_v1  ;;  %3052 = vmatmul.mubr.f32.gmra.mrb[176].mxu1 %v11444_v50 }
 0x3fe   :  { %v2098_v44 = vpop.f32.mrb[52].mxu0  ;;  %3057 = vmatprep.mubr.f32.mxu1 %v16019_v32  ;;  %7072 = vmatprep.subr.bf16.mxu1 %v7071_v4 }
 0x3ff   :  { %v11449_v3 = vmax.f32 %v2479_v0, 0.0  ;;  %v7165_v14 = vadd.f32 %v11096_v33, %v2098_v44  ;;  %v2100_v31 = vpop.f32.mrb[53].mxu0 }
 0x400   :  { %v2808_v31 = vld [vmem:[%s15514_s3 + $0x240] sm:$0xff] }
 0x401   :  { %16043 = vst [vmem:[#allocation47_spill] sm:$0xff] %v11449_v3  ;;  %v2484_v1 = vadd.f32 %v7165_v14, %v11047_v60  ;;  %3058 = vmatmul.mubr.f32.gmra.mrb[178].mxu1 %v11449_v3  ;;  %v2813_v60 = vld [vmem:[%s15514_s3 + $0x268] sm:$0xff] }
 0x402   :  { %v2103_v20 = vpop.f32.mrb[54].mxu0  ;;  %3063 = vmatprep.mubr.f32.mxu1 %v16019_v32  ;;  %v7073_v14 = vpack.c.bf16 %v2813_v60, %v2808_v31 }
 0x403   :  { %v7166_v19 = vadd.f32 %v11096_v33, %v2103_v20  ;;  %v2105_v0 = vpop.f32.mrb[55].mxu0  ;;  %v11462_v44 = vmax.f32 %v2484_v1, 0.0 }
 0x404   :  { %7074 = vmatpush1.bf16.msra.mxu1 %v7073_v14 }
 0x405   :  { %v2489_v24 = vadd.f32 %v7166_v19, %v11045_v8  ;;  %3064 = vmatmul.mubr.f32.gmra.mrb[180].mxu1 %v11462_v44 }
 0x406   :  { %v2108_v51 = vpop.f32.mrb[56].mxu0  ;;  %3069 = vmatprep.mubr.f32.mxu1 %v16019_v32 }
 0x407   :  { %v11473_v1 = vmax.f32 %v2489_v24, 0.0  ;;  %v7167_v4 = vadd.f32 %v11096_v33, %v2108_v51  ;;  %v2110_v20 = vpop.f32.mrb[57].mxu0 }
 0x409   :  { %v2494_v0 = vadd.f32 %v7167_v4, %v11063_v45  ;;  %3070 = vmatmul.mubr.f32.gmra.mrb[182].mxu1 %v11473_v1 }
 0x40a   :  { %v2113_v3 = vpop.f32.mrb[58].mxu0  ;;  %3075 = vmatprep.mubr.f32.mxu1 %v16019_v32 }
 0x40b   :  { %v7168_v8 = vadd.f32 %v11096_v33, %v2113_v3  ;;  %v2115_v19 = vpop.f32.mrb[59].mxu0  ;;  %v11480_v31 = vmax.f32 %v2494_v0, 0.0 }
 0x40c   :  { %v974_v19 = vadd.f32 %v11096_v33, %v10352_v35 }
 0x40d   :  { %v2499_v60 = vadd.f32 %v7168_v8, %v11061_v42  ;;  %3076 = vmatmul.mubr.f32.gmra.mrb[184].mxu1 %v11480_v31 }
 0x40e   :  { %v2118_v14 = vpop.f32.mrb[60].mxu0  ;;  %3081 = vmatprep.mubr.f32.mxu1 %v16019_v32 }
 0x40f   :  { %v11485_v24 = vmax.f32 %v2499_v60, 0.0  ;;  %v7169_v45 = vadd.f32 %v11096_v33, %v2118_v14  ;;  %v2120_v51 = vpop.f32.mrb[61].mxu0 }
 0x411   :  { %v2504_v4 = vadd.f32 %v7169_v45, %v11079_v36  ;;  %3082 = vmatmul.mubr.f32.gmra.mrb[186].mxu1 %v11485_v24 }
 0x412   :  { %v2123_v3 = vpop.f32.mrb[62].mxu0  ;;  %3087 = vmatprep.mubr.f32.mxu1 %v16019_v32 }
 0x413   :  { %v7170_v20 = vadd.f32 %v11096_v33, %v2123_v3  ;;  %v2125_v42 = vpop.f32.mrb[63].mxu0  ;;  %v11492_v0 = vmax.f32 %v2504_v4, 0.0  ;;  %v979_v4 = vadd.f32 %v11096_v33, %v10381_v46 }
 0x415   :  { %v2509_v8 = vadd.f32 %v7170_v20, %v11077_v12  ;;  %3088 = vmatmul.mubr.f32.gmra.mrb[188].mxu1 %v11492_v0 }
 0x416   :  { %v2128_v60 = vpop.f32.mrb[64].mxu0  ;;  %3093 = vmatprep.mubr.f32.mxu1 %v16019_v32 }
 0x417   :  { %v11499_v36 = vmax.f32 %v2509_v8, 0.0  ;;  %v7172_v14 = vadd.f32 %v2128_v60, %v974_v19  ;;  %v2130_v45 = vpop.f32.mrb[65].mxu0  ;;  %v984_v8 = vadd.f32 %v11096_v33, %v10392_v53  ;;  %v989_v53 = vadd.f32 %v11096_v33, %v10406_v59 }
 0x419   :  { %v2514_v51 = vadd.f32 %v7172_v14, %v11107_v13  ;;  %3094 = vmatmul.mubr.f32.gmra.mrb[190].mxu1 %v11499_v36  ;;  %v2740_v14 = vld [vmem:[%s15514_s3 + $0x20] sm:$0xff] }
 0x41a   :  { %v2133_v12 = vpop.f32.mrb[66].mxu0  ;;  %3099 = vmatprep.mubr.f32.mxu1 %v16019_v32 }
 0x41b   :  { %v7174_v3 = vadd.f32 %v2133_v12, %v979_v4  ;;  %v2135_v20 = vpop.f32.mrb[67].mxu0  ;;  %v11506_v35 = vmax.f32 %v2514_v51, 0.0 }
 0x41d   :  { %v2519_v42 = vadd.f32 %v7174_v3, %v11098_v47  ;;  %3100 = vmatmul.mubr.f32.gmra.mrb[192].mxu1 %v11506_v35  ;;  %v2745_v47 = vld [vmem:[%s15514_s3 + $0x48] sm:$0xff] }
 0x41e   :  { %v2138_v13 = vpop.f32.mrb[68].mxu0  ;;  %3105 = vmatprep.mubr.f32.mxu1 %v16019_v32  ;;  %v11525_v51 = vpack.c.bf16 %v2745_v47, %v2740_v14  ;;  %v999_v14 = vadd.f32 %v11096_v33, %v10440_v11 }
 0x41f   :  { %v11513_v19 = vmax.f32 %v2519_v42, 0.0  ;;  %v7176_v46 = vadd.f32 %v2138_v13, %v984_v8  ;;  %v2140_v60 = vpop.f32.mrb[69].mxu0 }
 0x420   :  { %7076 = vmatprep.subr.bf16.mxu1 %v11525_v51 }
 0x421   :  { %v2524_v45 = vadd.f32 %v7176_v46, %v11157_v41  ;;  %3106 = vmatmul.mubr.f32.gmra.mrb[194].mxu1 %v11513_v19  ;;  %v994_v41 = vadd.f32 %v11096_v33, %v10414_v63 }
 0x422   :  { %v2143_v4 = vpop.f32.mrb[70].mxu0  ;;  %3111 = vmatprep.mubr.f32.mxu1 %v16019_v32 }
 0x423   :  { %v7178_v12 = vadd.f32 %v2143_v4, %v989_v53  ;;  %v2145_v3 = vpop.f32.mrb[71].mxu0  ;;  %v11528_v20 = vmax.f32 %v2524_v45, 0.0  ;;  %v1004_v4 = vadd.f32 %v11096_v33, %v10451_v16 }
 0x425   :  { %v2529_v42 = vadd.f32 %v7178_v12, %v11146_v54  ;;  %3112 = vmatmul.mubr.f32.gmra.mrb[196].mxu1 %v11528_v20 }
 0x426   :  { %v2148_v8 = vpop.f32.mrb[72].mxu0  ;;  %3117 = vmatprep.mubr.f32.mxu1 %v16019_v32 }
 0x427   :  { %v11536_v59 = vmax.f32 %v2529_v42, 0.0  ;;  %v7180_v13 = vadd.f32 %v2148_v8, %v994_v41  ;;  %v2150_v46 = vpop.f32.mrb[73].mxu0  ;;  %v1009_v41 = vadd.f32 %v11096_v33, %v10462_v21 }
 0x429   :  { %v2534_v60 = vadd.f32 %v7180_v13, %v11209_v22  ;;  %3118 = vmatmul.mubr.f32.gmra.mrb[198].mxu1 %v11536_v59 }
 0x42a   :  { %v2153_v54 = vpop.f32.mrb[74].mxu0  ;;  %3123 = vmatprep.mubr.f32.mxu1 %v16019_v32 }
 0x42b   :  { %v7182_v47 = vadd.f32 %v2153_v54, %v999_v14  ;;  %v2155_v45 = vpop.f32.mrb[75].mxu0  ;;  %v11543_v63 = vmax.f32 %v2534_v60, 0.0  ;;  %v1014_v60 = vadd.f32 %v11096_v33, %v10473_v26 }
 0x42c   :  { %v1019_v45 = vadd.f32 %v11096_v33, %v10496_v38 }
 0x42d   :  { %v2539_v53 = vadd.f32 %v7182_v47, %v11198_v29  ;;  %3124 = vmatmul.mubr.f32.gmra.mrb[200].mxu1 %v11543_v63 }
 0x42e   :  { %v2158_v22 = vpop.f32.mrb[76].mxu0  ;;  %3129 = vmatprep.mubr.f32.mxu1 %v16019_v32 }
 0x42f   :  { %v11550_v12 = vmax.f32 %v2539_v53, 0.0  ;;  %v7184_v11 = vadd.f32 %v2158_v22, %v1004_v4  ;;  %v2160_v3 = vpop.f32.mrb[77].mxu0 }
 0x431   :  { %v2544_v42 = vadd.f32 %v7184_v11, %v11237_v5  ;;  %3130 = vmatmul.mubr.f32.gmra.mrb[202].mxu1 %v11550_v12  ;;  %v1024_v11 = vadd.f32 %v11096_v33, %v10507_v43 }
 0x432   :  { %v2163_v29 = vpop.f32.mrb[78].mxu0  ;;  %3135 = vmatprep.mubr.f32.mxu1 %v16019_v32 }
 0x433   :  { %v7186_v8 = vadd.f32 %v2163_v29, %v1009_v41  ;;  %v2165_v13 = vpop.f32.mrb[79].mxu0  ;;  %v11557_v16 = vmax.f32 %v2544_v42, 0.0  ;;  %v16044_v29 = vld [vmem:[#allocation2_spill] sm:$0xff] }
 0x435   :  { %v2549_v46 = vadd.f32 %v7186_v8, %v11232_v48  ;;  %3136 = vmatmul.mubr.f32.gmra.mrb[204].mxu1 %v11557_v16  ;;  %v1029_v8 = vadd.f32 %v11096_v33, %v16044_v29 }
 0x436   :  { %v2168_v5 = vpop.f32.mrb[80].mxu0  ;;  %3141 = vmatprep.mubr.f32.mxu1 %v16019_v32 }
 0x437   :  { %v11564_v14 = vmax.f32 %v2549_v46, 0.0  ;;  %v7188_v21 = vadd.f32 %v2168_v5, %v1014_v60  ;;  %v2170_v54 = vpop.f32.mrb[81].mxu0  ;;  %v16045_v5 = vld [vmem:[#allocation3_spill] sm:$0xff] }
 0x439   :  { %v2554_v47 = vadd.f32 %v7188_v21, %v11265_v18  ;;  %3142 = vmatmul.mubr.f32.gmra.mrb[206].mxu1 %v11564_v14  ;;  %v1034_v21 = vadd.f32 %v11096_v33, %v16045_v5 }
 0x43a   :  { %v2173_v48 = vpop.f32.mrb[82].mxu0  ;;  %3147 = vmatprep.mubr.f32.mxu1 %v16019_v32 }
 0x43b   :  { %v7190_v53 = vadd.f32 %v2173_v48, %v1019_v45  ;;  %v2175_v4 = vpop.f32.mrb[83].mxu0  ;;  %v11571_v26 = vmax.f32 %v2554_v47, 0.0 }
 0x43d   :  { %v2559_v22 = vadd.f32 %v7190_v53, %v11260_v15  ;;  %3148 = vmatmul.mubr.f32.gmra.mrb[208].mxu1 %v11571_v26  ;;  %v16046_v53 = vld [vmem:[#allocation4_spill] sm:$0xff] }
 0x43e   :  { %v2178_v18 = vpop.f32.mrb[84].mxu0  ;;  %3153 = vmatprep.mubr.f32.mxu1 %v16019_v32  ;;  %v1039_v4 = vadd.f32 %v11096_v33, %v16046_v53 }
 0x43f   :  { %v11578_v3 = vmax.f32 %v2559_v22, 0.0  ;;  %v7192_v38 = vadd.f32 %v2178_v18, %v1024_v11  ;;  %v2180_v42 = vpop.f32.mrb[85].mxu0 }
 0x440   :  { %v16047_v42 = vld [vmem:[#allocation5_spill] sm:$0xff] }
 0x441   :  { %v2564_v41 = vadd.f32 %v7192_v38, %v11299_v34  ;;  %3154 = vmatmul.mubr.f32.gmra.mrb[210].mxu1 %v11578_v3 }
 0x442   :  { %v2183_v15 = vpop.f32.mrb[86].mxu0  ;;  %3159 = vmatprep.mubr.f32.mxu1 %v16019_v32 }
 0x443   :  { %v7194_v13 = vadd.f32 %v2183_v15, %v1029_v8  ;;  %v2185_v46 = vpop.f32.mrb[87].mxu0  ;;  %v11585_v43 = vmax.f32 %v2564_v41, 0.0  ;;  %v1044_v41 = vadd.f32 %v11096_v33, %v16047_v42 }
 0x444   :  { %v16048_v46 = vld [vmem:[#allocation6_spill] sm:$0xff] }
 0x445   :  { %v2569_v60 = vadd.f32 %v7194_v13, %v11285_v7  ;;  %3160 = vmatmul.mubr.f32.gmra.mrb[212].mxu1 %v11585_v43 }
 0x446   :  { %v2188_v34 = vpop.f32.mrb[88].mxu0  ;;  %3165 = vmatprep.mubr.f32.mxu1 %v16019_v32 }
 0x447   :  { %v11592_v54 = vmax.f32 %v2569_v60, 0.0  ;;  %v7196_v47 = vadd.f32 %v2188_v34, %v1034_v21  ;;  %v2190_v45 = vpop.f32.mrb[89].mxu0  ;;  %v1049_v60 = vadd.f32 %v11096_v33, %v16048_v46 }
 0x448   :  { %v16049_v45 = vld [vmem:[#allocation7_spill] sm:$0xff] }
 0x449   :  { %v2574_v48 = vadd.f32 %v7196_v47, %v11318_v55  ;;  %3166 = vmatmul.mubr.f32.gmra.mrb[214].mxu1 %v11592_v54 }
 0x44a   :  { %v2193_v7 = vpop.f32.mrb[90].mxu0  ;;  %3171 = vmatprep.mubr.f32.mxu1 %v16019_v32 }
 0x44b   :  { %v7198_v22 = vadd.f32 %v2193_v7, %v1039_v4  ;;  %v2195_v11 = vpop.f32.mrb[91].mxu0  ;;  %v11599_v18 = vmax.f32 %v2574_v48, 0.0  ;;  %v1054_v48 = vadd.f32 %v11096_v33, %v16049_v45 }
 0x44c   :  { %v16050_v11 = vld [vmem:[#allocation8_spill] sm:$0xff] }
 0x44d   :  { %v2579_v38 = vadd.f32 %v7198_v22, %v11313_v9  ;;  %3172 = vmatmul.mubr.f32.gmra.mrb[216].mxu1 %v11599_v18 }
 0x44e   :  { %v2198_v55 = vpop.f32.mrb[92].mxu0  ;;  %3177 = vmatprep.mubr.f32.mxu1 %v16019_v32 }
 0x44f   :  { %v11606_v29 = vmax.f32 %v2579_v38, 0.0  ;;  %v7200_v8 = vadd.f32 %v2198_v55, %v1044_v41  ;;  %v2200_v15 = vpop.f32.mrb[93].mxu0  ;;  %v1059_v38 = vadd.f32 %v11096_v33, %v16050_v11 }
 0x450   :  { %v16051_v15 = vld [vmem:[#allocation9_spill] sm:$0xff] }
 0x451   :  { %v2584_v13 = vadd.f32 %v7200_v8, %v11328_v58  ;;  %3178 = vmatmul.mubr.f32.gmra.mrb[218].mxu1 %v11606_v29 }
 0x452   :  { %v2203_v9 = vpop.f32.mrb[94].mxu0  ;;  %3183 = vmatprep.mubr.f32.mxu1 %v16019_v32 }
 0x453   :  { %v11613_v5 = vmax.f32 %v2584_v13, 0.0  ;;  %v7202_v21 = vadd.f32 %v2203_v9, %v1049_v60  ;;  %v2205_v34 = vpop.f32.mrb[95].mxu0  ;;  %v1064_v13 = vadd.f32 %v11096_v33, %v16051_v15 }
 0x454   :  { %v16052_v34 = vld [vmem:[#allocation10_spill] sm:$0xff] }
 0x455   :  { %v2589_v47 = vadd.f32 %v7202_v21, %v11326_v49  ;;  %3184 = vmatmul.mubr.f32.gmra.mrb[220].mxu1 %v11613_v5 }
 0x456   :  { %v2208_v58 = vpop.f32.mrb[96].mxu0  ;;  %3189 = vmatprep.mubr.f32.mxu1 %v16019_v32 }
 0x457   :  { %v11620_v53 = vmax.f32 %v2589_v47, 0.0  ;;  %v7204_v4 = vadd.f32 %v2208_v58, %v1054_v48  ;;  %v2210_v7 = vpop.f32.mrb[97].mxu0  ;;  %v1069_v47 = vadd.f32 %v11096_v33, %v16052_v34 }
 0x459   :  { %v2594_v22 = vadd.f32 %v7204_v4, %v11338_v10  ;;  %3190 = vmatmul.mubr.f32.gmra.mrb[222].mxu1 %v11620_v53 }
 0x45a   :  { %v2213_v49 = vpop.f32.mrb[98].mxu0  ;;  %3195 = vmatprep.mubr.f32.mxu1 %v16019_v32 }
 0x45b   :  { %v11627_v42 = vmax.f32 %v2594_v22, 0.0  ;;  %v7206_v41 = vadd.f32 %v2213_v49, %v1059_v38  ;;  %v2215_v55 = vpop.f32.mrb[99].mxu0  ;;  %v16053_v22 = vld [vmem:[#allocation11_spill] sm:$0xff] }
 0x45d   :  { %v2599_v8 = vadd.f32 %v7206_v41, %v11336_v57  ;;  %3196 = vmatmul.mubr.f32.gmra.mrb[224].mxu1 %v11627_v42  ;;  %v2818_v57 = vlaneseq }
 0x45e   :  { %v2218_v10 = vpop.f32.mrb[100].mxu0  ;;  %3201 = vmatprep.mubr.f32.mxu1 %v16019_v32 }
 0x45f   :  { %v11634_v46 = vmax.f32 %v2599_v8, 0.0  ;;  %v7208_v60 = vadd.f32 %v2218_v10, %v1064_v13  ;;  %v2220_v9 = vpop.f32.mrb[101].mxu0  ;;  %v11652_v11 = vshrl.u32 %v2818_v57, 7  ;;  %v16055_v8 = vld [vmem:[#allocation12_spill] sm:$0xff]  ;;  %v16056_v57 = vld [vmem:[#allocation13_spill] sm:$0xff] }
 0x461   :  { %v2604_v21 = vadd.f32 %v7208_v60, %v11350_v40  ;;  %3202 = vmatmul.mubr.f32.gmra.mrb[226].mxu1 %v11634_v46  ;;  %v11648_v40 = vld [vmem:[%s15515_s2] ss:$0 sm:$0xff]  ;;  %16054 = vst [vmem:[#allocation2_spill] sm:$0xff] %v11652_v11  ;;  %v2820_v13 = vsub.s32 0, %v11652_v11  ;;  %v2824_v9 = vsub.s32 1, %v11652_v11 }
 0x462   :  { %v2223_v45 = vpop.f32.mrb[102].mxu0  ;;  %3207 = vmatprep.mubr.f32.mxu1 %v16019_v32  ;;  %v1074_v33 = vadd.f32 %v11648_v40, %v16053_v22  ;;  %v1079_v15 = vadd.f32 %v11648_v40, %v16055_v8  ;;  %v2816_v60 = vld [vmem:[%s15516_s4] sm:$0x1f] }
 0x463   :  { %v11641_v48 = vmax.f32 %v2604_v21, 0.0  ;;  %v7210_v58 = vadd.f32 %v2223_v45, %v1069_v47  ;;  %v2225_v4 = vpop.f32.mrb[103].mxu0  ;;  %v1084_v45 = vadd.f32 %v11648_v40, %v16056_v57  ;;  %v16058_v8 = vld [vmem:[#allocation14_spill] sm:$0xff] }
 0x465   :  { %v2609_v7 = vadd.f32 %v7210_v58, %v11346_v52  ;;  %3208 = vmatmul.mubr.f32.gmra.mrb[228].mxu1 %v11641_v48  ;;  %v11673_v58 = vrot.slane %v2816_v60, %v2820_v13 }
 0x466   :  { %v2228_v38 = vpop.f32.mrb[104].mxu0  ;;  %3213 = vmatprep.mubr.f32.mxu1 %v16019_v32 }
 0x467   :  { %v11655_v49 = vmax.f32 %v2609_v7, 0.0  ;;  %v7212_v41 = vadd.f32 %v2228_v38, %v1074_v33  ;;  %v2230_v55 = vpop.f32.mrb[105].mxu0  ;;  %v11676_v7 = vrot.slane %v2816_v60, %v2824_v9 }
 0x469   :  { %v2614_v52 = vadd.f32 %v7212_v41, %v11360_v6  ;;  %3214 = vmatmul.mubr.f32.gmra.mrb[230].mxu1 %v11655_v49 }
 0x46a   :  { %v2233_v10 = vpop.f32.mrb[106].mxu0  ;;  %3219 = vmatprep.mubr.f32.mxu1 %v16019_v32 }
 0x46b   :  { %v11667_v21 = vmax.f32 %v2614_v52, 0.0  ;;  %v7214_v34 = vadd.f32 %v2233_v10, %v1079_v15  ;;  %v2235_v6 = vpop.f32.mrb[107].mxu0  ;;  %v1089_v15 = vadd.f32 %v11648_v40, %v16058_v8 }
 0x46d   :  { %v2619_v47 = vadd.f32 %v7214_v34, %v11356_v17  ;;  %3220 = vmatmul.mubr.f32.gmra.mrb[232].mxu1 %v11667_v21 }
 0x46e   :  { %v2238_v4 = vpop.f32.mrb[108].mxu0  ;;  %3225 = vmatprep.mubr.f32.mxu1 %v16019_v32 }
 0x46f   :  { %v11678_v22 = vmax.f32 %v2619_v47, 0.0  ;;  %v7216_v33 = vadd.f32 %v2238_v4, %v1084_v45  ;;  %v2240_v38 = vpop.f32.mrb[109].mxu0  ;;  %v16061_v4 = vld [vmem:[#allocation15_spill] sm:$0xff] }
 0x470   :  { %v2909_v41 = vpop.f32.mrb[128].mxu1 }
 0x471   :  { %v2624_v55 = vadd.f32 %v7216_v33, %v11370_v25  ;;  %v11682_v17 = vadd.f32 %v2909_v41, %v11673_v58  ;;  %v2911_v52 = vpop.f32.mrb[129].mxu1  ;;  %3226 = vmatmul.mubr.f32.gmra.mrb[234].mxu1 %v11678_v22  ;;  %v1094_v33 = vadd.f32 %v11648_v40, %v16061_v4 }
 0x472   :  { %v11688_v13 = vadd.f32 %v2911_v52, %v11676_v7  ;;  %v2243_v10 = vpop.f32.mrb[110].mxu0  ;;  %3231 = vmatprep.mubr.f32.mxu1 %v16019_v32 }
 0x473   :  { %16057 = vst [vmem:[#allocation3_spill] sm:$0xff] %v11682_v17  ;;  %v11691_v60 = vmax.f32 %v2624_v55, 0.0  ;;  %v7218_v9 = vadd.f32 %v2243_v10, %v1089_v15  ;;  %v2245_v34 = vpop.f32.mrb[111].mxu0 }
 0x474   :  { %16059 = vst [vmem:[#allocation4_spill] sm:$0xff] %v11688_v13  ;;  %v2915_v6 = vpop.f32.mrb[130].mxu1 }
 0x475   :  { %v2629_v47 = vadd.f32 %v7218_v9, %v11366_v39  ;;  %v11697_v57 = vadd.f32 %v2915_v6, %v11673_v58  ;;  %v2917_v45 = vpop.f32.mrb[131].mxu1  ;;  %3232 = vmatmul.mubr.f32.gmra.mrb[236].mxu1 %v11691_v60  ;;  %v16064_v6 = vld [vmem:[#allocation16_spill] sm:$0xff] }
 0x476   :  { %v11703_v38 = vadd.f32 %v2917_v45, %v11676_v7  ;;  %v2248_v41 = vpop.f32.mrb[112].mxu0  ;;  %3237 = vmatprep.mubr.f32.mxu1 %v16019_v32  ;;  %v1099_v45 = vadd.f32 %v11648_v40, %v16064_v6 }
 0x477   :  { %16060 = vst [vmem:[#allocation5_spill] sm:$0xff] %v11697_v57  ;;  %v11706_v55 = vmax.f32 %v2629_v47, 0.0  ;;  %v7220_v52 = vadd.f32 %v2248_v41, %v1094_v33  ;;  %v2250_v8 = vpop.f32.mrb[113].mxu0 }
 0x478   :  { %16062 = vst [vmem:[#allocation6_spill] sm:$0xff] %v11703_v38  ;;  %v2921_v15 = vpop.f32.mrb[132].mxu1 }
 0x479   :  { %v2634_v10 = vadd.f32 %v7220_v52, %v11386_v28  ;;  %v11712_v9 = vadd.f32 %v2921_v15, %v11673_v58  ;;  %v2923_v34 = vpop.f32.mrb[133].mxu1  ;;  %3238 = vmatmul.mubr.f32.gmra.mrb[238].mxu1 %v11706_v55  ;;  %v16066_v15 = vld [vmem:[#allocation41_spill] sm:$0xff] }
 0x47a   :  { %v11718_v47 = vadd.f32 %v2923_v34, %v11676_v7  ;;  %v2253_v4 = vpop.f32.mrb[114].mxu0  ;;  %3243 = vmatprep.mubr.f32.mxu1 %v16019_v32  ;;  %v16068_v34 = vld [vmem:[#allocation17_spill] sm:$0xff] }
 0x47b   :  { %16063 = vst [vmem:[#allocation7_spill] sm:$0xff] %v11712_v9  ;;  %v11721_v33 = vmax.f32 %v2634_v10, 0.0  ;;  %v7222_v41 = vadd.f32 %v2253_v4, %v1099_v45  ;;  %v2255_v8 = vpop.f32.mrb[115].mxu0  ;;  %v1104_v38 = vadd.f32 %v11648_v40, %v16068_v34 }
 0x47c   :  { %16065 = vst [vmem:[#allocation8_spill] sm:$0xff] %v11718_v47  ;;  %v2927_v52 = vpop.f32.mrb[134].mxu1 }
 0x47d   :  { %v2639_v39 = vadd.f32 %v7222_v41, %v16066_v15  ;;  %v11727_v25 = vadd.f32 %v2927_v52, %v11673_v58  ;;  %v2929_v6 = vpop.f32.mrb[135].mxu1  ;;  %3244 = vmatmul.mubr.f32.gmra.mrb[240].mxu1 %v11721_v33 }
 0x47e   :  { %v11733_v10 = vadd.f32 %v2929_v6, %v11676_v7  ;;  %v2258_v45 = vpop.f32.mrb[116].mxu0  ;;  %3249 = vmatprep.mubr.f32.mxu1 %v16019_v32  ;;  %v16071_v6 = vld [vmem:[#allocation18_spill] sm:$0xff] }
 0x47f   :  { %16067 = vst [vmem:[#allocation9_spill] sm:$0xff] %v11727_v25  ;;  %v11736_v4 = vmax.f32 %v2639_v39, 0.0  ;;  %v7224_v8 = vadd.f32 %v2258_v45, %v1104_v38  ;;  %v2260_v28 = vpop.f32.mrb[117].mxu0  ;;  %v1109_v9 = vadd.f32 %v11648_v40, %v16071_v6 }
 0x480   :  { %16069 = vst [vmem:[#allocation10_spill] sm:$0xff] %v11733_v10  ;;  %v2933_v52 = vpop.f32.mrb[136].mxu1 }
 0x481   :  { %v2644_v15 = vadd.f32 %v7224_v8, %v11402_v30  ;;  %v11742_v47 = vadd.f32 %v2933_v52, %v11673_v58  ;;  %v2935_v34 = vpop.f32.mrb[137].mxu1  ;;  %3250 = vmatmul.mubr.f32.gmra.mrb[242].mxu1 %v11736_v4 }
 0x482   :  { %v11748_v39 = vadd.f32 %v2935_v34, %v11676_v7  ;;  %v2263_v38 = vpop.f32.mrb[118].mxu0  ;;  %3255 = vmatprep.mubr.f32.mxu1 %v16019_v32  ;;  %v16074_v34 = vld [vmem:[#allocation19_spill] sm:$0xff] }
 0x483   :  { %16070 = vst [vmem:[#allocation11_spill] sm:$0xff] %v11742_v47  ;;  %v11751_v28 = vmax.f32 %v2644_v15, 0.0  ;;  %v7226_v45 = vadd.f32 %v2263_v38, %v1109_v9  ;;  %v2265_v41 = vpop.f32.mrb[119].mxu0  ;;  %v1114_v25 = vadd.f32 %v11648_v40, %v16074_v34 }
 0x484   :  { %16072 = vst [vmem:[#allocation12_spill] sm:$0xff] %v11748_v39  ;;  %v2939_v8 = vpop.f32.mrb[138].mxu1 }
 0x485   :  { %v2649_v52 = vadd.f32 %v7226_v45, %v11398_v61  ;;  %v11757_v10 = vadd.f32 %v2939_v8, %v11673_v58  ;;  %v2941_v6 = vpop.f32.mrb[139].mxu1  ;;  %3256 = vmatmul.mubr.f32.gmra.mrb[244].mxu1 %v11751_v28 }
 0x486   :  { %v11763_v15 = vadd.f32 %v2941_v6, %v11676_v7  ;;  %v2268_v9 = vpop.f32.mrb[120].mxu0  ;;  %3261 = vmatprep.mubr.f32.mxu1 %v16019_v32  ;;  %v16078_v6 = vld [vmem:[#allocation20_spill] sm:$0xff] }
 0x487   :  { %16073 = vst [vmem:[#allocation13_spill] sm:$0xff] %v11757_v10  ;;  %v11766_v41 = vmax.f32 %v2649_v52, 0.0  ;;  %v7228_v38 = vadd.f32 %v2268_v9, %v1114_v25  ;;  %v2270_v30 = vpop.f32.mrb[121].mxu0  ;;  %v1119_v47 = vadd.f32 %v11648_v40, %v16078_v6 }
 0x488   :  { %16075 = vst [vmem:[#allocation14_spill] sm:$0xff] %v11763_v15  ;;  %v2945_v45 = vpop.f32.mrb[140].mxu1 }
 0x489   :  { %16076 = vst [vmem:[#allocation15_spill] sm:$0xff] %v11766_v41  ;;  %v2654_v8 = vadd.f32 %v7228_v38, %v11412_v23  ;;  %v11772_v39 = vadd.f32 %v2945_v45, %v11673_v58  ;;  %v2947_v34 = vpop.f32.mrb[141].mxu1  ;;  %3262 = vmatmul.mubr.f32.gmra.mrb[246].mxu1 %v11766_v41  ;;  %v16080_v45 = vld [vmem:[#allocation44_spill] sm:$0xff] }
 0x48a   :  { %v11778_v52 = vadd.f32 %v2947_v34, %v11676_v7  ;;  %v2273_v25 = vpop.f32.mrb[122].mxu0  ;;  %3267 = vmatprep.mubr.f32.mxu1 %v16019_v32  ;;  %v16082_v34 = vld [vmem:[#allocation21_spill] sm:$0xff] }
 0x48b   :  { %16077 = vst [vmem:[#allocation16_spill] sm:$0xff] %v11772_v39  ;;  %v11781_v30 = vmax.f32 %v2654_v8, 0.0  ;;  %v7230_v9 = vadd.f32 %v2273_v25, %v1119_v47  ;;  %v2275_v61 = vpop.f32.mrb[123].mxu0  ;;  %v1124_v41 = vadd.f32 %v11648_v40, %v16082_v34 }
 0x48c   :  { %16079 = vst [vmem:[#allocation41_spill] sm:$0xff] %v11778_v52  ;;  %v2951_v38 = vpop.f32.mrb[142].mxu1 }
 0x48d   :  { %v2659_v15 = vadd.f32 %v7230_v9, %v16080_v45  ;;  %v11787_v10 = vadd.f32 %v2951_v38, %v11673_v58  ;;  %v2953_v6 = vpop.f32.mrb[143].mxu1  ;;  %3268 = vmatmul.mubr.f32.gmra.mrb[248].mxu1 %v11781_v30 }
 0x48e   :  { %v11793_v8 = vadd.f32 %v2953_v6, %v11676_v7  ;;  %v2278_v47 = vpop.f32.mrb[124].mxu0  ;;  %3273 = vmatprep.mubr.f32.mxu1 %v16019_v32  ;;  %v16085_v6 = vld [vmem:[#allocation22_spill] sm:$0xff] }
 0x48f   :  { %16081 = vst [vmem:[#allocation17_spill] sm:$0xff] %v11787_v10  ;;  %v11796_v61 = vmax.f32 %v2659_v15, 0.0  ;;  %v7232_v25 = vadd.f32 %v2278_v47, %v1124_v41  ;;  %v2280_v23 = vpop.f32.mrb[125].mxu0  ;;  %v1129_v39 = vadd.f32 %v11648_v40, %v16085_v6  ;;  %v2755_v6 = vld [vmem:[%s15514_s3 + $0x98] sm:$0xff] }
 0x490   :  { %16083 = vst [vmem:[#allocation18_spill] sm:$0xff] %v11793_v8  ;;  %v2957_v38 = vpop.f32.mrb[144].mxu1 }
 0x491   :  { %v2664_v45 = vadd.f32 %v7232_v25, %v11422_v56  ;;  %v11802_v52 = vadd.f32 %v2957_v38, %v11673_v58  ;;  %v2959_v34 = vpop.f32.mrb[145].mxu1  ;;  %3274 = vmatmul.mubr.f32.gmra.mrb[250].mxu1 %v11796_v61  ;;  %v2760_v56 = vld [vmem:[%s15514_s3 + $0xc0] sm:$0xff] }
 0x492   :  { %v11808_v15 = vadd.f32 %v2959_v34, %v11676_v7  ;;  %v2283_v41 = vpop.f32.mrb[126].mxu0  ;;  %3279 = vmatprep.mubr.f32.mxu1 %v16019_v32 }
 0x493   :  { %16084 = vst [vmem:[#allocation19_spill] sm:$0xff] %v11802_v52  ;;  %v11811_v23 = vmax.f32 %v2664_v45, 0.0  ;;  %v7234_v47 = vadd.f32 %v2283_v41, %v1129_v39  ;;  %v2285_v9 = vpop.f32.mrb[127].mxu0 }
 0x494   :  { %16086 = vst [vmem:[#allocation20_spill] sm:$0xff] %v11808_v15  ;;  %v2963_v25 = vpop.f32.mrb[146].mxu1 }
 0x495   :  { %v2669_v38 = vadd.f32 %v7234_v47, %v11418_v2  ;;  %v11817_v8 = vadd.f32 %v2963_v25, %v11673_v58  ;;  %v2965_v40 = vpop.f32.mrb[147].mxu1  ;;  %3280 = vmatmul.mubr.f32.gmra.mrb[252].mxu1 %v11811_v23  ;;  %v2750_v2 = vld [vmem:[%s15514_s3 + $0x70] sm:$0xff] }
 0x496   :  { %v11821_v34 = vadd.f32 %v2965_v40, %v11676_v7  ;;  %3285 = vmatprep.mubr.f32.mxu1 %v16019_v32 }
 0x497   :  { %16087 = vst [vmem:[#allocation44_spill] sm:$0xff] %v11817_v8  ;;  %v11824_v45 = vmax.f32 %v2669_v38, 0.0  ;;  %v7079_v38 = vpack.c.bf16 %v2755_v6, %v2750_v2  ;;  %v16093_v8 = vld [vmem:[#allocation23_spill] sm:$0xff] }
 0x498   :  { %16088 = vst [vmem:[#allocation21_spill] sm:$0xff] %v11821_v34  ;;  %v2969_v9 = vpop.f32.mrb[148].mxu1 }
 0x499   :  { %16089 = vst [vmem:[#allocation22_spill] sm:$0xff] %v11824_v45  ;;  %v11835_v41 = vadd.f32 %v2969_v9, %v11673_v58  ;;  %v2971_v47 = vpop.f32.mrb[149].mxu1  ;;  %3286 = vmatmul.mubr.f32.gmra.mrb[254].mxu1 %v11824_v45  ;;  %v2765_v9 = vld [vmem:[%s15514_s3 + $0xe8] sm:$0xff]  ;;  %v16099_v45 = vld [vmem:[#allocation25_spill] sm:$0xff] }
 0x49a   :  { %v11839_v25 = vadd.f32 %v2971_v47, %v11676_v7  ;;  %3356 = vmatprep.mubr.f32.mxu1 %v16019_v32  ;;  %v7083_v6 = vpack.c.bf16 %v2765_v9, %v2760_v56 }
 0x49b   :  { %16090 = vst [vmem:[#allocation48_spill] sm:$0xff] %v11835_v41  ;;  %v2775_v41 = vld [vmem:[%s15514_s3 + $0x138] sm:$0xff] }
 0x49c   :  { %16091 = vst [vmem:[#allocation49_spill] sm:$0xff] %v11839_v25  ;;  %v2975_v39 = vpop.f32.mrb[150].mxu1 }
 0x49d   :  { %v11851_v34 = vadd.f32 %v2975_v39, %v11673_v58  ;;  %v2977_v47 = vpop.f32.mrb[151].mxu1  ;;  %3357 = vmatmul.mubr.f32.vlgmr.msra.gmra.mrb[0].mxu1 %v16093_v8  ;;  %v2770_v39 = vld [vmem:[%s15514_s3 + $0x110] sm:$0xff] }
 0x49e   :  { %v11855_v2 = vadd.f32 %v2977_v47, %v11676_v7  ;;  %7078 = vmatpush3.bf16.msra.mxu1 %v11525_v51  ;;  %3362 = vmatprep.mubr.f32.mxu1 %v16019_v32  ;;  %v16096_v8 = vld [vmem:[#allocation24_spill] sm:$0xff]  ;;  %v7087_v9 = vpack.c.bf16 %v2775_v41, %v2770_v39 }
 0x49f   :  { %16092 = vst [vmem:[#allocation50_spill] sm:$0xff] %v11851_v34  ;;  %7080 = vmatprep.subr.bf16.mxu1 %v7079_v38  ;;  %v2785_v34 = vld [vmem:[%s15514_s3 + $0x188] sm:$0xff] }
 0x4a0   :  { %16094 = vst [vmem:[#allocation51_spill] sm:$0xff] %v11855_v2  ;;  %v2981_v25 = vpop.f32.mrb[152].mxu1 }
 0x4a1   :  { %v11868_v47 = vadd.f32 %v2981_v25, %v11673_v58  ;;  %v2983_v51 = vpop.f32.mrb[153].mxu1  ;;  %3363 = vmatmul.mubr.f32.gmra.mrb[2].mxu1 %v16096_v8  ;;  %v2780_v25 = vld [vmem:[%s15514_s3 + $0x160] sm:$0xff] }
 0x4a2   :  { %v11872_v56 = vadd.f32 %v2983_v51, %v11676_v7  ;;  %3368 = vmatprep.mubr.f32.mxu1 %v16019_v32  ;;  %7082 = vmatpush3.bf16.msra.mxu1 %v7079_v38  ;;  %v7091_v38 = vpack.c.bf16 %v2785_v34, %v2780_v25 }
 0x4a3   :  { %16095 = vst [vmem:[#allocation52_spill] sm:$0xff] %v11868_v47  ;;  %7084 = vmatprep.subr.bf16.mxu1 %v7083_v6  ;;  %v16102_v47 = vld [vmem:[#allocation26_spill] sm:$0xff] }
 0x4a4   :  { %16097 = vst [vmem:[#allocation53_spill] sm:$0xff] %v11872_v56  ;;  %v2987_v2 = vpop.f32.mrb[154].mxu1 }
 0x4a5   :  { %v11884_v51 = vadd.f32 %v2987_v2, %v11673_v58  ;;  %v2989_v8 = vpop.f32.mrb[155].mxu1  ;;  %3369 = vmatmul.mubr.f32.gmra.mrb[4].mxu1 %v16099_v45 }
 0x4a6   :  { %v11888_v41 = vadd.f32 %v2989_v8, %v11676_v7  ;;  %3374 = vmatprep.mubr.f32.mxu1 %v16019_v32  ;;  %7086 = vmatpush3.bf16.msra.mxu1 %v7083_v6 }
 0x4a7   :  { %16098 = vst [vmem:[#allocation54_spill] sm:$0xff] %v11884_v51  ;;  %7088 = vmatprep.subr.bf16.mxu1 %v7087_v9 }
 0x4a8   :  { %16100 = vst [vmem:[#allocation55_spill] sm:$0xff] %v11888_v41  ;;  %v2993_v40 = vpop.f32.mrb[156].mxu1 }
 0x4a9   :  { %v11894_v56 = vadd.f32 %v2993_v40, %v11673_v58  ;;  %v2995_v2 = vpop.f32.mrb[157].mxu1  ;;  %3375 = vmatmul.mubr.f32.gmra.mrb[6].mxu1 %v16102_v47  ;;  %v16105_v40 = vld [vmem:[#allocation27_spill] sm:$0xff] }
 0x4aa   :  { %v11898_v45 = vadd.f32 %v2995_v2, %v11676_v7  ;;  %3380 = vmatprep.mubr.f32.mxu1 %v16019_v32  ;;  %7090 = vmatpush3.bf16.msra.mxu1 %v7087_v9 }
 0x4ab   :  { %16101 = vst [vmem:[#allocation56_spill] sm:$0xff] %v11894_v56  ;;  %7092 = vmatprep.subr.bf16.mxu1 %v7091_v38 }
 0x4ac   :  { %16103 = vst [vmem:[#allocation26_spill] sm:$0xff] %v11898_v45  ;;  %v2999_v34 = vpop.f32.mrb[158].mxu1  ;;  %v16108_v45 = vld [vmem:[#allocation28_spill] sm:$0xff] }
 0x4ad   :  { %v11904_v6 = vadd.f32 %v2999_v34, %v11673_v58  ;;  %v3001_v25 = vpop.f32.mrb[159].mxu1  ;;  %3381 = vmatmul.mubr.f32.gmra.mrb[8].mxu1 %v16105_v40 }
 0x4ae   :  { %v11908_v39 = vadd.f32 %v3001_v25, %v11676_v7  ;;  %3386 = vmatprep.mubr.f32.mxu1 %v16019_v32  ;;  %7094 = vmatpush3.bf16.msra.mxu1 %v7091_v38 }
 0x4af   :  { %16104 = vst [vmem:[#allocation57_spill] sm:$0xff] %v11904_v6 }
 0x4b0   :  { %16106 = vst [vmem:[#allocation27_spill] sm:$0xff] %v11908_v39  ;;  %v3005_v2 = vpop.f32.mrb[160].mxu1  ;;  %v16111_v39 = vld [vmem:[#allocation29_spill] sm:$0xff] }
 0x4b1   :  { %v11914_v41 = vadd.f32 %v3005_v2, %v11673_v58  ;;  %v3007_v8 = vpop.f32.mrb[161].mxu1  ;;  %3387 = vmatmul.mubr.f32.gmra.mrb[10].mxu1 %v16108_v45  ;;  %v16123_v45 = vld [vmem:[#allocation33_spill] sm:$0xff] }
 0x4b2   :  { %v11918_v34 = vadd.f32 %v3007_v8, %v11676_v7  ;;  %3392 = vmatprep.mubr.f32.mxu1 %v16019_v32 }
 0x4b3   :  { %16107 = vst [vmem:[#allocation58_spill] sm:$0xff] %v11914_v41 }
 0x4b4   :  { %16109 = vst [vmem:[#allocation59_spill] sm:$0xff] %v11918_v34  ;;  %v3011_v56 = vpop.f32.mrb[162].mxu1  ;;  %v16114_v34 = vld [vmem:[#allocation30_spill] sm:$0xff] }
 0x4b5   :  { %v11924_v38 = vadd.f32 %v3011_v56, %v11673_v58  ;;  %v3013_v9 = vpop.f32.mrb[163].mxu1  ;;  %3393 = vmatmul.mubr.f32.gmra.mrb[12].mxu1 %v16111_v39 }
 0x4b6   :  { %v11928_v2 = vadd.f32 %v3013_v9, %v11676_v7  ;;  %3398 = vmatprep.mubr.f32.mxu1 %v16019_v32  ;;  %v2790_v9 = vld [vmem:[%s15514_s3 + $0x1b0] sm:$0xff] }
 0x4b7   :  { %16110 = vst [vmem:[#allocation60_spill] sm:$0xff] %v11924_v38 }
 0x4b8   :  { %16112 = vst [vmem:[#allocation61_spill] sm:$0xff] %v11928_v2  ;;  %v3017_v6 = vpop.f32.mrb[164].mxu1  ;;  %v16117_v2 = vld [vmem:[#allocation31_spill] sm:$0xff] }
 0x4b9   :  { %v11934_v51 = vadd.f32 %v3017_v6, %v11673_v58  ;;  %v3019_v25 = vpop.f32.mrb[165].mxu1  ;;  %3399 = vmatmul.mubr.f32.gmra.mrb[14].mxu1 %v16114_v34 }
 0x4ba   :  { %v11938_v56 = vadd.f32 %v3019_v25, %v11676_v7  ;;  %3404 = vmatprep.mubr.f32.mxu1 %v16019_v32 }
 0x4bb   :  { %16113 = vst [vmem:[#allocation62_spill] sm:$0xff] %v11934_v51 }
 0x4bc   :  { %16115 = vst [vmem:[#allocation63_spill] sm:$0xff] %v11938_v56  ;;  %v3023_v41 = vpop.f32.mrb[166].mxu1 }
 0x4bd   :  { %v11944_v39 = vadd.f32 %v3023_v41, %v11673_v58  ;;  %v3025_v8 = vpop.f32.mrb[167].mxu1  ;;  %3405 = vmatmul.mubr.f32.gmra.mrb[16].mxu1 %v16117_v2  ;;  %v2795_v41 = vld [vmem:[%s15514_s3 + $0x1d8] sm:$0xff] }
 0x4be   :  { %v11948_v6 = vadd.f32 %v3025_v8, %v11676_v7  ;;  %3410 = vmatprep.mubr.f32.mxu1 %v16019_v32  ;;  %v16120_v8 = vld [vmem:[#allocation32_spill] sm:$0xff]  ;;  %v7095_v2 = vpack.c.bf16 %v2795_v41, %v2790_v9 }
 0x4bf   :  { %16116 = vst [vmem:[#allocation64_spill] sm:$0xff] %v11944_v39 }
 0x4c0   :  { %16118 = vst [vmem:[#allocation65_spill] sm:$0xff] %v11948_v6  ;;  %v3029_v38 = vpop.f32.mrb[168].mxu1  ;;  %7096 = vmatprep.subr.bf16.mxu1 %v7095_v2 }
 0x4c1   :  { %v11960_v56 = vadd.f32 %v3029_v38, %v11673_v58  ;;  %v3031_v51 = vpop.f32.mrb[169].mxu1  ;;  %3411 = vmatmul.mubr.f32.gmra.mrb[18].mxu1 %v16120_v8 }
 0x4c2   :  { %v11964_v34 = vadd.f32 %v3031_v51, %v11676_v7  ;;  %3416 = vmatprep.mubr.f32.mxu1 %v16019_v32  ;;  %7098 = vmatpush3.bf16.msra.mxu1 %v7095_v2  ;;  %v16126_v2 = vld [vmem:[#allocation34_spill] sm:$0xff] }
 0x4c3   :  { %16119 = vst [vmem:[#allocation66_spill] sm:$0xff] %v11960_v56 }
 0x4c4   :  { %16121 = vst [vmem:[#allocation67_spill] sm:$0xff] %v11964_v34  ;;  %v3035_v6 = vpop.f32.mrb[170].mxu1 }
 0x4c5   :  { %v11970_v39 = vadd.f32 %v3035_v6, %v11673_v58  ;;  %v3037_v38 = vpop.f32.mrb[171].mxu1  ;;  %3417 = vmatmul.mubr.f32.gmra.mrb[20].mxu1 %v16123_v45  ;;  %v16147_v45 = vld [vmem:[#allocation42_spill] sm:$0xff] }
 0x4c6   :  { %v11974_v8 = vadd.f32 %v3037_v38, %v11676_v7  ;;  %3422 = vmatprep.mubr.f32.mxu1 %v16019_v32 }
 0x4c7   :  { %16122 = vst [vmem:[#allocation68_spill] sm:$0xff] %v11970_v39 }
 0x4c8   :  { %16124 = vst [vmem:[#allocation69_spill] sm:$0xff] %v11974_v8  ;;  %v3041_v9 = vpop.f32.mrb[172].mxu1  ;;  %v16129_v8 = vld [vmem:[#allocation35_spill] sm:$0xff] }
 0x4c9   :  { %v11980_v41 = vadd.f32 %v3041_v9, %v11673_v58  ;;  %v3043_v25 = vpop.f32.mrb[173].mxu1  ;;  %3423 = vmatmul.mubr.f32.gmra.mrb[22].mxu1 %v16126_v2 }
 0x4ca   :  { %v11984_v6 = vadd.f32 %v3043_v25, %v11676_v7  ;;  %3428 = vmatprep.mubr.f32.mxu1 %v16019_v32 }
 0x4cb   :  { %16125 = vst [vmem:[#allocation70_spill] sm:$0xff] %v11980_v41 }
 0x4cc   :  { %16127 = vst [vmem:[#allocation71_spill] sm:$0xff] %v11984_v6  ;;  %v3047_v34 = vpop.f32.mrb[174].mxu1  ;;  %v16132_v6 = vld [vmem:[#allocation36_spill] sm:$0xff] }
 0x4cd   :  { %v11990_v56 = vadd.f32 %v3047_v34, %v11673_v58  ;;  %v3049_v51 = vpop.f32.mrb[175].mxu1  ;;  %3429 = vmatmul.mubr.f32.gmra.mrb[24].mxu1 %v16129_v8 }
 0x4ce   :  { %v11994_v9 = vadd.f32 %v3049_v51, %v11676_v7  ;;  %3434 = vmatprep.mubr.f32.mxu1 %v16019_v32 }
 0x4cf   :  { %16128 = vst [vmem:[#allocation72_spill] sm:$0xff] %v11990_v56 }
 0x4d0   :  { %16130 = vst [vmem:[#allocation73_spill] sm:$0xff] %v11994_v9  ;;  %v3053_v39 = vpop.f32.mrb[176].mxu1  ;;  %v16135_v9 = vld [vmem:[#allocation37_spill] sm:$0xff] }
 0x4d1   :  { %v12000_v2 = vadd.f32 %v3053_v39, %v11673_v58  ;;  %v3055_v38 = vpop.f32.mrb[177].mxu1  ;;  %3435 = vmatmul.mubr.f32.gmra.mrb[26].mxu1 %v16132_v6 }
 0x4d2   :  { %v12004_v34 = vadd.f32 %v3055_v38, %v11676_v7  ;;  %3440 = vmatprep.mubr.f32.mxu1 %v16019_v32 }
 0x4d3   :  { %16131 = vst [vmem:[#allocation74_spill] sm:$0xff] %v12000_v2 }
 0x4d4   :  { %16133 = vst [vmem:[#allocation75_spill] sm:$0xff] %v12004_v34  ;;  %v3059_v41 = vpop.f32.mrb[178].mxu1  ;;  %v16138_v34 = vld [vmem:[#allocation38_spill] sm:$0xff] }
 0x4d5   :  { %v12010_v8 = vadd.f32 %v3059_v41, %v11673_v58  ;;  %v3061_v25 = vpop.f32.mrb[179].mxu1  ;;  %3441 = vmatmul.mubr.f32.gmra.mrb[28].mxu1 %v16135_v9 }
 0x4d6   :  { %v12014_v39 = vadd.f32 %v3061_v25, %v11676_v7  ;;  %3446 = vmatprep.mubr.f32.mxu1 %v16019_v32  ;;  %v2800_v25 = vld [vmem:[%s15514_s3 + $0x200] sm:$0xff] }
 0x4d7   :  { %16134 = vst [vmem:[#allocation76_spill] sm:$0xff] %v12010_v8 }
 0x4d8   :  { %16136 = vst [vmem:[#allocation77_spill] sm:$0xff] %v12014_v39  ;;  %v3065_v56 = vpop.f32.mrb[180].mxu1  ;;  %v16141_v39 = vld [vmem:[#allocation39_spill] sm:$0xff] }
 0x4d9   :  { %v12020_v6 = vadd.f32 %v3065_v56, %v11673_v58  ;;  %v3067_v51 = vpop.f32.mrb[181].mxu1  ;;  %3447 = vmatmul.mubr.f32.gmra.mrb[30].mxu1 %v16138_v34 }
 0x4da   :  { %v12024_v41 = vadd.f32 %v3067_v51, %v11676_v7  ;;  %3452 = vmatprep.mubr.f32.mxu1 %v16019_v32 }
 0x4db   :  { %16137 = vst [vmem:[#allocation78_spill] sm:$0xff] %v12020_v6 }
 0x4dc   :  { %16139 = vst [vmem:[#allocation79_spill] sm:$0xff] %v12024_v41  ;;  %v3071_v2 = vpop.f32.mrb[182].mxu1 }
 0x4dd   :  { %v12030_v9 = vadd.f32 %v3071_v2, %v11673_v58  ;;  %v3073_v38 = vpop.f32.mrb[183].mxu1  ;;  %3453 = vmatmul.mubr.f32.gmra.mrb[32].mxu1 %v16141_v39  ;;  %v2805_v2 = vld [vmem:[%s15514_s3 + $0x228] sm:$0xff] }
 0x4de   :  { %v12034_v56 = vadd.f32 %v3073_v38, %v11676_v7  ;;  %3458 = vmatprep.mubr.f32.mxu1 %v16019_v32  ;;  %v16144_v38 = vld [vmem:[#allocation40_spill] sm:$0xff]  ;;  %v7099_v39 = vpack.c.bf16 %v2805_v2, %v2800_v25 }
 0x4df   :  { %16140 = vst [vmem:[#allocation80_spill] sm:$0xff] %v12030_v9 }
 0x4e0   :  { %16142 = vst [vmem:[#allocation81_spill] sm:$0xff] %v12034_v56  ;;  %v3077_v8 = vpop.f32.mrb[184].mxu1  ;;  %7100 = vmatprep.subr.bf16.mxu1 %v7099_v39 }
 0x4e1   :  { %v12046_v41 = vadd.f32 %v3077_v8, %v11673_v58  ;;  %v3079_v6 = vpop.f32.mrb[185].mxu1  ;;  %3459 = vmatmul.mubr.f32.gmra.mrb[34].mxu1 %v16144_v38 }
 0x4e2   :  { %v12050_v34 = vadd.f32 %v3079_v6, %v11676_v7  ;;  %3464 = vmatprep.mubr.f32.mxu1 %v16019_v32  ;;  %7102 = vmatpush3.bf16.msra.mxu1 %v7099_v39  ;;  %v16150_v39 = vld [vmem:[#allocation43_spill] sm:$0xff] }
 0x4e3   :  { %16143 = vst [vmem:[#allocation82_spill] sm:$0xff] %v12046_v41 }
 0x4e4   :  { %16145 = vst [vmem:[#allocation83_spill] sm:$0xff] %v12050_v34  ;;  %v3083_v56 = vpop.f32.mrb[186].mxu1 }
 0x4e5   :  { %v12056_v9 = vadd.f32 %v3083_v56, %v11673_v58  ;;  %v3085_v8 = vpop.f32.mrb[187].mxu1  ;;  %3465 = vmatmul.mubr.f32.gmra.mrb[36].mxu1 %v16147_v45 }
 0x4e6   :  { %v12060_v38 = vadd.f32 %v3085_v8, %v11676_v7  ;;  %3470 = vmatprep.mubr.f32.mxu1 %v16019_v32 }
 0x4e7   :  { %16146 = vst [vmem:[#allocation84_spill] sm:$0xff] %v12056_v9 }
 0x4e8   :  { %16148 = vst [vmem:[#allocation42_spill] sm:$0xff] %v12060_v38  ;;  %v3089_v25 = vpop.f32.mrb[188].mxu1  ;;  %v16153_v38 = vld [vmem:[#allocation45_spill] sm:$0xff] }
 0x4e9   :  { %v12066_v2 = vadd.f32 %v3089_v25, %v11673_v58  ;;  %v3091_v51 = vpop.f32.mrb[189].mxu1  ;;  %3471 = vmatmul.mubr.f32.gmra.mrb[38].mxu1 %v16150_v39 }
 0x4ea   :  { %v12070_v56 = vadd.f32 %v3091_v51, %v11676_v7  ;;  %3476 = vmatprep.mubr.f32.mxu1 %v16019_v32 }
 0x4eb   :  { %16149 = vst [vmem:[#allocation85_spill] sm:$0xff] %v12066_v2 }
 0x4ec   :  { %16151 = vst [vmem:[#allocation86_spill] sm:$0xff] %v12070_v56  ;;  %v3095_v34 = vpop.f32.mrb[190].mxu1 }
 0x4ed   :  { %v12076_v41 = vadd.f32 %v3095_v34, %v11673_v58  ;;  %v3097_v6 = vpop.f32.mrb[191].mxu1  ;;  %3477 = vmatmul.mubr.f32.gmra.mrb[40].mxu1 %v16153_v38 }
 0x4ee   :  { %v12080_v25 = vadd.f32 %v3097_v6, %v11676_v7  ;;  %3482 = vmatprep.mubr.f32.mxu1 %v16019_v32 }
 0x4ef   :  { %16152 = vst [vmem:[#allocation87_spill] sm:$0xff] %v12076_v41 }
 0x4f0   :  { %16154 = vst [vmem:[#allocation45_spill] sm:$0xff] %v12080_v25  ;;  %v3101_v9 = vpop.f32.mrb[192].mxu1 }
 0x4f1   :  { %v12086_v39 = vadd.f32 %v3101_v9, %v11673_v58  ;;  %v3103_v8 = vpop.f32.mrb[193].mxu1  ;;  %3483 = vmatmul.mubr.f32.gmra.mrb[42].mxu1 %v11425_v62 }
 0x4f2   :  { %v12090_v34 = vadd.f32 %v3103_v8, %v11676_v7  ;;  %3488 = vmatprep.mubr.f32.mxu1 %v16019_v32 }
 0x4f3   :  { %16155 = vst [vmem:[#allocation88_spill] sm:$0xff] %v12086_v39 }
 0x4f4   :  { %16156 = vst [vmem:[#allocation89_spill] sm:$0xff] %v12090_v34  ;;  %v3107_v56 = vpop.f32.mrb[194].mxu1 }
 0x4f5   :  { %v12096_v2 = vadd.f32 %v3107_v56, %v11673_v58  ;;  %v3109_v51 = vpop.f32.mrb[195].mxu1  ;;  %3489 = vmatmul.mubr.f32.gmra.mrb[44].mxu1 %v11432_v27 }
 0x4f6   :  { %v12100_v9 = vadd.f32 %v3109_v51, %v11676_v7  ;;  %3494 = vmatprep.mubr.f32.mxu1 %v16019_v32  ;;  %v2810_v51 = vld [vmem:[%s15514_s3 + $0x250] sm:$0xff] }
 0x4f7   :  { %16157 = vst [vmem:[#allocation90_spill] sm:$0xff] %v12096_v2 }
 0x4f8   :  { %16158 = vst [vmem:[#allocation91_spill] sm:$0xff] %v12100_v9  ;;  %v3113_v25 = vpop.f32.mrb[196].mxu1 }
 0x4f9   :  { %v12106_v41 = vadd.f32 %v3113_v25, %v11673_v58  ;;  %v3115_v6 = vpop.f32.mrb[197].mxu1  ;;  %3495 = vmatmul.mubr.f32.gmra.mrb[46].mxu1 %v11437_v37 }
 0x4fa   :  { %v12110_v56 = vadd.f32 %v3115_v6, %v11676_v7  ;;  %3500 = vmatprep.mubr.f32.mxu1 %v16019_v32 }
 0x4fb   :  { %16159 = vst [vmem:[#allocation92_spill] sm:$0xff] %v12106_v41 }
 0x4fc   :  { %16160 = vst [vmem:[#allocation93_spill] sm:$0xff] %v12110_v56  ;;  %v3119_v34 = vpop.f32.mrb[198].mxu1 }
 0x4fd   :  { %v12116_v39 = vadd.f32 %v3119_v34, %v11673_v58  ;;  %v3121_v8 = vpop.f32.mrb[199].mxu1  ;;  %3501 = vmatmul.mubr.f32.gmra.mrb[48].mxu1 %v11444_v50  ;;  %v2815_v34 = vld [vmem:[%s15514_s3 + $0x278] sm:$0xff] }
 0x4fe   :  { %v12120_v25 = vadd.f32 %v3121_v8, %v11676_v7  ;;  %3506 = vmatprep.mubr.f32.mxu1 %v16019_v32  ;;  %v16164_v8 = vld [vmem:[#allocation47_spill] sm:$0xff]  ;;  %v7103_v2 = vpack.c.bf16 %v2815_v34, %v2810_v51 }
 0x4ff   :  { %16161 = vst [vmem:[#allocation94_spill] sm:$0xff] %v12116_v39 }
 0x500   :  { %16162 = vst [vmem:[#allocation95_spill] sm:$0xff] %v12120_v25  ;;  %v3125_v9 = vpop.f32.mrb[200].mxu1  ;;  %7104 = vmatprep.subr.bf16.mxu1 %v7103_v2 }
 0x501   :  { %v12132_v56 = vadd.f32 %v3125_v9, %v11673_v58  ;;  %v3127_v41 = vpop.f32.mrb[201].mxu1  ;;  %3507 = vmatmul.mubr.f32.gmra.mrb[50].mxu1 %v16164_v8 }
 0x502   :  { %v12136_v50 = vadd.f32 %v3127_v41, %v11676_v7  ;;  %3512 = vmatprep.mubr.f32.mxu1 %v16019_v32  ;;  %7106 = vmatpush3.bf16.msra.mxu1 %v7103_v2 }
 0x503   :  { %16163 = vst [vmem:[#allocation96_spill] sm:$0xff] %v12132_v56 }
 0x504   :  { %16165 = vst [vmem:[#allocation97_spill] sm:$0xff] %v12136_v50  ;;  %v3131_v25 = vpop.f32.mrb[202].mxu1 }
 0x505   :  { %v12142_v39 = vadd.f32 %v3131_v25, %v11673_v58  ;;  %v3133_v9 = vpop.f32.mrb[203].mxu1  ;;  %3513 = vmatmul.mubr.f32.gmra.mrb[52].mxu1 %v11462_v44 }
 0x506   :  { %v12146_v8 = vadd.f32 %v3133_v9, %v11676_v7  ;;  %3518 = vmatprep.mubr.f32.mxu1 %v16019_v32 }
 0x507   :  { %16166 = vst [vmem:[#allocation98_spill] sm:$0xff] %v12142_v39  ;;  %v16254_v39 = vld [vmem:[#allocation14_spill] sm:$0xff] }
 0x508   :  { %16167 = vst [vmem:[#allocation99_spill] sm:$0xff] %v12146_v8  ;;  %v3137_v51 = vpop.f32.mrb[204].mxu1 }
 0x509   :  { %v12152_v34 = vadd.f32 %v3137_v51, %v11673_v58  ;;  %v3139_v6 = vpop.f32.mrb[205].mxu1  ;;  %3519 = vmatmul.mubr.f32.gmra.mrb[54].mxu1 %v11473_v1 }
 0x50a   :  { %v12156_v2 = vadd.f32 %v3139_v6, %v11676_v7  ;;  %3524 = vmatprep.mubr.f32.mxu1 %v16019_v32 }
 0x50b   :  { %16168 = vst [vmem:[#allocation100_spill] sm:$0xff] %v12152_v34 }
 0x50c   :  { %16169 = vst [vmem:[#allocation101_spill] sm:$0xff] %v12156_v2  ;;  %v3143_v9 = vpop.f32.mrb[206].mxu1 }
 0x50d   :  { %v12162_v50 = vadd.f32 %v3143_v9, %v11673_v58  ;;  %v3145_v41 = vpop.f32.mrb[207].mxu1  ;;  %3525 = vmatmul.mubr.f32.gmra.mrb[56].mxu1 %v11480_v31 }
 0x50e   :  { %v12166_v51 = vadd.f32 %v3145_v41, %v11676_v7  ;;  %3530 = vmatprep.mubr.f32.mxu1 %v16019_v32 }
 0x50f   :  { %16170 = vst [vmem:[#allocation102_spill] sm:$0xff] %v12162_v50 }
 0x510   :  { %16171 = vst [vmem:[#allocation103_spill] sm:$0xff] %v12166_v51  ;;  %v3149_v56 = vpop.f32.mrb[208].mxu1 }
 0x511   :  { %v12172_v8 = vadd.f32 %v3149_v56, %v11673_v58  ;;  %v3151_v25 = vpop.f32.mrb[209].mxu1  ;;  %3531 = vmatmul.mubr.f32.gmra.mrb[58].mxu1 %v11485_v24 }
 0x512   :  { %v12176_v9 = vadd.f32 %v3151_v25, %v11676_v7  ;;  %3536 = vmatprep.mubr.f32.mxu1 %v16019_v32 }
 0x513   :  { %16172 = vst [vmem:[#allocation104_spill] sm:$0xff] %v12172_v8 }
 0x514   :  { %16173 = vst [vmem:[#allocation105_spill] sm:$0xff] %v12176_v9  ;;  %v3155_v2 = vpop.f32.mrb[210].mxu1 }
 0x515   :  { %v12182_v34 = vadd.f32 %v3155_v2, %v11673_v58  ;;  %v3157_v6 = vpop.f32.mrb[211].mxu1  ;;  %3537 = vmatmul.mubr.f32.gmra.mrb[60].mxu1 %v11492_v0 }
 0x516   :  { %v12186_v56 = vadd.f32 %v3157_v6, %v11676_v7  ;;  %3542 = vmatprep.mubr.f32.mxu1 %v16019_v32 }
 0x517   :  { %16174 = vst [vmem:[#allocation106_spill] sm:$0xff] %v12182_v34 }
 0x518   :  { %16175 = vst [vmem:[#allocation107_spill] sm:$0xff] %v12186_v56  ;;  %v3161_v51 = vpop.f32.mrb[212].mxu1 }
 0x519   :  { %v12192_v50 = vadd.f32 %v3161_v51, %v11673_v58  ;;  %v3163_v41 = vpop.f32.mrb[213].mxu1  ;;  %3543 = vmatmul.mubr.f32.gmra.mrb[62].mxu1 %v11499_v36 }
 0x51a   :  { %v12196_v2 = vadd.f32 %v3163_v41, %v11676_v7  ;;  %3548 = vmatprep.mubr.f32.mxu1 %v16019_v32 }
 0x51b   :  { %16176 = vst [vmem:[#allocation108_spill] sm:$0xff] %v12192_v50 }
 0x51c   :  { %16177 = vst [vmem:[#allocation109_spill] sm:$0xff] %v12196_v2  ;;  %v3167_v9 = vpop.f32.mrb[214].mxu1 }
 0x51d   :  { %v12202_v8 = vadd.f32 %v3167_v9, %v11673_v58  ;;  %v3169_v25 = vpop.f32.mrb[215].mxu1  ;;  %3549 = vmatmul.mubr.f32.gmra.mrb[64].mxu1 %v11506_v35 }
 0x51e   :  { %v12206_v51 = vadd.f32 %v3169_v25, %v11676_v7  ;;  %3554 = vmatprep.mubr.f32.mxu1 %v16019_v32 }
 0x51f   :  { %16178 = vst [vmem:[#allocation110_spill] sm:$0xff] %v12202_v8 }
 0x520   :  { %16179 = vst [vmem:[#allocation111_spill] sm:$0xff] %v12206_v51  ;;  %v3173_v56 = vpop.f32.mrb[216].mxu1 }
 0x521   :  { %v12212_v34 = vadd.f32 %v3173_v56, %v11673_v58  ;;  %v3175_v6 = vpop.f32.mrb[217].mxu1  ;;  %3555 = vmatmul.mubr.f32.gmra.mrb[66].mxu1 %v11513_v19 }
 0x522   :  { %v12216_v9 = vadd.f32 %v3175_v6, %v11676_v7  ;;  %3560 = vmatprep.mubr.f32.mxu1 %v16019_v32 }
 0x523   :  { %16180 = vst [vmem:[#allocation112_spill] sm:$0xff] %v12212_v34 }
 0x524   :  { %16181 = vst [vmem:[#allocation113_spill] sm:$0xff] %v12216_v9  ;;  %v3179_v2 = vpop.f32.mrb[218].mxu1 }
 0x525   :  { %v12222_v50 = vadd.f32 %v3179_v2, %v11673_v58  ;;  %v3181_v41 = vpop.f32.mrb[219].mxu1  ;;  %3561 = vmatmul.mubr.f32.gmra.mrb[68].mxu1 %v11528_v20 }
 0x526   :  { %v12226_v56 = vadd.f32 %v3181_v41, %v11676_v7  ;;  %3566 = vmatprep.mubr.f32.mxu1 %v16019_v32 }
 0x527   :  { %16182 = vst [vmem:[#allocation114_spill] sm:$0xff] %v12222_v50 }
 0x528   :  { %16183 = vst [vmem:[#allocation115_spill] sm:$0xff] %v12226_v56  ;;  %v3185_v51 = vpop.f32.mrb[220].mxu1 }
 0x529   :  { %v12232_v8 = vadd.f32 %v3185_v51, %v11673_v58  ;;  %v3187_v25 = vpop.f32.mrb[221].mxu1  ;;  %3567 = vmatmul.mubr.f32.gmra.mrb[70].mxu1 %v11536_v59 }
 0x52a   :  { %v12236_v2 = vadd.f32 %v3187_v25, %v11676_v7  ;;  %3572 = vmatprep.mubr.f32.mxu1 %v16019_v32 }
 0x52b   :  { %16184 = vst [vmem:[#allocation116_spill] sm:$0xff] %v12232_v8 }
 0x52c   :  { %16185 = vst [vmem:[#allocation117_spill] sm:$0xff] %v12236_v2  ;;  %v3191_v9 = vpop.f32.mrb[222].mxu1 }
 0x52d   :  { %v12242_v34 = vadd.f32 %v3191_v9, %v11673_v58  ;;  %v3193_v6 = vpop.f32.mrb[223].mxu1  ;;  %3573 = vmatmul.mubr.f32.gmra.mrb[72].mxu1 %v11543_v63 }
 0x52e   :  { %v12246_v51 = vadd.f32 %v3193_v6, %v11676_v7  ;;  %3578 = vmatprep.mubr.f32.mxu1 %v16019_v32 }
 0x52f   :  { %16186 = vst [vmem:[#allocation118_spill] sm:$0xff] %v12242_v34 }
 0x530   :  { %16187 = vst [vmem:[#allocation119_spill] sm:$0xff] %v12246_v51  ;;  %v3197_v56 = vpop.f32.mrb[224].mxu1 }
 0x531   :  { %v12252_v50 = vadd.f32 %v3197_v56, %v11673_v58  ;;  %v3199_v41 = vpop.f32.mrb[225].mxu1  ;;  %3579 = vmatmul.mubr.f32.gmra.mrb[74].mxu1 %v11550_v12 }
 0x532   :  { %v12256_v9 = vadd.f32 %v3199_v41, %v11676_v7  ;;  %3584 = vmatprep.mubr.f32.mxu1 %v16019_v32 }
 0x533   :  { %16188 = vst [vmem:[#allocation120_spill] sm:$0xff] %v12252_v50 }
 0x534   :  { %16189 = vst [vmem:[#allocation121_spill] sm:$0xff] %v12256_v9  ;;  %v3203_v2 = vpop.f32.mrb[226].mxu1 }
 0x535   :  { %v12262_v8 = vadd.f32 %v3203_v2, %v11673_v58  ;;  %v3205_v25 = vpop.f32.mrb[227].mxu1  ;;  %3585 = vmatmul.mubr.f32.gmra.mrb[76].mxu1 %v11557_v16 }
 0x536   :  { %v12266_v56 = vadd.f32 %v3205_v25, %v11676_v7  ;;  %3590 = vmatprep.mubr.f32.mxu1 %v16019_v32 }
 0x537   :  { %16190 = vst [vmem:[#allocation122_spill] sm:$0xff] %v12262_v8 }
 0x538   :  { %16191 = vst [vmem:[#allocation123_spill] sm:$0xff] %v12266_v56  ;;  %v3209_v51 = vpop.f32.mrb[228].mxu1 }
 0x539   :  { %v12272_v34 = vadd.f32 %v3209_v51, %v11673_v58  ;;  %v3211_v6 = vpop.f32.mrb[229].mxu1  ;;  %3591 = vmatmul.mubr.f32.gmra.mrb[78].mxu1 %v11564_v14 }
 0x53a   :  { %v12276_v2 = vadd.f32 %v3211_v6, %v11676_v7  ;;  %3596 = vmatprep.mubr.f32.mxu1 %v16019_v32 }
 0x53b   :  { %16192 = vst [vmem:[#allocation124_spill] sm:$0xff] %v12272_v34 }
 0x53c   :  { %16193 = vst [vmem:[#allocation125_spill] sm:$0xff] %v12276_v2  ;;  %v3215_v9 = vpop.f32.mrb[230].mxu1 }
 0x53d   :  { %v12282_v50 = vadd.f32 %v3215_v9, %v11673_v58  ;;  %v3217_v41 = vpop.f32.mrb[231].mxu1  ;;  %3597 = vmatmul.mubr.f32.gmra.mrb[80].mxu1 %v11571_v26 }
 0x53e   :  { %v12286_v51 = vadd.f32 %v3217_v41, %v11676_v7  ;;  %3602 = vmatprep.mubr.f32.mxu1 %v16019_v32 }
 0x53f   :  { %16194 = vst [vmem:[#allocation126_spill] sm:$0xff] %v12282_v50 }
 0x540   :  { %16195 = vst [vmem:[#allocation127_spill] sm:$0xff] %v12286_v51  ;;  %v3221_v56 = vpop.f32.mrb[232].mxu1 }
 0x541   :  { %v12292_v8 = vadd.f32 %v3221_v56, %v11673_v58  ;;  %v3223_v25 = vpop.f32.mrb[233].mxu1  ;;  %3603 = vmatmul.mubr.f32.gmra.mrb[82].mxu1 %v11578_v3 }
 0x542   :  { %v12296_v9 = vadd.f32 %v3223_v25, %v11676_v7  ;;  %3608 = vmatprep.mubr.f32.mxu1 %v16019_v32 }
 0x543   :  { %16196 = vst [vmem:[#allocation128_spill] sm:$0xff] %v12292_v8 }
 0x544   :  { %16197 = vst [vmem:[#allocation129_spill] sm:$0xff] %v12296_v9  ;;  %v3227_v2 = vpop.f32.mrb[234].mxu1 }
 0x545   :  { %v12302_v34 = vadd.f32 %v3227_v2, %v11673_v58  ;;  %v3229_v6 = vpop.f32.mrb[235].mxu1  ;;  %3609 = vmatmul.mubr.f32.gmra.mrb[84].mxu1 %v11585_v43 }
 0x546   :  { %v12306_v56 = vadd.f32 %v3229_v6, %v11676_v7  ;;  %3614 = vmatprep.mubr.f32.mxu1 %v16019_v32 }
 0x547   :  { %16198 = vst [vmem:[#allocation130_spill] sm:$0xff] %v12302_v34 }
 0x548   :  { %16199 = vst [vmem:[#allocation131_spill] sm:$0xff] %v12306_v56  ;;  %v3233_v51 = vpop.f32.mrb[236].mxu1 }
 0x549   :  { %v12312_v50 = vadd.f32 %v3233_v51, %v11673_v58  ;;  %v3235_v41 = vpop.f32.mrb[237].mxu1  ;;  %3615 = vmatmul.mubr.f32.gmra.mrb[86].mxu1 %v11592_v54 }
 0x54a   :  { %v12316_v2 = vadd.f32 %v3235_v41, %v11676_v7  ;;  %3620 = vmatprep.mubr.f32.mxu1 %v16019_v32 }
 0x54b   :  { %16200 = vst [vmem:[#allocation132_spill] sm:$0xff] %v12312_v50 }
 0x54c   :  { %16201 = vst [vmem:[#allocation133_spill] sm:$0xff] %v12316_v2  ;;  %v3239_v9 = vpop.f32.mrb[238].mxu1 }
 0x54d   :  { %v12322_v8 = vadd.f32 %v3239_v9, %v11673_v58  ;;  %v3241_v25 = vpop.f32.mrb[239].mxu1  ;;  %3621 = vmatmul.mubr.f32.gmra.mrb[88].mxu1 %v11599_v18 }
 0x54e   :  { %v12326_v51 = vadd.f32 %v3241_v25, %v11676_v7  ;;  %3626 = vmatprep.mubr.f32.mxu1 %v16019_v32 }
 0x54f   :  { %16202 = vst [vmem:[#allocation134_spill] sm:$0xff] %v12322_v8 }
 0x550   :  { %16203 = vst [vmem:[#allocation135_spill] sm:$0xff] %v12326_v51  ;;  %v3245_v56 = vpop.f32.mrb[240].mxu1 }
 0x551   :  { %v12332_v34 = vadd.f32 %v3245_v56, %v11673_v58  ;;  %v3247_v6 = vpop.f32.mrb[241].mxu1  ;;  %3627 = vmatmul.mubr.f32.gmra.mrb[90].mxu1 %v11606_v29 }
 0x552   :  { %v12336_v9 = vadd.f32 %v3247_v6, %v11676_v7  ;;  %3632 = vmatprep.mubr.f32.mxu1 %v16019_v32 }
 0x553   :  { %16204 = vst [vmem:[#allocation136_spill] sm:$0xff] %v12332_v34 }
 0x554   :  { %16205 = vst [vmem:[#allocation137_spill] sm:$0xff] %v12336_v9  ;;  %v3251_v2 = vpop.f32.mrb[242].mxu1 }
 0x555   :  { %v12342_v50 = vadd.f32 %v3251_v2, %v11673_v58  ;;  %v3253_v41 = vpop.f32.mrb[243].mxu1  ;;  %3633 = vmatmul.mubr.f32.gmra.mrb[92].mxu1 %v11613_v5 }
 0x556   :  { %v12346_v56 = vadd.f32 %v3253_v41, %v11676_v7  ;;  %3638 = vmatprep.mubr.f32.mxu1 %v16019_v32 }
 0x557   :  { %16206 = vst [vmem:[#allocation138_spill] sm:$0xff] %v12342_v50 }
 0x558   :  { %16207 = vst [vmem:[#allocation139_spill] sm:$0xff] %v12346_v56  ;;  %v3257_v51 = vpop.f32.mrb[244].mxu1 }
 0x559   :  { %v12352_v8 = vadd.f32 %v3257_v51, %v11673_v58  ;;  %v3259_v25 = vpop.f32.mrb[245].mxu1  ;;  %3639 = vmatmul.mubr.f32.gmra.mrb[94].mxu1 %v11620_v53 }
 0x55a   :  { %v12356_v2 = vadd.f32 %v3259_v25, %v11676_v7  ;;  %3644 = vmatprep.mubr.f32.mxu1 %v16019_v32 }
 0x55b   :  { %16208 = vst [vmem:[#allocation140_spill] sm:$0xff] %v12352_v8 }
 0x55c   :  { %16209 = vst [vmem:[#allocation141_spill] sm:$0xff] %v12356_v2  ;;  %v3263_v9 = vpop.f32.mrb[246].mxu1 }
 0x55d   :  { %v12362_v34 = vadd.f32 %v3263_v9, %v11673_v58  ;;  %v3265_v6 = vpop.f32.mrb[247].mxu1  ;;  %3645 = vmatmul.mubr.f32.gmra.mrb[96].mxu1 %v11627_v42 }
 0x55e   :  { %v12366_v51 = vadd.f32 %v3265_v6, %v11676_v7  ;;  %3650 = vmatprep.mubr.f32.mxu1 %v16019_v32 }
 0x55f   :  { %16210 = vst [vmem:[#allocation142_spill] sm:$0xff] %v12362_v34 }
 0x560   :  { %16211 = vst [vmem:[#allocation143_spill] sm:$0xff] %v12366_v51  ;;  %v3269_v56 = vpop.f32.mrb[248].mxu1 }
 0x561   :  { %v12372_v50 = vadd.f32 %v3269_v56, %v11673_v58  ;;  %v3271_v41 = vpop.f32.mrb[249].mxu1  ;;  %3651 = vmatmul.mubr.f32.gmra.mrb[98].mxu1 %v11634_v46 }
 0x562   :  { %v12376_v9 = vadd.f32 %v3271_v41, %v11676_v7  ;;  %3656 = vmatprep.mubr.f32.mxu1 %v16019_v32 }
 0x563   :  { %16212 = vst [vmem:[#allocation144_spill] sm:$0xff] %v12372_v50 }
 0x564   :  { %16213 = vst [vmem:[#allocation145_spill] sm:$0xff] %v12376_v9  ;;  %v3275_v2 = vpop.f32.mrb[250].mxu1 }
 0x565   :  { %v12382_v8 = vadd.f32 %v3275_v2, %v11673_v58  ;;  %v3277_v25 = vpop.f32.mrb[251].mxu1  ;;  %3657 = vmatmul.mubr.f32.gmra.mrb[100].mxu1 %v11641_v48  ;;  %v2828_v2 = vsub.s32 2, %v11652_v11 }
 0x566   :  { %v12386_v56 = vadd.f32 %v3277_v25, %v11676_v7  ;;  %3662 = vmatprep.mubr.f32.mxu1 %v16019_v32  ;;  %v2832_v25 = vsub.s32 3, %v11652_v11 }
 0x567   :  { %16214 = vst [vmem:[#allocation146_spill] sm:$0xff] %v12382_v8  ;;  %v12410_v8 = vld [vmem:[%s15516_s4] sm:$0x1f] }
 0x568   :  { %16215 = vst [vmem:[#allocation147_spill] sm:$0xff] %v12386_v56  ;;  %v3281_v51 = vpop.f32.mrb[252].mxu1  ;;  %16219 = vst [vmem:[#allocation151_spill] sm:$0xff] %v12410_v8  ;;  %v12420_v50 = vrot.slane %v12410_v8, %v2832_v25 }
 0x569   :  { %v12392_v34 = vadd.f32 %v3281_v51, %v11673_v58  ;;  %v3283_v6 = vpop.f32.mrb[253].mxu1  ;;  %3663 = vmatmul.mubr.f32.gmra.mrb[102].mxu1 %v11655_v49 }
 0x56a   :  { %v12397_v9 = vadd.f32 %v3283_v6, %v11676_v7  ;;  %3668 = vmatprep.mubr.f32.mxu1 %v16019_v32  ;;  %v12413_v6 = vrot.slane %v12410_v8, %v2828_v2  ;;  %v16229_v8 = vld [vmem:[#allocation6_spill] sm:$0xff] }
 0x56b   :  { %16216 = vst [vmem:[#allocation148_spill] sm:$0xff] %v12392_v34 }
 0x56c   :  { %16217 = vst [vmem:[#allocation149_spill] sm:$0xff] %v12397_v9  ;;  %v3287_v41 = vpop.f32.mrb[254].mxu1 }
 0x56d   :  { %v12404_v56 = vadd.f32 %v3287_v41, %v11673_v58  ;;  %v3289_v51 = vpop.f32.mrb[255].mxu1  ;;  %3669 = vmatmul.mubr.f32.gmra.mrb[104].mxu1 %v11667_v21 }
 0x56e   :  { %v12416_v11 = vadd.f32 %v3289_v51, %v11676_v7  ;;  %3674 = vmatprep.mubr.f32.mxu1 %v16019_v32 }
 0x56f   :  { %16218 = vst [vmem:[#allocation150_spill] sm:$0xff] %v12404_v56 }
 0x570   :  { %16220 = vst [vmem:[#allocation152_spill] sm:$0xff] %v12416_v11  ;;  %v3358_v41 = vpop.f32.mrb[0].mxu1 }
 0x571   :  { %v12425_v9 = vadd.f32 %v3358_v41, %v12413_v6  ;;  %v3360_v34 = vpop.f32.mrb[1].mxu1  ;;  %3675 = vmatmul.mubr.f32.gmra.mrb[106].mxu1 %v11678_v22 }
 0x572   :  { %v12429_v2 = vadd.f32 %v3360_v34, %v12420_v50  ;;  %3680 = vmatprep.mubr.f32.mxu1 %v16019_v32  ;;  %v16225_v34 = vmax.f32 %v11682_v17, %v11688_v13  ;;  %v16230_v13 = vmax.f32 %v11697_v57, %v16229_v8  ;;  %v16240_v57 = vld [vmem:[#allocation9_spill] sm:$0xff] }
 0x573   :  { %16221 = vst [vmem:[#allocation153_spill] sm:$0xff] %v12425_v9 }
 0x574   :  { %16222 = vst [vmem:[#allocation154_spill] sm:$0xff] %v12429_v2  ;;  %v4190_v7 = vmax.f32 %v12425_v9, %v12429_v2  ;;  %v3364_v25 = vpop.f32.mrb[2].mxu1 }
 0x575   :  { %v12435_v51 = vadd.f32 %v3364_v25, %v12413_v6  ;;  %v3366_v58 = vpop.f32.mrb[3].mxu1  ;;  %3681 = vmatmul.mubr.f32.gmra.mrb[108].mxu1 %v11691_v60 }
 0x576   :  { %v12439_v41 = vadd.f32 %v3366_v58, %v12420_v50  ;;  %3686 = vmatprep.mubr.f32.mxu1 %v16019_v32  ;;  %v12445_v11 = vmax.f32 %v16225_v34, %v4190_v7 }
 0x577   :  { %16223 = vst [vmem:[#allocation155_spill] sm:$0xff] %v12435_v51 }
 0x578   :  { %16224 = vst [vmem:[#allocation156_spill] sm:$0xff] %v12439_v41  ;;  %16226 = vst [vmem:[#allocation157_spill] sm:$0xff] %v12445_v11  ;;  %v4191_v56 = vmax.f32 %v12435_v51, %v12439_v41  ;;  %v3370_v2 = vpop.f32.mrb[4].mxu1  ;;  %v16234_v51 = vld [vmem:[#allocation7_spill] sm:$0xff]  ;;  %v16235_v11 = vld [vmem:[#allocation8_spill] sm:$0xff] }
 0x579   :  { %v12450_v25 = vadd.f32 %v3370_v2, %v12413_v6  ;;  %v3372_v9 = vpop.f32.mrb[5].mxu1  ;;  %3687 = vmatmul.mubr.f32.gmra.mrb[110].mxu1 %v11706_v55  ;;  %v16236_v8 = vmax.f32 %v16234_v51, %v16235_v11 }
 0x57a   :  { %v12454_v58 = vadd.f32 %v3372_v9, %v12420_v50  ;;  %3692 = vmatprep.mubr.f32.mxu1 %v16019_v32  ;;  %v12460_v7 = vmax.f32 %v16230_v13, %v4191_v56 }
 0x57b   :  { %16227 = vst [vmem:[#allocation158_spill] sm:$0xff] %v12450_v25 }
 0x57c   :  { %16228 = vst [vmem:[#allocation159_spill] sm:$0xff] %v12454_v58  ;;  %16231 = vst [vmem:[#allocation160_spill] sm:$0xff] %v12460_v7  ;;  %v4192_v34 = vmax.f32 %v12450_v25, %v12454_v58  ;;  %v3376_v17 = vpop.f32.mrb[6].mxu1  ;;  %v16241_v7 = vld [vmem:[#allocation10_spill] sm:$0xff] }
 0x57d   :  { %v12465_v2 = vadd.f32 %v3376_v17, %v12413_v6  ;;  %v3378_v41 = vpop.f32.mrb[7].mxu1  ;;  %3693 = vmatmul.mubr.f32.gmra.mrb[112].mxu1 %v11721_v33  ;;  %v16242_v11 = vmax.f32 %v16240_v57, %v16241_v7  ;;  %v16251_v57 = vld [vmem:[#allocation15_spill] sm:$0xff] }
 0x57e   :  { %v12469_v9 = vadd.f32 %v3378_v41, %v12420_v50  ;;  %3698 = vmatprep.mubr.f32.mxu1 %v16019_v32  ;;  %v12475_v13 = vmax.f32 %v16236_v8, %v4192_v34 }
 0x57f   :  { %16232 = vst [vmem:[#allocation161_spill] sm:$0xff] %v12465_v2 }
 0x580   :  { %16233 = vst [vmem:[#allocation162_spill] sm:$0xff] %v12469_v9  ;;  %16237 = vst [vmem:[#allocation163_spill] sm:$0xff] %v12475_v13  ;;  %v4193_v56 = vmax.f32 %v12465_v2, %v12469_v9  ;;  %v3382_v58 = vpop.f32.mrb[8].mxu1  ;;  %v16246_v2 = vld [vmem:[#allocation11_spill] sm:$0xff]  ;;  %v16247_v13 = vld [vmem:[#allocation12_spill] sm:$0xff] }
 0x581   :  { %v12480_v17 = vadd.f32 %v3382_v58, %v12413_v6  ;;  %v3384_v25 = vpop.f32.mrb[9].mxu1  ;;  %3699 = vmatmul.mubr.f32.gmra.mrb[114].mxu1 %v11736_v4  ;;  %v16248_v7 = vmax.f32 %v16246_v2, %v16247_v13 }
 0x582   :  { %v12484_v41 = vadd.f32 %v3384_v25, %v12420_v50  ;;  %3704 = vmatprep.mubr.f32.mxu1 %v16019_v32  ;;  %v12490_v8 = vmax.f32 %v16242_v11, %v4193_v56 }
 0x583   :  { %16238 = vst [vmem:[#allocation164_spill] sm:$0xff] %v12480_v17 }
 0x584   :  { %16239 = vst [vmem:[#allocation165_spill] sm:$0xff] %v12484_v41  ;;  %16243 = vst [vmem:[#allocation166_spill] sm:$0xff] %v12490_v8  ;;  %v4194_v34 = vmax.f32 %v12480_v17, %v12484_v41  ;;  %v3388_v51 = vpop.f32.mrb[10].mxu1  ;;  %v16253_v8 = vld [vmem:[#allocation13_spill] sm:$0xff] }
 0x585   :  { %v12495_v58 = vadd.f32 %v3388_v51, %v12413_v6  ;;  %v3390_v9 = vpop.f32.mrb[11].mxu1  ;;  %3705 = vmatmul.mubr.f32.gmra.mrb[116].mxu1 %v11751_v28  ;;  %v16255_v13 = vmax.f32 %v16253_v8, %v16254_v39  ;;  %v16264_v8 = vld [vmem:[#allocation18_spill] sm:$0xff] }
 0x586   :  { %v12499_v25 = vadd.f32 %v3390_v9, %v12420_v50  ;;  %3710 = vmatprep.mubr.f32.mxu1 %v16019_v32  ;;  %v12505_v11 = vmax.f32 %v16248_v7, %v4194_v34 }
 0x587   :  { %16244 = vst [vmem:[#allocation167_spill] sm:$0xff] %v12495_v58 }
 0x588   :  { %16245 = vst [vmem:[#allocation168_spill] sm:$0xff] %v12499_v25  ;;  %16249 = vst [vmem:[#allocation169_spill] sm:$0xff] %v12505_v11  ;;  %v4195_v56 = vmax.f32 %v12495_v58, %v12499_v25  ;;  %v3394_v41 = vpop.f32.mrb[12].mxu1  ;;  %v16258_v25 = vld [vmem:[#allocation16_spill] sm:$0xff]  ;;  %v16259_v58 = vld [vmem:[#allocation41_spill] sm:$0xff] }
 0x589   :  { %v12510_v51 = vadd.f32 %v3394_v41, %v12413_v6  ;;  %v3396_v17 = vpop.f32.mrb[13].mxu1  ;;  %3711 = vmatmul.mubr.f32.gmra.mrb[118].mxu1 %v16251_v57  ;;  %v16260_v39 = vmax.f32 %v16258_v25, %v16259_v58  ;;  %v16265_v58 = vmax.f32 %v11787_v10, %v16264_v8  ;;  %v16274_v8 = vld [vmem:[#allocation23_spill] sm:$0xff]  ;;  %v16276_v10 = vld [vmem:[#allocation21_spill] sm:$0xff] }
 0x58a   :  { %v12514_v9 = vadd.f32 %v3396_v17, %v12420_v50  ;;  %3716 = vmatprep.mubr.f32.mxu1 %v16019_v32  ;;  %v12520_v7 = vmax.f32 %v16255_v13, %v4195_v56 }
 0x58b   :  { %16250 = vst [vmem:[#allocation170_spill] sm:$0xff] %v12510_v51 }
 0x58c   :  { %16252 = vst [vmem:[#allocation15_spill] sm:$0xff] %v12514_v9  ;;  %v4196_v34 = vmax.f32 %v12510_v51, %v12514_v9  ;;  %v3400_v2 = vpop.f32.mrb[14].mxu1 }
 0x58d   :  { %v12525_v41 = vadd.f32 %v3400_v2, %v12413_v6  ;;  %v3402_v11 = vpop.f32.mrb[15].mxu1  ;;  %3717 = vmatmul.mubr.f32.gmra.mrb[120].mxu1 %v11781_v30 }
 0x58e   :  { %v12529_v17 = vadd.f32 %v3402_v11, %v12420_v50  ;;  %3722 = vmatprep.mubr.f32.mxu1 %v16019_v32  ;;  %v12535_v13 = vmax.f32 %v16260_v39, %v4196_v34 }
 0x58f   :  { %16256 = vst [vmem:[#allocation171_spill] sm:$0xff] %v12525_v41 }
 0x590   :  { %16257 = vst [vmem:[#allocation172_spill] sm:$0xff] %v12529_v17  ;;  %16261 = vst [vmem:[#allocation173_spill] sm:$0xff] %v12535_v13  ;;  %v4197_v56 = vmax.f32 %v12525_v41, %v12529_v17  ;;  %v3406_v9 = vpop.f32.mrb[16].mxu1  ;;  %v16269_v17 = vmax.f32 %v11802_v52, %v11808_v15  ;;  %v16272_v41 = vld [vmem:[#allocation22_spill] sm:$0xff] }
 0x591   :  { %v12540_v2 = vadd.f32 %v3406_v9, %v12413_v6  ;;  %v3408_v51 = vpop.f32.mrb[17].mxu1  ;;  %3723 = vmatmul.mubr.f32.gmra.mrb[122].mxu1 %v11796_v61 }
 0x592   :  { %v12544_v11 = vadd.f32 %v3408_v51, %v12420_v50  ;;  %3728 = vmatprep.mubr.f32.mxu1 %v16019_v32  ;;  %v12550_v39 = vmax.f32 %v16265_v58, %v4197_v56 }
 0x593   :  { %16262 = vst [vmem:[#allocation174_spill] sm:$0xff] %v12540_v2 }
 0x594   :  { %16263 = vst [vmem:[#allocation175_spill] sm:$0xff] %v12544_v11  ;;  %16266 = vst [vmem:[#allocation176_spill] sm:$0xff] %v12550_v39  ;;  %v4198_v34 = vmax.f32 %v12540_v2, %v12544_v11  ;;  %v3412_v25 = vpop.f32.mrb[18].mxu1  ;;  %v16283_v39 = vld [vmem:[#allocation49_spill] sm:$0xff] }
 0x595   :  { %v12555_v9 = vadd.f32 %v3412_v25, %v12413_v6  ;;  %v3414_v13 = vpop.f32.mrb[19].mxu1  ;;  %3729 = vmatmul.mubr.f32.gmra.mrb[124].mxu1 %v11811_v23 }
 0x596   :  { %v12559_v51 = vadd.f32 %v3414_v13, %v12420_v50  ;;  %3734 = vmatprep.mubr.f32.mxu1 %v16019_v32  ;;  %v12565_v58 = vmax.f32 %v16269_v17, %v4198_v34  ;;  %v16275_v32 = vld [vmem:[#allocation44_spill] sm:$0xff] }
 0x597   :  { %16267 = vst [vmem:[#allocation177_spill] sm:$0xff] %v12555_v9  ;;  %v16277_v15 = vmax.f32 %v16275_v32, %v16276_v10 }
 0x598   :  { %16268 = vst [vmem:[#allocation178_spill] sm:$0xff] %v12559_v51  ;;  %16270 = vst [vmem:[#allocation179_spill] sm:$0xff] %v12565_v58  ;;  %v4199_v56 = vmax.f32 %v12555_v9, %v12559_v51  ;;  %v3418_v11 = vpop.f32.mrb[20].mxu1  ;;  %v16279_v9 = vld [vmem:[#allocation24_spill] sm:$0xff]  ;;  %v16281_v58 = vld [vmem:[#allocation25_spill] sm:$0xff] }
 0x599   :  { %v12570_v25 = vadd.f32 %v3418_v11, %v12413_v6  ;;  %v3420_v2 = vpop.f32.mrb[21].mxu1  ;;  %3735 = vmatmul.mubr.f32.gmra.mrb[126].mxu1 %v16272_v41 }
 0x59a   :  { %v12574_v13 = vadd.f32 %v3420_v2, %v12420_v50  ;;  %6691 = vmatprep.mubr.f32.mxu1 %v16274_v8  ;;  %v12580_v17 = vmax.f32 %v16277_v15, %v4199_v56  ;;  %v16282_v8 = vld [vmem:[#allocation48_spill] sm:$0xff] }
 0x59b   :  { %16271 = vst [vmem:[#allocation180_spill] sm:$0xff] %v12570_v25  ;;  %v16284_v10 = vmax.f32 %v16282_v8, %v16283_v39 }
 0x59c   :  { %16273 = vst [vmem:[#allocation22_spill] sm:$0xff] %v12574_v13  ;;  %v4200_v34 = vmax.f32 %v12570_v25, %v12574_v13  ;;  %v3424_v52 = vpop.f32.mrb[22].mxu1 }
 0x59d   :  { %v12585_v11 = vadd.f32 %v3424_v52, %v12413_v6  ;;  %v3426_v51 = vpop.f32.mrb[23].mxu1  ;;  %6692 = vmatmul.mubr.f32.vlgmr.msra.gmra.mrb[128].mxu1 %v16279_v9 }
 0x59e   :  { %v12589_v2 = vadd.f32 %v3426_v51, %v12420_v50  ;;  %6694 = vmatprep.mubr.f32.mxu1 %v16281_v58  ;;  %v12595_v15 = vmax.f32 %v16284_v10, %v4200_v34  ;;  %v16288_v51 = vld [vmem:[#allocation50_spill] sm:$0xff]  ;;  %v16289_v58 = vld [vmem:[#allocation51_spill] sm:$0xff] }
 0x59f   :  { %16278 = vst [vmem:[#allocation23_spill] sm:$0xff] %v12585_v11  ;;  %v16290_v39 = vmax.f32 %v16288_v51, %v16289_v58  ;;  %v16301_v51 = vld [vmem:[#allocation30_spill] sm:$0xff] }
 0x5a0   :  { %16280 = vst [vmem:[#allocation44_spill] sm:$0xff] %v12589_v2  ;;  %16285 = vst [vmem:[#allocation24_spill] sm:$0xff] %v12595_v15  ;;  %v4201_v56 = vmax.f32 %v12585_v11, %v12589_v2  ;;  %v3430_v13 = vpop.f32.mrb[24].mxu1  ;;  %v16293_v11 = vld [vmem:[#allocation28_spill] sm:$0xff]  ;;  %v16297_v15 = vld [vmem:[#allocation53_spill] sm:$0xff] }
 0x5a1   :  { %v12600_v52 = vadd.f32 %v3430_v13, %v12413_v6  ;;  %v3432_v25 = vpop.f32.mrb[25].mxu1  ;;  %6695 = vmatmul.mubr.f32.gmra.mrb[130].mxu1 %v16102_v47 }
 0x5a2   :  { %v12604_v9 = vadd.f32 %v3432_v25, %v12420_v50  ;;  %6697 = vmatprep.mubr.f32.mxu1 %v16105_v40  ;;  %v12610_v10 = vmax.f32 %v16290_v39, %v4201_v56  ;;  %v16295_v25 = vld [vmem:[#allocation29_spill] sm:$0xff]  ;;  %v16296_v40 = vld [vmem:[#allocation52_spill] sm:$0xff] }
 0x5a3   :  { %16286 = vst [vmem:[#allocation25_spill] sm:$0xff] %v12600_v52  ;;  %v16298_v58 = vmax.f32 %v16296_v40, %v16297_v15 }
 0x5a4   :  { %16287 = vst [vmem:[#allocation181_spill] sm:$0xff] %v12604_v9  ;;  %16291 = vst [vmem:[#allocation182_spill] sm:$0xff] %v12610_v10  ;;  %v4202_v34 = vmax.f32 %v12600_v52, %v12604_v9  ;;  %v3436_v8 = vpop.f32.mrb[26].mxu1  ;;  %v16305_v10 = vld [vmem:[#allocation55_spill] sm:$0xff] }
 0x5a5   :  { %v12615_v13 = vadd.f32 %v3436_v8, %v12413_v6  ;;  %v3438_v2 = vpop.f32.mrb[27].mxu1  ;;  %6698 = vmatmul.mubr.f32.gmra.mrb[132].mxu1 %v16293_v11 }
 0x5a6   :  { %v12619_v47 = vadd.f32 %v3438_v2, %v12420_v50  ;;  %6700 = vmatprep.mubr.f32.mxu1 %v16295_v25  ;;  %v12625_v39 = vmax.f32 %v16298_v58, %v4202_v34  ;;  %v16303_v2 = vld [vmem:[#allocation31_spill] sm:$0xff]  ;;  %v16304_v25 = vld [vmem:[#allocation54_spill] sm:$0xff] }
 0x5a7   :  { %16292 = vst [vmem:[#allocation183_spill] sm:$0xff] %v12615_v13  ;;  %v16306_v15 = vmax.f32 %v16304_v25, %v16305_v10  ;;  %v16317_v25 = vld [vmem:[#allocation34_spill] sm:$0xff] }
 0x5a8   :  { %16294 = vst [vmem:[#allocation28_spill] sm:$0xff] %v12619_v47  ;;  %16299 = vst [vmem:[#allocation29_spill] sm:$0xff] %v12625_v39  ;;  %v4203_v56 = vmax.f32 %v12615_v13, %v12619_v47  ;;  %v3442_v9 = vpop.f32.mrb[28].mxu1  ;;  %v16309_v47 = vld [vmem:[#allocation32_spill] sm:$0xff]  ;;  %v16313_v13 = vld [vmem:[#allocation26_spill] sm:$0xff] }
 0x5a9   :  { %v12630_v8 = vadd.f32 %v3442_v9, %v12413_v6  ;;  %v3444_v52 = vpop.f32.mrb[29].mxu1  ;;  %6701 = vmatmul.mubr.f32.gmra.mrb[134].mxu1 %v16301_v51  ;;  %v16311_v51 = vld [vmem:[#allocation33_spill] sm:$0xff] }
 0x5aa   :  { %v12634_v11 = vadd.f32 %v3444_v52, %v12420_v50  ;;  %6703 = vmatprep.mubr.f32.mxu1 %v16303_v2  ;;  %v12640_v58 = vmax.f32 %v16306_v15, %v4203_v56  ;;  %v16312_v2 = vld [vmem:[#allocation56_spill] sm:$0xff] }
 0x5ab   :  { %16300 = vst [vmem:[#allocation184_spill] sm:$0xff] %v12630_v8  ;;  %v16314_v10 = vmax.f32 %v16312_v2, %v16313_v13 }
 0x5ac   :  { %16302 = vst [vmem:[#allocation30_spill] sm:$0xff] %v12634_v11  ;;  %16307 = vst [vmem:[#allocation31_spill] sm:$0xff] %v12640_v58  ;;  %v4204_v34 = vmax.f32 %v12630_v8, %v12634_v11  ;;  %v3448_v40 = vpop.f32.mrb[30].mxu1  ;;  %v16321_v58 = vld [vmem:[#allocation27_spill] sm:$0xff] }
 0x5ad   :  { %v12645_v9 = vadd.f32 %v3448_v40, %v12413_v6  ;;  %v3450_v39 = vpop.f32.mrb[31].mxu1  ;;  %6704 = vmatmul.mubr.f32.gmra.mrb[136].mxu1 %v16309_v47 }
 0x5ae   :  { %v12649_v52 = vadd.f32 %v3450_v39, %v12420_v50  ;;  %6706 = vmatprep.mubr.f32.mxu1 %v16311_v51  ;;  %v12655_v15 = vmax.f32 %v16314_v10, %v4204_v34  ;;  %v16319_v39 = vld [vmem:[#allocation35_spill] sm:$0xff]  ;;  %v16320_v51 = vld [vmem:[#allocation57_spill] sm:$0xff] }
 0x5af   :  { %16308 = vst [vmem:[#allocation185_spill] sm:$0xff] %v12645_v9  ;;  %v16322_v13 = vmax.f32 %v16320_v51, %v16321_v58  ;;  %v16332_v51 = vld [vmem:[#allocation38_spill] sm:$0xff] }
 0x5b0   :  { %16310 = vst [vmem:[#allocation32_spill] sm:$0xff] %v12649_v52  ;;  %16315 = vst [vmem:[#allocation33_spill] sm:$0xff] %v12655_v15  ;;  %v4205_v56 = vmax.f32 %v12645_v9, %v12649_v52  ;;  %v3454_v11 = vpop.f32.mrb[32].mxu1  ;;  %v16325_v52 = vld [vmem:[#allocation36_spill] sm:$0xff]  ;;  %v16329_v9 = vld [vmem:[#allocation59_spill] sm:$0xff] }
 0x5b1   :  { %v12660_v40 = vadd.f32 %v3454_v11, %v12413_v6  ;;  %v3456_v8 = vpop.f32.mrb[33].mxu1  ;;  %6707 = vmatmul.mubr.f32.gmra.mrb[138].mxu1 %v16317_v25  ;;  %v16327_v25 = vld [vmem:[#allocation37_spill] sm:$0xff] }
 0x5b2   :  { %v12664_v47 = vadd.f32 %v3456_v8, %v12420_v50  ;;  %6709 = vmatprep.mubr.f32.mxu1 %v16319_v39  ;;  %v12670_v10 = vmax.f32 %v16322_v13, %v4205_v56  ;;  %v16328_v39 = vld [vmem:[#allocation58_spill] sm:$0xff] }
 0x5b3   :  { %16316 = vst [vmem:[#allocation186_spill] sm:$0xff] %v12660_v40  ;;  %v16330_v58 = vmax.f32 %v16328_v39, %v16329_v9 }
 0x5b4   :  { %16318 = vst [vmem:[#allocation34_spill] sm:$0xff] %v12664_v47  ;;  %16323 = vst [vmem:[#allocation35_spill] sm:$0xff] %v12670_v10  ;;  %v4206_v34 = vmax.f32 %v12660_v40, %v12664_v47  ;;  %v3460_v2 = vpop.f32.mrb[34].mxu1  ;;  %v16336_v10 = vld [vmem:[#allocation61_spill] sm:$0xff] }
 0x5b5   :  { %v12675_v11 = vadd.f32 %v3460_v2, %v12413_v6  ;;  %v3462_v15 = vpop.f32.mrb[35].mxu1  ;;  %6710 = vmatmul.mubr.f32.gmra.mrb[140].mxu1 %v16325_v52 }
 0x5b6   :  { %v12679_v8 = vadd.f32 %v3462_v15, %v12420_v50  ;;  %6712 = vmatprep.mubr.f32.mxu1 %v16327_v25  ;;  %v12685_v13 = vmax.f32 %v16330_v58, %v4206_v34  ;;  %v16334_v15 = vld [vmem:[#allocation39_spill] sm:$0xff]  ;;  %v16335_v25 = vld [vmem:[#allocation60_spill] sm:$0xff] }
 0x5b7   :  { %16324 = vst [vmem:[#allocation187_spill] sm:$0xff] %v12675_v11  ;;  %v16337_v9 = vmax.f32 %v16335_v25, %v16336_v10  ;;  %v16346_v25 = vld [vmem:[#allocation43_spill] sm:$0xff] }
 0x5b8   :  { %16326 = vst [vmem:[#allocation36_spill] sm:$0xff] %v12679_v8  ;;  %v4207_v56 = vmax.f32 %v12675_v11, %v12679_v8  ;;  %v3466_v47 = vpop.f32.mrb[36].mxu1  ;;  %v16339_v11 = vld [vmem:[#allocation40_spill] sm:$0xff] }
 0x5b9   :  { %v12690_v2 = vadd.f32 %v3466_v47, %v12413_v6  ;;  %v3468_v40 = vpop.f32.mrb[37].mxu1  ;;  %6713 = vmatmul.mubr.f32.gmra.mrb[142].mxu1 %v16332_v51  ;;  %v16341_v51 = vld [vmem:[#allocation62_spill] sm:$0xff] }
 0x5ba   :  { %v12694_v52 = vadd.f32 %v3468_v40, %v12420_v50  ;;  %6715 = vmatprep.mubr.f32.mxu1 %v16334_v15  ;;  %v12700_v58 = vmax.f32 %v16337_v9, %v4207_v56  ;;  %v16342_v15 = vld [vmem:[#allocation63_spill] sm:$0xff] }
 0x5bb   :  { %16331 = vst [vmem:[#allocation37_spill] sm:$0xff] %v12690_v2  ;;  %v16343_v10 = vmax.f32 %v16341_v51, %v16342_v15 }
 0x5bc   :  { %16333 = vst [vmem:[#allocation38_spill] sm:$0xff] %v12694_v52  ;;  %v4208_v34 = vmax.f32 %v12690_v2, %v12694_v52  ;;  %v3472_v39 = vpop.f32.mrb[38].mxu1 }
 0x5bd   :  { %v12705_v47 = vadd.f32 %v3472_v39, %v12413_v6  ;;  %v3474_v8 = vpop.f32.mrb[39].mxu1  ;;  %6716 = vmatmul.mubr.f32.gmra.mrb[144].mxu1 %v16339_v11 }
 0x5be   :  { %v12709_v40 = vadd.f32 %v3474_v8, %v12420_v50  ;;  %6718 = vmatprep.mubr.f32.mxu1 %v16147_v45  ;;  %v12715_v9 = vmax.f32 %v16343_v10, %v4208_v34  ;;  %v16348_v45 = vld [vmem:[#allocation64_spill] sm:$0xff]  ;;  %v16349_v8 = vld [vmem:[#allocation65_spill] sm:$0xff] }
 0x5bf   :  { %16338 = vst [vmem:[#allocation39_spill] sm:$0xff] %v12705_v47  ;;  %v16350_v15 = vmax.f32 %v16348_v45, %v16349_v8 }
 0x5c0   :  { %16340 = vst [vmem:[#allocation40_spill] sm:$0xff] %v12709_v40  ;;  %16344 = vst [vmem:[#allocation188_spill] sm:$0xff] %v12715_v9  ;;  %v4209_v56 = vmax.f32 %v12705_v47, %v12709_v40  ;;  %v3478_v52 = vpop.f32.mrb[40].mxu1  ;;  %v16361_v47 = vld [vmem:[#allocation69_spill] sm:$0xff] }
 0x5c1   :  { %v12720_v39 = vadd.f32 %v3478_v52, %v12413_v6  ;;  %v3480_v2 = vpop.f32.mrb[41].mxu1  ;;  %6719 = vmatmul.mubr.f32.gmra.mrb[146].mxu1 %v16346_v25  ;;  %v16354_v25 = vld [vmem:[#allocation67_spill] sm:$0xff] }
 0x5c2   :  { %v12724_v11 = vadd.f32 %v3480_v2, %v12420_v50  ;;  %6721 = vmatprep.mubr.f32.mxu1 %v16153_v38  ;;  %v12730_v10 = vmax.f32 %v16350_v15, %v4209_v56  ;;  %v16353_v38 = vld [vmem:[#allocation66_spill] sm:$0xff] }
 0x5c3   :  { %16345 = vst [vmem:[#allocation189_spill] sm:$0xff] %v12720_v39  ;;  %v16355_v40 = vmax.f32 %v16353_v38, %v16354_v25 }
 0x5c4   :  { %16347 = vst [vmem:[#allocation43_spill] sm:$0xff] %v12724_v11  ;;  %v4210_v34 = vmax.f32 %v12720_v39, %v12724_v11  ;;  %v3484_v51 = vpop.f32.mrb[42].mxu1 }
 0x5c5   :  { %v12735_v52 = vadd.f32 %v3484_v51, %v12413_v6  ;;  %v3486_v9 = vpop.f32.mrb[43].mxu1  ;;  %6722 = vmatmul.mubr.f32.gmra.mrb[148].mxu1 %v11425_v62 }
 0x5c6   :  { %v12739_v2 = vadd.f32 %v3486_v9, %v12420_v50  ;;  %6724 = vmatprep.mubr.f32.mxu1 %v11432_v27  ;;  %v12745_v15 = vmax.f32 %v16355_v40, %v4210_v34  ;;  %v16359_v9 = vld [vmem:[#allocation46_spill] sm:$0xff]  ;;  %v16360_v27 = vld [vmem:[#allocation68_spill] sm:$0xff] }
 0x5c7   :  { %16351 = vst [vmem:[#allocation64_spill] sm:$0xff] %v12735_v52  ;;  %v16362_v25 = vmax.f32 %v16360_v27, %v16361_v47 }
 0x5c8   :  { %16352 = vst [vmem:[#allocation65_spill] sm:$0xff] %v12739_v2  ;;  %16356 = vst [vmem:[#allocation190_spill] sm:$0xff] %v12745_v15  ;;  %v4211_v56 = vmax.f32 %v12735_v52, %v12739_v2  ;;  %v3490_v11 = vpop.f32.mrb[44].mxu1  ;;  %v16364_v2 = vld [vmem:[#allocation47_spill] sm:$0xff] }
 0x5c9   :  { %v12750_v51 = vadd.f32 %v3490_v11, %v12413_v6  ;;  %v3492_v39 = vpop.f32.mrb[45].mxu1  ;;  %6725 = vmatmul.mubr.f32.gmra.mrb[150].mxu1 %v11437_v37 }
 0x5ca   :  { %v12754_v62 = vadd.f32 %v3492_v39, %v12420_v50  ;;  %6727 = vmatprep.mubr.f32.mxu1 %v16359_v9  ;;  %v12760_v40 = vmax.f32 %v16362_v25, %v4211_v56  ;;  %v16366_v56 = vld [vmem:[#allocation70_spill] sm:$0xff]  ;;  %v16367_v9 = vld [vmem:[#allocation71_spill] sm:$0xff] }
 0x5cb   :  { %16357 = vst [vmem:[#allocation191_spill] sm:$0xff] %v12750_v51  ;;  %v16368_v52 = vmax.f32 %v16366_v56, %v16367_v9 }
 0x5cc   :  { %16358 = vst [vmem:[#allocation192_spill] sm:$0xff] %v12754_v62  ;;  %v4212_v34 = vmax.f32 %v12750_v51, %v12754_v62  ;;  %v3496_v38 = vpop.f32.mrb[46].mxu1 }
 0x5cd   :  { %v12765_v11 = vadd.f32 %v3496_v38, %v12413_v6  ;;  %v3498_v15 = vpop.f32.mrb[47].mxu1  ;;  %6728 = vmatmul.mubr.f32.gmra.mrb[152].mxu1 %v16364_v2 }
 0x5ce   :  { %v12769_v37 = vadd.f32 %v3498_v15, %v12420_v50  ;;  %6730 = vmatprep.mubr.f32.mxu1 %v11462_v44  ;;  %v12777_v62 = vmax.f32 %v16368_v52, %v4212_v34  ;;  %v16371_v44 = vld [vmem:[#allocation72_spill] sm:$0xff]  ;;  %v16372_v15 = vld [vmem:[#allocation73_spill] sm:$0xff] }
 0x5cf   :  { %16363 = vst [vmem:[#allocation46_spill] sm:$0xff] %v12765_v11 }
 0x5d0   :  { %16365 = vst [vmem:[#allocation68_spill] sm:$0xff] %v12769_v37  ;;  %v4213_v39 = vmax.f32 %v12765_v11, %v12769_v37  ;;  %v3502_v25 = vpop.f32.mrb[48].mxu1  ;;  %v16373_v37 = vmax.f32 %v16371_v44, %v16372_v15 }
 0x5d1   :  { %v12780_v38 = vadd.f32 %v3502_v25, %v12413_v6  ;;  %v3504_v51 = vpop.f32.mrb[49].mxu1  ;;  %6731 = vmatmul.mubr.f32.gmra.mrb[154].mxu1 %v11473_v1 }
 0x5d2   :  { %v12784_v2 = vadd.f32 %v3504_v51, %v12420_v50  ;;  %6733 = vmatprep.mubr.f32.mxu1 %v11480_v31  ;;  %v12790_v11 = vmax.f32 %v16373_v37, %v4213_v39 }
 0x5d3   :  { %16369 = vst [vmem:[#allocation69_spill] sm:$0xff] %v12780_v38 }
 0x5d4   :  { %16370 = vst [vmem:[#allocation47_spill] sm:$0xff] %v12784_v2  ;;  %v4214_v52 = vmax.f32 %v12780_v38, %v12784_v2  ;;  %v3508_v34 = vpop.f32.mrb[50].mxu1 }
 0x5d5   :  { %v12795_v25 = vadd.f32 %v3508_v34, %v12413_v6  ;;  %v3510_v9 = vpop.f32.mrb[51].mxu1  ;;  %6734 = vmatmul.mubr.f32.gmra.mrb[156].mxu1 %v11485_v24 }
 0x5d6   :  { %v12799_v1 = vadd.f32 %v3510_v9, %v12420_v50  ;;  %6736 = vmatprep.mubr.f32.mxu1 %v11492_v0 }
 0x5d7   :  { %16374 = vst [vmem:[#allocation70_spill] sm:$0xff] %v12795_v25 }
 0x5d8   :  { %16375 = vst [vmem:[#allocation72_spill] sm:$0xff] %v12799_v1  ;;  %v4215_v31 = vmax.f32 %v12795_v25, %v12799_v1  ;;  %v3514_v51 = vpop.f32.mrb[52].mxu1 }
 0x5d9   :  { %v12805_v37 = vadd.f32 %v3514_v51, %v12413_v6  ;;  %v3516_v39 = vpop.f32.mrb[53].mxu1  ;;  %6737 = vmatmul.mubr.f32.gmra.mrb[158].mxu1 %v11499_v36 }
 0x5da   :  { %v12809_v34 = vadd.f32 %v3516_v39, %v12420_v50  ;;  %6739 = vmatprep.mubr.f32.mxu1 %v11506_v35 }
 0x5db   :  { %16376 = vst [vmem:[#allocation73_spill] sm:$0xff] %v12805_v37 }
 0x5dc   :  { %16377 = vst [vmem:[#allocation193_spill] sm:$0xff] %v12809_v34  ;;  %v4216_v24 = vmax.f32 %v12805_v37, %v12809_v34  ;;  %v3520_v9 = vpop.f32.mrb[54].mxu1 }
 0x5dd   :  { %v12815_v0 = vadd.f32 %v3520_v9, %v12413_v6  ;;  %v3522_v2 = vpop.f32.mrb[55].mxu1  ;;  %6740 = vmatmul.mubr.f32.gmra.mrb[160].mxu1 %v11513_v19  ;;  %v16382_v19 = vld [vmem:[#allocation76_spill] sm:$0xff] }
 0x5de   :  { %v12819_v51 = vadd.f32 %v3522_v2, %v12420_v50  ;;  %6742 = vmatprep.mubr.f32.mxu1 %v11528_v20  ;;  %v16383_v2 = vld [vmem:[#allocation77_spill] sm:$0xff] }
 0x5df   :  { %16378 = vst [vmem:[#allocation194_spill] sm:$0xff] %v12815_v0  ;;  %v16384_v37 = vmax.f32 %v16382_v19, %v16383_v2 }
 0x5e0   :  { %16379 = vst [vmem:[#allocation195_spill] sm:$0xff] %v12819_v51  ;;  %v4217_v36 = vmax.f32 %v12815_v0, %v12819_v51  ;;  %v3526_v39 = vpop.f32.mrb[56].mxu1 }
 0x5e1   :  { %v12825_v35 = vadd.f32 %v3526_v39, %v12413_v6  ;;  %v3528_v34 = vpop.f32.mrb[57].mxu1  ;;  %6743 = vmatmul.mubr.f32.gmra.mrb[162].mxu1 %v11536_v59  ;;  %v12835_v38 = vmax.f32 %v16384_v37, %v4215_v31  ;;  %v16386_v59 = vld [vmem:[#allocation74_spill] sm:$0xff] }
 0x5e2   :  { %v12829_v9 = vadd.f32 %v3528_v34, %v12420_v50  ;;  %6745 = vmatprep.mubr.f32.mxu1 %v11543_v63  ;;  %v16387_v34 = vld [vmem:[#allocation75_spill] sm:$0xff] }
 0x5e3   :  { %16380 = vst [vmem:[#allocation196_spill] sm:$0xff] %v12825_v35  ;;  %v16388_v1 = vmax.f32 %v16386_v59, %v16387_v34  ;;  %v16403_v59 = vld [vmem:[#allocation79_spill] sm:$0xff] }
 0x5e4   :  { %16381 = vst [vmem:[#allocation197_spill] sm:$0xff] %v12829_v9  ;;  %v3532_v51 = vpop.f32.mrb[58].mxu1 }
 0x5e5   :  { %v12840_v39 = vadd.f32 %v3532_v51, %v12413_v6  ;;  %v3534_v0 = vpop.f32.mrb[59].mxu1  ;;  %6746 = vmatmul.mubr.f32.gmra.mrb[164].mxu1 %v11550_v12  ;;  %v12846_v25 = vmax.f32 %v16388_v1, %v4214_v52 }
 0x5e6   :  { %v12849_v63 = vadd.f32 %v3534_v0, %v12420_v50  ;;  %6748 = vmatprep.mubr.f32.mxu1 %v11557_v16 }
 0x5e7   :  { %16385 = vst [vmem:[#allocation198_spill] sm:$0xff] %v12840_v39 }
 0x5e8   :  { %16389 = vst [vmem:[#allocation199_spill] sm:$0xff] %v12849_v63  ;;  %v3538_v37 = vpop.f32.mrb[60].mxu1 }
 0x5e9   :  { %v12855_v51 = vadd.f32 %v3538_v37, %v12413_v6  ;;  %v3540_v20 = vpop.f32.mrb[61].mxu1  ;;  %6749 = vmatmul.mubr.f32.gmra.mrb[166].mxu1 %v11564_v14 }
 0x5ea   :  { %v12859_v12 = vadd.f32 %v3540_v20, %v12420_v50  ;;  %6751 = vmatprep.mubr.f32.mxu1 %v11571_v26 }
 0x5eb   :  { %16390 = vst [vmem:[#allocation200_spill] sm:$0xff] %v12855_v51 }
 0x5ec   :  { %16391 = vst [vmem:[#allocation201_spill] sm:$0xff] %v12859_v12  ;;  %v3544_v1 = vpop.f32.mrb[62].mxu1 }
 0x5ed   :  { %v12865_v16 = vadd.f32 %v3544_v1, %v12413_v6  ;;  %v3546_v0 = vpop.f32.mrb[63].mxu1  ;;  %6752 = vmatmul.mubr.f32.gmra.mrb[168].mxu1 %v11578_v3 }
 0x5ee   :  { %v12869_v37 = vadd.f32 %v3546_v0, %v12420_v50  ;;  %6754 = vmatprep.mubr.f32.mxu1 %v11585_v43 }
 0x5ef   :  { %16392 = vst [vmem:[#allocation202_spill] sm:$0xff] %v12865_v16 }
 0x5f0   :  { %16393 = vst [vmem:[#allocation203_spill] sm:$0xff] %v12869_v37  ;;  %v3550_v20 = vpop.f32.mrb[64].mxu1 }
 0x5f1   :  { %v12875_v26 = vadd.f32 %v3550_v20, %v12413_v6  ;;  %v3552_v52 = vpop.f32.mrb[65].mxu1  ;;  %6755 = vmatmul.mubr.f32.gmra.mrb[170].mxu1 %v11592_v54  ;;  %v16398_v54 = vld [vmem:[#allocation80_spill] sm:$0xff] }
 0x5f2   :  { %v12879_v1 = vadd.f32 %v3552_v52, %v12420_v50  ;;  %6757 = vmatprep.mubr.f32.mxu1 %v11599_v18  ;;  %v16399_v52 = vld [vmem:[#allocation81_spill] sm:$0xff]  ;;  %v16402_v18 = vld [vmem:[#allocation78_spill] sm:$0xff] }
 0x5f3   :  { %16394 = vst [vmem:[#allocation204_spill] sm:$0xff] %v12875_v26  ;;  %v16400_v31 = vmax.f32 %v16398_v54, %v16399_v52  ;;  %v16404_v3 = vmax.f32 %v16402_v18, %v16403_v59 }
 0x5f4   :  { %16395 = vst [vmem:[#allocation205_spill] sm:$0xff] %v12879_v1  ;;  %v3556_v0 = vpop.f32.mrb[66].mxu1 }
 0x5f5   :  { %v12885_v43 = vadd.f32 %v3556_v0, %v12413_v6  ;;  %v3558_v14 = vpop.f32.mrb[67].mxu1  ;;  %6758 = vmatmul.mubr.f32.gmra.mrb[172].mxu1 %v11606_v29  ;;  %v12895_v34 = vmax.f32 %v16400_v31, %v4217_v36  ;;  %v12900_v2 = vmax.f32 %v16404_v3, %v4216_v24 }
 0x5f6   :  { %v12889_v20 = vadd.f32 %v3558_v14, %v12420_v50  ;;  %6760 = vmatprep.mubr.f32.mxu1 %v11613_v5 }
 0x5f7   :  { %16396 = vst [vmem:[#allocation206_spill] sm:$0xff] %v12885_v43  ;;  %16401 = vst [vmem:[#allocation208_spill] sm:$0xff] %v12895_v34 }
 0x5f8   :  { %16397 = vst [vmem:[#allocation207_spill] sm:$0xff] %v12889_v20  ;;  %16405 = vst [vmem:[#allocation209_spill] sm:$0xff] %v12900_v2  ;;  %v3562_v19 = vpop.f32.mrb[68].mxu1 }
 0x5f9   :  { %v12905_v29 = vadd.f32 %v3562_v19, %v12413_v6  ;;  %v3564_v14 = vpop.f32.mrb[69].mxu1  ;;  %6761 = vmatmul.mubr.f32.gmra.mrb[174].mxu1 %v11620_v53 }
 0x5fa   :  { %v12909_v5 = vadd.f32 %v3564_v14, %v12420_v50  ;;  %6763 = vmatprep.mubr.f32.mxu1 %v11627_v42 }
 0x5fb   :  { %16406 = vst [vmem:[#allocation210_spill] sm:$0xff] %v12905_v29 }
 0x5fc   :  { %16407 = vst [vmem:[#allocation211_spill] sm:$0xff] %v12909_v5  ;;  %v3568_v24 = vpop.f32.mrb[70].mxu1 }
 0x5fd   :  { %v12915_v31 = vadd.f32 %v3568_v24, %v12413_v6  ;;  %v3570_v3 = vpop.f32.mrb[71].mxu1  ;;  %6764 = vmatmul.mubr.f32.gmra.mrb[176].mxu1 %v11634_v46 }
 0x5fe   :  { %v12919_v19 = vadd.f32 %v3570_v3, %v12420_v50  ;;  %6766 = vmatprep.mubr.f32.mxu1 %v11641_v48 }
 0x5ff   :  { %16408 = vst [vmem:[#allocation212_spill] sm:$0xff] %v12915_v31 }
 0x600   :  { %16409 = vst [vmem:[#allocation213_spill] sm:$0xff] %v12919_v19  ;;  %v3574_v14 = vpop.f32.mrb[72].mxu1 }
 0x601   :  { %v12925_v42 = vadd.f32 %v3574_v14, %v12413_v6  ;;  %v3576_v36 = vpop.f32.mrb[73].mxu1  ;;  %6767 = vmatmul.mubr.f32.gmra.mrb[178].mxu1 %v11655_v49 }
 0x602   :  { %v12929_v24 = vadd.f32 %v3576_v36, %v12420_v50  ;;  %6769 = vmatprep.mubr.f32.mxu1 %v11667_v21 }
 0x603   :  { %16410 = vst [vmem:[#allocation214_spill] sm:$0xff] %v12925_v42 }
 0x604   :  { %16411 = vst [vmem:[#allocation215_spill] sm:$0xff] %v12929_v24  ;;  %v3580_v3 = vpop.f32.mrb[74].mxu1 }
 0x605   :  { %v12935_v48 = vadd.f32 %v3580_v3, %v12413_v6  ;;  %v3582_v53 = vpop.f32.mrb[75].mxu1  ;;  %6770 = vmatmul.mubr.f32.gmra.mrb[180].mxu1 %v11678_v22  ;;  %v16416_v22 = vmax.f32 %v12840_v39, %v12849_v63 }
 0x606   :  { %v12939_v14 = vadd.f32 %v3582_v53, %v12420_v50  ;;  %6772 = vmatprep.mubr.f32.mxu1 %v11691_v60  ;;  %v16417_v53 = vld [vmem:[#allocation84_spill] sm:$0xff]  ;;  %v16418_v60 = vld [vmem:[#allocation42_spill] sm:$0xff] }
 0x607   :  { %16412 = vst [vmem:[#allocation216_spill] sm:$0xff] %v12935_v48  ;;  %v16419_v0 = vmax.f32 %v16417_v53, %v16418_v60 }
 0x608   :  { %16413 = vst [vmem:[#allocation217_spill] sm:$0xff] %v12939_v14  ;;  %v3586_v36 = vpop.f32.mrb[76].mxu1 }
 0x609   :  { %v12945_v21 = vadd.f32 %v3586_v36, %v12413_v6  ;;  %v3588_v46 = vpop.f32.mrb[77].mxu1  ;;  %6773 = vmatmul.mubr.f32.gmra.mrb[182].mxu1 %v11706_v55  ;;  %v12958_v59 = vmax.f32 %v16419_v0, %v16416_v22  ;;  %v16424_v0 = vld [vmem:[#allocation82_spill] sm:$0xff]  ;;  %v16425_v22 = vld [vmem:[#allocation83_spill] sm:$0xff] }
 0x60a   :  { %v12949_v3 = vadd.f32 %v3588_v46, %v12420_v50  ;;  %6775 = vmatprep.mubr.f32.mxu1 %v11721_v33  ;;  %v16423_v46 = vmax.f32 %v12825_v35, %v12829_v9  ;;  %v16426_v63 = vmax.f32 %v16424_v0, %v16425_v22 }
 0x60b   :  { %16414 = vst [vmem:[#allocation218_spill] sm:$0xff] %v12945_v21  ;;  %16420 = vst [vmem:[#allocation220_spill] sm:$0xff] %v12958_v59 }
 0x60c   :  { %16415 = vst [vmem:[#allocation219_spill] sm:$0xff] %v12949_v3  ;;  %v3592_v49 = vpop.f32.mrb[78].mxu1  ;;  %v12976_v39 = vmax.f32 %v16426_v63, %v16423_v46 }
 0x60d   :  { %v12963_v18 = vadd.f32 %v3592_v49, %v12413_v6  ;;  %v3594_v55 = vpop.f32.mrb[79].mxu1  ;;  %6776 = vmatmul.mubr.f32.gmra.mrb[184].mxu1 %v11736_v4 }
 0x60e   :  { %v12967_v33 = vadd.f32 %v3594_v55, %v12420_v50  ;;  %6778 = vmatprep.mubr.f32.mxu1 %v11751_v28  ;;  %16427 = vst [vmem:[#allocation223_spill] sm:$0xff] %v12976_v39 }
 0x60f   :  { %16421 = vst [vmem:[#allocation221_spill] sm:$0xff] %v12963_v18 }
 0x610   :  { %16422 = vst [vmem:[#allocation222_spill] sm:$0xff] %v12967_v33  ;;  %v3598_v36 = vpop.f32.mrb[80].mxu1 }
 0x611   :  { %v12981_v60 = vadd.f32 %v3598_v36, %v12413_v6  ;;  %v3600_v4 = vpop.f32.mrb[81].mxu1  ;;  %6779 = vmatmul.mubr.f32.gmra.mrb[186].mxu1 %v16251_v57 }
 0x612   :  { %v12985_v28 = vadd.f32 %v3600_v4, %v12420_v50  ;;  %6781 = vmatprep.mubr.f32.mxu1 %v11781_v30 }
 0x613   :  { %16428 = vst [vmem:[#allocation224_spill] sm:$0xff] %v12981_v60 }
 0x614   :  { %16429 = vst [vmem:[#allocation225_spill] sm:$0xff] %v12985_v28  ;;  %v3604_v63 = vpop.f32.mrb[82].mxu1 }
 0x615   :  { %v12991_v46 = vadd.f32 %v3604_v63, %v12413_v6  ;;  %v3606_v49 = vpop.f32.mrb[83].mxu1  ;;  %6782 = vmatmul.mubr.f32.gmra.mrb[188].mxu1 %v11796_v61 }
 0x616   :  { %v12995_v36 = vadd.f32 %v3606_v49, %v12420_v50  ;;  %6784 = vmatprep.mubr.f32.mxu1 %v11811_v23 }
 0x617   :  { %16430 = vst [vmem:[#allocation226_spill] sm:$0xff] %v12991_v46 }
 0x618   :  { %16431 = vst [vmem:[#allocation227_spill] sm:$0xff] %v12995_v36  ;;  %v3610_v4 = vpop.f32.mrb[84].mxu1  ;;  %v16438_v36 = vld [vmem:[#allocation86_spill] sm:$0xff] }
 0x619   :  { %v13001_v30 = vadd.f32 %v3610_v4, %v12413_v6  ;;  %v3612_v55 = vpop.f32.mrb[85].mxu1  ;;  %6785 = vmatmul.mubr.f32.gmra.mrb[190].mxu1 %v16272_v41  ;;  %v16436_v41 = vmax.f32 %v12855_v51, %v12859_v12 }
 0x61a   :  { %v13005_v63 = vadd.f32 %v3612_v55, %v12420_v50  ;;  %v16437_v55 = vld [vmem:[#allocation85_spill] sm:$0xff] }
 0x61b   :  { %16432 = vst [vmem:[#allocation228_spill] sm:$0xff] %v13001_v30  ;;  %v16439_v46 = vmax.f32 %v16437_v55, %v16438_v36  ;;  %v16444_v30 = vld [vmem:[#allocation45_spill] sm:$0xff] }
 0x61c   :  { %16433 = vst [vmem:[#allocation229_spill] sm:$0xff] %v13005_v63  ;;  %v3616_v49 = vpop.f32.mrb[86].mxu1  ;;  %v16443_v63 = vld [vmem:[#allocation87_spill] sm:$0xff] }
 0x61d   :  { %v13010_v28 = vadd.f32 %v3616_v49, %v12413_v6  ;;  %v3618_v23 = vpop.f32.mrb[87].mxu1  ;;  %v13023_v9 = vmax.f32 %v16439_v46, %v16436_v41  ;;  %v16445_v35 = vmax.f32 %v16443_v63, %v16444_v30 }
 0x61e   :  { %v13013_v57 = vadd.f32 %v3618_v23, %v12420_v50  ;;  %v16442_v23 = vmax.f32 %v12865_v16, %v12869_v37 }
 0x61f   :  { %16434 = vst [vmem:[#allocation230_spill] sm:$0xff] %v13010_v28  ;;  %16440 = vst [vmem:[#allocation232_spill] sm:$0xff] %v13023_v9 }
 0x620   :  { %16435 = vst [vmem:[#allocation231_spill] sm:$0xff] %v13013_v57  ;;  %v3622_v60 = vpop.f32.mrb[88].mxu1  ;;  %v13034_v4 = vmax.f32 %v16445_v35, %v16442_v23 }
 0x621   :  { %v13026_v61 = vadd.f32 %v3622_v60, %v12413_v6  ;;  %v3624_v49 = vpop.f32.mrb[89].mxu1 }
 0x622   :  { %16446 = vst [vmem:[#allocation234_spill] sm:$0xff] %v13034_v4  ;;  %v13037_v57 = vadd.f32 %v3624_v49, %v12420_v50 }
 0x623   :  { %16441 = vst [vmem:[#allocation233_spill] sm:$0xff] %v13026_v61 }
 0x624   :  { %16447 = vst [vmem:[#allocation235_spill] sm:$0xff] %v13037_v57  ;;  %v3628_v46 = vpop.f32.mrb[90].mxu1 }
 0x625   :  { %v13042_v41 = vadd.f32 %v3628_v46, %v12413_v6  ;;  %v3630_v60 = vpop.f32.mrb[91].mxu1 }
 0x626   :  { %v13045_v12 = vadd.f32 %v3630_v60, %v12420_v50 }
 0x627   :  { %16448 = vst [vmem:[#allocation236_spill] sm:$0xff] %v13042_v41  ;;  %v16456_v41 = vld [vmem:[#allocation91_spill] sm:$0xff] }
 0x628   :  { %16449 = vst [vmem:[#allocation237_spill] sm:$0xff] %v13045_v12  ;;  %v3634_v36 = vpop.f32.mrb[92].mxu1  ;;  %v16454_v12 = vmax.f32 %v12885_v43, %v12889_v20 }
 0x629   :  { %v13050_v35 = vadd.f32 %v3634_v36, %v12413_v6  ;;  %v3636_v49 = vpop.f32.mrb[93].mxu1 }
 0x62a   :  { %v13053_v23 = vadd.f32 %v3636_v49, %v12420_v50  ;;  %v16455_v49 = vld [vmem:[#allocation90_spill] sm:$0xff] }
 0x62b   :  { %16450 = vst [vmem:[#allocation238_spill] sm:$0xff] %v13050_v35  ;;  %v16457_v55 = vmax.f32 %v16455_v49, %v16456_v41 }
 0x62c   :  { %16451 = vst [vmem:[#allocation239_spill] sm:$0xff] %v13053_v23  ;;  %v3640_v46 = vpop.f32.mrb[94].mxu1 }
 0x62d   :  { %v13058_v57 = vadd.f32 %v3640_v46, %v12413_v6  ;;  %v3642_v60 = vpop.f32.mrb[95].mxu1  ;;  %v13071_v37 = vmax.f32 %v16457_v55, %v16454_v12  ;;  %v16463_v12 = vmax.f32 %v12875_v26, %v12879_v1  ;;  %v16464_v55 = vld [vmem:[#allocation88_spill] sm:$0xff] }
 0x62e   :  { %v13061_v61 = vadd.f32 %v3642_v60, %v12420_v50 }
 0x62f   :  { %16452 = vst [vmem:[#allocation240_spill] sm:$0xff] %v13058_v57  ;;  %16458 = vst [vmem:[#allocation242_spill] sm:$0xff] %v13071_v37 }
 0x630   :  { %16453 = vst [vmem:[#allocation241_spill] sm:$0xff] %v13061_v61  ;;  %v3646_v36 = vpop.f32.mrb[96].mxu1 }
 0x631   :  { %v13074_v28 = vadd.f32 %v3646_v36, %v12413_v6  ;;  %v3648_v46 = vpop.f32.mrb[97].mxu1  ;;  %v16465_v36 = vld [vmem:[#allocation89_spill] sm:$0xff] }
 0x632   :  { %v13077_v23 = vadd.f32 %v3648_v46, %v12420_v50  ;;  %v16466_v20 = vmax.f32 %v16464_v55, %v16465_v36  ;;  %v16484_v46 = vld [vmem:[#allocation92_spill] sm:$0xff] }
 0x633   :  { %16459 = vst [vmem:[#allocation243_spill] sm:$0xff] %v13074_v28 }
 0x634   :  { %16460 = vst [vmem:[#allocation244_spill] sm:$0xff] %v13077_v23  ;;  %v3652_v51 = vpop.f32.mrb[98].mxu1  ;;  %v13093_v43 = vmax.f32 %v16466_v20, %v16463_v12 }
 0x635   :  { %v13082_v35 = vadd.f32 %v3652_v51, %v12413_v6  ;;  %v3654_v61 = vpop.f32.mrb[99].mxu1 }
 0x636   :  { %v13085_v57 = vadd.f32 %v3654_v61, %v12420_v50  ;;  %16467 = vst [vmem:[#allocation247_spill] sm:$0xff] %v13093_v43 }
 0x637   :  { %16461 = vst [vmem:[#allocation245_spill] sm:$0xff] %v13082_v35 }
 0x638   :  { %16462 = vst [vmem:[#allocation246_spill] sm:$0xff] %v13085_v57  ;;  %v3658_v60 = vpop.f32.mrb[100].mxu1 }
 0x639   :  { %v13098_v23 = vadd.f32 %v3658_v60, %v12413_v6  ;;  %v3660_v51 = vpop.f32.mrb[101].mxu1 }
 0x63a   :  { %v13101_v28 = vadd.f32 %v3660_v51, %v12420_v50 }
 0x63b   :  { %16468 = vst [vmem:[#allocation248_spill] sm:$0xff] %v13098_v23 }
 0x63c   :  { %16469 = vst [vmem:[#allocation249_spill] sm:$0xff] %v13101_v28  ;;  %v3664_v1 = vpop.f32.mrb[102].mxu1 }
 0x63d   :  { %v13106_v26 = vadd.f32 %v3664_v1, %v12413_v6  ;;  %v3666_v20 = vpop.f32.mrb[103].mxu1 }
 0x63e   :  { %v13109_v12 = vadd.f32 %v3666_v20, %v12420_v50 }
 0x63f   :  { %16470 = vst [vmem:[#allocation250_spill] sm:$0xff] %v13106_v26  ;;  %v16478_v26 = vld [vmem:[#allocation95_spill] sm:$0xff] }
 0x640   :  { %16471 = vst [vmem:[#allocation251_spill] sm:$0xff] %v13109_v12  ;;  %v3670_v60 = vpop.f32.mrb[104].mxu1  ;;  %v16476_v12 = vmax.f32 %v12915_v31, %v12919_v19 }
 0x641   :  { %v13114_v57 = vadd.f32 %v3670_v60, %v12413_v6  ;;  %v3672_v51 = vpop.f32.mrb[105].mxu1 }
 0x642   :  { %v13117_v35 = vadd.f32 %v3672_v51, %v12420_v50  ;;  %v16477_v51 = vld [vmem:[#allocation94_spill] sm:$0xff] }
 0x643   :  { %16472 = vst [vmem:[#allocation252_spill] sm:$0xff] %v13114_v57  ;;  %v16479_v36 = vmax.f32 %v16477_v51, %v16478_v26  ;;  %v16485_v57 = vld [vmem:[#allocation93_spill] sm:$0xff]  ;;  %v16537_v26 = vld [vmem:[#allocation154_spill] sm:$0xff] }
 0x644   :  { %16473 = vst [vmem:[#allocation253_spill] sm:$0xff] %v13117_v35  ;;  %v3676_v1 = vpop.f32.mrb[106].mxu1 }
 0x645   :  { %v13122_v28 = vadd.f32 %v3676_v1, %v12413_v6  ;;  %v3678_v20 = vpop.f32.mrb[107].mxu1  ;;  %v13135_v55 = vmax.f32 %v16479_v36, %v16476_v12 }
 0x646   :  { %v13125_v23 = vadd.f32 %v3678_v20, %v12420_v50  ;;  %v16483_v20 = vmax.f32 %v12905_v29, %v12909_v5 }
 0x647   :  { %16474 = vst [vmem:[#allocation254_spill] sm:$0xff] %v13122_v28  ;;  %16480 = vst [vmem:[#allocation256_spill] sm:$0xff] %v13135_v55 }
 0x648   :  { %16475 = vst [vmem:[#allocation255_spill] sm:$0xff] %v13125_v23  ;;  %v3682_v60 = vpop.f32.mrb[108].mxu1  ;;  %v16486_v23 = vmax.f32 %v16484_v46, %v16485_v57  ;;  %v16503_v57 = vld [vmem:[#allocation96_spill] sm:$0xff]  ;;  %v16504_v46 = vld [vmem:[#allocation97_spill] sm:$0xff] }
 0x649   :  { %v13138_v61 = vadd.f32 %v3682_v60, %v12413_v6  ;;  %v3684_v1 = vpop.f32.mrb[109].mxu1 }
 0x64a   :  { %v13141_v35 = vadd.f32 %v3684_v1, %v12420_v50  ;;  %v13149_v28 = vmax.f32 %v16486_v23, %v16483_v20  ;;  %v16498_v1 = vld [vmem:[#allocation98_spill] sm:$0xff] }
 0x64b   :  { %16481 = vst [vmem:[#allocation257_spill] sm:$0xff] %v13138_v61 }
 0x64c   :  { %16482 = vst [vmem:[#allocation258_spill] sm:$0xff] %v13141_v35  ;;  %16487 = vst [vmem:[#allocation259_spill] sm:$0xff] %v13149_v28  ;;  %v3688_v36 = vpop.f32.mrb[110].mxu1  ;;  %v16505_v28 = vmax.f32 %v16503_v57, %v16504_v46  ;;  %v16516_v57 = vld [vmem:[#allocation151_spill] sm:$0xff] }
 0x64d   :  { %v13154_v12 = vadd.f32 %v3688_v36, %v12413_v6  ;;  %v3690_v60 = vpop.f32.mrb[111].mxu1 }
 0x64e   :  { %v13157_v31 = vadd.f32 %v3690_v60, %v12420_v50 }
 0x64f   :  { %16488 = vst [vmem:[#allocation260_spill] sm:$0xff] %v13154_v12 }
 0x650   :  { %16489 = vst [vmem:[#allocation261_spill] sm:$0xff] %v13157_v31  ;;  %v3694_v5 = vpop.f32.mrb[112].mxu1 }
 0x651   :  { %v13162_v29 = vadd.f32 %v3694_v5, %v12413_v6  ;;  %v3696_v23 = vpop.f32.mrb[113].mxu1 }
 0x652   :  { %v13165_v20 = vadd.f32 %v3696_v23, %v12420_v50 }
 0x653   :  { %16490 = vst [vmem:[#allocation262_spill] sm:$0xff] %v13162_v29  ;;  %v16497_v29 = vmax.f32 %v12935_v48, %v12939_v14 }
 0x654   :  { %16491 = vst [vmem:[#allocation263_spill] sm:$0xff] %v13165_v20  ;;  %v3700_v36 = vpop.f32.mrb[114].mxu1 }
 0x655   :  { %v13170_v35 = vadd.f32 %v3700_v36, %v12413_v6  ;;  %v3702_v60 = vpop.f32.mrb[115].mxu1 }
 0x656   :  { %v13173_v61 = vadd.f32 %v3702_v60, %v12420_v50 }
 0x657   :  { %16492 = vst [vmem:[#allocation264_spill] sm:$0xff] %v13170_v35 }
 0x658   :  { %16493 = vst [vmem:[#allocation265_spill] sm:$0xff] %v13173_v61  ;;  %v3706_v5 = vpop.f32.mrb[116].mxu1  ;;  %v16499_v61 = vld [vmem:[#allocation99_spill] sm:$0xff] }
 0x659   :  { %v13178_v31 = vadd.f32 %v3706_v5, %v12413_v6  ;;  %v3708_v23 = vpop.f32.mrb[117].mxu1  ;;  %v16500_v35 = vmax.f32 %v16498_v1, %v16499_v61  ;;  %v16531_v61 = vld [vmem:[#allocation6_spill] sm:$0xff]  ;;  %v16535_v1 = vld [vmem:[#allocation4_spill] sm:$0xff] }
 0x65a   :  { %v13181_v12 = vadd.f32 %v3708_v23, %v12420_v50  ;;  %v16502_v23 = vmax.f32 %v12925_v42, %v12929_v24 }
 0x65b   :  { %16494 = vst [vmem:[#allocation266_spill] sm:$0xff] %v13178_v31  ;;  %v13194_v5 = vmax.f32 %v16500_v35, %v16497_v29 }
 0x65c   :  { %16495 = vst [vmem:[#allocation267_spill] sm:$0xff] %v13181_v12  ;;  %v3712_v36 = vpop.f32.mrb[118].mxu1  ;;  %v13202_v19 = vmax.f32 %v16505_v28, %v16502_v23 }
 0x65d   :  { %v13186_v20 = vadd.f32 %v3712_v36, %v12413_v6  ;;  %v3714_v60 = vpop.f32.mrb[119].mxu1  ;;  %16501 = vst [vmem:[#allocation269_spill] sm:$0xff] %v13194_v5 }
 0x65e   :  { %16506 = vst [vmem:[#allocation270_spill] sm:$0xff] %v13202_v19  ;;  %v13205_v36 = vadd.f32 %v3714_v60, %v12420_v50 }
 0x65f   :  { %16496 = vst [vmem:[#allocation268_spill] sm:$0xff] %v13186_v20  ;;  %v16513_v20 = vld [vmem:[#allocation2_spill] sm:$0xff] }
 0x660   :  { %16507 = vst [vmem:[#allocation271_spill] sm:$0xff] %v13205_v36  ;;  %v3718_v31 = vpop.f32.mrb[120].mxu1  ;;  %v2836_v46 = vsub.s32 4, %v16513_v20  ;;  %v16518_v20 = vmax.f32 %v12963_v18, %v12967_v33  ;;  %v16528_v18 = vld [vmem:[#allocation160_spill] sm:$0xff] }
 0x661   :  { %v13210_v14 = vadd.f32 %v3718_v31, %v12413_v6  ;;  %v3720_v29 = vpop.f32.mrb[121].mxu1 }
 0x662   :  { %v13213_v35 = vadd.f32 %v3720_v29, %v12420_v50  ;;  %v13238_v12 = vrot.slane %v16516_v57, %v2836_v46 }
 0x663   :  { %16508 = vst [vmem:[#allocation272_spill] sm:$0xff] %v13210_v14 }
 0x664   :  { %16509 = vst [vmem:[#allocation273_spill] sm:$0xff] %v13213_v35  ;;  %v3724_v42 = vpop.f32.mrb[122].mxu1 }
 0x665   :  { %v13218_v28 = vadd.f32 %v3724_v42, %v12413_v6  ;;  %v3726_v60 = vpop.f32.mrb[123].mxu1  ;;  %v16523_v42 = vmax.f32 %v12945_v21, %v12949_v3  ;;  %v16530_v3 = vld [vmem:[#allocation5_spill] sm:$0xff] }
 0x666   :  { %v13221_v23 = vadd.f32 %v3726_v60, %v12420_v50 }
 0x667   :  { %16510 = vst [vmem:[#allocation274_spill] sm:$0xff] %v13218_v28 }
 0x668   :  { %16511 = vst [vmem:[#allocation275_spill] sm:$0xff] %v13221_v23  ;;  %v3730_v31 = vpop.f32.mrb[124].mxu1  ;;  %v16519_v23 = vld [vmem:[#allocation102_spill] sm:$0xff] }
 0x669   :  { %v13226_v36 = vadd.f32 %v3730_v31, %v12413_v6  ;;  %v3732_v29 = vpop.f32.mrb[125].mxu1 }
 0x66a   :  { %v13230_v24 = vadd.f32 %v3732_v29, %v12420_v50  ;;  %v16520_v29 = vld [vmem:[#allocation103_spill] sm:$0xff] }
 0x66b   :  { %16512 = vst [vmem:[#allocation276_spill] sm:$0xff] %v13226_v36  ;;  %v16521_v28 = vmax.f32 %v16519_v23, %v16520_v29 }
 0x66c   :  { %16514 = vst [vmem:[#allocation2_spill] sm:$0xff] %v13230_v24  ;;  %v3736_v35 = vpop.f32.mrb[126].mxu1 }
 0x66d   :  { %v13235_v60 = vadd.f32 %v3736_v35, %v12413_v6  ;;  %v3738_v14 = vpop.f32.mrb[127].mxu1  ;;  %v13249_v48 = vmax.f32 %v16521_v28, %v16518_v20  ;;  %v16524_v6 = vld [vmem:[#allocation100_spill] sm:$0xff]  ;;  %v16525_v35 = vld [vmem:[#allocation101_spill] sm:$0xff] }
 0x66e   :  { %v13241_v31 = vadd.f32 %v3738_v14, %v12420_v50  ;;  %v16526_v24 = vmax.f32 %v16524_v6, %v16525_v35  ;;  %v16529_v20 = vld [vmem:[#allocation157_spill] sm:$0xff]  ;;  %v16533_v6 = vld [vmem:[#allocation156_spill] sm:$0xff] }
 0x66f   :  { %16515 = vst [vmem:[#allocation277_spill] sm:$0xff] %v13235_v60  ;;  %16522 = vst [vmem:[#allocation278_spill] sm:$0xff] %v13249_v48  ;;  %v16534_v60 = vld [vmem:[#allocation3_spill] sm:$0xff] }
 0x670   :  { %16517 = vst [vmem:[#allocation151_spill] sm:$0xff] %v13241_v31  ;;  %v13257_v36 = vmax.f32 %v16526_v24, %v16523_v42  ;;  %v6693_v14 = vpop.f32.mrb[128].mxu1  ;;  %v16532_v24 = vld [vmem:[#allocation155_spill] sm:$0xff] }
 0x671   :  { %v3813_v57 = vadd.f32 %v6693_v14, %v13238_v12  ;;  %v3807_v46 = vpop.f32.mrb[129].mxu1 }
 0x672   :  { %16527 = vst [vmem:[#allocation279_spill] sm:$0xff] %v13257_v36  ;;  %v3808_v33 = vadd.f32 %v3807_v46, %v13238_v12  ;;  %v16536_v46 = vld [vmem:[#allocation153_spill] sm:$0xff] }
 0x673   :  { %v4319_v28 = vmax.f32 %v16528_v18, %v3813_v57 }
 0x674   :  { %v4318_v29 = vmax.f32 %v16529_v20, %v3808_v33  ;;  %v6696_v23 = vpop.f32.mrb[130].mxu1 }
 0x675   :  { %v4383_v21 = vsub.f32 %v16530_v3, %v4319_v28  ;;  %v4575_v35 = vsub.f32 %v16531_v61, %v4319_v28  ;;  %v4767_v42 = vsub.f32 %v16532_v24, %v4319_v28  ;;  %v4959_v36 = vsub.f32 %v16533_v6, %v4319_v28  ;;  %v3817_v50 = vpop.f32.mrb[131].mxu1 }
 0x676   :  { %v5151_v31 = vsub.f32 %v3813_v57, %v4319_v28  ;;  %v4382_v14 = vsub.f32 %v16534_v60, %v4318_v29  ;;  %v4574_v48 = vsub.f32 %v16535_v1, %v4318_v29  ;;  %v4766_v19 = vsub.f32 %v16536_v46, %v4318_v29 }
 0x677   :  { %v4448_v18 = vmul.f32 1.442695, %v4383_v21  ;;  %v4640_v5 = vmul.f32 1.442695, %v4575_v35  ;;  %v4832_v20 = vmul.f32 1.442695, %v4767_v42  ;;  %v4958_v51 = vsub.f32 %v16537_v26, %v4318_v29 }
 0x678   :  { %v5024_v3 = vmul.f32 1.442695, %v4959_v36  ;;  %v5150_v55 = vsub.f32 %v3808_v33, %v4318_v29  ;;  %v5216_v61 = vmul.f32 1.442695, %v5151_v31  ;;  %v4446_v24 = vmul.f32 1.442695, %v4382_v14 }
 0x679   :  { %7557 = vpow2.f32 %v4448_v18  ;;  %v4638_v6 = vmul.f32 1.442695, %v4574_v48  ;;  %v3823_v57 = vadd.f32 %v6696_v23, %v13238_v12  ;;  %v3818_v60 = vadd.f32 %v3817_v50, %v13238_v12  ;;  %v6699_v28 = vpop.f32.mrb[132].mxu1  ;;  %v16538_v33 = vld [vmem:[#allocation166_spill] sm:$0xff]  ;;  %v16539_v31 = vld [vmem:[#allocation163_spill] sm:$0xff]  ;;  %v16542_v18 = vld [vmem:[#allocation161_spill] sm:$0xff] }
 0x67a   :  { %7559 = vpow2.f32 %v4640_v5  ;;  %v4830_v1 = vmul.f32 1.442695, %v4766_v19  ;;  %v5022_v46 = vmul.f32 1.442695, %v4958_v51  ;;  %v13276_v21 = vadd.f32 %v6699_v28, %v13238_v12  ;;  %v3827_v35 = vpop.f32.mrb[133].mxu1  ;;  %v16541_v42 = vld [vmem:[#allocation10_spill] sm:$0xff] }
 0x67b   :  { %7561 = vpow2.f32 %v4832_v20  ;;  %v5214_v26 = vmul.f32 1.442695, %v5150_v55  ;;  %v4321_v36 = vmax.f32 %v16538_v33, %v3823_v57  ;;  %v4320_v29 = vmax.f32 %v16539_v31, %v3818_v60  ;;  %v16540_v55 = vld [vmem:[#allocation9_spill] sm:$0xff]  ;;  %v16544_v28 = vld [vmem:[#allocation7_spill] sm:$0xff] }
 0x67c   :  { %7563 = vpow2.f32 %v5024_v3  ;;  %v6702_v5 = vpop.f32.mrb[134].mxu1  ;;  %v13282_v48 = vmax.f32 %v12520_v7, %v13276_v21  ;;  %v13285_v23 = vadd.f32 %v3827_v35, %v13238_v12  ;;  %v16543_v3 = vld [vmem:[#allocation162_spill] sm:$0xff] }
 0x67d   :  { %7565 = vpow2.f32 %v5216_v61  ;;  %v13288_v19 = vadd.f32 %v6702_v5, %v13238_v12  ;;  %v13290_v51 = vpop.f32.mrb[135].mxu1  ;;  %v4385_v50 = vsub.f32 %v16540_v55, %v4321_v36  ;;  %v4577_v14 = vsub.f32 %v16541_v42, %v4321_v36  ;;  %v16545_v55 = vld [vmem:[#allocation8_spill] sm:$0xff]  ;;  %v16546_v42 = vld [vmem:[#allocation158_spill] sm:$0xff] }
 0x67e   :  { %7567 = vpow2.f32 %v4446_v24  ;;  %v4769_v20 = vsub.f32 %v16542_v18, %v4321_v36  ;;  %v4961_v61 = vsub.f32 %v16543_v3, %v4321_v36  ;;  %v5153_v7 = vsub.f32 %v3823_v57, %v4321_v36  ;;  %v16547_v18 = vld [vmem:[#allocation159_spill] sm:$0xff]  ;;  %v8327_v3 = vld [vmem:[%s15513_s0 + $0x50] sm:$0xff] }
 0x67f   :  { %7569 = vpow2.f32 %v4638_v6  ;;  %v4384_v33 = vsub.f32 %v16544_v28, %v4320_v29  ;;  %v4452_v35 = vmul.f32 1.442695, %v4385_v50  ;;  %v4644_v31 = vmul.f32 1.442695, %v4577_v14 }
 0x680   :  { %7571 = vpow2.f32 %v4830_v1  ;;  %v4836_v5 = vmul.f32 1.442695, %v4769_v20  ;;  %v5028_v43 = vmul.f32 1.442695, %v4961_v61  ;;  %v5220_v41 = vmul.f32 1.442695, %v5153_v7 }
 0x681   :  { %7573 = vpow2.f32 %v5022_v46  ;;  %v4450_v24 = vmul.f32 1.442695, %v4384_v33  ;;  %v4576_v49 = vsub.f32 %v16545_v55, %v4320_v29  ;;  %v4768_v37 = vsub.f32 %v16546_v42, %v4320_v29  ;;  %v13300_v16 = vpop.f32.mrb[136].mxu1  ;;  %v16548_v1 = vld [vmem:[#allocation13_spill] sm:$0xff]  ;;  %v16549_v46 = vld [vmem:[#allocation14_spill] sm:$0xff] }
 0x682   :  { %7575 = vpow2.f32 %v5214_v26  ;;  %v4960_v6 = vsub.f32 %v16547_v18, %v4320_v29  ;;  %v5152_v36 = vsub.f32 %v3818_v60, %v4320_v29  ;;  %v4387_v50 = vsub.f32 %v16548_v1, %v13282_v48  ;;  %v13306_v20 = vpop.f32.mrb[137].mxu1 }
 0x683   :  { %v7558_v57 = vpop.eup %7557  ;;  %7577 = vpow2.f32 %v4452_v35  ;;  %v4579_v14 = vsub.f32 %v16549_v46, %v13282_v48  ;;  %v4642_v7 = vmul.f32 1.442695, %v4576_v49  ;;  %v4834_v28 = vmul.f32 1.442695, %v4768_v37  ;;  %v8328_v35 = vld [vmem:[%s15513_s0 + $0x70] sm:$0xff] }
 0x684   :  { %v7560_v26 = vpop.eup %7559  ;;  %v5663_v61 = vmul.f32 %v8327_v3, %v7558_v57  ;;  %7579 = vpow2.f32 %v4644_v31  ;;  %v13311_v33 = vpop.f32.mrb[138].mxu1  ;;  %v5026_v42 = vmul.f32 1.442695, %v4960_v6  ;;  %v8329_v31 = vld [vmem:[%s15513_s0 + $0x80] sm:$0xff]  ;;  %v5218_v37 = vmul.f32 1.442695, %v5152_v36 }
 0x685   :  { %v7562_v60 = vpop.eup %7561  ;;  %v5343_v29 = vadd.f32 %v7560_v26, %v7558_v57  ;;  %v5727_v55 = vmul.f32 %v8328_v35, %v7560_v26  ;;  %7581 = vpow2.f32 %v4836_v5  ;;  %v13316_v18 = vpop.f32.mrb[139].mxu1  ;;  %v4456_v46 = vmul.f32 1.442695, %v4387_v50  ;;  %v8330_v26 = vld [vmem:[%s15513_s0 + $0x60] sm:$0xff]  ;;  %v8331_v35 = vld [vmem:[%s15513_s0 + $0x68] sm:$0xff] }
 0x686   :  { %v7564_v1 = vpop.eup %7563  ;;  %v5855_v49 = vmul.f32 %v8329_v31, %v7562_v60  ;;  %7583 = vpow2.f32 %v5028_v43  ;;  %v4648_v31 = vmul.f32 1.442695, %v4579_v14  ;;  %v16550_v43 = vld [vmem:[#allocation167_spill] sm:$0xff] }
 0x687   :  { %v7566_v3 = vpop.eup %7565  ;;  %v5407_v57 = vadd.f32 %v7562_v60, %v5343_v29  ;;  %v5791_v30 = vadd.f32 %v5727_v55, %v5663_v61  ;;  %v5983_v5 = vmul.f32 %v8330_v26, %v7564_v1  ;;  %7585 = vpow2.f32 %v5220_v41  ;;  %v8332_v41 = vld [vmem:[%s15513_s0 + $0x8] sm:$0xff] }
 0x688   :  { %v7568_v6 = vpop.eup %7567  ;;  %v6111_v63 = vmul.f32 %v8331_v35, %v7566_v3  ;;  %7587 = vpow2.f32 %v4450_v24  ;;  %v4771_v36 = vsub.f32 %v16550_v43, %v13282_v48  ;;  %v13329_v50 = vpop.f32.mrb[140].mxu1  ;;  %v8333_v24 = vld [vmem:[%s15513_s0 + $0x28] sm:$0xff] }
 0x689   :  { %v7570_v61 = vpop.eup %7569  ;;  %v5471_v60 = vadd.f32 %v7564_v1, %v5407_v57  ;;  %v5919_v29 = vadd.f32 %v5855_v49, %v5791_v30  ;;  %v5662_v55 = vmul.f32 %v8332_v41, %v7568_v6  ;;  %7589 = vpow2.f32 %v4642_v7  ;;  %v13334_v26 = vpop.f32.mrb[141].mxu1  ;;  %v8334_v49 = vld [vmem:[%s15513_s0 + $0x38] sm:$0xff] }
 0x68a   :  { %v7572_v22 = vpop.eup %7571  ;;  %v5342_v35 = vadd.f32 %v7570_v61, %v7568_v6  ;;  %v5726_v14 = vmul.f32 %v8333_v24, %v7570_v61  ;;  %7591 = vpow2.f32 %v4834_v28  ;;  %v4840_v43 = vmul.f32 1.442695, %v4771_v36  ;;  %v8335_v6 = vld [vmem:[%s15513_s0 + $0x18] sm:$0xff] }
 0x68b   :  { %v7574_v0 = vpop.eup %7573  ;;  %v5535_v1 = vadd.f32 %v7566_v3, %v5471_v60  ;;  %v6047_v30 = vadd.f32 %v5983_v5, %v5919_v29  ;;  %v5854_v57 = vmul.f32 %v8334_v49, %v7572_v22  ;;  %7593 = vpow2.f32 %v5026_v42  ;;  %v8336_v5 = vld [vmem:[%s15513_s0 + $0x20] sm:$0xff] }
 0x68c   :  { %v7576_v7 = vpop.eup %7575  ;;  %v5406_v41 = vadd.f32 %v7572_v22, %v5342_v35  ;;  %v5790_v9 = vadd.f32 %v5726_v14, %v5662_v55  ;;  %v5982_v4 = vmul.f32 %v8335_v6, %v7574_v0  ;;  %7595 = vpow2.f32 %v5218_v37  ;;  %v13345_v28 = vpop.f32.mrb[142].mxu1  ;;  %v16551_v22 = vld [vmem:[#allocation168_spill] sm:$0xff]  ;;  %v8337_v37 = vld [vmem:[%s15513_s0 + $0xe0] sm:$0xff] }
 0x68d   :  { %v7578_v36 = vpop.eup %7577  ;;  %7597 = vrcp.f32 %v5535_v1  ;;  %v13347_v3 = vadd.f32 %v6111_v63, %v6047_v30  ;;  %v6110_v42 = vmul.f32 %v8336_v5, %v7576_v7  ;;  %v4963_v61 = vsub.f32 %v16551_v22, %v13282_v48  ;;  %v13354_v60 = vpop.f32.mrb[143].mxu1  ;;  %v8338_v1 = vld [vmem:[%s15513_s0 + $0x100] sm:$0xff] }
 0x68e   :  { %v7580_v29 = vpop.eup %7579  ;;  %v5470_v55 = vadd.f32 %v7574_v0, %v5406_v41  ;;  %v5918_v35 = vadd.f32 %v5854_v57, %v5790_v9  ;;  %v5665_v24 = vmul.f32 %v8337_v37, %v7578_v36  ;;  %7599 = vpow2.f32 %v4456_v46  ;;  %v8339_v9 = vld [vmem:[%s15513_s0 + $0x110] sm:$0xff] }
 0x68f   :  { %v7582_v63 = vpop.eup %7581  ;;  %v5345_v14 = vadd.f32 %v7580_v29, %v7578_v36  ;;  %v5729_v30 = vmul.f32 %v8338_v1, %v7580_v29  ;;  %7601 = vpow2.f32 %v4648_v31  ;;  %v5032_v49 = vmul.f32 1.442695, %v4963_v61  ;;  %v8340_v29 = vld [vmem:[%s15513_s0 + $0xf0] sm:$0xff] }
 0x690   :  { %v7584_v6 = vpop.eup %7583  ;;  %v5534_v5 = vadd.f32 %v7576_v7, %v5470_v55  ;;  %v6046_v22 = vadd.f32 %v5982_v4, %v5918_v35  ;;  %v5857_v0 = vmul.f32 %v8339_v9, %v7582_v63  ;;  %7603 = vpow2.f32 %v4840_v43  ;;  %v13365_v57 = vpop.f32.mrb[144].mxu1  ;;  %v8341_v43 = vld [vmem:[%s15513_s0 + $0xf8] sm:$0xff] }
 0x691   :  { %v7586_v46 = vpop.eup %7585  ;;  %v5409_v41 = vadd.f32 %v7582_v63, %v5345_v14  ;;  %v5793_v36 = vadd.f32 %v5729_v30, %v5665_v24  ;;  %v5985_v31 = vmul.f32 %v8340_v29, %v7584_v6  ;;  %7605 = vpow2.f32 %v5032_v49  ;;  %v13370_v61 = vpop.f32.mrb[145].mxu1  ;;  %v8342_v14 = vld [vmem:[%s15513_s0 + $0x98] sm:$0xff] }
 0x692   :  { %v7588_v4 = vpop.eup %7587  ;;  %7607 = vrcp.f32 %v5534_v5  ;;  %v13372_v7 = vadd.f32 %v6110_v42, %v6046_v22  ;;  %v6113_v55 = vmul.f32 %v8341_v43, %v7586_v46  ;;  %v5155_v35 = vsub.f32 %v13276_v21, %v13282_v48  ;;  %v16552_v30 = vld [vmem:[#allocation169_spill] sm:$0xff]  ;;  %v16553_v48 = vld [vmem:[#allocation176_spill] sm:$0xff]  ;;  %v8344_v43 = vld [vmem:[%s15513_s0 + $0xc8] sm:$0xff] }
 0x693   :  { %v7590_v37 = vpop.eup %7589  ;;  %v5473_v24 = vadd.f32 %v7584_v6, %v5409_v41  ;;  %v5921_v63 = vadd.f32 %v5857_v0, %v5793_v36  ;;  %v5664_v1 = vmul.f32 %v8342_v14, %v7588_v4  ;;  %v13384_v42 = vmax.f32 %v16552_v30, %v13285_v23  ;;  %v8343_v22 = vld [vmem:[%s15513_s0 + $0xb8] sm:$0xff]  ;;  %v16554_v14 = vld [vmem:[#allocation11_spill] sm:$0xff] }
 0x694   :  { %v7592_v49 = vpop.eup %7591  ;;  %v5344_v5 = vadd.f32 %v7590_v37, %v7588_v4  ;;  %v5728_v9 = vmul.f32 %v8343_v22, %v7590_v37  ;;  %v5224_v21 = vmul.f32 1.442695, %v5155_v35  ;;  %v13391_v6 = vmax.f32 %v16553_v48, %v13288_v19  ;;  %v13393_v0 = vpop.f32.mrb[146].mxu1  ;;  %v8345_v48 = vld [vmem:[%s15513_s0 + $0xa8] sm:$0xff] }
 0x695   :  { %v7594_v41 = vpop.eup %7593  ;;  %v5537_v36 = vadd.f32 %v7586_v46, %v5473_v24  ;;  %v6049_v29 = vadd.f32 %v5985_v31, %v5921_v63  ;;  %v5856_v4 = vmul.f32 %v8344_v43, %v7592_v49  ;;  %v4386_v30 = vsub.f32 %v16554_v14, %v13384_v42  ;;  %v13400_v39 = vpop.f32.mrb[147].mxu1  ;;  %v8346_v24 = vld [vmem:[%s15513_s0 + $0xb0] sm:$0xff] }
 0x696   :  { %v7596_v35 = vpop.eup %7595  ;;  %v5408_v37 = vadd.f32 %v7592_v49, %v5344_v5  ;;  %v5792_v22 = vadd.f32 %v5728_v9, %v5664_v1  ;;  %v5984_v53 = vmul.f32 %v8345_v48, %v7594_v41  ;;  %7609 = vpow2.f32 %v5224_v21  ;;  %v16555_v5 = vld [vmem:[#allocation12_spill] sm:$0xff]  ;;  %v16557_v48 = vld [vmem:[#allocation165_spill] sm:$0xff] }
 0x697   :  { %v7598_v46 = vpop.eup %7597  ;;  %7611 = vrcp.f32 %v5537_v36  ;;  %v6177_v31 = vadd.f32 %v6113_v55, %v6049_v29  ;;  %v6112_v63 = vmul.f32 %v8346_v24, %v7596_v35  ;;  %v4454_v43 = vmul.f32 1.442695, %v4386_v30  ;;  %v8347_v55 = vld [vmem:[%s15513_s0 + $0x170] sm:$0xff] }
 0x698   :  { %v7600_v14 = vpop.eup %7599  ;;  %v6239_v59 = vmul.f32 %v7598_v46, %v13347_v3  ;;  %v5472_v49 = vadd.f32 %v7594_v41, %v5408_v37  ;;  %v5920_v1 = vadd.f32 %v5856_v4, %v5792_v22  ;;  %v4578_v9 = vsub.f32 %v16555_v5, %v13384_v42  ;;  %v13411_v52 = vpop.f32.mrb[148].mxu1  ;;  %v16556_v29 = vld [vmem:[#allocation164_spill] sm:$0xff] }
 0x699   :  { %v7602_v21 = vpop.eup %7601  ;;  %v5667_v36 = vmul.f32 %v8347_v55, %v7600_v14  ;;  %7613 = vpow2.f32 %v4454_v43  ;;  %v4770_v30 = vsub.f32 %v16556_v29, %v13384_v42  ;;  %v4962_v3 = vsub.f32 %v16557_v48, %v13384_v42  ;;  %v13420_v41 = vpop.f32.mrb[149].mxu1  ;;  %v8348_v24 = vld [vmem:[%s15513_s0 + $0x190] sm:$0xff]  ;;  %v8349_v55 = vld [vmem:[%s15513_s0 + $0x1a0] sm:$0xff] }
 0x69a   :  { %v7604_v4 = vpop.eup %7603  ;;  %6303 = vst [vmem:[%s15517_s5 + $0x8] sm:$0xff] %v6239_v59  ;;  %v5536_v37 = vadd.f32 %v7596_v35, %v5472_v49  ;;  %v6048_v22 = vadd.f32 %v5984_v53, %v5920_v1  ;;  %v5347_v46 = vadd.f32 %v7602_v21, %v7600_v14  ;;  %v5731_v43 = vmul.f32 %v8348_v24, %v7602_v21  ;;  %v8350_v1 = vld [vmem:[%s15513_s0 + $0x180] sm:$0xff]  ;;  %v16561_v24 = vld [vmem:[#allocation172_spill] sm:$0xff] }
 0x69b   :  { %v7606_v5 = vpop.eup %7605  ;;  %v5859_v29 = vmul.f32 %v8349_v55, %v7604_v4  ;;  %v4646_v48 = vmul.f32 1.442695, %v4578_v9  ;;  %v4838_v54 = vmul.f32 1.442695, %v4770_v30  ;;  %v5030_v2 = vmul.f32 1.442695, %v4962_v3 }
 0x69c   :  { %v7608_v34 = vpop.eup %7607  ;;  %7615 = vrcp.f32 %v5536_v37  ;;  %v6176_v59 = vadd.f32 %v6112_v63, %v6048_v22  ;;  %v5411_v35 = vadd.f32 %v7604_v4, %v5347_v46  ;;  %v5795_v53 = vadd.f32 %v5731_v43, %v5667_v36  ;;  %v13431_v14 = vpop.f32.mrb[150].mxu1  ;;  %v16558_v63 = vld [vmem:[#allocation17_spill] sm:$0xff]  ;;  %v16560_v37 = vld [vmem:[#allocation171_spill] sm:$0xff] }
 0x69d   :  { %v6238_v49 = vmul.f32 %v7608_v34, %v13372_v7  ;;  %v5987_v21 = vmul.f32 %v8350_v1, %v7606_v5  ;;  %7617 = vpow2.f32 %v4646_v48  ;;  %v5154_v9 = vsub.f32 %v13285_v23, %v13384_v42  ;;  %v16559_v7 = vld [vmem:[#allocation18_spill] sm:$0xff]  ;;  %v13448_v46 = vpop.f32.mrb[151].mxu1 }
 0x69e   :  { %v5475_v30 = vadd.f32 %v7606_v5, %v5411_v35  ;;  %v5923_v3 = vadd.f32 %v5859_v29, %v5795_v53  ;;  %7619 = vpow2.f32 %v4838_v54  ;;  %v4389_v4 = vsub.f32 %v16558_v63, %v13391_v6  ;;  %v8351_v29 = vld [vmem:[%s15513_s0 + $0x188] sm:$0xff] }
 0x69f   :  { %6302 = vst [vmem:[%s15517_s5] sm:$0xff] %v6238_v49  ;;  %7621 = vpow2.f32 %v5030_v2  ;;  %v5222_v34 = vmul.f32 1.442695, %v5154_v9  ;;  %v4581_v36 = vsub.f32 %v16559_v7, %v13391_v6  ;;  %v4773_v22 = vsub.f32 %v16560_v37, %v13391_v6 }
 0x6a0   :  { %v7610_v23 = vpop.eup %7609  ;;  %v6051_v42 = vadd.f32 %v5987_v21, %v5923_v3  ;;  %v4460_v54 = vmul.f32 1.442695, %v4389_v4  ;;  %v4965_v43 = vsub.f32 %v16561_v24, %v13391_v6  ;;  %v5157_v5 = vsub.f32 %v13288_v19, %v13391_v6  ;;  %v8352_v6 = vld [vmem:[%s15513_s0 + $0x128] sm:$0xff] }
 0x6a1   :  { %v7612_v55 = vpop.eup %7611  ;;  %v5539_v2 = vadd.f32 %v7610_v23, %v5475_v30  ;;  %v6115_v48 = vmul.f32 %v8351_v29, %v7610_v23  ;;  %7623 = vpow2.f32 %v5222_v34  ;;  %v4652_v35 = vmul.f32 1.442695, %v4581_v36 }
 0x6a2   :  { %v6241_v53 = vmul.f32 %v7612_v55, %v6177_v31  ;;  %7625 = vpow2.f32 %v4460_v54  ;;  %v4844_v49 = vmul.f32 1.442695, %v4773_v22  ;;  %v5036_v1 = vmul.f32 1.442695, %v4965_v43  ;;  %v16565_v54 = vld [vmem:[#allocation41_spill] sm:$0xff] }
 0x6a3   :  { %v7614_v21 = vpop.eup %7613  ;;  %7627 = vrcp.f32 %v5539_v2  ;;  %v6179_v9 = vadd.f32 %v6115_v48, %v6051_v42  ;;  %v5228_v3 = vmul.f32 1.442695, %v5157_v5  ;;  %v3838_v19 = vadd.f32 %v13290_v51, %v13238_v12  ;;  %v16562_v51 = vld [vmem:[#allocation173_spill] sm:$0xff]  ;;  %v16564_v42 = vld [vmem:[#allocation16_spill] sm:$0xff]  ;;  %v16566_v2 = vld [vmem:[#allocation170_spill] sm:$0xff] }
 0x6a4   :  { %6305 = vst [vmem:[%s15517_s5 + $0x18] sm:$0xff] %v6241_v53  ;;  %v5666_v30 = vmul.f32 %v8352_v6, %v7614_v21  ;;  %7629 = vpow2.f32 %v4652_v35  ;;  %v13467_v31 = vadd.f32 %v13300_v16, %v13238_v12  ;;  %v13471_v63 = vadd.f32 %v13306_v20, %v13238_v12  ;;  %v16563_v20 = vld [vmem:[#allocation179_spill] sm:$0xff] }
 0x6a5   :  { %7631 = vpow2.f32 %v4844_v49  ;;  %v4324_v4 = vmax.f32 %v16562_v51, %v3838_v19  ;;  %v13476_v34 = vadd.f32 %v13311_v33, %v13238_v12  ;;  %v13480_v7 = vadd.f32 %v13316_v18, %v13238_v12  ;;  %v16567_v48 = vld [vmem:[#allocation15_spill] sm:$0xff] }
 0x6a6   :  { %v7616_v36 = vpop.eup %7615  ;;  %7633 = vpow2.f32 %v5036_v1  ;;  %v13484_v16 = vmax.f32 %v12580_v17, %v13467_v31  ;;  %v13488_v37 = vmax.f32 %v16563_v20, %v13471_v63  ;;  %v13492_v22 = vadd.f32 %v13329_v50, %v13238_v12  ;;  %v8353_v17 = vld [vmem:[%s15513_s0 + $0x148] sm:$0xff] }
 0x6a7   :  { %v7618_v33 = vpop.eup %7617  ;;  %v6240_v23 = vmul.f32 %v7616_v36, %v6176_v59  ;;  %7635 = vpow2.f32 %v5228_v3  ;;  %v4388_v18 = vsub.f32 %v16564_v42, %v4324_v4  ;;  %v4580_v24 = vsub.f32 %v16565_v54, %v4324_v4  ;;  %v8354_v59 = vld [vmem:[%s15513_s0 + $0x158] sm:$0xff]  ;;  %v13507_v3 = vpop.f32.mrb[152].mxu1 }
 0x6a8   :  { %v7620_v43 = vpop.eup %7619  ;;  %v5346_v5 = vadd.f32 %v7618_v33, %v7614_v21  ;;  %v5730_v55 = vmul.f32 %v8353_v17, %v7618_v33  ;;  %v4772_v29 = vsub.f32 %v16566_v2, %v4324_v4  ;;  %v4964_v35 = vsub.f32 %v16567_v48, %v4324_v4  ;;  %v8355_v36 = vld [vmem:[%s15513_s0 + $0x138] sm:$0xff] }
 0x6a9   :  { %v7622_v50 = vpop.eup %7621  ;;  %6304 = vst [vmem:[%s15517_s5 + $0x10] sm:$0xff] %v6240_v23  ;;  %v5858_v53 = vmul.f32 %v8354_v59, %v7620_v43  ;;  %v4458_v49 = vmul.f32 1.442695, %v4388_v18  ;;  %v4650_v1 = vmul.f32 1.442695, %v4580_v24  ;;  %v5156_v21 = vsub.f32 %v3838_v19, %v4324_v4 }
 0x6aa   :  { %v5410_v6 = vadd.f32 %v7620_v43, %v5346_v5  ;;  %v5794_v51 = vadd.f32 %v5730_v55, %v5666_v30  ;;  %v5986_v20 = vmul.f32 %v8355_v36, %v7622_v50  ;;  %v4842_v33 = vmul.f32 1.442695, %v4772_v29  ;;  %v8356_v30 = vld [vmem:[%s15513_s0 + $0x140] sm:$0xff]  ;;  %v16568_v29 = vld [vmem:[#allocation21_spill] sm:$0xff] }
 0x6ab   :  { %v7624_v42 = vpop.eup %7623  ;;  %7637 = vpow2.f32 %v4458_v49  ;;  %v5034_v23 = vmul.f32 1.442695, %v4964_v35  ;;  %v5226_v54 = vmul.f32 1.442695, %v5156_v21  ;;  %v4391_v17 = vsub.f32 %v16275_v32, %v13484_v16  ;;  %v8357_v5 = vld [vmem:[%s15513_s0 + $0x200] sm:$0xff] }
 0x6ac   :  { %v7626_v18 = vpop.eup %7625  ;;  %v5474_v24 = vadd.f32 %v7622_v50, %v5410_v6  ;;  %v5922_v19 = vadd.f32 %v5858_v53, %v5794_v51  ;;  %v6114_v4 = vmul.f32 %v8356_v30, %v7624_v42  ;;  %7639 = vpow2.f32 %v4650_v1  ;;  %v8358_v1 = vld [vmem:[%s15513_s0 + $0x220] sm:$0xff]  ;;  %v8361_v30 = vld [vmem:[%s15513_s0 + $0x218] sm:$0xff] }
 0x6ad   :  { %v7628_v43 = vpop.eup %7627  ;;  %v5669_v55 = vmul.f32 %v8357_v5, %v7626_v18  ;;  %7641 = vpow2.f32 %v4842_v33  ;;  %v4464_v2 = vmul.f32 1.442695, %v4391_v17  ;;  %v4583_v32 = vsub.f32 %v16568_v29, %v13484_v16  ;;  %v16569_v33 = vld [vmem:[#allocation177_spill] sm:$0xff]  ;;  %v16570_v5 = vld [vmem:[#allocation178_spill] sm:$0xff] }
 0x6ae   :  { %v7630_v48 = vpop.eup %7629  ;;  %v6243_v35 = vmul.f32 %v7628_v43, %v6179_v9  ;;  %v5538_v50 = vadd.f32 %v7624_v42, %v5474_v24  ;;  %v6050_v59 = vadd.f32 %v5986_v20, %v5922_v19  ;;  %7643 = vpow2.f32 %v5034_v23  ;;  %v8359_v9 = vld [vmem:[%s15513_s0 + $0x230] sm:$0xff]  ;;  %v13533_v23 = vpop.f32.mrb[153].mxu1 }
 0x6af   :  { %v7632_v53 = vpop.eup %7631  ;;  %v5349_v49 = vadd.f32 %v7630_v48, %v7626_v18  ;;  %v5733_v21 = vmul.f32 %v8358_v1, %v7630_v48  ;;  %7645 = vpow2.f32 %v5226_v54  ;;  %v4656_v6 = vmul.f32 1.442695, %v4583_v32  ;;  %v8360_v24 = vld [vmem:[%s15513_s0 + $0x210] sm:$0xff] }
 0x6b0   :  { %v7634_v51 = vpop.eup %7633  ;;  %6307 = vst [vmem:[%s15517_s5 + $0x28] sm:$0xff] %v6243_v35  ;;  %7647 = vrcp.f32 %v5538_v50  ;;  %v6178_v36 = vadd.f32 %v6114_v4, %v6050_v59  ;;  %v5861_v20 = vmul.f32 %v8359_v9, %v7632_v53  ;;  %v4775_v42 = vsub.f32 %v16569_v33, %v13484_v16  ;;  %v16571_v35 = vld [vmem:[#allocation19_spill] sm:$0xff]  ;;  %v16572_v59 = vld [vmem:[#allocation20_spill] sm:$0xff] }
 0x6b1   :  { %v7636_v17 = vpop.eup %7635  ;;  %v5413_v54 = vadd.f32 %v7632_v53, %v5349_v49  ;;  %v5797_v18 = vadd.f32 %v5733_v21, %v5669_v55  ;;  %v5989_v19 = vmul.f32 %v8360_v24, %v7634_v51  ;;  %7649 = vpow2.f32 %v4464_v2  ;;  %v16573_v49 = vld [vmem:[#allocation174_spill] sm:$0xff] }
 0x6b2   :  { %v6117_v4 = vmul.f32 %v8361_v30, %v7636_v17  ;;  %7651 = vpow2.f32 %v4656_v6  ;;  %v4848_v43 = vmul.f32 1.442695, %v4775_v42  ;;  %v4967_v29 = vsub.f32 %v16570_v5, %v13484_v16  ;;  %v8364_v5 = vld [vmem:[%s15513_s0 + $0x1e8] sm:$0xff] }
 0x6b3   :  { %v5477_v32 = vadd.f32 %v7634_v51, %v5413_v54  ;;  %v5925_v48 = vadd.f32 %v5861_v20, %v5797_v18  ;;  %v5159_v55 = vsub.f32 %v13467_v31, %v13484_v16  ;;  %v4390_v50 = vsub.f32 %v16571_v35, %v13488_v37  ;;  %v8362_v31 = vld [vmem:[%s15513_s0 + $0x1b8] sm:$0xff] }
 0x6b4   :  { %7653 = vpow2.f32 %v4848_v43  ;;  %v5040_v2 = vmul.f32 1.442695, %v4967_v29  ;;  %v4582_v53 = vsub.f32 %v16572_v59, %v13488_v37  ;;  %v4774_v1 = vsub.f32 %v16573_v49, %v13488_v37 }
 0x6b5   :  { %v7638_v21 = vpop.eup %7637  ;;  %v5541_v6 = vadd.f32 %v7636_v17, %v5477_v32  ;;  %v6053_v9 = vadd.f32 %v5989_v19, %v5925_v48  ;;  %v5232_v33 = vmul.f32 1.442695, %v5159_v55  ;;  %v4462_v51 = vmul.f32 1.442695, %v4390_v50  ;;  %v8363_v17 = vld [vmem:[%s15513_s0 + $0x1d8] sm:$0xff]  ;;  %v16574_v32 = vld [vmem:[#allocation175_spill] sm:$0xff] }
 0x6b6   :  { %v7640_v20 = vpop.eup %7639  ;;  %v5668_v16 = vmul.f32 %v8362_v31, %v7638_v21  ;;  %7655 = vpow2.f32 %v5040_v2  ;;  %v4654_v42 = vmul.f32 1.442695, %v4582_v53  ;;  %v4846_v54 = vmul.f32 1.442695, %v4774_v1  ;;  %v8365_v2 = vld [vmem:[%s15513_s0 + $0x1c8] sm:$0xff]  ;;  %v13569_v53 = vpop.f32.mrb[154].mxu1 }
 0x6b7   :  { %v7642_v18 = vpop.eup %7641  ;;  %7657 = vrcp.f32 %v5541_v6  ;;  %v13554_v24 = vadd.f32 %v6117_v4, %v6053_v9  ;;  %v5348_v30 = vadd.f32 %v7640_v20, %v7638_v21  ;;  %v5732_v19 = vmul.f32 %v8363_v17, %v7640_v20  ;;  %v8366_v1 = vld [vmem:[%s15513_s0 + $0x1d0] sm:$0xff] }
 0x6b8   :  { %v7644_v43 = vpop.eup %7643  ;;  %v5860_v29 = vmul.f32 %v8364_v5, %v7642_v18  ;;  %7659 = vpow2.f32 %v5232_v33  ;;  %v4966_v48 = vsub.f32 %v16574_v32, %v13488_v37  ;;  %v5158_v4 = vsub.f32 %v13471_v63, %v13488_v37  ;;  %v16576_v17 = vld [vmem:[#allocation24_spill] sm:$0xff]  ;;  %v16577_v32 = vld [vmem:[#allocation50_spill] sm:$0xff] }
 0x6b9   :  { %v7646_v55 = vpop.eup %7645  ;;  %v5412_v35 = vadd.f32 %v7642_v18, %v5348_v30  ;;  %v5796_v50 = vadd.f32 %v5732_v19, %v5668_v16  ;;  %v5988_v59 = vmul.f32 %v8365_v2, %v7644_v43  ;;  %7661 = vpow2.f32 %v4462_v51  ;;  %v8367_v51 = vld [vmem:[%s15513_s0 + $0x290] sm:$0xff]  ;;  %v16575_v18 = vld [vmem:[#allocation182_spill] sm:$0xff] }
 0x6ba   :  { %v7648_v49 = vpop.eup %7647  ;;  %v6116_v21 = vmul.f32 %v8366_v1, %v7646_v55  ;;  %7663 = vpow2.f32 %v4654_v42  ;;  %v5038_v6 = vmul.f32 1.442695, %v4966_v48  ;;  %v5230_v63 = vmul.f32 1.442695, %v5158_v4  ;;  %v16578_v4 = vld [vmem:[#allocation51_spill] sm:$0xff] }
 0x6bb   :  { %v7650_v37 = vpop.eup %7649  ;;  %v6242_v9 = vmul.f32 %v7648_v49, %v6178_v36  ;;  %v5476_v33 = vadd.f32 %v7644_v43, %v5412_v35  ;;  %v5924_v20 = vadd.f32 %v5860_v29, %v5796_v50  ;;  %7665 = vpow2.f32 %v4846_v54  ;;  %v8368_v43 = vld [vmem:[%s15513_s0 + $0x2b0] sm:$0xff]  ;;  %v16579_v50 = vld [vmem:[#allocation23_spill] sm:$0xff]  ;;  %v13592_v49 = vpop.f32.mrb[155].mxu1 }
 0x6bc   :  { %v7652_v31 = vpop.eup %7651  ;;  %v5671_v16 = vmul.f32 %v8367_v51, %v7650_v37  ;;  %7667 = vpow2.f32 %v5038_v6  ;;  %v4329_v30 = vmax.f32 %v16575_v18, %v13476_v34  ;;  %v13581_v42 = vmax.f32 %v16576_v17, %v13480_v7  ;;  %v8370_v18 = vld [vmem:[%s15513_s0 + $0x2a0] sm:$0xff] }
 0x6bd   :  { %6306 = vst [vmem:[%s15517_s5 + $0x20] sm:$0xff] %v6242_v9  ;;  %v5540_v36 = vadd.f32 %v7646_v55, %v5476_v33  ;;  %v6052_v54 = vadd.f32 %v5988_v59, %v5924_v20  ;;  %v5351_v19 = vadd.f32 %v7652_v31, %v7650_v37  ;;  %v5735_v5 = vmul.f32 %v8368_v43, %v7652_v31  ;;  %v8369_v37 = vld [vmem:[%s15513_s0 + $0x2c0] sm:$0xff] }
 0x6be   :  { %v7654_v29 = vpop.eup %7653  ;;  %7669 = vpow2.f32 %v5230_v63  ;;  %v4393_v48 = vsub.f32 %v16577_v32, %v4329_v30  ;;  %v4585_v35 = vsub.f32 %v16578_v4, %v4329_v30  ;;  %v4777_v2 = vsub.f32 %v16579_v50, %v4329_v30  ;;  %v8371_v4 = vld [vmem:[%s15513_s0 + $0x2a8] sm:$0xff] }
 0x6bf   :  { %7671 = vrcp.f32 %v5540_v36  ;;  %v6180_v1 = vadd.f32 %v6116_v21, %v6052_v54  ;;  %v5415_v55 = vadd.f32 %v7654_v29, %v5351_v19  ;;  %v5799_v59 = vadd.f32 %v5735_v5, %v5671_v16  ;;  %v16580_v36 = vld [vmem:[#allocation44_spill] sm:$0xff] }
 0x6c0   :  { %v7656_v6 = vpop.eup %7655  ;;  %v5863_v9 = vmul.f32 %v8369_v37, %v7654_v29  ;;  %v4468_v33 = vmul.f32 1.442695, %v4393_v48  ;;  %v4660_v63 = vmul.f32 1.442695, %v4585_v35  ;;  %v4852_v20 = vmul.f32 1.442695, %v4777_v2 }
 0x6c1   :  { %v7658_v31 = vpop.eup %7657  ;;  %v5479_v51 = vadd.f32 %v7656_v6, %v5415_v55  ;;  %v5991_v17 = vmul.f32 %v8370_v18, %v7656_v6  ;;  %v4969_v21 = vsub.f32 %v16580_v36, %v4329_v30  ;;  %v5161_v16 = vsub.f32 %v13476_v34, %v4329_v30  ;;  %v16581_v5 = vld [vmem:[#allocation48_spill] sm:$0xff]  ;;  %v8373_v37 = vld [vmem:[%s15513_s0 + $0x268] sm:$0xff] }
 0x6c2   :  { %v7660_v54 = vpop.eup %7659  ;;  %v6245_v19 = vmul.f32 %v7658_v31, %v13554_v24  ;;  %v5927_v43 = vadd.f32 %v5863_v9, %v5799_v59  ;;  %7673 = vpow2.f32 %v4468_v33  ;;  %v4392_v29 = vsub.f32 %v16581_v5, %v13581_v42  ;;  %v8372_v24 = vld [vmem:[%s15513_s0 + $0x248] sm:$0xff]  ;;  %v16583_v5 = vld [vmem:[#allocation180_spill] sm:$0xff] }
 0x6c3   :  { %v7662_v32 = vpop.eup %7661  ;;  %v5543_v48 = vadd.f32 %v7660_v54, %v5479_v51  ;;  %v6119_v35 = vmul.f32 %v8371_v4, %v7660_v54  ;;  %7675 = vpow2.f32 %v4660_v63  ;;  %v5044_v50 = vmul.f32 1.442695, %v4969_v21  ;;  %v8374_v51 = vld [vmem:[%s15513_s0 + $0x278] sm:$0xff] }
 0x6c4   :  { %v7664_v2 = vpop.eup %7663  ;;  %6309 = vst [vmem:[%s15517_s5 + $0x38] sm:$0xff] %v6245_v19  ;;  %v6055_v34 = vadd.f32 %v5991_v17, %v5927_v43  ;;  %v5670_v30 = vmul.f32 %v8372_v24, %v7662_v32  ;;  %7677 = vpow2.f32 %v4852_v20  ;;  %v5236_v55 = vmul.f32 1.442695, %v5161_v16  ;;  %v16582_v20 = vld [vmem:[#allocation49_spill] sm:$0xff] }
 0x6c5   :  { %v7666_v59 = vpop.eup %7665  ;;  %7679 = vrcp.f32 %v5543_v48  ;;  %v5350_v6 = vadd.f32 %v7664_v2, %v7662_v32  ;;  %v5734_v9 = vmul.f32 %v8373_v37, %v7664_v2  ;;  %v4466_v33 = vmul.f32 1.442695, %v4392_v29  ;;  %v8375_v16 = vld [vmem:[%s15513_s0 + $0x258] sm:$0xff]  ;;  %v16584_v32 = vld [vmem:[#allocation22_spill] sm:$0xff] }
 0x6c6   :  { %v7668_v63 = vpop.eup %7667  ;;  %v6183_v31 = vadd.f32 %v6119_v35, %v6055_v34  ;;  %v5862_v18 = vmul.f32 %v8374_v51, %v7666_v59  ;;  %7681 = vpow2.f32 %v5044_v50  ;;  %v4584_v17 = vsub.f32 %v16582_v20, %v13581_v42  ;;  %v8376_v2 = vld [vmem:[%s15513_s0 + $0x260] sm:$0xff] }
 0x6c7   :  { %v5414_v36 = vadd.f32 %v7666_v59, %v5350_v6  ;;  %v5798_v21 = vadd.f32 %v5734_v9, %v5670_v30  ;;  %v5990_v54 = vmul.f32 %v8375_v16, %v7668_v63  ;;  %7683 = vpow2.f32 %v5236_v55  ;;  %v13634_v30 = vpop.f32.mrb[156].mxu1  ;;  %v16586_v16 = vld [vmem:[#allocation54_spill] sm:$0xff] }
 0x6c8   :  { %v7670_v19 = vpop.eup %7669  ;;  %7685 = vpow2.f32 %v4466_v33  ;;  %v4658_v43 = vmul.f32 1.442695, %v4584_v17  ;;  %v4776_v29 = vsub.f32 %v16583_v5, %v13581_v42  ;;  %v4968_v48 = vsub.f32 %v16584_v32, %v13581_v42  ;;  %v8379_v32 = vld [vmem:[%s15513_s0 + $0x350] sm:$0xff] }
 0x6c9   :  { %v7672_v4 = vpop.eup %7671  ;;  %v5478_v35 = vadd.f32 %v7668_v63, %v5414_v36  ;;  %v5926_v50 = vadd.f32 %v5862_v18, %v5798_v21  ;;  %v6118_v34 = vmul.f32 %v8376_v2, %v7670_v19  ;;  %v5160_v24 = vsub.f32 %v13480_v7, %v13581_v42  ;;  %v16585_v63 = vld [vmem:[#allocation31_spill] sm:$0xff]  ;;  %v8377_v36 = vld [vmem:[%s15513_s0 + $0x320] sm:$0xff]  ;;  %v13665_v2 = vpop.f32.mrb[157].mxu1 }
 0x6ca   :  { %v6244_v55 = vmul.f32 %v7672_v4, %v6180_v1  ;;  %7687 = vpow2.f32 %v4658_v43  ;;  %v4850_v59 = vmul.f32 1.442695, %v4776_v29  ;;  %v5042_v6 = vmul.f32 1.442695, %v4968_v48 }
 0x6cb   :  { %v5542_v37 = vadd.f32 %v7670_v19, %v5478_v35  ;;  %v6054_v9 = vadd.f32 %v5990_v54, %v5926_v50  ;;  %v5234_v33 = vmul.f32 1.442695, %v5160_v24  ;;  %v4331_v51 = vmax.f32 %v16585_v63, %v13492_v22  ;;  %v16588_v35 = vld [vmem:[#allocation183_spill] sm:$0xff] }
 0x6cc   :  { %v7674_v18 = vpop.eup %7673  ;;  %6308 = vst [vmem:[%s15517_s5 + $0x30] sm:$0xff] %v6244_v55  ;;  %7689 = vpow2.f32 %v4850_v59  ;;  %v13643_v7 = vadd.f32 %v13334_v26, %v13238_v12  ;;  %v13647_v42 = vadd.f32 %v13345_v28, %v13238_v12  ;;  %v13651_v1 = vadd.f32 %v13354_v60, %v13238_v12  ;;  %v8378_v28 = vld [vmem:[%s15513_s0 + $0x340] sm:$0xff]  ;;  %v16587_v60 = vld [vmem:[#allocation55_spill] sm:$0xff] }
 0x6cd   :  { %v7676_v20 = vpop.eup %7675  ;;  %7691 = vrcp.f32 %v5542_v37  ;;  %v6182_v17 = vadd.f32 %v6118_v34, %v6054_v9  ;;  %v5673_v21 = vmul.f32 %v8377_v36, %v7674_v18  ;;  %v4395_v54 = vsub.f32 %v16586_v16, %v4331_v51  ;;  %v8380_v9 = vld [vmem:[%s15513_s0 + $0x330] sm:$0xff] }
 0x6ce   :  { %v7678_v26 = vpop.eup %7677  ;;  %v5353_v19 = vadd.f32 %v7676_v20, %v7674_v18  ;;  %v5737_v43 = vmul.f32 %v8378_v28, %v7676_v20  ;;  %7693 = vpow2.f32 %v5042_v6  ;;  %v4587_v5 = vsub.f32 %v16587_v60, %v4331_v51  ;;  %v16589_v20 = vld [vmem:[#allocation28_spill] sm:$0xff] }
 0x6cf   :  { %v7680_v29 = vpop.eup %7679  ;;  %v5865_v48 = vmul.f32 %v8379_v32, %v7678_v26  ;;  %7695 = vpow2.f32 %v5234_v33  ;;  %v4472_v4 = vmul.f32 1.442695, %v4395_v54  ;;  %v4779_v50 = vsub.f32 %v16588_v35, %v4331_v51  ;;  %v16590_v32 = vld [vmem:[#allocation29_spill] sm:$0xff] }
 0x6d0   :  { %v7682_v34 = vpop.eup %7681  ;;  %v6247_v24 = vmul.f32 %v7680_v29, %v6183_v31  ;;  %v5417_v55 = vadd.f32 %v7678_v26, %v5353_v19  ;;  %v5801_v59 = vadd.f32 %v5737_v43, %v5673_v21  ;;  %v4664_v37 = vmul.f32 1.442695, %v4587_v5  ;;  %v8381_v21 = vld [vmem:[%s15513_s0 + $0x338] sm:$0xff] }
 0x6d1   :  { %v7684_v6 = vpop.eup %7683  ;;  %v5993_v63 = vmul.f32 %v8380_v9, %v7682_v34  ;;  %7697 = vpow2.f32 %v4472_v4  ;;  %v4856_v18 = vmul.f32 1.442695, %v4779_v50  ;;  %v4971_v33 = vsub.f32 %v16589_v20, %v4331_v51  ;;  %v8382_v26 = vld [vmem:[%s15513_s0 + $0x2d8] sm:$0xff]  ;;  %v16591_v4 = vld [vmem:[#allocation35_spill] sm:$0xff] }
 0x6d2   :  { %v7686_v36 = vpop.eup %7685  ;;  %6311 = vst [vmem:[%s15517_s5 + $0x48] sm:$0xff] %v6247_v24  ;;  %v5481_v16 = vadd.f32 %v7682_v34, %v5417_v55  ;;  %v5929_v31 = vadd.f32 %v5865_v48, %v5801_v59  ;;  %v6121_v54 = vmul.f32 %v8381_v21, %v7684_v6  ;;  %7699 = vpow2.f32 %v4664_v37  ;;  %v8383_v34 = vld [vmem:[%s15513_s0 + $0x2f8] sm:$0xff] }
 0x6d3   :  { %v5672_v19 = vmul.f32 %v8382_v26, %v7686_v36  ;;  %7701 = vpow2.f32 %v4856_v18  ;;  %v5048_v28 = vmul.f32 1.442695, %v4971_v33  ;;  %v5163_v43 = vsub.f32 %v13492_v22, %v4331_v51  ;;  %v16592_v51 = vld [vmem:[#allocation52_spill] sm:$0xff]  ;;  %v8384_v33 = vld [vmem:[%s15513_s0 + $0x308] sm:$0xff] }
 0x6d4   :  { %v7688_v60 = vpop.eup %7687  ;;  %v5545_v5 = vadd.f32 %v7684_v6, %v5481_v16  ;;  %v6057_v29 = vadd.f32 %v5993_v63, %v5929_v31  ;;  %v4330_v48 = vmax.f32 %v16590_v32, %v13643_v7  ;;  %v13685_v35 = vmax.f32 %v16591_v4, %v13647_v42  ;;  %v16593_v6 = vld [vmem:[#allocation53_spill] sm:$0xff] }
 0x6d5   :  { %v5352_v50 = vadd.f32 %v7688_v60, %v7686_v36  ;;  %v5736_v24 = vmul.f32 %v8383_v34, %v7688_v60  ;;  %7703 = vpow2.f32 %v5048_v28  ;;  %v5240_v55 = vmul.f32 1.442695, %v5163_v43  ;;  %v16594_v28 = vld [vmem:[#allocation25_spill] sm:$0xff] }
 0x6d6   :  { %v7690_v59 = vpop.eup %7689  ;;  %7705 = vrcp.f32 %v5545_v5  ;;  %v6185_v22 = vadd.f32 %v6121_v54, %v6057_v29  ;;  %v4394_v37 = vsub.f32 %v16592_v51, %v4330_v48  ;;  %v4586_v9 = vsub.f32 %v16593_v6, %v4330_v48  ;;  %v8385_v29 = vld [vmem:[%s15513_s0 + $0x2e8] sm:$0xff]  ;;  %v16595_v32 = vld [vmem:[#allocation181_spill] sm:$0xff]  ;;  %v13707_v6 = vpop.f32.mrb[158].mxu1 }
 0x6d7   :  { %v7692_v63 = vpop.eup %7691  ;;  %v5416_v18 = vadd.f32 %v7690_v59, %v5352_v50  ;;  %v5800_v20 = vadd.f32 %v5736_v24, %v5672_v19  ;;  %v5864_v36 = vmul.f32 %v8384_v33, %v7690_v59  ;;  %7707 = vpow2.f32 %v5240_v55  ;;  %v16596_v33 = vld [vmem:[#allocation57_spill] sm:$0xff] }
 0x6d8   :  { %v7694_v16 = vpop.eup %7693  ;;  %v6246_v31 = vmul.f32 %v7692_v63, %v6182_v17  ;;  %v4470_v21 = vmul.f32 1.442695, %v4394_v37  ;;  %v4662_v26 = vmul.f32 1.442695, %v4586_v9  ;;  %v4778_v43 = vsub.f32 %v16594_v28, %v4330_v48  ;;  %v8386_v17 = vld [vmem:[%s15513_s0 + $0x2f0] sm:$0xff] }
 0x6d9   :  { %v7696_v54 = vpop.eup %7695  ;;  %v5480_v60 = vadd.f32 %v7694_v16, %v5416_v18  ;;  %v5928_v5 = vadd.f32 %v5864_v36, %v5800_v20  ;;  %v5992_v19 = vmul.f32 %v8385_v29, %v7694_v16  ;;  %v4970_v4 = vsub.f32 %v16595_v32, %v4330_v48  ;;  %v8387_v63 = vld [vmem:[%s15513_s0 + $0x3b0] sm:$0xff]  ;;  %v16598_v32 = vld [vmem:[#allocation185_spill] sm:$0xff] }
 0x6da   :  { %6310 = vst [vmem:[%s15517_s5 + $0x40] sm:$0xff] %v6246_v31  ;;  %v6120_v50 = vmul.f32 %v8386_v17, %v7696_v54  ;;  %7709 = vpow2.f32 %v4470_v21  ;;  %v4854_v34 = vmul.f32 1.442695, %v4778_v43  ;;  %v5162_v24 = vsub.f32 %v13643_v7, %v4330_v48  ;;  %v8388_v31 = vld [vmem:[%s15513_s0 + $0x3d0] sm:$0xff]  ;;  %v13724_v17 = vpop.f32.mrb[159].mxu1 }
 0x6db   :  { %v7698_v55 = vpop.eup %7697  ;;  %v5544_v59 = vadd.f32 %v7696_v54, %v5480_v60  ;;  %v6056_v51 = vadd.f32 %v5992_v19, %v5928_v5  ;;  %7711 = vpow2.f32 %v4662_v26  ;;  %v5046_v37 = vmul.f32 1.442695, %v4970_v4  ;;  %v8389_v26 = vld [vmem:[%s15513_s0 + $0x3e0] sm:$0xff]  ;;  %v16597_v54 = vld [vmem:[#allocation27_spill] sm:$0xff] }
 0x6dc   :  { %v7700_v9 = vpop.eup %7699  ;;  %v5675_v18 = vmul.f32 %v8387_v63, %v7698_v55  ;;  %7713 = vpow2.f32 %v4854_v34  ;;  %v5238_v20 = vmul.f32 1.442695, %v5162_v24  ;;  %v4397_v36 = vsub.f32 %v16596_v33, %v13685_v35  ;;  %v8390_v34 = vld [vmem:[%s15513_s0 + $0x3c0] sm:$0xff]  ;;  %v8391_v33 = vld [vmem:[%s15513_s0 + $0x3c8] sm:$0xff] }
 0x6dd   :  { %v7702_v16 = vpop.eup %7701  ;;  %7715 = vrcp.f32 %v5544_v59  ;;  %v6184_v7 = vadd.f32 %v6120_v50, %v6056_v51  ;;  %v5355_v48 = vadd.f32 %v7700_v9, %v7698_v55  ;;  %v5739_v21 = vmul.f32 %v8388_v31, %v7700_v9  ;;  %v16599_v59 = vld [vmem:[#allocation32_spill] sm:$0xff] }
 0x6de   :  { %v5867_v28 = vmul.f32 %v8389_v26, %v7702_v16  ;;  %7717 = vpow2.f32 %v5046_v37  ;;  %v4476_v43 = vmul.f32 1.442695, %v4397_v36  ;;  %v4589_v60 = vsub.f32 %v16597_v54, %v13685_v35 }
 0x6df   :  { %v7704_v5 = vpop.eup %7703  ;;  %v5419_v29 = vadd.f32 %v7702_v16, %v5355_v48  ;;  %v5803_v19 = vadd.f32 %v5739_v21, %v5675_v18  ;;  %7719 = vpow2.f32 %v5238_v20  ;;  %v4781_v4 = vsub.f32 %v16598_v32, %v13685_v35 }
 0x6e0   :  { %v7706_v50 = vpop.eup %7705  ;;  %v5995_v24 = vmul.f32 %v8390_v34, %v7704_v5  ;;  %7721 = vpow2.f32 %v4476_v43  ;;  %v4668_v55 = vmul.f32 1.442695, %v4589_v60  ;;  %v4973_v51 = vsub.f32 %v16599_v59, %v13685_v35 }
 0x6e1   :  { %v7708_v37 = vpop.eup %7707  ;;  %v6249_v9 = vmul.f32 %v7706_v50, %v6185_v22  ;;  %v5483_v63 = vadd.f32 %v7704_v5, %v5419_v29  ;;  %v5931_v18 = vadd.f32 %v5867_v28, %v5803_v19  ;;  %v4860_v20 = vmul.f32 1.442695, %v4781_v4  ;;  %v16600_v22 = vld [vmem:[#allocation33_spill] sm:$0xff]  ;;  %v8392_v5 = vld [vmem:[%s15513_s0 + $0x368] sm:$0xff]  ;;  %v16601_v19 = vld [vmem:[#allocation56_spill] sm:$0xff] }
 0x6e2   :  { %v6123_v36 = vmul.f32 %v8391_v33, %v7708_v37  ;;  %7723 = vpow2.f32 %v4668_v55  ;;  %v5052_v16 = vmul.f32 1.442695, %v4973_v51  ;;  %v5165_v48 = vsub.f32 %v13647_v42, %v13685_v35  ;;  %v13759_v55 = vpop.f32.mrb[160].mxu1  ;;  %v8394_v51 = vld [vmem:[%s15513_s0 + $0x398] sm:$0xff] }
 0x6e3   :  { %6313 = vst [vmem:[%s15517_s5 + $0x58] sm:$0xff] %v6249_v9  ;;  %v5547_v31 = vadd.f32 %v7708_v37, %v5483_v63  ;;  %v6059_v21 = vadd.f32 %v5995_v24, %v5931_v18  ;;  %7725 = vpow2.f32 %v4860_v20  ;;  %v4332_v26 = vmax.f32 %v16600_v22, %v13651_v1  ;;  %v16603_v63 = vld [vmem:[#allocation184_spill] sm:$0xff]  ;;  %v16604_v20 = vld [vmem:[#allocation30_spill] sm:$0xff] }
 0x6e4   :  { %v7710_v28 = vpop.eup %7709  ;;  %7727 = vpow2.f32 %v5052_v16  ;;  %v5244_v43 = vmul.f32 1.442695, %v5165_v48  ;;  %v13743_v54 = vadd.f32 %v13365_v57, %v13238_v12  ;;  %v13747_v42 = vadd.f32 %v13370_v61, %v13238_v12  ;;  %v8393_v57 = vld [vmem:[%s15513_s0 + $0x388] sm:$0xff]  ;;  %v16602_v61 = vld [vmem:[#allocation26_spill] sm:$0xff] }
 0x6e5   :  { %v7712_v35 = vpop.eup %7711  ;;  %7729 = vrcp.f32 %v5547_v31  ;;  %v13749_v60 = vadd.f32 %v6123_v36, %v6059_v21  ;;  %v5674_v29 = vmul.f32 %v8392_v5, %v7710_v28  ;;  %v4396_v32 = vsub.f32 %v16601_v19, %v4332_v26 }
 0x6e6   :  { %v7714_v4 = vpop.eup %7713  ;;  %v5354_v50 = vadd.f32 %v7712_v35, %v7710_v28  ;;  %v5738_v34 = vmul.f32 %v8393_v57, %v7712_v35  ;;  %7731 = vpow2.f32 %v5244_v43  ;;  %v4588_v24 = vsub.f32 %v16602_v61, %v4332_v26  ;;  %v8395_v28 = vld [vmem:[%s15513_s0 + $0x378] sm:$0xff] }
 0x6e7   :  { %v7716_v59 = vpop.eup %7715  ;;  %v5866_v37 = vmul.f32 %v8394_v51, %v7714_v4  ;;  %v4474_v9 = vmul.f32 1.442695, %v4396_v32  ;;  %v4780_v18 = vsub.f32 %v16603_v63, %v4332_v26  ;;  %v4972_v33 = vsub.f32 %v16604_v20, %v4332_v26 }
 0x6e8   :  { %v7718_v36 = vpop.eup %7717  ;;  %v6248_v16 = vmul.f32 %v7716_v59, %v6184_v7  ;;  %v5418_v48 = vadd.f32 %v7714_v4, %v5354_v50  ;;  %v5802_v31 = vadd.f32 %v5738_v34, %v5674_v29  ;;  %v4666_v21 = vmul.f32 1.442695, %v4588_v24  ;;  %v8396_v7 = vld [vmem:[%s15513_s0 + $0x380] sm:$0xff] }
 0x6e9   :  { %v7720_v22 = vpop.eup %7719  ;;  %v5994_v43 = vmul.f32 %v8395_v28, %v7718_v36  ;;  %7733 = vpow2.f32 %v4474_v9  ;;  %v4858_v35 = vmul.f32 1.442695, %v4780_v18  ;;  %v5050_v5 = vmul.f32 1.442695, %v4972_v33  ;;  %v8397_v4 = vld [vmem:[%s15513_s0 + $0x440] sm:$0xff] }
 0x6ea   :  { %v7722_v19 = vpop.eup %7721  ;;  %6312 = vst [vmem:[%s15517_s5 + $0x50] sm:$0xff] %v6248_v16  ;;  %v5482_v32 = vadd.f32 %v7718_v36, %v5418_v48  ;;  %v5930_v57 = vadd.f32 %v5866_v37, %v5802_v31  ;;  %v6122_v29 = vmul.f32 %v8396_v7, %v7720_v22  ;;  %7735 = vpow2.f32 %v4666_v21  ;;  %v8398_v18 = vld [vmem:[%s15513_s0 + $0x460] sm:$0xff]  ;;  %v8399_v16 = vld [vmem:[%s15513_s0 + $0x470] sm:$0xff] }
 0x6eb   :  { %v5677_v50 = vmul.f32 %v8397_v4, %v7722_v19  ;;  %7737 = vpow2.f32 %v4858_v35  ;;  %v5164_v34 = vsub.f32 %v13651_v1, %v4332_v26  ;;  %v4335_v61 = vmax.f32 %v12700_v58, %v13743_v54  ;;  %v16605_v1 = vld [vmem:[#allocation60_spill] sm:$0xff] }
 0x6ec   :  { %v7724_v24 = vpop.eup %7723  ;;  %v5546_v59 = vadd.f32 %v7720_v22, %v5482_v32  ;;  %v6058_v51 = vadd.f32 %v5994_v43, %v5930_v57  ;;  %7739 = vpow2.f32 %v5050_v5  ;;  %v13783_v37 = vmax.f32 %v12685_v13, %v13747_v42  ;;  %v16606_v13 = vld [vmem:[#allocation61_spill] sm:$0xff]  ;;  %v8400_v43 = vld [vmem:[%s15513_s0 + $0x450] sm:$0xff]  ;;  %v13796_v5 = vpop.f32.mrb[161].mxu1 }
 0x6ed   :  { %v7726_v9 = vpop.eup %7725  ;;  %v5357_v63 = vadd.f32 %v7724_v24, %v7722_v19  ;;  %v5741_v20 = vmul.f32 %v8398_v18, %v7724_v24  ;;  %v5242_v33 = vmul.f32 1.442695, %v5164_v34  ;;  %v4399_v26 = vsub.f32 %v16605_v1, %v4335_v61  ;;  %v16609_v18 = vld [vmem:[#allocation58_spill] sm:$0xff] }
 0x6ee   :  { %v7728_v36 = vpop.eup %7727  ;;  %7741 = vrcp.f32 %v5546_v59  ;;  %v6186_v58 = vadd.f32 %v6122_v29, %v6058_v51  ;;  %v5869_v48 = vmul.f32 %v8399_v16, %v7726_v9  ;;  %v4591_v31 = vsub.f32 %v16606_v13, %v4335_v61  ;;  %v16607_v29 = vld [vmem:[#allocation187_spill] sm:$0xff]  ;;  %v16608_v51 = vld [vmem:[#allocation36_spill] sm:$0xff] }
 0x6ef   :  { %v7730_v21 = vpop.eup %7729  ;;  %v5421_v22 = vadd.f32 %v7726_v9, %v5357_v63  ;;  %v5805_v28 = vadd.f32 %v5741_v20, %v5677_v50  ;;  %v5997_v35 = vmul.f32 %v8400_v43, %v7728_v36  ;;  %7743 = vpow2.f32 %v5242_v33  ;;  %v8401_v50 = vld [vmem:[%s15513_s0 + $0x458] sm:$0xff] }
 0x6f0   :  { %v7732_v19 = vpop.eup %7731  ;;  %v6251_v32 = vmul.f32 %v7730_v21, %v13749_v60  ;;  %v4480_v57 = vmul.f32 1.442695, %v4399_v26  ;;  %v4672_v7 = vmul.f32 1.442695, %v4591_v31  ;;  %v4783_v4 = vsub.f32 %v16607_v29, %v4335_v61  ;;  %v16611_v29 = vld [vmem:[#allocation186_spill] sm:$0xff] }
 0x6f1   :  { %v5485_v34 = vadd.f32 %v7728_v36, %v5421_v22  ;;  %v5933_v24 = vadd.f32 %v5869_v48, %v5805_v28  ;;  %v6125_v59 = vmul.f32 %v8401_v50, %v7732_v19  ;;  %v4975_v9 = vsub.f32 %v16608_v51, %v4335_v61  ;;  %v8402_v48 = vld [vmem:[%s15513_s0 + $0x3f8] sm:$0xff]  ;;  %v8405_v50 = vld [vmem:[%s15513_s0 + $0x408] sm:$0xff] }
 0x6f2   :  { %6315 = vst [vmem:[%s15517_s5 + $0x68] sm:$0xff] %v6251_v32  ;;  %7745 = vpow2.f32 %v4480_v57  ;;  %v4864_v63 = vmul.f32 1.442695, %v4783_v4  ;;  %v5167_v60 = vsub.f32 %v13743_v54, %v4335_v61  ;;  %v4398_v20 = vsub.f32 %v16609_v18, %v13783_v37  ;;  %v8403_v28 = vld [vmem:[%s15513_s0 + $0x418] sm:$0xff]  ;;  %v16610_v57 = vld [vmem:[#allocation59_spill] sm:$0xff] }
 0x6f3   :  { %v7734_v33 = vpop.eup %7733  ;;  %v5549_v1 = vadd.f32 %v7732_v19, %v5485_v34  ;;  %v6061_v26 = vadd.f32 %v5997_v35, %v5933_v24  ;;  %7747 = vpow2.f32 %v4672_v7  ;;  %v5056_v36 = vmul.f32 1.442695, %v4975_v9  ;;  %v8404_v19 = vld [vmem:[%s15513_s0 + $0x428] sm:$0xff] }
 0x6f4   :  { %v7736_v16 = vpop.eup %7735  ;;  %v5676_v13 = vmul.f32 %v8402_v48, %v7734_v33  ;;  %7749 = vpow2.f32 %v4864_v63  ;;  %v5248_v31 = vmul.f32 1.442695, %v5167_v60  ;;  %v4478_v21 = vmul.f32 1.442695, %v4398_v20  ;;  %v16612_v60 = vld [vmem:[#allocation34_spill] sm:$0xff] }
 0x6f5   :  { %v7738_v22 = vpop.eup %7737  ;;  %7751 = vrcp.f32 %v5549_v1  ;;  %v6189_v54 = vadd.f32 %v6125_v59, %v6061_v26  ;;  %v5356_v61 = vadd.f32 %v7736_v16, %v7734_v33  ;;  %v5740_v43 = vmul.f32 %v8403_v28, %v7736_v16  ;;  %v8406_v16 = vld [vmem:[%s15513_s0 + $0x410] sm:$0xff] }
 0x6f6   :  { %v7740_v35 = vpop.eup %7739  ;;  %v5868_v32 = vmul.f32 %v8404_v19, %v7738_v22  ;;  %7753 = vpow2.f32 %v5056_v36  ;;  %v4590_v7 = vsub.f32 %v16610_v57, %v13783_v37  ;;  %v4782_v4 = vsub.f32 %v16611_v29, %v13783_v37  ;;  %v8407_v19 = vld [vmem:[%s15513_s0 + $0x4d0] sm:$0xff] }
 0x6f7   :  { %v5420_v34 = vadd.f32 %v7738_v22, %v5356_v61  ;;  %v5804_v24 = vadd.f32 %v5740_v43, %v5676_v13  ;;  %v5996_v59 = vmul.f32 %v8405_v50, %v7740_v35  ;;  %7755 = vpow2.f32 %v5248_v31 }
 0x6f8   :  { %v7742_v51 = vpop.eup %7741  ;;  %7757 = vpow2.f32 %v4478_v21  ;;  %v4670_v9 = vmul.f32 1.442695, %v4590_v7  ;;  %v4862_v63 = vmul.f32 1.442695, %v4782_v4  ;;  %v4974_v18 = vsub.f32 %v16612_v60, %v13783_v37  ;;  %v13837_v21 = vpop.f32.mrb[162].mxu1 }
 0x6f9   :  { %v7744_v20 = vpop.eup %7743  ;;  %v6250_v33 = vmul.f32 %v7742_v51, %v6186_v58  ;;  %v5484_v1 = vadd.f32 %v7740_v35, %v5420_v34  ;;  %v5932_v26 = vadd.f32 %v5868_v32, %v5804_v24  ;;  %v5166_v36 = vsub.f32 %v13747_v42, %v13783_v37  ;;  %v8409_v34 = vld [vmem:[%s15513_s0 + $0x500] sm:$0xff]  ;;  %v16614_v51 = vld [vmem:[#allocation40_spill] sm:$0xff] }
 0x6fa   :  { %v6124_v48 = vmul.f32 %v8406_v16, %v7744_v20  ;;  %7759 = vpow2.f32 %v4670_v9  ;;  %v5054_v13 = vmul.f32 1.442695, %v4974_v18  ;;  %v13835_v31 = vadd.f32 %v13393_v0, %v13238_v12 }
 0x6fb   :  { %6314 = vst [vmem:[%s15517_s5 + $0x60] sm:$0xff] %v6250_v33  ;;  %v5548_v58 = vadd.f32 %v7744_v20, %v5484_v1  ;;  %v6060_v22 = vadd.f32 %v5996_v59, %v5932_v26  ;;  %7761 = vpow2.f32 %v4862_v63  ;;  %v5246_v42 = vmul.f32 1.442695, %v5166_v36  ;;  %v13871_v63 = vpop.f32.mrb[163].mxu1  ;;  %v8410_v26 = vld [vmem:[%s15513_s0 + $0x4e0] sm:$0xff] }
 0x6fc   :  { %v7746_v37 = vpop.eup %7745  ;;  %7763 = vpow2.f32 %v5054_v13  ;;  %v4337_v61 = vmax.f32 %v12730_v10, %v13835_v31  ;;  %v13846_v28 = vadd.f32 %v13400_v39, %v13238_v12  ;;  %v13850_v0 = vadd.f32 %v13411_v52, %v13238_v12  ;;  %v8408_v52 = vld [vmem:[%s15513_s0 + $0x4f0] sm:$0xff] }
 0x6fd   :  { %v7748_v43 = vpop.eup %7747  ;;  %7765 = vrcp.f32 %v5548_v58  ;;  %v13852_v35 = vadd.f32 %v6124_v48, %v6060_v22  ;;  %v5679_v32 = vmul.f32 %v8407_v19, %v7746_v37  ;;  %v13859_v10 = vadd.f32 %v13420_v41, %v13238_v12  ;;  %v16613_v41 = vld [vmem:[#allocation39_spill] sm:$0xff] }
 0x6fe   :  { %v7750_v57 = vpop.eup %7749  ;;  %v5359_v39 = vadd.f32 %v7748_v43, %v7746_v37  ;;  %v5743_v7 = vmul.f32 %v8408_v52, %v7748_v43  ;;  %7767 = vpow2.f32 %v5246_v42  ;;  %v4401_v29 = vsub.f32 %v16348_v45, %v4337_v61  ;;  %v8412_v37 = vld [vmem:[%s15513_s0 + $0x488] sm:$0xff] }
 0x6ff   :  { %v7752_v4 = vpop.eup %7751  ;;  %v5871_v24 = vmul.f32 %v8409_v34, %v7750_v57  ;;  %v4593_v50 = vsub.f32 %v16349_v8, %v4337_v61  ;;  %v4785_v59 = vsub.f32 %v16613_v41, %v4337_v61  ;;  %v4977_v9 = vsub.f32 %v16614_v51, %v4337_v61 }
 0x700   :  { %v7754_v60 = vpop.eup %7753  ;;  %v6253_v18 = vmul.f32 %v7752_v4, %v6189_v54  ;;  %v5423_v20 = vadd.f32 %v7750_v57, %v5359_v39  ;;  %v5807_v33 = vadd.f32 %v5743_v7, %v5679_v32  ;;  %v4484_v1 = vmul.f32 1.442695, %v4401_v29  ;;  %v8411_v54 = vld [vmem:[%s15513_s0 + $0x4e8] sm:$0xff]  ;;  %v16615_v32 = vld [vmem:[#allocation188_spill] sm:$0xff] }
 0x701   :  { %v7756_v45 = vpop.eup %7755  ;;  %v5999_v36 = vmul.f32 %v8410_v26, %v7754_v60  ;;  %v4676_v16 = vmul.f32 1.442695, %v4593_v50  ;;  %v4868_v48 = vmul.f32 1.442695, %v4785_v59  ;;  %v5060_v8 = vmul.f32 1.442695, %v4977_v9 }
 0x702   :  { %v7758_v13 = vpop.eup %7757  ;;  %6317 = vst [vmem:[%s15517_s5 + $0x78] sm:$0xff] %v6253_v18  ;;  %v5487_v58 = vadd.f32 %v7754_v60, %v5423_v20  ;;  %v5935_v22 = vadd.f32 %v5871_v24, %v5807_v33  ;;  %v6127_v42 = vmul.f32 %v8411_v54, %v7756_v45  ;;  %7769 = vpow2.f32 %v4484_v1  ;;  %v8413_v24 = vld [vmem:[%s15513_s0 + $0x4a8] sm:$0xff]  ;;  %v8414_v59 = vld [vmem:[%s15513_s0 + $0x4b8] sm:$0xff]  ;;  %v16616_v9 = vld [vmem:[#allocation62_spill] sm:$0xff] }
 0x703   :  { %v5678_v43 = vmul.f32 %v8412_v37, %v7758_v13  ;;  %7771 = vpow2.f32 %v4676_v16  ;;  %v5169_v19 = vsub.f32 %v13835_v31, %v4337_v61  ;;  %v4336_v57 = vmax.f32 %v16615_v32, %v13846_v28  ;;  %v8415_v33 = vld [vmem:[%s15513_s0 + $0x498] sm:$0xff]  ;;  %v16617_v16 = vld [vmem:[#allocation63_spill] sm:$0xff]  ;;  %v8416_v54 = vld [vmem:[%s15513_s0 + $0x4a0] sm:$0xff] }
 0x704   :  { %v7760_v39 = vpop.eup %7759  ;;  %v5551_v52 = vadd.f32 %v7756_v45, %v5487_v58  ;;  %v6063_v7 = vadd.f32 %v5999_v36, %v5935_v22  ;;  %7773 = vpow2.f32 %v4868_v48  ;;  %v13890_v29 = vmax.f32 %v12760_v40, %v13850_v0  ;;  %v16619_v37 = vld [vmem:[#allocation38_spill] sm:$0xff] }
 0x705   :  { %v7762_v4 = vpop.eup %7761  ;;  %v5358_v34 = vadd.f32 %v7760_v39, %v7758_v13  ;;  %v5742_v50 = vmul.f32 %v8413_v24, %v7760_v39  ;;  %7775 = vpow2.f32 %v5060_v8  ;;  %v5252_v31 = vmul.f32 1.442695, %v5169_v19  ;;  %v16618_v8 = vld [vmem:[#allocation37_spill] sm:$0xff] }
 0x706   :  { %v7764_v61 = vpop.eup %7763  ;;  %7777 = vrcp.f32 %v5551_v52  ;;  %v6191_v41 = vadd.f32 %v6127_v42, %v6063_v7  ;;  %v5870_v51 = vmul.f32 %v8414_v59, %v7762_v4  ;;  %v4400_v40 = vsub.f32 %v16616_v9, %v4336_v57 }
 0x707   :  { %v7766_v60 = vpop.eup %7765  ;;  %v5422_v18 = vadd.f32 %v7762_v4, %v5358_v34  ;;  %v5806_v20 = vadd.f32 %v5742_v50, %v5678_v43  ;;  %v5998_v1 = vmul.f32 %v8415_v33, %v7764_v61  ;;  %7779 = vpow2.f32 %v5252_v31  ;;  %v13915_v34 = vpop.f32.mrb[164].mxu1 }
 0x708   :  { %v7768_v45 = vpop.eup %7767  ;;  %v6252_v26 = vmul.f32 %v7766_v60, %v13852_v35  ;;  %v4482_v36 = vmul.f32 1.442695, %v4400_v40  ;;  %v4592_v48 = vsub.f32 %v16617_v16, %v4336_v57  ;;  %v4784_v13 = vsub.f32 %v16618_v8, %v4336_v57 }
 0x709   :  { %v5486_v58 = vadd.f32 %v7764_v61, %v5422_v18  ;;  %v5934_v22 = vadd.f32 %v5870_v51, %v5806_v20  ;;  %v6126_v42 = vmul.f32 %v8416_v54, %v7768_v45  ;;  %v4976_v43 = vsub.f32 %v16619_v37, %v4336_v57  ;;  %v16620_v61 = vld [vmem:[#allocation64_spill] sm:$0xff]  ;;  %v8418_v18 = vld [vmem:[%s15513_s0 + $0x580] sm:$0xff]  ;;  %v13935_v54 = vpop.f32.mrb[165].mxu1 }
 0x70a   :  { %6316 = vst [vmem:[%s15517_s5 + $0x70] sm:$0xff] %v6252_v26  ;;  %7781 = vpow2.f32 %v4482_v36  ;;  %v4674_v35 = vmul.f32 1.442695, %v4592_v48  ;;  %v4866_v19 = vmul.f32 1.442695, %v4784_v13  ;;  %v5168_v32 = vsub.f32 %v13846_v28, %v4336_v57  ;;  %v8417_v57 = vld [vmem:[%s15513_s0 + $0x560] sm:$0xff] }
 0x70b   :  { %v5550_v39 = vadd.f32 %v7768_v45, %v5486_v58  ;;  %v6062_v52 = vadd.f32 %v5998_v1, %v5934_v22  ;;  %v5058_v7 = vmul.f32 1.442695, %v4976_v43  ;;  %v4403_v4 = vsub.f32 %v16360_v27, %v13890_v29  ;;  %v8419_v1 = vld [vmem:[%s15513_s0 + $0x590] sm:$0xff]  ;;  %v16621_v36 = vld [vmem:[#allocation65_spill] sm:$0xff] }
 0x70c   :  { %v7770_v24 = vpop.eup %7769  ;;  %7783 = vpow2.f32 %v4674_v35  ;;  %v5250_v50 = vmul.f32 1.442695, %v5168_v32  ;;  %v4595_v31 = vsub.f32 %v16361_v47, %v13890_v29  ;;  %v4787_v59 = vsub.f32 %v16620_v61, %v13890_v29  ;;  %v8420_v58 = vld [vmem:[%s15513_s0 + $0x570] sm:$0xff]  ;;  %v8422_v61 = vld [vmem:[%s15513_s0 + $0x518] sm:$0xff] }
 0x70d   :  { %v7772_v51 = vpop.eup %7771  ;;  %7785 = vrcp.f32 %v5550_v39  ;;  %v6190_v28 = vadd.f32 %v6126_v42, %v6062_v52  ;;  %v5681_v9 = vmul.f32 %v8417_v57, %v7770_v24  ;;  %v4488_v27 = vmul.f32 1.442695, %v4403_v4  ;;  %v8421_v39 = vld [vmem:[%s15513_s0 + $0x578] sm:$0xff] }
 0x70e   :  { %v7774_v40 = vpop.eup %7773  ;;  %v5361_v60 = vadd.f32 %v7772_v51, %v7770_v24  ;;  %v5745_v20 = vmul.f32 %v8418_v18, %v7772_v51  ;;  %7787 = vpow2.f32 %v4866_v19  ;;  %v4680_v47 = vmul.f32 1.442695, %v4595_v31  ;;  %v16623_v51 = vld [vmem:[#allocation66_spill] sm:$0xff] }
 0x70f   :  { %v7776_v33 = vpop.eup %7775  ;;  %v5873_v45 = vmul.f32 %v8419_v1, %v7774_v40  ;;  %7789 = vpow2.f32 %v5058_v7  ;;  %v4872_v26 = vmul.f32 1.442695, %v4787_v59  ;;  %v4979_v16 = vsub.f32 %v16621_v36, %v13890_v29  ;;  %v8423_v1 = vld [vmem:[%s15513_s0 + $0x538] sm:$0xff] }
 0x710   :  { %v7778_v48 = vpop.eup %7777  ;;  %v5425_v8 = vadd.f32 %v7774_v40, %v5361_v60  ;;  %v5809_v13 = vadd.f32 %v5745_v20, %v5681_v9  ;;  %v6001_v22 = vmul.f32 %v8420_v58, %v7776_v33  ;;  %7791 = vpow2.f32 %v5250_v50  ;;  %v16624_v9 = vld [vmem:[#allocation67_spill] sm:$0xff]  ;;  %v16625_v60 = vld [vmem:[#allocation189_spill] sm:$0xff] }
 0x711   :  { %v7780_v42 = vpop.eup %7779  ;;  %v6255_v37 = vmul.f32 %v7778_v48, %v6191_v41  ;;  %7793 = vpow2.f32 %v4488_v27  ;;  %v5064_v43 = vmul.f32 1.442695, %v4979_v16  ;;  %v5171_v35 = vsub.f32 %v13850_v0, %v13890_v29  ;;  %v16622_v41 = vld [vmem:[#allocation190_spill] sm:$0xff]  ;;  %v16626_v20 = vld [vmem:[#allocation43_spill] sm:$0xff] }
 0x712   :  { %v5489_v19 = vadd.f32 %v7776_v33, %v5425_v8  ;;  %v5937_v32 = vadd.f32 %v5873_v45, %v5809_v13  ;;  %v6129_v52 = vmul.f32 %v8421_v39, %v7780_v42  ;;  %7795 = vpow2.f32 %v4680_v47 }
 0x713   :  { %6319 = vst [vmem:[%s15517_s5 + $0x88] sm:$0xff] %v6255_v37  ;;  %7797 = vpow2.f32 %v4872_v26  ;;  %v5256_v7 = vmul.f32 1.442695, %v5171_v35  ;;  %v4338_v4 = vmax.f32 %v16622_v41, %v13859_v10  ;;  %v13949_v0 = vadd.f32 %v13431_v14, %v13238_v12  ;;  %v8424_v35 = vld [vmem:[%s15513_s0 + $0x548] sm:$0xff] }
 0x714   :  { %v7782_v29 = vpop.eup %7781  ;;  %v5553_v24 = vadd.f32 %v7780_v42, %v5489_v19  ;;  %v6065_v50 = vadd.f32 %v6001_v22, %v5937_v32  ;;  %7799 = vpow2.f32 %v5064_v43  ;;  %v13953_v31 = vadd.f32 %v13448_v46, %v13238_v12  ;;  %v13968_v22 = vpop.f32.mrb[166].mxu1 }
 0x715   :  { %v5680_v59 = vmul.f32 %v8422_v61, %v7782_v29  ;;  %7801 = vpow2.f32 %v5256_v7  ;;  %v4402_v57 = vsub.f32 %v16623_v51, %v4338_v4  ;;  %v4594_v27 = vsub.f32 %v16624_v9, %v4338_v4  ;;  %v8427_v61 = vld [vmem:[%s15513_s0 + $0x5f0] sm:$0xff] }
 0x716   :  { %v7784_v14 = vpop.eup %7783  ;;  %7803 = vrcp.f32 %v5553_v24  ;;  %v13960_v40 = vadd.f32 %v6129_v52, %v6065_v50  ;;  %v4786_v18 = vsub.f32 %v16625_v60, %v4338_v4  ;;  %v4978_v47 = vsub.f32 %v16626_v20, %v4338_v4  ;;  %v8428_v60 = vld [vmem:[%s15513_s0 + $0x610] sm:$0xff]  ;;  %v13992_v20 = vpop.f32.mrb[167].mxu1 }
 0x717   :  { %v7786_v46 = vpop.eup %7785  ;;  %v5360_v33 = vadd.f32 %v7784_v14, %v7782_v29  ;;  %v5744_v45 = vmul.f32 %v8423_v1, %v7784_v14  ;;  %v4486_v26 = vmul.f32 1.442695, %v4402_v57  ;;  %v4678_v36 = vmul.f32 1.442695, %v4594_v27  ;;  %v8426_v29 = vld [vmem:[%s15513_s0 + $0x530] sm:$0xff] }
 0x718   :  { %v7788_v16 = vpop.eup %7787  ;;  %v6254_v48 = vmul.f32 %v7786_v46, %v6190_v28  ;;  %v4870_v8 = vmul.f32 1.442695, %v4786_v18  ;;  %v5062_v13 = vmul.f32 1.442695, %v4978_v47  ;;  %v5170_v58 = vsub.f32 %v13859_v10, %v4338_v4  ;;  %v8425_v10 = vld [vmem:[%s15513_s0 + $0x528] sm:$0xff]  ;;  %v8429_v46 = vld [vmem:[%s15513_s0 + $0x620] sm:$0xff] }
 0x719   :  { %v7790_v42 = vpop.eup %7789  ;;  %v5424_v37 = vadd.f32 %v7788_v16, %v5360_v33  ;;  %v5808_v43 = vadd.f32 %v5744_v45, %v5680_v59  ;;  %v5872_v19 = vmul.f32 %v8424_v35, %v7788_v16  ;;  %7805 = vpow2.f32 %v4486_v26 }
 0x71a   :  { %v7792_v32 = vpop.eup %7791  ;;  %6318 = vst [vmem:[%s15517_s5 + $0x80] sm:$0xff] %v6254_v48  ;;  %v6000_v28 = vmul.f32 %v8425_v10, %v7790_v42  ;;  %7807 = vpow2.f32 %v4678_v36  ;;  %v5254_v39 = vmul.f32 1.442695, %v5170_v58  ;;  %v4341_v52 = vmax.f32 %v12790_v11, %v13949_v0  ;;  %v8430_v48 = vld [vmem:[%s15513_s0 + $0x600] sm:$0xff]  ;;  %v16628_v10 = vld [vmem:[#allocation68_spill] sm:$0xff] }
 0x71b   :  { %v7794_v7 = vpop.eup %7793  ;;  %v5488_v41 = vadd.f32 %v7790_v42, %v5424_v37  ;;  %v5936_v4 = vadd.f32 %v5872_v19, %v5808_v43  ;;  %v6128_v24 = vmul.f32 %v8426_v29, %v7792_v32  ;;  %7809 = vpow2.f32 %v4870_v8  ;;  %v16627_v42 = vld [vmem:[#allocation46_spill] sm:$0xff] }
 0x71c   :  { %v7796_v50 = vpop.eup %7795  ;;  %v5683_v59 = vmul.f32 %v8427_v61, %v7794_v7  ;;  %7811 = vpow2.f32 %v5062_v13  ;;  %v4405_v51 = vsub.f32 %v16371_v44, %v4341_v52  ;;  %v4597_v11 = vsub.f32 %v16372_v15, %v4341_v52  ;;  %v8431_v13 = vld [vmem:[%s15513_s0 + $0x608] sm:$0xff] }
 0x71d   :  { %v7798_v57 = vpop.eup %7797  ;;  %v5552_v9 = vadd.f32 %v7792_v32, %v5488_v41  ;;  %v6064_v27 = vadd.f32 %v6000_v28, %v5936_v4  ;;  %v5363_v14 = vadd.f32 %v7796_v50, %v7794_v7  ;;  %v5747_v18 = vmul.f32 %v8428_v60, %v7796_v50  ;;  %v16629_v60 = vld [vmem:[#allocation71_spill] sm:$0xff] }
 0x71e   :  { %v7800_v47 = vpop.eup %7799  ;;  %v5875_v33 = vmul.f32 %v8429_v46, %v7798_v57  ;;  %7813 = vpow2.f32 %v5254_v39  ;;  %v4492_v44 = vmul.f32 1.442695, %v4405_v51  ;;  %v4684_v15 = vmul.f32 1.442695, %v4597_v11 }
 0x71f   :  { %v7802_v1 = vpop.eup %7801  ;;  %7815 = vrcp.f32 %v5552_v9  ;;  %v6192_v45 = vadd.f32 %v6128_v24, %v6064_v27  ;;  %v5427_v26 = vadd.f32 %v7798_v57, %v5363_v14  ;;  %v5811_v36 = vadd.f32 %v5747_v18, %v5683_v59  ;;  %v8434_v9 = vld [vmem:[%s15513_s0 + $0x5d8] sm:$0xff] }
 0x720   :  { %v7804_v16 = vpop.eup %7803  ;;  %v6003_v8 = vmul.f32 %v8430_v48, %v7800_v47  ;;  %v6131_v58 = vmul.f32 %v8431_v13, %v7802_v1  ;;  %7817 = vpow2.f32 %v4492_v44  ;;  %v4789_v37 = vsub.f32 %v16627_v42, %v4341_v52  ;;  %v16631_v48 = vld [vmem:[#allocation192_spill] sm:$0xff]  ;;  %v8436_v42 = vld [vmem:[%s15513_s0 + $0x5c0] sm:$0xff] }
 0x721   :  { %v6257_v43 = vmul.f32 %v7804_v16, %v13960_v40  ;;  %v5491_v35 = vadd.f32 %v7800_v47, %v5427_v26  ;;  %v5939_v19 = vadd.f32 %v5875_v33, %v5811_v36  ;;  %7819 = vpow2.f32 %v4684_v15  ;;  %v8435_v33 = vld [vmem:[%s15513_s0 + $0x5b8] sm:$0xff]  ;;  %v16630_v36 = vld [vmem:[#allocation191_spill] sm:$0xff] }
 0x722   :  { %v4876_v32 = vmul.f32 1.442695, %v4789_v37  ;;  %v4981_v28 = vsub.f32 %v16628_v10, %v4341_v52  ;;  %v5173_v39 = vsub.f32 %v13949_v0, %v4341_v52  ;;  %v4340_v7 = vmax.f32 %v12777_v62, %v13953_v31  ;;  %v8432_v62 = vld [vmem:[%s15513_s0 + $0x5a8] sm:$0xff] }
 0x723   :  { %v7806_v41 = vpop.eup %7805  ;;  %6321 = vst [vmem:[%s15517_s5 + $0x98] sm:$0xff] %v6257_v43  ;;  %v5555_v4 = vadd.f32 %v7802_v1, %v5491_v35  ;;  %v6067_v29 = vadd.f32 %v6003_v8, %v5939_v19  ;;  %v14014_v40 = vadd.f32 %v13507_v3, %v13238_v12  ;;  %v14018_v24 = vadd.f32 %v13533_v23, %v13238_v12  ;;  %v8433_v3 = vld [vmem:[%s15513_s0 + $0x5c8] sm:$0xff]  ;;  %v14040_v35 = vpop.f32.mrb[168].mxu1 }
 0x724   :  { %v7808_v50 = vpop.eup %7807  ;;  %v5682_v0 = vmul.f32 %v8432_v62, %v7806_v41  ;;  %7821 = vpow2.f32 %v4876_v32  ;;  %v5068_v52 = vmul.f32 1.442695, %v4981_v28  ;;  %v5260_v61 = vmul.f32 1.442695, %v5173_v39 }
 0x725   :  { %v7810_v59 = vpop.eup %7809  ;;  %7823 = vrcp.f32 %v5555_v4  ;;  %v6195_v51 = vadd.f32 %v6131_v58, %v6067_v29  ;;  %v5362_v11 = vadd.f32 %v7808_v50, %v7806_v41  ;;  %v5746_v57 = vmul.f32 %v8433_v3, %v7808_v50  ;;  %v8437_v29 = vld [vmem:[%s15513_s0 + $0x680] sm:$0xff] }
 0x726   :  { %v7812_v23 = vpop.eup %7811  ;;  %v5874_v27 = vmul.f32 %v8434_v9, %v7810_v59  ;;  %7825 = vpow2.f32 %v5068_v52  ;;  %v4404_v14 = vsub.f32 %v16366_v56, %v4340_v7  ;;  %v4596_v18 = vsub.f32 %v16629_v60, %v4340_v7 }
 0x727   :  { %v5426_v47 = vadd.f32 %v7810_v59, %v5362_v11  ;;  %v5810_v46 = vadd.f32 %v5746_v57, %v5682_v0  ;;  %v6002_v44 = vmul.f32 %v8435_v33, %v7812_v23  ;;  %7827 = vpow2.f32 %v5260_v61 }
 0x728   :  { %v7814_v15 = vpop.eup %7813  ;;  %v4490_v1 = vmul.f32 1.442695, %v4404_v14  ;;  %v4682_v26 = vmul.f32 1.442695, %v4596_v18  ;;  %v4788_v16 = vsub.f32 %v16630_v36, %v4340_v7  ;;  %v4980_v8 = vsub.f32 %v16631_v48, %v4340_v7  ;;  %v8440_v36 = vld [vmem:[%s15513_s0 + $0x690] sm:$0xff] }
 0x729   :  { %v7816_v13 = vpop.eup %7815  ;;  %v5490_v58 = vadd.f32 %v7812_v23, %v5426_v47  ;;  %v5938_v56 = vadd.f32 %v5874_v27, %v5810_v46  ;;  %v6130_v37 = vmul.f32 %v8436_v42, %v7814_v15  ;;  %v5172_v43 = vsub.f32 %v13953_v31, %v4340_v7  ;;  %v16633_v47 = vld [vmem:[#allocation77_spill] sm:$0xff] }
 0x72a   :  { %v7818_v19 = vpop.eup %7817  ;;  %v6256_v32 = vmul.f32 %v7816_v13, %v6192_v45  ;;  %7829 = vpow2.f32 %v4490_v1  ;;  %v4874_v10 = vmul.f32 1.442695, %v4788_v16  ;;  %v5066_v28 = vmul.f32 1.442695, %v4980_v8  ;;  %v8438_v45 = vld [vmem:[%s15513_s0 + $0x6a0] sm:$0xff] }
 0x72b   :  { %v7820_v39 = vpop.eup %7819  ;;  %v5554_v41 = vadd.f32 %v7814_v15, %v5490_v58  ;;  %v6066_v4 = vadd.f32 %v6002_v44, %v5938_v56  ;;  %v5685_v50 = vmul.f32 %v8437_v29, %v7818_v19  ;;  %7831 = vpow2.f32 %v4682_v26  ;;  %v16635_v44 = vld [vmem:[#allocation72_spill] sm:$0xff] }
 0x72c   :  { %6320 = vst [vmem:[%s15517_s5 + $0x90] sm:$0xff] %v6256_v32  ;;  %v5365_v31 = vadd.f32 %v7820_v39, %v7818_v19  ;;  %v5749_v7 = vmul.f32 %v8438_v45, %v7820_v39  ;;  %7833 = vpow2.f32 %v4874_v10  ;;  %v5258_v62 = vmul.f32 1.442695, %v5172_v43  ;;  %v16636_v32 = vld [vmem:[#allocation74_spill] sm:$0xff] }
 0x72d   :  { %7835 = vrcp.f32 %v5554_v41  ;;  %v6194_v0 = vadd.f32 %v6130_v37, %v6066_v4  ;;  %v4343_v52 = vmax.f32 %v12835_v38, %v14014_v40  ;;  %v14055_v61 = vmax.f32 %v12846_v25, %v14018_v24  ;;  %v8439_v38 = vld [vmem:[%s15513_s0 + $0x6b0] sm:$0xff]  ;;  %v16638_v41 = vld [vmem:[#allocation69_spill] sm:$0xff] }
 0x72e   :  { %v7822_v59 = vpop.eup %7821  ;;  %v5813_v11 = vadd.f32 %v5749_v7, %v5685_v50  ;;  %7837 = vpow2.f32 %v5066_v28  ;;  %v14059_v3 = vadd.f32 %v13569_v53, %v13238_v12  ;;  %v14063_v57 = vadd.f32 %v13592_v49, %v13238_v12  ;;  %v16632_v25 = vld [vmem:[#allocation76_spill] sm:$0xff]  ;;  %v16634_v53 = vld [vmem:[#allocation70_spill] sm:$0xff]  ;;  %v16637_v28 = vld [vmem:[#allocation75_spill] sm:$0xff] }
 0x72f   :  { %v7824_v23 = vpop.eup %7823  ;;  %v5429_v9 = vadd.f32 %v7822_v59, %v5365_v31  ;;  %v5877_v27 = vmul.f32 %v8439_v38, %v7822_v59  ;;  %7839 = vpow2.f32 %v5258_v62  ;;  %v4407_v14 = vsub.f32 %v16632_v25, %v4343_v52  ;;  %v8442_v31 = vld [vmem:[%s15513_s0 + $0x638] sm:$0xff] }
 0x730   :  { %v7826_v60 = vpop.eup %7825  ;;  %v6259_v18 = vmul.f32 %v7824_v23, %v6195_v51  ;;  %v4599_v46 = vsub.f32 %v16633_v47, %v4343_v52  ;;  %v4791_v33 = vsub.f32 %v16634_v53, %v4343_v52  ;;  %v4983_v15 = vsub.f32 %v16635_v44, %v4343_v52  ;;  %v8441_v51 = vld [vmem:[%s15513_s0 + $0x698] sm:$0xff]  ;;  %v8445_v53 = vld [vmem:[%s15513_s0 + $0x648] sm:$0xff] }
 0x731   :  { %v7828_v49 = vpop.eup %7827  ;;  %v5493_v1 = vadd.f32 %v7826_v60, %v5429_v9  ;;  %v5941_v26 = vadd.f32 %v5877_v27, %v5813_v11  ;;  %v6005_v16 = vmul.f32 %v8440_v36, %v7826_v60  ;;  %v4496_v48 = vmul.f32 1.442695, %v4407_v14  ;;  %v8444_v9 = vld [vmem:[%s15513_s0 + $0x668] sm:$0xff] }
 0x732   :  { %6323 = vst [vmem:[%s15517_s5 + $0xa8] sm:$0xff] %v6259_v18  ;;  %v6133_v8 = vmul.f32 %v8441_v51, %v7828_v49  ;;  %v4688_v13 = vmul.f32 1.442695, %v4599_v46  ;;  %v4880_v58 = vmul.f32 1.442695, %v4791_v33  ;;  %v5175_v43 = vsub.f32 %v14014_v40, %v4343_v52  ;;  %v8443_v52 = vld [vmem:[%s15513_s0 + $0x658] sm:$0xff] }
 0x733   :  { %v5072_v56 = vmul.f32 1.442695, %v4983_v15  ;;  %v5557_v42 = vadd.f32 %v7828_v49, %v5493_v1  ;;  %v6069_v37 = vadd.f32 %v6005_v16, %v5941_v26  ;;  %7841 = vpow2.f32 %v4496_v48  ;;  %v16639_v44 = vld [vmem:[#allocation47_spill] sm:$0xff]  ;;  %v8446_v26 = vld [vmem:[%s15513_s0 + $0x650] sm:$0xff] }
 0x734   :  { %v7830_v19 = vpop.eup %7829  ;;  %7843 = vpow2.f32 %v4688_v13  ;;  %v4406_v10 = vsub.f32 %v16636_v32, %v14055_v61  ;;  %v4598_v39 = vsub.f32 %v16637_v28, %v14055_v61  ;;  %v4790_v4 = vsub.f32 %v16638_v41, %v14055_v61  ;;  %v16640_v51 = vld [vmem:[#allocation208_spill] sm:$0xff] }
 0x735   :  { %v7832_v29 = vpop.eup %7831  ;;  %7845 = vrcp.f32 %v5557_v42  ;;  %v6197_v50 = vadd.f32 %v6133_v8, %v6069_v37  ;;  %v5684_v45 = vmul.f32 %v8442_v31, %v7830_v19  ;;  %v5264_v40 = vmul.f32 1.442695, %v5175_v43  ;;  %v16642_v37 = vld [vmem:[#allocation80_spill] sm:$0xff]  ;;  %v16645_v31 = vld [vmem:[#allocation195_spill] sm:$0xff] }
 0x736   :  { %v7834_v7 = vpop.eup %7833  ;;  %v5364_v62 = vadd.f32 %v7832_v29, %v7830_v19  ;;  %v5748_v59 = vmul.f32 %v8443_v52, %v7832_v29  ;;  %7847 = vpow2.f32 %v4880_v58  ;;  %v4494_v11 = vmul.f32 1.442695, %v4406_v10  ;;  %v16643_v19 = vld [vmem:[#allocation81_spill] sm:$0xff]  ;;  %v16644_v10 = vld [vmem:[#allocation194_spill] sm:$0xff] }
 0x737   :  { %v7836_v23 = vpop.eup %7835  ;;  %v5876_v38 = vmul.f32 %v8444_v9, %v7834_v7  ;;  %7849 = vpow2.f32 %v5072_v56  ;;  %v4686_v27 = vmul.f32 1.442695, %v4598_v39  ;;  %v4878_v25 = vmul.f32 1.442695, %v4790_v4  ;;  %v8447_v4 = vld [vmem:[%s15513_s0 + $0x710] sm:$0xff] }
 0x738   :  { %v7838_v14 = vpop.eup %7837  ;;  %v6258_v60 = vmul.f32 %v7836_v23, %v6194_v0  ;;  %v5428_v18 = vadd.f32 %v7834_v7, %v5364_v62  ;;  %v5812_v47 = vadd.f32 %v5748_v59, %v5684_v45  ;;  %7851 = vpow2.f32 %v5264_v40  ;;  %v8448_v7 = vld [vmem:[%s15513_s0 + $0x730] sm:$0xff] }
 0x739   :  { %v7840_v46 = vpop.eup %7839  ;;  %v6004_v33 = vmul.f32 %v8445_v53, %v7838_v14  ;;  %7853 = vpow2.f32 %v4494_v11  ;;  %v4982_v15 = vsub.f32 %v16639_v44, %v14055_v61  ;;  %v5174_v49 = vsub.f32 %v14018_v24, %v14055_v61  ;;  %v16641_v61 = vld [vmem:[#allocation209_spill] sm:$0xff] }
 0x73a   :  { %6322 = vst [vmem:[%s15517_s5 + $0xa0] sm:$0xff] %v6258_v60  ;;  %v5492_v0 = vadd.f32 %v7838_v14, %v5428_v18  ;;  %v5940_v1 = vadd.f32 %v5876_v38, %v5812_v47  ;;  %v6132_v36 = vmul.f32 %v8446_v26, %v7840_v46  ;;  %7855 = vpow2.f32 %v4686_v27  ;;  %v8449_v60 = vld [vmem:[%s15513_s0 + $0x740] sm:$0xff] }
 0x73b   :  { %7857 = vpow2.f32 %v4878_v25  ;;  %v5070_v16 = vmul.f32 1.442695, %v4982_v15  ;;  %v5262_v48 = vmul.f32 1.442695, %v5174_v49  ;;  %v4345_v8 = vmax.f32 %v16640_v51, %v14059_v3 }
 0x73c   :  { %v5556_v13 = vadd.f32 %v7840_v46, %v5492_v0  ;;  %v6068_v24 = vadd.f32 %v6004_v33, %v5940_v1  ;;  %v14114_v58 = vmax.f32 %v16641_v61, %v14063_v57  ;;  %v14118_v56 = vadd.f32 %v13634_v30, %v13238_v12  ;;  %v16646_v33 = vld [vmem:[#allocation78_spill] sm:$0xff]  ;;  %v8451_v1 = vld [vmem:[%s15513_s0 + $0x728] sm:$0xff] }
 0x73d   :  { %v7842_v42 = vpop.eup %7841  ;;  %7859 = vpow2.f32 %v5070_v16  ;;  %v4409_v43 = vsub.f32 %v16642_v37, %v4345_v8  ;;  %v4601_v32 = vsub.f32 %v16643_v19, %v4345_v8  ;;  %v4793_v28 = vsub.f32 %v16644_v10, %v4345_v8  ;;  %v8452_v16 = vld [vmem:[%s15513_s0 + $0x6c8] sm:$0xff] }
 0x73e   :  { %v7844_v39 = vpop.eup %7843  ;;  %7861 = vrcp.f32 %v5556_v13  ;;  %v14123_v41 = vadd.f32 %v6132_v36, %v6068_v24  ;;  %v5687_v29 = vmul.f32 %v8447_v4, %v7842_v42  ;;  %v4985_v30 = vsub.f32 %v16645_v31, %v4345_v8 }
 0x73f   :  { %v7846_v45 = vpop.eup %7845  ;;  %v5367_v40 = vadd.f32 %v7844_v39, %v7842_v42  ;;  %v5751_v62 = vmul.f32 %v8448_v7, %v7844_v39  ;;  %7863 = vpow2.f32 %v5262_v48  ;;  %v4500_v52 = vmul.f32 1.442695, %v4409_v43  ;;  %v8453_v42 = vld [vmem:[%s15513_s0 + $0x6e8] sm:$0xff]  ;;  %v8454_v43 = vld [vmem:[%s15513_s0 + $0x6f8] sm:$0xff] }
 0x740   :  { %v7848_v59 = vpop.eup %7847  ;;  %v6261_v11 = vmul.f32 %v7846_v45, %v6197_v50  ;;  %v4692_v23 = vmul.f32 1.442695, %v4601_v32  ;;  %v4884_v9 = vmul.f32 1.442695, %v4793_v28  ;;  %v5076_v38 = vmul.f32 1.442695, %v4985_v30 }
 0x741   :  { %v7850_v27 = vpop.eup %7849  ;;  %v5431_v25 = vadd.f32 %v7848_v59, %v5367_v40  ;;  %v5815_v14 = vadd.f32 %v5751_v62, %v5687_v29  ;;  %v5879_v18 = vmul.f32 %v8449_v60, %v7848_v59  ;;  %7865 = vpow2.f32 %v4500_v52  ;;  %v8450_v50 = vld [vmem:[%s15513_s0 + $0x720] sm:$0xff]  ;;  %v16647_v32 = vld [vmem:[#allocation79_spill] sm:$0xff]  ;;  %v16648_v28 = vld [vmem:[#allocation73_spill] sm:$0xff] }
 0x742   :  { %v7852_v47 = vpop.eup %7851  ;;  %6325 = vst [vmem:[%s15517_s5 + $0xb8] sm:$0xff] %v6261_v11  ;;  %v6007_v46 = vmul.f32 %v8450_v50, %v7850_v27  ;;  %7867 = vpow2.f32 %v4692_v23  ;;  %v5177_v53 = vsub.f32 %v14059_v3, %v4345_v8  ;;  %v4408_v44 = vsub.f32 %v16646_v33, %v14114_v58  ;;  %v8455_v40 = vld [vmem:[%s15513_s0 + $0x6d8] sm:$0xff] }
 0x743   :  { %v7854_v15 = vpop.eup %7853  ;;  %v5495_v49 = vadd.f32 %v7850_v27, %v5431_v25  ;;  %v5943_v0 = vadd.f32 %v5879_v18, %v5815_v14  ;;  %v6135_v26 = vmul.f32 %v8451_v1, %v7852_v47  ;;  %7869 = vpow2.f32 %v4884_v9  ;;  %v8456_v25 = vld [vmem:[%s15513_s0 + $0x6e0] sm:$0xff]  ;;  %v16650_v18 = vld [vmem:[#allocation220_spill] sm:$0xff] }
 0x744   :  { %v7856_v36 = vpop.eup %7855  ;;  %v5686_v48 = vmul.f32 %v8452_v16, %v7854_v15  ;;  %7871 = vpow2.f32 %v5076_v38  ;;  %v5268_v3 = vmul.f32 1.442695, %v5177_v53  ;;  %v4498_v51 = vmul.f32 1.442695, %v4408_v44  ;;  %v16649_v38 = vld [vmem:[#allocation193_spill] sm:$0xff]  ;;  %v8457_v44 = vld [vmem:[%s15513_s0 + $0x7a0] sm:$0xff] }
 0x745   :  { %v7858_v8 = vpop.eup %7857  ;;  %v5559_v13 = vadd.f32 %v7852_v47, %v5495_v49  ;;  %v6071_v24 = vadd.f32 %v6007_v46, %v5943_v0  ;;  %v5366_v61 = vadd.f32 %v7856_v36, %v7854_v15  ;;  %v5750_v37 = vmul.f32 %v8453_v42, %v7856_v36  ;;  %v16652_v0 = vld [vmem:[#allocation42_spill] sm:$0xff] }
 0x746   :  { %v5878_v19 = vmul.f32 %v8454_v43, %v7858_v8  ;;  %7873 = vpow2.f32 %v5268_v3  ;;  %v4600_v10 = vsub.f32 %v16647_v32, %v14114_v58  ;;  %v4792_v39 = vsub.f32 %v16648_v28, %v14114_v58  ;;  %v8460_v43 = vld [vmem:[%s15513_s0 + $0x7b0] sm:$0xff] }
 0x747   :  { %v7860_v4 = vpop.eup %7859  ;;  %7875 = vrcp.f32 %v5559_v13  ;;  %v6199_v29 = vadd.f32 %v6135_v26, %v6071_v24  ;;  %v5430_v31 = vadd.f32 %v7858_v8, %v5366_v61  ;;  %v5814_v30 = vadd.f32 %v5750_v37, %v5686_v48  ;;  %v8458_v48 = vld [vmem:[%s15513_s0 + $0x7c0] sm:$0xff]  ;;  %v8459_v8 = vld [vmem:[%s15513_s0 + $0x7d0] sm:$0xff] }
 0x748   :  { %v7862_v45 = vpop.eup %7861  ;;  %v6006_v7 = vmul.f32 %v8455_v40, %v7860_v4  ;;  %7877 = vpow2.f32 %v4498_v51  ;;  %v4690_v62 = vmul.f32 1.442695, %v4600_v10  ;;  %v4882_v52 = vmul.f32 1.442695, %v4792_v39  ;;  %v16653_v10 = vld [vmem:[#allocation198_spill] sm:$0xff]  ;;  %v16654_v39 = vld [vmem:[#allocation199_spill] sm:$0xff] }
 0x749   :  { %v7864_v59 = vpop.eup %7863  ;;  %v6260_v11 = vmul.f32 %v7862_v45, %v14123_v41  ;;  %v5494_v23 = vadd.f32 %v7860_v4, %v5430_v31  ;;  %v5942_v9 = vadd.f32 %v5878_v19, %v5814_v30  ;;  %v4984_v27 = vsub.f32 %v16649_v38, %v14114_v58 }
 0x74a   :  { %v6134_v14 = vmul.f32 %v8456_v25, %v7864_v59  ;;  %7879 = vpow2.f32 %v4690_v62  ;;  %v5176_v60 = vsub.f32 %v14063_v57, %v14114_v58  ;;  %v4347_v47 = vmax.f32 %v16650_v18, %v14118_v56  ;;  %v16651_v57 = vld [vmem:[#allocation84_spill] sm:$0xff] }
 0x74b   :  { %v7866_v50 = vpop.eup %7865  ;;  %6324 = vst [vmem:[%s15517_s5 + $0xb0] sm:$0xff] %v6260_v11  ;;  %v5558_v41 = vadd.f32 %v7864_v59, %v5494_v23  ;;  %v6070_v46 = vadd.f32 %v6006_v7, %v5942_v9  ;;  %7881 = vpow2.f32 %v4882_v52  ;;  %v5074_v53 = vmul.f32 1.442695, %v4984_v27  ;;  %v8461_v7 = vld [vmem:[%s15513_s0 + $0x7b8] sm:$0xff] }
 0x74c   :  { %v7868_v33 = vpop.eup %7867  ;;  %v5689_v15 = vmul.f32 %v8457_v44, %v7866_v50  ;;  %v5266_v49 = vmul.f32 1.442695, %v5176_v60  ;;  %v4411_v58 = vsub.f32 %v16651_v57, %v4347_v47  ;;  %v4603_v1 = vsub.f32 %v16652_v0, %v4347_v47 }
 0x74d   :  { %v7870_v26 = vpop.eup %7869  ;;  %7883 = vrcp.f32 %v5558_v41  ;;  %v6198_v36 = vadd.f32 %v6134_v14, %v6070_v46  ;;  %v5369_v16 = vadd.f32 %v7868_v33, %v7866_v50  ;;  %v5753_v3 = vmul.f32 %v8458_v48, %v7868_v33  ;;  %v8463_v46 = vld [vmem:[%s15513_s0 + $0x778] sm:$0xff] }
 0x74e   :  { %v7872_v51 = vpop.eup %7871  ;;  %v5881_v13 = vmul.f32 %v8459_v8, %v7870_v26  ;;  %7885 = vpow2.f32 %v5074_v53  ;;  %v4504_v24 = vmul.f32 1.442695, %v4411_v58  ;;  %v4696_v61 = vmul.f32 1.442695, %v4603_v1  ;;  %v16657_v1 = vld [vmem:[#allocation232_spill] sm:$0xff]  ;;  %v16659_v8 = vld [vmem:[#allocation83_spill] sm:$0xff] }
 0x74f   :  { %v5433_v42 = vadd.f32 %v7870_v26, %v5369_v16  ;;  %v5817_v37 = vadd.f32 %v5753_v3, %v5689_v15  ;;  %v6009_v19 = vmul.f32 %v8460_v43, %v7872_v51  ;;  %7887 = vpow2.f32 %v5266_v49  ;;  %v14227_v49 = vpop.f32.mrb[169].mxu1  ;;  %v16658_v3 = vld [vmem:[#allocation82_spill] sm:$0xff] }
 0x750   :  { %v7874_v32 = vpop.eup %7873  ;;  %7889 = vpow2.f32 %v4504_v24  ;;  %v4795_v28 = vsub.f32 %v16653_v10, %v4347_v47  ;;  %v4987_v4 = vsub.f32 %v16654_v39, %v4347_v47  ;;  %v5179_v31 = vsub.f32 %v14118_v56, %v4347_v47  ;;  %v8462_v56 = vld [vmem:[%s15513_s0 + $0x758] sm:$0xff]  ;;  %v16660_v24 = vld [vmem:[#allocation196_spill] sm:$0xff] }
 0x751   :  { %v7876_v30 = vpop.eup %7875  ;;  %v5497_v45 = vadd.f32 %v7872_v51, %v5433_v42  ;;  %v5945_v40 = vadd.f32 %v5881_v13, %v5817_v37  ;;  %v6137_v62 = vmul.f32 %v8461_v7, %v7874_v32  ;;  %7891 = vpow2.f32 %v4696_v61  ;;  %v16661_v10 = vld [vmem:[#allocation197_spill] sm:$0xff] }
 0x752   :  { %v7878_v52 = vpop.eup %7877  ;;  %v6263_v59 = vmul.f32 %v7876_v30, %v6199_v29  ;;  %v4888_v11 = vmul.f32 1.442695, %v4795_v28  ;;  %v5080_v23 = vmul.f32 1.442695, %v4987_v4  ;;  %v5272_v9 = vmul.f32 1.442695, %v5179_v31 }
 0x753   :  { %v5561_v38 = vadd.f32 %v7874_v32, %v5497_v45  ;;  %v6073_v27 = vadd.f32 %v6009_v19, %v5945_v40  ;;  %v5688_v25 = vmul.f32 %v8462_v56, %v7878_v52  ;;  %v3948_v14 = vadd.f32 %v13665_v2, %v13238_v12  ;;  %v8465_v19 = vld [vmem:[%s15513_s0 + $0x768] sm:$0xff] }
 0x754   :  { %v7880_v60 = vpop.eup %7879  ;;  %6327 = vst [vmem:[%s15517_s5 + $0xc8] sm:$0xff] %v6263_v59  ;;  %7893 = vpow2.f32 %v4888_v11  ;;  %v14206_v29 = vadd.f32 %v13707_v6, %v13238_v12  ;;  %v14210_v18 = vadd.f32 %v13724_v17, %v13238_v12  ;;  %v14214_v47 = vadd.f32 %v13759_v55, %v13238_v12  ;;  %v8464_v6 = vld [vmem:[%s15513_s0 + $0x788] sm:$0xff]  ;;  %v16656_v55 = vld [vmem:[#allocation234_spill] sm:$0xff] }
 0x755   :  { %v7882_v50 = vpop.eup %7881  ;;  %7895 = vrcp.f32 %v5561_v38  ;;  %v6201_v2 = vadd.f32 %v6137_v62, %v6073_v27  ;;  %v5368_v41 = vadd.f32 %v7880_v60, %v7878_v52  ;;  %v5752_v53 = vmul.f32 %v8463_v46, %v7880_v60  ;;  %v16655_v17 = vld [vmem:[#allocation223_spill] sm:$0xff]  ;;  %v8467_v52 = vld [vmem:[%s15513_s0 + $0x830] sm:$0xff] }
 0x756   :  { %v5880_v33 = vmul.f32 %v8464_v6, %v7882_v50  ;;  %7897 = vpow2.f32 %v5080_v23  ;;  %v4346_v44 = vmax.f32 %v16655_v17, %v3948_v14  ;;  %v14225_v15 = vmax.f32 %v16656_v55, %v14206_v29  ;;  %v14249_v23 = vpop.f32.mrb[170].mxu1  ;;  %v8468_v38 = vld [vmem:[%s15513_s0 + $0x850] sm:$0xff]  ;;  %v16662_v60 = vld [vmem:[#allocation87_spill] sm:$0xff]  ;;  %v16664_v17 = vld [vmem:[#allocation202_spill] sm:$0xff] }
 0x757   :  { %v7884_v57 = vpop.eup %7883  ;;  %v5432_v58 = vadd.f32 %v7882_v50, %v5368_v41  ;;  %v5816_v0 = vadd.f32 %v5752_v53, %v5688_v25  ;;  %7899 = vpow2.f32 %v5272_v9  ;;  %v14231_v26 = vmax.f32 %v16657_v1, %v14210_v18  ;;  %v16663_v41 = vld [vmem:[#allocation45_spill] sm:$0xff] }
 0x758   :  { %v7886_v16 = vpop.eup %7885  ;;  %v6262_v48 = vmul.f32 %v7884_v57, %v6198_v36  ;;  %v4410_v51 = vsub.f32 %v16658_v3, %v4346_v44  ;;  %v4602_v13 = vsub.f32 %v16659_v8, %v4346_v44  ;;  %v4794_v61 = vsub.f32 %v16660_v24, %v4346_v44  ;;  %v8466_v36 = vld [vmem:[%s15513_s0 + $0x770] sm:$0xff]  ;;  %v8470_v24 = vld [vmem:[%s15513_s0 + $0x840] sm:$0xff] }
 0x759   :  { %v7888_v42 = vpop.eup %7887  ;;  %v5496_v37 = vadd.f32 %v7886_v16, %v5432_v58  ;;  %v5944_v43 = vadd.f32 %v5880_v33, %v5816_v0  ;;  %v6008_v32 = vmul.f32 %v8465_v19, %v7886_v16  ;;  %v4986_v28 = vsub.f32 %v16661_v10, %v4346_v44 }
 0x75a   :  { %v7890_v39 = vpop.eup %7889  ;;  %6326 = vst [vmem:[%s15517_s5 + $0xc0] sm:$0xff] %v6262_v48  ;;  %v6136_v4 = vmul.f32 %v8466_v36, %v7888_v42  ;;  %v4502_v31 = vmul.f32 1.442695, %v4410_v51  ;;  %v4694_v30 = vmul.f32 1.442695, %v4602_v13  ;;  %v5178_v56 = vsub.f32 %v3948_v14, %v4346_v44  ;;  %v8469_v14 = vld [vmem:[%s15513_s0 + $0x860] sm:$0xff] }
 0x75b   :  { %v4886_v45 = vmul.f32 1.442695, %v4794_v61  ;;  %v7892_v40 = vpop.eup %7891  ;;  %v5560_v7 = vadd.f32 %v7888_v42, %v5496_v37  ;;  %v6072_v62 = vadd.f32 %v6008_v32, %v5944_v43  ;;  %v5691_v59 = vmul.f32 %v8467_v52, %v7890_v39  ;;  %v16665_v37 = vld [vmem:[#allocation203_spill] sm:$0xff]  ;;  %v14278_v36 = vpop.f32.mrb[171].mxu1 }
 0x75c   :  { %v5078_v11 = vmul.f32 1.442695, %v4986_v28  ;;  %v5371_v9 = vadd.f32 %v7892_v40, %v7890_v39  ;;  %v5755_v27 = vmul.f32 %v8468_v38, %v7892_v40  ;;  %7901 = vpow2.f32 %v4502_v31  ;;  %v16666_v28 = vld [vmem:[#allocation85_spill] sm:$0xff] }
 0x75d   :  { %7903 = vrcp.f32 %v5560_v7  ;;  %v6200_v25 = vadd.f32 %v6136_v4, %v6072_v62  ;;  %v4413_v50 = vsub.f32 %v16662_v60, %v14225_v15  ;;  %v4605_v46 = vsub.f32 %v16663_v41, %v14225_v15 }
 0x75e   :  { %v7894_v53 = vpop.eup %7893  ;;  %v5819_v6 = vadd.f32 %v5755_v27, %v5691_v59  ;;  %7905 = vpow2.f32 %v4694_v30  ;;  %v5270_v33 = vmul.f32 1.442695, %v5178_v56  ;;  %v4797_v55 = vsub.f32 %v16664_v17, %v14225_v15  ;;  %v16667_v30 = vld [vmem:[#allocation86_spill] sm:$0xff]  ;;  %v16669_v59 = vld [vmem:[#allocation201_spill] sm:$0xff]  ;;  %v8472_v27 = vld [vmem:[%s15513_s0 + $0x7e8] sm:$0xff] }
 0x75f   :  { %v7896_v57 = vpop.eup %7895  ;;  %v5435_v58 = vadd.f32 %v7894_v53, %v5371_v9  ;;  %v5883_v44 = vmul.f32 %v8469_v14, %v7894_v53  ;;  %7907 = vpow2.f32 %v4886_v45  ;;  %v4508_v0 = vmul.f32 1.442695, %v4413_v50  ;;  %v16670_v50 = vld [vmem:[#allocation242_spill] sm:$0xff] }
 0x760   :  { %v7898_v1 = vpop.eup %7897  ;;  %v6265_v16 = vmul.f32 %v7896_v57, %v6201_v2  ;;  %7909 = vpow2.f32 %v5078_v11  ;;  %v4700_v48 = vmul.f32 1.442695, %v4605_v46  ;;  %v4892_v3 = vmul.f32 1.442695, %v4797_v55  ;;  %v8471_v2 = vld [vmem:[%s15513_s0 + $0x848] sm:$0xff]  ;;  %v16671_v57 = vld [vmem:[#allocation90_spill] sm:$0xff] }
 0x761   :  { %v7900_v51 = vpop.eup %7899  ;;  %v5499_v8 = vadd.f32 %v7898_v1, %v5435_v58  ;;  %v5947_v13 = vadd.f32 %v5883_v44, %v5819_v6  ;;  %v6011_v61 = vmul.f32 %v8470_v24, %v7898_v1  ;;  %7911 = vpow2.f32 %v5270_v33 }
 0x762   :  { %6329 = vst [vmem:[%s15517_s5 + $0xd8] sm:$0xff] %v6265_v16  ;;  %v6139_v42 = vmul.f32 %v8471_v2, %v7900_v51  ;;  %7913 = vpow2.f32 %v4508_v0  ;;  %v4989_v43 = vsub.f32 %v16665_v37, %v14225_v15  ;;  %v5181_v19 = vsub.f32 %v14206_v29, %v14225_v15  ;;  %v16668_v29 = vld [vmem:[#allocation200_spill] sm:$0xff]  ;;  %v16672_v0 = vld [vmem:[#allocation91_spill] sm:$0xff]  ;;  %v16673_v16 = vld [vmem:[#allocation206_spill] sm:$0xff] }
 0x763   :  { %v5563_v32 = vadd.f32 %v7900_v51, %v5499_v8  ;;  %v6075_v10 = vadd.f32 %v6011_v61, %v5947_v13  ;;  %7915 = vpow2.f32 %v4700_v48  ;;  %v4412_v39 = vsub.f32 %v16666_v28, %v14231_v26  ;;  %v8475_v13 = vld [vmem:[%s15513_s0 + $0x7f8] sm:$0xff]  ;;  %v14315_v61 = vpop.f32.mrb[172].mxu1 }
 0x764   :  { %7917 = vpow2.f32 %v4892_v3  ;;  %v5084_v4 = vmul.f32 1.442695, %v4989_v43  ;;  %v5276_v31 = vmul.f32 1.442695, %v5181_v19  ;;  %v4604_v45 = vsub.f32 %v16667_v30, %v14231_v26 }
 0x765   :  { %7919 = vrcp.f32 %v5563_v32  ;;  %v14282_v40 = vadd.f32 %v6139_v42, %v6075_v10  ;;  %v4506_v7 = vmul.f32 1.442695, %v4412_v39  ;;  %v4796_v15 = vsub.f32 %v16668_v29, %v14231_v26  ;;  %v8476_v42 = vld [vmem:[%s15513_s0 + $0x800] sm:$0xff] }
 0x766   :  { %v7902_v62 = vpop.eup %7901  ;;  %7921 = vpow2.f32 %v5084_v4  ;;  %v4698_v52 = vmul.f32 1.442695, %v4604_v45  ;;  %v4988_v11 = vsub.f32 %v16669_v59, %v14231_v26  ;;  %v5180_v9 = vsub.f32 %v14210_v18, %v14231_v26  ;;  %v8473_v18 = vld [vmem:[%s15513_s0 + $0x808] sm:$0xff]  ;;  %v8477_v39 = vld [vmem:[%s15513_s0 + $0x8c0] sm:$0xff] }
 0x767   :  { %v7904_v38 = vpop.eup %7903  ;;  %v5690_v56 = vmul.f32 %v8472_v27, %v7902_v62  ;;  %7923 = vpow2.f32 %v5276_v31  ;;  %v4890_v60 = vmul.f32 1.442695, %v4796_v15  ;;  %v14295_v41 = vmax.f32 %v16670_v50, %v14214_v47  ;;  %v16674_v15 = vld [vmem:[#allocation207_spill] sm:$0xff] }
 0x768   :  { %v7906_v46 = vpop.eup %7905  ;;  %v6264_v53 = vmul.f32 %v7904_v38, %v6200_v25  ;;  %7925 = vpow2.f32 %v4506_v7  ;;  %v5082_v6 = vmul.f32 1.442695, %v4988_v11  ;;  %v5274_v33 = vmul.f32 1.442695, %v5180_v9  ;;  %v8474_v25 = vld [vmem:[%s15513_s0 + $0x818] sm:$0xff]  ;;  %v8478_v7 = vld [vmem:[%s15513_s0 + $0x8e0] sm:$0xff] }
 0x769   :  { %v7908_v17 = vpop.eup %7907  ;;  %v5370_v55 = vadd.f32 %v7906_v46, %v7902_v62  ;;  %v5754_v26 = vmul.f32 %v8473_v18, %v7906_v46  ;;  %7927 = vpow2.f32 %v4698_v52  ;;  %v4415_v58 = vsub.f32 %v16671_v57, %v14295_v41  ;;  %v8479_v9 = vld [vmem:[%s15513_s0 + $0x8f0] sm:$0xff] }
 0x76a   :  { %v7910_v14 = vpop.eup %7909  ;;  %6328 = vst [vmem:[%s15517_s5 + $0xd0] sm:$0xff] %v6264_v53  ;;  %v5882_v44 = vmul.f32 %v8474_v25, %v7908_v17  ;;  %7929 = vpow2.f32 %v4890_v60  ;;  %v4607_v1 = vsub.f32 %v16672_v0, %v14295_v41  ;;  %v4799_v48 = vsub.f32 %v16673_v16, %v14295_v41  ;;  %v8482_v25 = vld [vmem:[%s15513_s0 + $0x878] sm:$0xff] }
 0x76b   :  { %v7912_v3 = vpop.eup %7911  ;;  %v5434_v51 = vadd.f32 %v7908_v17, %v5370_v55  ;;  %v5818_v8 = vadd.f32 %v5754_v26, %v5690_v56  ;;  %v6010_v24 = vmul.f32 %v8475_v13, %v7910_v14  ;;  %7931 = vpow2.f32 %v5082_v6  ;;  %v8480_v6 = vld [vmem:[%s15513_s0 + $0x8d0] sm:$0xff]  ;;  %v8481_v26 = vld [vmem:[%s15513_s0 + $0x8d8] sm:$0xff]  ;;  %v8484_v13 = vld [vmem:[%s15513_s0 + $0x8a8] sm:$0xff] }
 0x76c   :  { %v7914_v2 = vpop.eup %7913  ;;  %v6138_v37 = vmul.f32 %v8476_v42, %v7912_v3  ;;  %7933 = vpow2.f32 %v5274_v33  ;;  %v4512_v43 = vmul.f32 1.442695, %v4415_v58  ;;  %v4704_v19 = vmul.f32 1.442695, %v4607_v1 }
 0x76d   :  { %v7916_v32 = vpop.eup %7915  ;;  %v5498_v10 = vadd.f32 %v7910_v14, %v5434_v51  ;;  %v5946_v28 = vadd.f32 %v5882_v44, %v5818_v8  ;;  %v5693_v4 = vmul.f32 %v8477_v39, %v7914_v2  ;;  %v4896_v31 = vmul.f32 1.442695, %v4799_v48 }
 0x76e   :  { %v7918_v30 = vpop.eup %7917  ;;  %v5373_v45 = vadd.f32 %v7916_v32, %v7914_v2  ;;  %v5757_v29 = vmul.f32 %v8478_v7, %v7916_v32  ;;  %7935 = vpow2.f32 %v4512_v43  ;;  %v4991_v62 = vsub.f32 %v16674_v15, %v14295_v41  ;;  %v16675_v2 = vld [vmem:[#allocation247_spill] sm:$0xff]  ;;  %v14372_v7 = vpop.f32.mrb[173].mxu1 }
 0x76f   :  { %v7920_v52 = vpop.eup %7919  ;;  %v5562_v59 = vadd.f32 %v7912_v3, %v5498_v10  ;;  %v6074_v11 = vadd.f32 %v6010_v24, %v5946_v28  ;;  %v5885_v38 = vmul.f32 %v8479_v9, %v7918_v30  ;;  %7937 = vpow2.f32 %v4704_v19  ;;  %v8485_v28 = vld [vmem:[%s15513_s0 + $0x888] sm:$0xff] }
 0x770   :  { %v7922_v27 = vpop.eup %7921  ;;  %v6267_v56 = vmul.f32 %v7920_v52, %v14282_v40  ;;  %v5437_v60 = vadd.f32 %v7918_v30, %v5373_v45  ;;  %v5821_v50 = vadd.f32 %v5757_v29, %v5693_v4  ;;  %7939 = vpow2.f32 %v4896_v31  ;;  %v8486_v4 = vld [vmem:[%s15513_s0 + $0x890] sm:$0xff]  ;;  %v16678_v52 = vld [vmem:[#allocation89_spill] sm:$0xff] }
 0x771   :  { %v7924_v46 = vpop.eup %7923  ;;  %7941 = vrcp.f32 %v5562_v59  ;;  %v14332_v53 = vadd.f32 %v6138_v37, %v6074_v11  ;;  %v6013_v33 = vmul.f32 %v8480_v6, %v7922_v27  ;;  %v5088_v17 = vmul.f32 1.442695, %v4991_v62  ;;  %v16677_v30 = vld [vmem:[#allocation88_spill] sm:$0xff] }
 0x772   :  { %v7926_v55 = vpop.eup %7925  ;;  %6331 = vst [vmem:[%s15517_s5 + $0xe8] sm:$0xff] %v6267_v56  ;;  %v5501_v18 = vadd.f32 %v7922_v27, %v5437_v60  ;;  %v5949_v40 = vadd.f32 %v5885_v38, %v5821_v50  ;;  %v6141_v57 = vmul.f32 %v8481_v26, %v7924_v46  ;;  %v5183_v58 = vsub.f32 %v14214_v47, %v14295_v41  ;;  %v8483_v47 = vld [vmem:[%s15513_s0 + $0x898] sm:$0xff]  ;;  %v16679_v11 = vld [vmem:[#allocation204_spill] sm:$0xff] }
 0x773   :  { %v7928_v14 = vpop.eup %7927  ;;  %v5692_v44 = vmul.f32 %v8482_v25, %v7926_v55  ;;  %7943 = vpow2.f32 %v5088_v17  ;;  %v3968_v0 = vadd.f32 %v13796_v5, %v13238_v12  ;;  %v14352_v1 = vadd.f32 %v13837_v21, %v13238_v12  ;;  %v16676_v21 = vld [vmem:[#allocation256_spill] sm:$0xff]  ;;  %v16680_v50 = vld [vmem:[#allocation205_spill] sm:$0xff] }
 0x774   :  { %v7930_v16 = vpop.eup %7929  ;;  %v5565_v48 = vadd.f32 %v7924_v46, %v5501_v18  ;;  %v6077_v3 = vadd.f32 %v6013_v33, %v5949_v40  ;;  %v5372_v51 = vadd.f32 %v7928_v14, %v7926_v55  ;;  %v5756_v41 = vmul.f32 %v8483_v47, %v7928_v14  ;;  %v8487_v27 = vld [vmem:[%s15513_s0 + $0x950] sm:$0xff] }
 0x775   :  { %v7932_v8 = vpop.eup %7931  ;;  %v5884_v24 = vmul.f32 %v8484_v13, %v7930_v16  ;;  %v5280_v5 = vmul.f32 1.442695, %v5183_v58  ;;  %v4350_v42 = vmax.f32 %v16675_v2, %v3968_v0  ;;  %v14363_v37 = vmax.f32 %v16676_v21, %v14352_v1  ;;  %v8488_v40 = vld [vmem:[%s15513_s0 + $0x970] sm:$0xff]  ;;  %v8489_v58 = vld [vmem:[%s15513_s0 + $0x980] sm:$0xff]  ;;  %v16682_v21 = vld [vmem:[#allocation95_spill] sm:$0xff] }
 0x776   :  { %v7934_v43 = vpop.eup %7933  ;;  %7945 = vrcp.f32 %v5565_v48  ;;  %v6205_v19 = vadd.f32 %v6141_v57, %v6077_v3  ;;  %v5436_v32 = vadd.f32 %v7930_v16, %v5372_v51  ;;  %v5820_v10 = vadd.f32 %v5756_v41, %v5692_v44  ;;  %v14387_v3 = vpop.f32.mrb[174].mxu1 }
 0x777   :  { %v6012_v39 = vmul.f32 %v8485_v28, %v7932_v8  ;;  %v6140_v31 = vmul.f32 %v8486_v4, %v7934_v43  ;;  %7947 = vpow2.f32 %v5280_v5  ;;  %v4414_v45 = vsub.f32 %v16677_v30, %v4350_v42  ;;  %v16681_v5 = vld [vmem:[#allocation94_spill] sm:$0xff]  ;;  %v16684_v4 = vld [vmem:[#allocation213_spill] sm:$0xff] }
 0x778   :  { %v7936_v29 = vpop.eup %7935  ;;  %v5500_v15 = vadd.f32 %v7932_v8, %v5436_v32  ;;  %v5948_v62 = vadd.f32 %v5884_v24, %v5820_v10  ;;  %v4606_v59 = vsub.f32 %v16678_v52, %v4350_v42  ;;  %v4798_v9 = vsub.f32 %v16679_v11, %v4350_v42  ;;  %v8490_v24 = vld [vmem:[%s15513_s0 + $0x960] sm:$0xff]  ;;  %v16683_v32 = vld [vmem:[#allocation212_spill] sm:$0xff]  ;;  %v8491_v11 = vld [vmem:[%s15513_s0 + $0x968] sm:$0xff] }
 0x779   :  { %v7938_v38 = vpop.eup %7937  ;;  %v5695_v56 = vmul.f32 %v8487_v27, %v7936_v29  ;;  %v4510_v60 = vmul.f32 1.442695, %v4414_v45  ;;  %v4990_v46 = vsub.f32 %v16680_v50, %v4350_v42  ;;  %v5182_v6 = vsub.f32 %v3968_v0, %v4350_v42 }
 0x77a   :  { %v7940_v33 = vpop.eup %7939  ;;  %v5564_v17 = vadd.f32 %v7934_v43, %v5500_v15  ;;  %v6076_v55 = vadd.f32 %v6012_v39, %v5948_v62  ;;  %v5375_v18 = vadd.f32 %v7938_v38, %v7936_v29  ;;  %v5759_v26 = vmul.f32 %v8488_v40, %v7938_v38  ;;  %v16688_v40 = vld [vmem:[#allocation278_spill] sm:$0xff] }
 0x77b   :  { %v7942_v57 = vpop.eup %7941  ;;  %v5887_v14 = vmul.f32 %v8489_v58, %v7940_v33  ;;  %7949 = vpow2.f32 %v4510_v60  ;;  %v4702_v25 = vmul.f32 1.442695, %v4606_v59  ;;  %v4894_v44 = vmul.f32 1.442695, %v4798_v9 }
 0x77c   :  { %v6266_v0 = vmul.f32 %v7942_v57, %v14332_v53  ;;  %7951 = vrcp.f32 %v5564_v17  ;;  %v6204_v16 = vadd.f32 %v6140_v31, %v6076_v55  ;;  %v5439_v48 = vadd.f32 %v7940_v33, %v5375_v18  ;;  %v14447_v57 = vpop.f32.mrb[175].mxu1 }
 0x77d   :  { %v7944_v51 = vpop.eup %7943  ;;  %v5823_v47 = vadd.f32 %v5759_v26, %v5695_v56  ;;  %7953 = vpow2.f32 %v4702_v25  ;;  %v5086_v41 = vmul.f32 1.442695, %v4990_v46  ;;  %v5278_v8 = vmul.f32 1.442695, %v5182_v6  ;;  %v16685_v46 = vld [vmem:[#allocation259_spill] sm:$0xff] }
 0x77e   :  { %6330 = vst [vmem:[%s15517_s5 + $0xe0] sm:$0xff] %v6266_v0  ;;  %v5503_v13 = vadd.f32 %v7944_v51, %v5439_v48  ;;  %v6015_v53 = vmul.f32 %v8490_v24, %v7944_v51  ;;  %7955 = vpow2.f32 %v4894_v44  ;;  %v4417_v2 = vsub.f32 %v16681_v5, %v14363_v37  ;;  %v16690_v44 = vld [vmem:[#allocation93_spill] sm:$0xff]  ;;  %v16692_v24 = vld [vmem:[#allocation211_spill] sm:$0xff] }
 0x77f   :  { %v5951_v42 = vadd.f32 %v5887_v14, %v5823_v47  ;;  %7957 = vpow2.f32 %v5086_v41  ;;  %v4609_v43 = vsub.f32 %v16682_v21, %v14363_v37  ;;  %v4801_v10 = vsub.f32 %v16683_v32, %v14363_v37  ;;  %v16689_v14 = vld [vmem:[#allocation92_spill] sm:$0xff]  ;;  %v8493_v47 = vld [vmem:[%s15513_s0 + $0x928] sm:$0xff] }
 0x780   :  { %v7946_v28 = vpop.eup %7945  ;;  %7959 = vpow2.f32 %v5278_v8  ;;  %v4516_v39 = vmul.f32 1.442695, %v4417_v2  ;;  %v4993_v31 = vsub.f32 %v16684_v4, %v14363_v37  ;;  %v5185_v30 = vsub.f32 %v14352_v1, %v14363_v37  ;;  %v16691_v8 = vld [vmem:[#allocation210_spill] sm:$0xff] }
 0x781   :  { %v7948_v45 = vpop.eup %7947  ;;  %v6269_v29 = vmul.f32 %v7946_v28, %v6205_v19  ;;  %v6079_v15 = vadd.f32 %v6015_v53, %v5951_v42  ;;  %v4708_v62 = vmul.f32 1.442695, %v4609_v43  ;;  %v4900_v52 = vmul.f32 1.442695, %v4801_v10 }
 0x782   :  { %v5567_v59 = vadd.f32 %v7948_v45, %v5503_v13  ;;  %v6143_v9 = vmul.f32 %v8491_v11, %v7948_v45  ;;  %7961 = vpow2.f32 %v4516_v39  ;;  %v5092_v38 = vmul.f32 1.442695, %v4993_v31  ;;  %v8495_v39 = vld [vmem:[%s15513_s0 + $0x918] sm:$0xff]  ;;  %v16693_v11 = vld [vmem:[#allocation98_spill] sm:$0xff] }
 0x783   :  { %6333 = vst [vmem:[%s15517_s5 + $0xf8] sm:$0xff] %v6269_v29  ;;  %7963 = vpow2.f32 %v4708_v62  ;;  %v5284_v27 = vmul.f32 1.442695, %v5185_v30  ;;  %v3978_v1 = vadd.f32 %v13871_v63, %v13238_v12  ;;  %v14415_v37 = vadd.f32 %v13915_v34, %v13238_v12  ;;  %v16686_v63 = vld [vmem:[#allocation269_spill] sm:$0xff]  ;;  %v8496_v30 = vld [vmem:[%s15513_s0 + $0x920] sm:$0xff] }
 0x784   :  { %7965 = vrcp.f32 %v5567_v59  ;;  %v14417_v19 = vadd.f32 %v6143_v9, %v6079_v15  ;;  %v14421_v56 = vadd.f32 %v13935_v54, %v13238_v12  ;;  %v14425_v60 = vadd.f32 %v13968_v22, %v13238_v12  ;;  %v8492_v54 = vld [vmem:[%s15513_s0 + $0x908] sm:$0xff]  ;;  %v16687_v22 = vld [vmem:[#allocation270_spill] sm:$0xff] }
 0x785   :  { %v7950_v50 = vpop.eup %7949  ;;  %7967 = vpow2.f32 %v4900_v52  ;;  %v4352_v6 = vmax.f32 %v16685_v46, %v3978_v1  ;;  %v14430_v33 = vmax.f32 %v16686_v63, %v14415_v37  ;;  %v14434_v34 = vadd.f32 %v13992_v20, %v13238_v12 }
 0x786   :  { %v7952_v17 = vpop.eup %7951  ;;  %v5694_v55 = vmul.f32 %v8492_v54, %v7950_v50  ;;  %7969 = vpow2.f32 %v5092_v38  ;;  %v14441_v18 = vmax.f32 %v16687_v22, %v14421_v56  ;;  %v14445_v26 = vmax.f32 %v16688_v40, %v14425_v60  ;;  %v8498_v40 = vld [vmem:[%s15513_s0 + $0xa00] sm:$0xff] }
 0x787   :  { %v7954_v58 = vpop.eup %7953  ;;  %v6268_v20 = vmul.f32 %v7952_v17, %v6204_v16  ;;  %7971 = vpow2.f32 %v5284_v27  ;;  %v4416_v25 = vsub.f32 %v16689_v14, %v4352_v6  ;;  %v4608_v0 = vsub.f32 %v16690_v44, %v4352_v6  ;;  %v8494_v16 = vld [vmem:[%s15513_s0 + $0x938] sm:$0xff]  ;;  %v8497_v27 = vld [vmem:[%s15513_s0 + $0x9e0] sm:$0xff] }
 0x788   :  { %v7956_v48 = vpop.eup %7955  ;;  %v5374_v51 = vadd.f32 %v7954_v58, %v7950_v50  ;;  %v5758_v41 = vmul.f32 %v8493_v47, %v7954_v58  ;;  %v4800_v13 = vsub.f32 %v16691_v8, %v4352_v6  ;;  %v4992_v53 = vsub.f32 %v16692_v24, %v4352_v6  ;;  %v16694_v50 = vld [vmem:[#allocation99_spill] sm:$0xff] }
 0x789   :  { %v7958_v5 = vpop.eup %7957  ;;  %6332 = vst [vmem:[%s15517_s5 + $0xf0] sm:$0xff] %v6268_v20  ;;  %v5886_v2 = vmul.f32 %v8494_v16, %v7956_v48  ;;  %v4514_v42 = vmul.f32 1.442695, %v4416_v25  ;;  %v4706_v21 = vmul.f32 1.442695, %v4608_v0  ;;  %v5184_v43 = vsub.f32 %v3978_v1, %v4352_v6  ;;  %v16695_v6 = vld [vmem:[#allocation216_spill] sm:$0xff] }
 0x78a   :  { %v7960_v32 = vpop.eup %7959  ;;  %v5438_v10 = vadd.f32 %v7956_v48, %v5374_v51  ;;  %v5822_v28 = vadd.f32 %v5758_v41, %v5694_v55  ;;  %v6014_v4 = vmul.f32 %v8495_v39, %v7958_v5  ;;  %v4898_v31 = vmul.f32 1.442695, %v4800_v13  ;;  %v14480_v20 = vpop.f32.mrb[176].mxu1  ;;  %v8499_v13 = vld [vmem:[%s15513_s0 + $0xa10] sm:$0xff] }
 0x78b   :  { %v6142_v45 = vmul.f32 %v8496_v30, %v7960_v32  ;;  %7973 = vpow2.f32 %v4514_v42  ;;  %v5090_v29 = vmul.f32 1.442695, %v4992_v53  ;;  %v5282_v15 = vmul.f32 1.442695, %v5184_v43  ;;  %v16698_v30 = vld [vmem:[#allocation97_spill] sm:$0xff] }
 0x78c   :  { %v7962_v62 = vpop.eup %7961  ;;  %v5502_v52 = vadd.f32 %v7958_v5, %v5438_v10  ;;  %v5950_v59 = vadd.f32 %v5886_v2, %v5822_v28  ;;  %7975 = vpow2.f32 %v4706_v21  ;;  %v4419_v9 = vsub.f32 %v16693_v11, %v14430_v33  ;;  %v8501_v2 = vld [vmem:[%s15513_s0 + $0x9f8] sm:$0xff]  ;;  %v16697_v28 = vld [vmem:[#allocation96_spill] sm:$0xff]  ;;  %v16699_v11 = vld [vmem:[#allocation214_spill] sm:$0xff] }
 0x78d   :  { %v7964_v38 = vpop.eup %7963  ;;  %v5697_v1 = vmul.f32 %v8497_v27, %v7962_v62  ;;  %7977 = vpow2.f32 %v4898_v31  ;;  %v4611_v46 = vsub.f32 %v16694_v50, %v14430_v33  ;;  %v4803_v63 = vsub.f32 %v16695_v6, %v14430_v33  ;;  %v16696_v21 = vld [vmem:[#allocation217_spill] sm:$0xff] }
 0x78e   :  { %v7966_v17 = vpop.eup %7965  ;;  %v5566_v54 = vadd.f32 %v7960_v32, %v5502_v52  ;;  %v6078_v55 = vadd.f32 %v6014_v4, %v5950_v59  ;;  %v5377_v22 = vadd.f32 %v7964_v38, %v7962_v62  ;;  %v5761_v58 = vmul.f32 %v8498_v40, %v7964_v38 }
 0x78f   :  { %v7968_v14 = vpop.eup %7967  ;;  %v6271_v25 = vmul.f32 %v7966_v17, %v14417_v19  ;;  %7979 = vpow2.f32 %v5090_v29  ;;  %v4520_v44 = vmul.f32 1.442695, %v4419_v9  ;;  %v4712_v0 = vmul.f32 1.442695, %v4611_v46  ;;  %v8500_v19 = vld [vmem:[%s15513_s0 + $0x9f0] sm:$0xff]  ;;  %v14503_v29 = vpop.f32.mrb[177].mxu1 }
 0x790   :  { %v7970_v48 = vpop.eup %7969  ;;  %7981 = vrcp.f32 %v5566_v54  ;;  %v6206_v51 = vadd.f32 %v6142_v45, %v6078_v55  ;;  %v5441_v47 = vadd.f32 %v7968_v14, %v5377_v22  ;;  %v5825_v41 = vadd.f32 %v5761_v58, %v5697_v1  ;;  %v16700_v1 = vld [vmem:[#allocation215_spill] sm:$0xff]  ;;  %v8503_v17 = vld [vmem:[%s15513_s0 + $0x9b8] sm:$0xff] }
 0x791   :  { %v7972_v8 = vpop.eup %7971  ;;  %6335 = vst [vmem:[%s15517_s5 + $0x108] sm:$0xff] %v6271_v25  ;;  %v5889_v24 = vmul.f32 %v8499_v13, %v7968_v14  ;;  %v6017_v53 = vmul.f32 %v8500_v19, %v7970_v48  ;;  %7983 = vpow2.f32 %v5282_v15  ;;  %v4904_v5 = vmul.f32 1.442695, %v4803_v63  ;;  %v8504_v55 = vld [vmem:[%s15513_s0 + $0x9c8] sm:$0xff] }
 0x792   :  { %v5505_v16 = vadd.f32 %v7970_v48, %v5441_v47  ;;  %v6145_v42 = vmul.f32 %v8501_v2, %v7972_v8  ;;  %7985 = vpow2.f32 %v4520_v44  ;;  %v4995_v43 = vsub.f32 %v16696_v21, %v14430_v33  ;;  %v8505_v47 = vld [vmem:[%s15513_s0 + $0x9a8] sm:$0xff] }
 0x793   :  { %v5953_v32 = vadd.f32 %v5889_v24, %v5825_v41  ;;  %7987 = vpow2.f32 %v4712_v0  ;;  %v5187_v10 = vsub.f32 %v14415_v37, %v14430_v33  ;;  %v4418_v39 = vsub.f32 %v16697_v28, %v14441_v18  ;;  %v8502_v37 = vld [vmem:[%s15513_s0 + $0x998] sm:$0xff]  ;;  %v16702_v24 = vld [vmem:[#allocation103_spill] sm:$0xff] }
 0x794   :  { %v5569_v4 = vadd.f32 %v7972_v8, %v5505_v16  ;;  %7989 = vpow2.f32 %v4904_v5  ;;  %v5096_v31 = vmul.f32 1.442695, %v4995_v43  ;;  %v4610_v45 = vsub.f32 %v16698_v30, %v14441_v18  ;;  %v16701_v8 = vld [vmem:[#allocation102_spill] sm:$0xff] }
 0x795   :  { %v7974_v15 = vpop.eup %7973  ;;  %v6081_v62 = vadd.f32 %v6017_v53, %v5953_v32  ;;  %v5288_v52 = vmul.f32 1.442695, %v5187_v10  ;;  %v4518_v59 = vmul.f32 1.442695, %v4418_v39  ;;  %v4802_v9 = vsub.f32 %v16699_v11, %v14441_v18  ;;  %v14530_v32 = vpop.f32.mrb[178].mxu1  ;;  %v8507_v39 = vld [vmem:[%s15513_s0 + $0xa70] sm:$0xff] }
 0x796   :  { %v7976_v38 = vpop.eup %7975  ;;  %7991 = vrcp.f32 %v5569_v4  ;;  %v5696_v33 = vmul.f32 %v8502_v37, %v7974_v15  ;;  %v4710_v27 = vmul.f32 1.442695, %v4610_v45  ;;  %v4994_v50 = vsub.f32 %v16700_v1, %v14441_v18  ;;  %v16704_v37 = vld [vmem:[#allocation222_spill] sm:$0xff] }
 0x797   :  { %v7978_v46 = vpop.eup %7977  ;;  %v6209_v6 = vadd.f32 %v6145_v42, %v6081_v62  ;;  %v5376_v63 = vadd.f32 %v7976_v38, %v7974_v15  ;;  %v5760_v54 = vmul.f32 %v8503_v17, %v7976_v38  ;;  %7993 = vpow2.f32 %v5096_v31  ;;  %v8508_v15 = vld [vmem:[%s15513_s0 + $0xa90] sm:$0xff] }
 0x798   :  { %v5888_v22 = vmul.f32 %v8504_v55, %v7978_v46  ;;  %7995 = vpow2.f32 %v5288_v52  ;;  %v4902_v40 = vmul.f32 1.442695, %v4802_v9  ;;  %v5094_v58 = vmul.f32 1.442695, %v4994_v50  ;;  %v16703_v52 = vld [vmem:[#allocation221_spill] sm:$0xff]  ;;  %v8509_v9 = vld [vmem:[%s15513_s0 + $0xaa0] sm:$0xff] }
 0x799   :  { %v7980_v14 = vpop.eup %7979  ;;  %v5440_v25 = vadd.f32 %v7978_v46, %v5376_v63  ;;  %v5824_v44 = vadd.f32 %v5760_v54, %v5696_v33  ;;  %7997 = vpow2.f32 %v4518_v59  ;;  %v5186_v0 = vsub.f32 %v14421_v56, %v14441_v18  ;;  %v8506_v56 = vld [vmem:[%s15513_s0 + $0x9b0] sm:$0xff] }
 0x79a   :  { %v7982_v48 = vpop.eup %7981  ;;  %v6016_v41 = vmul.f32 %v8505_v47, %v7980_v14  ;;  %7999 = vpow2.f32 %v4710_v27  ;;  %v4421_v13 = vsub.f32 %v16701_v8, %v14445_v26  ;;  %v4613_v19 = vsub.f32 %v16702_v24, %v14445_v26 }
 0x79b   :  { %v7984_v53 = vpop.eup %7983  ;;  %v6270_v5 = vmul.f32 %v7982_v48, %v6206_v51  ;;  %v5504_v16 = vadd.f32 %v7980_v14, %v5440_v25  ;;  %v5952_v2 = vadd.f32 %v5888_v22, %v5824_v44  ;;  %8001 = vpow2.f32 %v4902_v40  ;;  %v8510_v14 = vld [vmem:[%s15513_s0 + $0xa80] sm:$0xff] }
 0x79c   :  { %v7986_v42 = vpop.eup %7985  ;;  %v6144_v18 = vmul.f32 %v8506_v56, %v7984_v53  ;;  %8003 = vpow2.f32 %v5094_v58  ;;  %v5286_v21 = vmul.f32 1.442695, %v5186_v0  ;;  %v4524_v43 = vmul.f32 1.442695, %v4421_v13  ;;  %v8512_v13 = vld [vmem:[%s15513_s0 + $0xa28] sm:$0xff] }
 0x79d   :  { %v7988_v10 = vpop.eup %7987  ;;  %6334 = vst [vmem:[%s15517_s5 + $0x100] sm:$0xff] %v6270_v5  ;;  %v5568_v51 = vadd.f32 %v7984_v53, %v5504_v16  ;;  %v6080_v28 = vadd.f32 %v6016_v41, %v5952_v2  ;;  %v5699_v4 = vmul.f32 %v8507_v39, %v7986_v42  ;;  %v4716_v31 = vmul.f32 1.442695, %v4613_v19  ;;  %v8513_v16 = vld [vmem:[%s15513_s0 + $0xa48] sm:$0xff] }
 0x79e   :  { %v7990_v30 = vpop.eup %7989  ;;  %v5379_v45 = vadd.f32 %v7988_v10, %v7986_v42  ;;  %v5763_v62 = vmul.f32 %v8508_v15, %v7988_v10  ;;  %8005 = vpow2.f32 %v5286_v21  ;;  %v4805_v59 = vsub.f32 %v16703_v52, %v14445_v26  ;;  %v16706_v42 = vld [vmem:[#allocation100_spill] sm:$0xff] }
 0x79f   :  { %8007 = vrcp.f32 %v5568_v51  ;;  %v14543_v11 = vadd.f32 %v6144_v18, %v6080_v28  ;;  %v5891_v38 = vmul.f32 %v8509_v9, %v7990_v30  ;;  %v4997_v33 = vsub.f32 %v16704_v37, %v14445_v26  ;;  %v14584_v37 = vpop.f32.mrb[179].mxu1 }
 0x7a0   :  { %v7992_v27 = vpop.eup %7991  ;;  %v5443_v1 = vadd.f32 %v7990_v30, %v5379_v45  ;;  %v5827_v50 = vadd.f32 %v5763_v62, %v5699_v4  ;;  %8009 = vpow2.f32 %v4524_v43  ;;  %v4908_v46 = vmul.f32 1.442695, %v4805_v59  ;;  %v8514_v43 = vld [vmem:[%s15513_s0 + $0xa58] sm:$0xff]  ;;  %v16708_v62 = vld [vmem:[#allocation218_spill] sm:$0xff]  ;;  %v16709_v59 = vld [vmem:[#allocation219_spill] sm:$0xff] }
 0x7a1   :  { %v7994_v63 = vpop.eup %7993  ;;  %v6273_v17 = vmul.f32 %v7992_v27, %v6209_v6  ;;  %8011 = vpow2.f32 %v4716_v31  ;;  %v5100_v54 = vmul.f32 1.442695, %v4997_v33  ;;  %v5189_v55 = vsub.f32 %v14425_v60, %v14445_v26  ;;  %v8511_v6 = vld [vmem:[%s15513_s0 + $0xa88] sm:$0xff]  ;;  %v8515_v4 = vld [vmem:[%s15513_s0 + $0xa38] sm:$0xff] }
 0x7a2   :  { %v7996_v22 = vpop.eup %7995  ;;  %v5507_v40 = vadd.f32 %v7994_v63, %v5443_v1  ;;  %v5955_v58 = vadd.f32 %v5891_v38, %v5827_v50  ;;  %v6019_v25 = vmul.f32 %v8510_v14, %v7994_v63  ;;  %8013 = vpow2.f32 %v4908_v46  ;;  %v16705_v26 = vld [vmem:[#allocation279_spill] sm:$0xff]  ;;  %v8516_v50 = vld [vmem:[%s15513_s0 + $0xa40] sm:$0xff] }
 0x7a3   :  { %v7998_v44 = vpop.eup %7997  ;;  %6337 = vst [vmem:[%s15517_s5 + $0x118] sm:$0xff] %v6273_v17  ;;  %v6147_v0 = vmul.f32 %v8511_v6, %v7996_v22  ;;  %8015 = vpow2.f32 %v5100_v54  ;;  %v5292_v60 = vmul.f32 1.442695, %v5189_v55  ;;  %v4356_v48 = vmax.f32 %v16705_v26, %v14434_v34  ;;  %v16711_v26 = vld [vmem:[#allocation227_spill] sm:$0xff] }
 0x7a4   :  { %v8000_v47 = vpop.eup %7999  ;;  %v5571_v41 = vadd.f32 %v7996_v22, %v5507_v40  ;;  %v6083_v8 = vadd.f32 %v6019_v25, %v5955_v58  ;;  %v5698_v24 = vmul.f32 %v8512_v13, %v7998_v44  ;;  %v14568_v19 = vadd.f32 %v14040_v35, %v13238_v12  ;;  %v16707_v35 = vld [vmem:[#allocation101_spill] sm:$0xff]  ;;  %v8517_v58 = vld [vmem:[%s15513_s0 + $0xb00] sm:$0xff] }
 0x7a5   :  { %v8002_v53 = vpop.eup %8001  ;;  %v5378_v5 = vadd.f32 %v8000_v47, %v7998_v44  ;;  %v5762_v2 = vmul.f32 %v8513_v16, %v8000_v47  ;;  %8017 = vpow2.f32 %v5292_v60  ;;  %v4420_v56 = vsub.f32 %v16706_v42, %v4356_v48  ;;  %v16710_v60 = vld [vmem:[#allocation226_spill] sm:$0xff] }
 0x7a6   :  { %v8004_v18 = vpop.eup %8003  ;;  %8019 = vrcp.f32 %v5571_v41  ;;  %v6211_v21 = vadd.f32 %v6147_v0, %v6083_v8  ;;  %v5890_v10 = vmul.f32 %v8514_v43, %v8002_v53  ;;  %v4612_v51 = vsub.f32 %v16707_v35, %v4356_v48  ;;  %v16713_v47 = vld [vmem:[#allocation106_spill] sm:$0xff]  ;;  %v16714_v41 = vld [vmem:[#allocation107_spill] sm:$0xff] }
 0x7a7   :  { %v5442_v28 = vadd.f32 %v8002_v53, %v5378_v5  ;;  %v5826_v39 = vadd.f32 %v5762_v2, %v5698_v24  ;;  %v6018_v31 = vmul.f32 %v8515_v4, %v8004_v18  ;;  %v4522_v30 = vmul.f32 1.442695, %v4420_v56  ;;  %v8519_v5 = vld [vmem:[%s15513_s0 + $0xb30] sm:$0xff] }
 0x7a8   :  { %v8006_v45 = vpop.eup %8005  ;;  %v4714_v15 = vmul.f32 1.442695, %v4612_v51  ;;  %v4804_v52 = vsub.f32 %v16708_v62, %v4356_v48  ;;  %v4996_v9 = vsub.f32 %v16709_v59, %v4356_v48  ;;  %v5188_v38 = vsub.f32 %v14434_v34, %v4356_v48 }
 0x7a9   :  { %v8008_v33 = vpop.eup %8007  ;;  %v5506_v27 = vadd.f32 %v8004_v18, %v5442_v28  ;;  %v5954_v1 = vadd.f32 %v5890_v10, %v5826_v39  ;;  %v6146_v46 = vmul.f32 %v8516_v50, %v8006_v45  ;;  %8021 = vpow2.f32 %v4522_v30  ;;  %v8520_v18 = vld [vmem:[%s15513_s0 + $0xb10] sm:$0xff]  ;;  %v14615_v10 = vpop.f32.mrb[180].mxu1  ;;  %v16717_v39 = vld [vmem:[#allocation225_spill] sm:$0xff]  ;;  %v16725_v50 = vld [vmem:[#allocation110_spill] sm:$0xff] }
 0x7aa   :  { %v8010_v63 = vpop.eup %8009  ;;  %v6272_v17 = vmul.f32 %v8008_v33, %v14543_v11  ;;  %8023 = vpow2.f32 %v4714_v15  ;;  %v4906_v54 = vmul.f32 1.442695, %v4804_v52  ;;  %v5098_v55 = vmul.f32 1.442695, %v4996_v9  ;;  %v8518_v11 = vld [vmem:[%s15513_s0 + $0xb20] sm:$0xff]  ;;  %v16716_v28 = vld [vmem:[#allocation224_spill] sm:$0xff] }
 0x7ab   :  { %v8012_v22 = vpop.eup %8011  ;;  %v5570_v40 = vadd.f32 %v8006_v45, %v5506_v27  ;;  %v6082_v34 = vadd.f32 %v6018_v31, %v5954_v1  ;;  %v5701_v14 = vmul.f32 %v8517_v58, %v8010_v63  ;;  %v5290_v25 = vmul.f32 1.442695, %v5188_v38  ;;  %v16719_v31 = vld [vmem:[#allocation104_spill] sm:$0xff]  ;;  %v8521_v9 = vld [vmem:[%s15513_s0 + $0xb18] sm:$0xff]  ;;  %v16722_v33 = vld [vmem:[#allocation230_spill] sm:$0xff] }
 0x7ac   :  { %v8014_v44 = vpop.eup %8013  ;;  %6336 = vst [vmem:[%s15517_s5 + $0x110] sm:$0xff] %v6272_v17  ;;  %v5381_v6 = vadd.f32 %v8012_v22, %v8010_v63  ;;  %v5765_v0 = vmul.f32 %v8518_v11, %v8012_v22  ;;  %8025 = vpow2.f32 %v4906_v54  ;;  %v16712_v48 = vmax.f32 %v16710_v60, %v16711_v26  ;;  %v16723_v27 = vld [vmem:[#allocation231_spill] sm:$0xff] }
 0x7ad   :  { %v16715_v8 = vmax.f32 %v16713_v47, %v16714_v41  ;;  %v8016_v24 = vpop.eup %8015  ;;  %8027 = vrcp.f32 %v5570_v40  ;;  %v6210_v53 = vadd.f32 %v6146_v46, %v6082_v34  ;;  %v5893_v16 = vmul.f32 %v8519_v5, %v8014_v44  ;;  %v16726_v46 = vld [vmem:[#allocation111_spill] sm:$0xff] }
 0x7ae   :  { %v14610_v2 = vadd.f32 %v14227_v49, %v13238_v12  ;;  %v5445_v42 = vadd.f32 %v8014_v44, %v5381_v6  ;;  %v5829_v56 = vadd.f32 %v5765_v0, %v5701_v14  ;;  %v6021_v43 = vmul.f32 %v8520_v18, %v8016_v24  ;;  %v16720_v49 = vld [vmem:[#allocation105_spill] sm:$0xff] }
 0x7af   :  { %v4295_v13 = vmax.f32 %v16715_v8, %v16712_v48  ;;  %8029 = vpow2.f32 %v5098_v55  ;;  %v8018_v35 = vpop.eup %8017  ;;  %v16718_v4 = vmax.f32 %v16716_v28, %v16717_v39  ;;  %v16721_v30 = vmax.f32 %v16719_v31, %v16720_v49 }
 0x7b0   :  { %8031 = vpow2.f32 %v5290_v25  ;;  %v14626_v15 = vadd.f32 %v14249_v23, %v13238_v12  ;;  %v8020_v62 = vpop.eup %8019  ;;  %v5509_v52 = vadd.f32 %v8016_v24, %v5445_v42  ;;  %v5957_v59 = vadd.f32 %v5893_v16, %v5829_v56 }
 0x7b1   :  { %v4359_v51 = vmax.f32 %v4295_v13, %v14568_v19  ;;  %v4294_v45 = vmax.f32 %v16721_v30, %v16718_v4  ;;  %v6149_v38 = vmul.f32 %v8521_v9, %v8018_v35  ;;  %v16724_v1 = vmax.f32 %v16722_v33, %v16723_v27  ;;  %v14658_v4 = vpop.f32.mrb[181].mxu1 }
 0x7b2   :  { %v16727_v63 = vmax.f32 %v16725_v50, %v16726_v46  ;;  %v6275_v54 = vmul.f32 %v8020_v62, %v6211_v21  ;;  %v5573_v40 = vadd.f32 %v8018_v35, %v5509_v52  ;;  %v6085_v34 = vadd.f32 %v6021_v43, %v5957_v59  ;;  %v8524_v35 = vld [vmem:[%s15513_s0 + $0xae8] sm:$0xff] }
 0x7b3   :  { %v4423_v55 = vsub.f32 %v16713_v47, %v4359_v51  ;;  %v4615_v23 = vsub.f32 %v16714_v41, %v4359_v51  ;;  %v4807_v22 = vsub.f32 %v16710_v60, %v4359_v51  ;;  %v4999_v58 = vsub.f32 %v16711_v26, %v4359_v51  ;;  %v8022_v25 = vpop.eup %8021  ;;  %v8522_v60 = vld [vmem:[%s15513_s0 + $0xab8] sm:$0xff] }
 0x7b4   :  { %v4297_v17 = vmax.f32 %v16727_v63, %v16724_v1  ;;  %v5191_v14 = vsub.f32 %v14568_v19, %v4359_v51  ;;  %6339 = vst [vmem:[%s15517_s5 + $0x128] sm:$0xff] %v6275_v54  ;;  %v4358_v11 = vmax.f32 %v4294_v45, %v14610_v2  ;;  %v8024_v0 = vpop.eup %8023  ;;  %8033 = vrcp.f32 %v5573_v40  ;;  %v8523_v41 = vld [vmem:[%s15513_s0 + $0xad8] sm:$0xff] }
 0x7b5   :  { %v4528_v44 = vmul.f32 1.442695, %v4423_v55  ;;  %v4720_v6 = vmul.f32 1.442695, %v4615_v23  ;;  %v4912_v21 = vmul.f32 1.442695, %v4807_v22  ;;  %v6213_v48 = vadd.f32 %v6149_v38, %v6085_v34 }
 0x7b6   :  { %v5700_v26 = vmul.f32 %v8522_v60, %v8022_v25  ;;  %v5104_v47 = vmul.f32 1.442695, %v4999_v58  ;;  %v5380_v19 = vadd.f32 %v8024_v0, %v8022_v25  ;;  %v5764_v8 = vmul.f32 %v8523_v41, %v8024_v0  ;;  %v8026_v24 = vpop.eup %8025  ;;  %v16728_v25 = vld [vmem:[#allocation228_spill] sm:$0xff] }
 0x7b7   :  { %8035 = vpow2.f32 %v4528_v44  ;;  %v5296_v13 = vmul.f32 1.442695, %v5191_v14  ;;  %v4422_v5 = vsub.f32 %v16719_v31, %v4358_v11  ;;  %v4614_v16 = vsub.f32 %v16720_v49, %v4358_v11  ;;  %v8028_v56 = vpop.eup %8027  ;;  %v16729_v44 = vld [vmem:[#allocation229_spill] sm:$0xff] }
 0x7b8   :  { %8037 = vpow2.f32 %v4720_v6  ;;  %v4806_v42 = vsub.f32 %v16716_v28, %v4358_v11  ;;  %v5444_v18 = vadd.f32 %v8026_v24, %v5380_v19  ;;  %v5828_v43 = vadd.f32 %v5764_v8, %v5700_v26  ;;  %v8525_v28 = vld [vmem:[%s15513_s0 + $0xac8] sm:$0xff]  ;;  %v16731_v6 = vld [vmem:[#allocation108_spill] sm:$0xff]  ;;  %v14687_v26 = vpop.f32.mrb[182].mxu1 }
 0x7b9   :  { %v5892_v51 = vmul.f32 %v8524_v35, %v8026_v24  ;;  %8039 = vpow2.f32 %v4912_v21  ;;  %v8030_v30 = vpop.eup %8029  ;;  %v6274_v45 = vmul.f32 %v8028_v56, %v6210_v53  ;;  %v4526_v62 = vmul.f32 1.442695, %v4422_v5  ;;  %v8526_v53 = vld [vmem:[%s15513_s0 + $0xad0] sm:$0xff]  ;;  %v16732_v21 = vld [vmem:[#allocation109_spill] sm:$0xff] }
 0x7ba   :  { %8041 = vpow2.f32 %v5104_v47  ;;  %v4718_v31 = vmul.f32 1.442695, %v4614_v16  ;;  %v8032_v52 = vpop.eup %8031  ;;  %v5508_v49 = vadd.f32 %v8030_v30, %v5444_v18  ;;  %v6020_v9 = vmul.f32 %v8525_v28, %v8030_v30  ;;  %v8527_v24 = vld [vmem:[%s15513_s0 + $0xb90] sm:$0xff]  ;;  %v8531_v28 = vld [vmem:[%s15513_s0 + $0xba8] sm:$0xff] }
 0x7bb   :  { %v5956_v59 = vadd.f32 %v5892_v51, %v5828_v43  ;;  %8043 = vpow2.f32 %v5296_v13  ;;  %6338 = vst [vmem:[%s15517_s5 + $0x120] sm:$0xff] %v6274_v45  ;;  %v6148_v38 = vmul.f32 %v8526_v53, %v8032_v52  ;;  %v4910_v1 = vmul.f32 1.442695, %v4806_v42  ;;  %v8529_v43 = vld [vmem:[%s15513_s0 + $0xbc0] sm:$0xff] }
 0x7bc   :  { %8045 = vpow2.f32 %v4526_v62  ;;  %v4998_v63 = vsub.f32 %v16717_v39, %v4358_v11  ;;  %v5572_v54 = vadd.f32 %v8032_v52, %v5508_v49  ;;  %v5190_v23 = vsub.f32 %v14610_v2, %v4358_v11  ;;  %v8530_v52 = vld [vmem:[%s15513_s0 + $0xba0] sm:$0xff] }
 0x7bd   :  { %v6084_v55 = vadd.f32 %v6020_v9, %v5956_v59  ;;  %8047 = vpow2.f32 %v4718_v31  ;;  %v4361_v40 = vmax.f32 %v4297_v17, %v14626_v15  ;;  %v14674_v34 = vadd.f32 %v14278_v36, %v13238_v12 }
 0x7be   :  { %8049 = vpow2.f32 %v4910_v1  ;;  %v5102_v22 = vmul.f32 1.442695, %v4998_v63  ;;  %v5294_v14 = vmul.f32 1.442695, %v5190_v23  ;;  %v16730_v39 = vmax.f32 %v16728_v25, %v16729_v44  ;;  %v8034_v2 = vpop.eup %8033 }
 0x7bf   :  { %8051 = vrcp.f32 %v5572_v54  ;;  %v14676_v58 = vadd.f32 %v6148_v38, %v6084_v55  ;;  %v16733_v0 = vmax.f32 %v16731_v6, %v16732_v21  ;;  %v4425_v11 = vsub.f32 %v16725_v50, %v4361_v40  ;;  %v8532_v54 = vld [vmem:[%s15513_s0 + $0xb48] sm:$0xff] }
 0x7c0   :  { %8053 = vpow2.f32 %v5102_v22  ;;  %v4617_v17 = vsub.f32 %v16726_v46, %v4361_v40  ;;  %v4809_v36 = vsub.f32 %v16722_v33, %v4361_v40  ;;  %v6277_v19 = vmul.f32 %v8034_v2, %v6213_v48  ;;  %v8534_v2 = vld [vmem:[%s15513_s0 + $0xb78] sm:$0xff] }
 0x7c1   :  { %v4296_v60 = vmax.f32 %v16733_v0, %v16730_v39  ;;  %v8036_v47 = vpop.eup %8035  ;;  %8055 = vpow2.f32 %v5294_v14  ;;  %v5001_v41 = vsub.f32 %v16723_v27, %v4361_v40  ;;  %v5193_v8 = vsub.f32 %v14626_v15, %v4361_v40  ;;  %v8528_v27 = vld [vmem:[%s15513_s0 + $0xbb0] sm:$0xff]  ;;  %v8533_v40 = vld [vmem:[%s15513_s0 + $0xb68] sm:$0xff] }
 0x7c2   :  { %v8038_v13 = vpop.eup %8037  ;;  %v5703_v5 = vmul.f32 %v8527_v24, %v8036_v47  ;;  %v4532_v50 = vmul.f32 1.442695, %v4425_v11  ;;  %v4724_v16 = vmul.f32 1.442695, %v4617_v17  ;;  %v4916_v46 = vmul.f32 1.442695, %v4809_v36 }
 0x7c3   :  { %v8040_v42 = vpop.eup %8039  ;;  %6341 = vst [vmem:[%s15517_s5 + $0x138] sm:$0xff] %v6277_v19  ;;  %v5383_v33 = vadd.f32 %v8038_v13, %v8036_v47  ;;  %v5767_v15 = vmul.f32 %v8528_v27, %v8038_v13  ;;  %v5108_v48 = vmul.f32 1.442695, %v5001_v41  ;;  %v5300_v56 = vmul.f32 1.442695, %v5193_v8  ;;  %v8535_v24 = vld [vmem:[%s15513_s0 + $0xb58] sm:$0xff] }
 0x7c4   :  { %v8042_v18 = vpop.eup %8041  ;;  %v5895_v35 = vmul.f32 %v8529_v43, %v8040_v42  ;;  %8057 = vpow2.f32 %v4532_v50  ;;  %v14704_v51 = vmax.f32 %v4296_v60, %v14674_v34  ;;  %v14708_v30 = vadd.f32 %v14315_v61, %v13238_v12  ;;  %v16738_v43 = vld [vmem:[#allocation115_spill] sm:$0xff] }
 0x7c5   :  { %v8044_v45 = vpop.eup %8043  ;;  %v5447_v62 = vadd.f32 %v8040_v42, %v5383_v33  ;;  %v5831_v31 = vadd.f32 %v5767_v15, %v5703_v5  ;;  %v6023_v49 = vmul.f32 %v8530_v52, %v8042_v18  ;;  %8059 = vpow2.f32 %v4724_v16 }
 0x7c6   :  { %v8046_v59 = vpop.eup %8045  ;;  %v6151_v9 = vmul.f32 %v8531_v28, %v8044_v45  ;;  %8061 = vpow2.f32 %v4916_v46  ;;  %v4424_v61 = vsub.f32 %v16731_v6, %v14704_v51  ;;  %v4616_v53 = vsub.f32 %v16732_v21, %v14704_v51  ;;  %v14726_v6 = vpop.f32.mrb[183].mxu1  ;;  %v8536_v46 = vld [vmem:[%s15513_s0 + $0xb60] sm:$0xff]  ;;  %v16741_v28 = vld [vmem:[#allocation235_spill] sm:$0xff] }
 0x7c7   :  { %v8048_v38 = vpop.eup %8047  ;;  %v5511_v1 = vadd.f32 %v8042_v18, %v5447_v62  ;;  %v5959_v63 = vadd.f32 %v5895_v35, %v5831_v31  ;;  %v5702_v55 = vmul.f32 %v8532_v54, %v8046_v59  ;;  %8063 = vpow2.f32 %v5108_v48  ;;  %v16735_v48 = vld [vmem:[#allocation237_spill] sm:$0xff]  ;;  %v16737_v18 = vld [vmem:[#allocation114_spill] sm:$0xff] }
 0x7c8   :  { %v8050_v23 = vpop.eup %8049  ;;  %v5382_v22 = vadd.f32 %v8048_v38, %v8046_v59  ;;  %v5766_v14 = vmul.f32 %v8533_v40, %v8048_v38  ;;  %8065 = vpow2.f32 %v5300_v56  ;;  %v4530_v39 = vmul.f32 1.442695, %v4424_v61  ;;  %v16740_v59 = vld [vmem:[#allocation233_spill] sm:$0xff]  ;;  %v8537_v38 = vld [vmem:[%s15513_s0 + $0xc20] sm:$0xff] }
 0x7c9   :  { %v8052_v21 = vpop.eup %8051  ;;  %v5575_v0 = vadd.f32 %v8044_v45, %v5511_v1  ;;  %v6087_v60 = vadd.f32 %v6023_v49, %v5959_v63  ;;  %v5894_v11 = vmul.f32 %v8534_v2, %v8050_v23  ;;  %v4722_v17 = vmul.f32 1.442695, %v4616_v53  ;;  %v16744_v61 = vld [vmem:[#allocation113_spill] sm:$0xff] }
 0x7ca   :  { %v8054_v36 = vpop.eup %8053  ;;  %v6276_v47 = vmul.f32 %v8052_v21, %v14676_v58  ;;  %v5446_v19 = vadd.f32 %v8050_v23, %v5382_v22  ;;  %v5830_v41 = vadd.f32 %v5766_v14, %v5702_v55  ;;  %8067 = vpow2.f32 %v4530_v39  ;;  %v8538_v22 = vld [vmem:[%s15513_s0 + $0xc40] sm:$0xff]  ;;  %v14769_v14 = vpop.f32.mrb[184].mxu1  ;;  %v8539_v21 = vld [vmem:[%s15513_s0 + $0xc50] sm:$0xff] }
 0x7cb   :  { %v8056_v8 = vpop.eup %8055  ;;  %8069 = vrcp.f32 %v5575_v0  ;;  %v6215_v13 = vadd.f32 %v6151_v9, %v6087_v60  ;;  %v6022_v5 = vmul.f32 %v8535_v24, %v8054_v36  ;;  %v4808_v50 = vsub.f32 %v16728_v25, %v14704_v51  ;;  %v16734_v25 = vld [vmem:[#allocation236_spill] sm:$0xff] }
 0x7cc   :  { %6340 = vst [vmem:[%s15517_s5 + $0x130] sm:$0xff] %v6276_v47  ;;  %v5510_v16 = vadd.f32 %v8054_v36, %v5446_v19  ;;  %v5958_v58 = vadd.f32 %v5894_v11, %v5830_v41  ;;  %v6150_v42 = vmul.f32 %v8536_v46, %v8056_v8  ;;  %8071 = vpow2.f32 %v4722_v17  ;;  %v16743_v9 = vld [vmem:[#allocation112_spill] sm:$0xff]  ;;  %v8541_v41 = vld [vmem:[%s15513_s0 + $0xc38] sm:$0xff] }
 0x7cd   :  { %v4914_v33 = vmul.f32 1.442695, %v4808_v50  ;;  %v5000_v27 = vsub.f32 %v16729_v44, %v14704_v51  ;;  %v5192_v15 = vsub.f32 %v14674_v34, %v14704_v51  ;;  %v16736_v56 = vmax.f32 %v16734_v25, %v16735_v48  ;;  %v8540_v47 = vld [vmem:[%s15513_s0 + $0xc30] sm:$0xff] }
 0x7ce   :  { %v16739_v35 = vmax.f32 %v16737_v18, %v16738_v43  ;;  %v8058_v62 = vpop.eup %8057  ;;  %v5574_v31 = vadd.f32 %v8056_v8, %v5510_v16  ;;  %v6086_v52 = vadd.f32 %v6022_v5, %v5958_v58  ;;  %v14755_v49 = vadd.f32 %v14372_v7, %v13238_v12 }
 0x7cf   :  { %v16742_v44 = vmax.f32 %v16740_v59, %v16741_v28  ;;  %v16745_v34 = vmax.f32 %v16743_v9, %v16744_v61  ;;  %v8060_v53 = vpop.eup %8059  ;;  %v5705_v1 = vmul.f32 %v8537_v38, %v8058_v62  ;;  %8073 = vpow2.f32 %v4914_v33 }
 0x7d0   :  { %v4299_v45 = vmax.f32 %v16739_v35, %v16736_v56  ;;  %v5106_v63 = vmul.f32 1.442695, %v5000_v27  ;;  %v5298_v54 = vmul.f32 1.442695, %v5192_v15  ;;  %v8062_v55 = vpop.eup %8061  ;;  %8075 = vrcp.f32 %v5574_v31  ;;  %v8542_v15 = vld [vmem:[%s15513_s0 + $0xbd8] sm:$0xff] }
 0x7d1   :  { %v4298_v51 = vmax.f32 %v16745_v34, %v16742_v44  ;;  %v6214_v7 = vadd.f32 %v6150_v42, %v6086_v52  ;;  %v5385_v23 = vadd.f32 %v8060_v53, %v8058_v62  ;;  %v5769_v40 = vmul.f32 %v8538_v22, %v8060_v53  ;;  %v8064_v39 = vpop.eup %8063  ;;  %v8544_v22 = vld [vmem:[%s15513_s0 + $0xc08] sm:$0xff] }
 0x7d2   :  { %v5897_v0 = vmul.f32 %v8539_v21, %v8062_v55  ;;  %8077 = vpow2.f32 %v5106_v63  ;;  %v4363_v60 = vmax.f32 %v4299_v45, %v14708_v30  ;;  %v8066_v11 = vpop.eup %8065  ;;  %v6025_v19 = vmul.f32 %v8540_v47, %v8064_v39 }
 0x7d3   :  { %v14776_v2 = vmax.f32 %v4298_v51, %v14755_v49  ;;  %v5449_v17 = vadd.f32 %v8062_v55, %v5385_v23  ;;  %v5833_v36 = vadd.f32 %v5769_v40, %v5705_v1  ;;  %8079 = vpow2.f32 %v5298_v54 }
 0x7d4   :  { %v6153_v8 = vmul.f32 %v8541_v41, %v8066_v11  ;;  %v4427_v24 = vsub.f32 %v16737_v18, %v4363_v60  ;;  %v4619_v5 = vsub.f32 %v16738_v43, %v4363_v60  ;;  %v4811_v50 = vsub.f32 %v16734_v25, %v4363_v60  ;;  %v8068_v16 = vpop.eup %8067 }
 0x7d5   :  { %v5513_v58 = vadd.f32 %v8064_v39, %v5449_v17  ;;  %v5961_v46 = vadd.f32 %v5897_v0, %v5833_v36  ;;  %v5003_v42 = vsub.f32 %v16735_v48, %v4363_v60  ;;  %v5195_v33 = vsub.f32 %v14708_v30, %v4363_v60  ;;  %v8070_v27 = vpop.eup %8069  ;;  %v8543_v48 = vld [vmem:[%s15513_s0 + $0xbf8] sm:$0xff]  ;;  %v14812_v36 = vpop.f32.mrb[185].mxu1 }
 0x7d6   :  { %v5704_v56 = vmul.f32 %v8542_v15, %v8068_v16  ;;  %v4536_v35 = vmul.f32 1.442695, %v4427_v24  ;;  %v4728_v45 = vmul.f32 1.442695, %v4619_v5  ;;  %v4920_v18 = vmul.f32 1.442695, %v4811_v50  ;;  %v8072_v62 = vpop.eup %8071 }
 0x7d7   :  { %v6279_v43 = vmul.f32 %v8070_v27, %v6215_v13  ;;  %v5577_v31 = vadd.f32 %v8066_v11, %v5513_v58  ;;  %v6089_v25 = vadd.f32 %v6025_v19, %v5961_v46  ;;  %v5112_v52 = vmul.f32 1.442695, %v5003_v42  ;;  %v16747_v58 = vld [vmem:[#allocation241_spill] sm:$0xff]  ;;  %v16749_v42 = vld [vmem:[#allocation118_spill] sm:$0xff] }
 0x7d8   :  { %v5384_v44 = vadd.f32 %v8072_v62, %v8068_v16  ;;  %v5768_v30 = vmul.f32 %v8543_v48, %v8072_v62  ;;  %8081 = vpow2.f32 %v4536_v35  ;;  %v5304_v34 = vmul.f32 1.442695, %v5195_v33  ;;  %v16746_v16 = vld [vmem:[#allocation240_spill] sm:$0xff]  ;;  %v16750_v33 = vld [vmem:[#allocation119_spill] sm:$0xff] }
 0x7d9   :  { %6343 = vst [vmem:[%s15517_s5 + $0x148] sm:$0xff] %v6279_v43  ;;  %8083 = vrcp.f32 %v5577_v31  ;;  %v6217_v51 = vadd.f32 %v6153_v8, %v6089_v25  ;;  %v4426_v13 = vsub.f32 %v16743_v9, %v14776_v2  ;;  %v4618_v53 = vsub.f32 %v16744_v61, %v14776_v2  ;;  %v8074_v38 = vpop.eup %8073  ;;  %v16753_v35 = vld [vmem:[#allocation239_spill] sm:$0xff] }
 0x7da   :  { %v5832_v1 = vadd.f32 %v5768_v30, %v5704_v56  ;;  %8085 = vpow2.f32 %v4728_v45  ;;  %v4810_v63 = vsub.f32 %v16740_v59, %v14776_v2  ;;  %v5002_v54 = vsub.f32 %v16741_v28, %v14776_v2  ;;  %v8076_v55 = vpop.eup %8075  ;;  %v8545_v28 = vld [vmem:[%s15513_s0 + $0xbe8] sm:$0xff]  ;;  %v16761_v30 = vld [vmem:[#allocation122_spill] sm:$0xff] }
 0x7db   :  { %v5448_v23 = vadd.f32 %v8074_v38, %v5384_v44  ;;  %v5896_v40 = vmul.f32 %v8544_v22, %v8074_v38  ;;  %8087 = vpow2.f32 %v4920_v18  ;;  %v4534_v9 = vmul.f32 1.442695, %v4426_v13  ;;  %v16756_v18 = vld [vmem:[#allocation117_spill] sm:$0xff] }
 0x7dc   :  { %v8078_v39 = vpop.eup %8077  ;;  %v6278_v61 = vmul.f32 %v8076_v55, %v6214_v7  ;;  %8089 = vpow2.f32 %v5112_v52  ;;  %v4726_v21 = vmul.f32 1.442695, %v4618_v53  ;;  %v4918_v0 = vmul.f32 1.442695, %v4810_v63  ;;  %v8546_v7 = vld [vmem:[%s15513_s0 + $0xbf0] sm:$0xff]  ;;  %v16758_v44 = vld [vmem:[#allocation245_spill] sm:$0xff] }
 0x7dd   :  { %v8080_v60 = vpop.eup %8079  ;;  %v5512_v11 = vadd.f32 %v8078_v39, %v5448_v23  ;;  %v5960_v59 = vadd.f32 %v5896_v40, %v5832_v1  ;;  %v6024_v17 = vmul.f32 %v8545_v28, %v8078_v39  ;;  %8091 = vpow2.f32 %v5304_v34  ;;  %v16762_v34 = vld [vmem:[#allocation123_spill] sm:$0xff]  ;;  %v16765_v23 = vld [vmem:[#allocation244_spill] sm:$0xff] }
 0x7de   :  { %6342 = vst [vmem:[%s15517_s5 + $0x140] sm:$0xff] %v6278_v61  ;;  %v6152_v47 = vmul.f32 %v8546_v7, %v8080_v60  ;;  %8093 = vpow2.f32 %v4534_v9  ;;  %v5110_v19 = vmul.f32 1.442695, %v5002_v54  ;;  %v5194_v41 = vsub.f32 %v14755_v49, %v14776_v2  ;;  %v16752_v2 = vld [vmem:[#allocation238_spill] sm:$0xff]  ;;  %v16764_v55 = vld [vmem:[#allocation243_spill] sm:$0xff]  ;;  %v16767_v40 = vld [vmem:[#allocation120_spill] sm:$0xff] }
 0x7df   :  { %v5576_v8 = vadd.f32 %v8080_v60, %v5512_v11  ;;  %v6088_v24 = vadd.f32 %v6024_v17, %v5960_v59  ;;  %8095 = vpow2.f32 %v4726_v21  ;;  %v4043_v5 = vadd.f32 %v14387_v3, %v13238_v12  ;;  %v16755_v3 = vld [vmem:[#allocation116_spill] sm:$0xff]  ;;  %v16768_v9 = vld [vmem:[#allocation121_spill] sm:$0xff] }
 0x7e0   :  { %8097 = vpow2.f32 %v4918_v0  ;;  %v5302_v50 = vmul.f32 1.442695, %v5194_v41  ;;  %v16748_v46 = vmax.f32 %v16746_v16, %v16747_v58  ;;  %v16751_v27 = vmax.f32 %v16749_v42, %v16750_v33  ;;  %v8548_v7 = vld [vmem:[%s15513_s0 + $0xcd0] sm:$0xff] }
 0x7e1   :  { %v14832_v56 = vadd.f32 %v14447_v57, %v13238_v12  ;;  %8099 = vrcp.f32 %v5576_v8  ;;  %v14834_v49 = vadd.f32 %v6152_v47, %v6088_v24  ;;  %v16754_v45 = vmax.f32 %v16752_v2, %v16753_v35  ;;  %v16759_v57 = vld [vmem:[#allocation246_spill] sm:$0xff] }
 0x7e2   :  { %v4301_v15 = vmax.f32 %v16751_v27, %v16748_v46  ;;  %v16757_v62 = vmax.f32 %v16755_v3, %v16756_v18  ;;  %v14844_v31 = vadd.f32 %v14480_v20, %v13238_v12  ;;  %v8082_v25 = vpop.eup %8081  ;;  %8101 = vpow2.f32 %v5110_v19  ;;  %v8547_v20 = vld [vmem:[%s15513_s0 + $0xcb0] sm:$0xff] }
 0x7e3   :  { %v16760_v48 = vmax.f32 %v16758_v44, %v16759_v57  ;;  %v16763_v13 = vmax.f32 %v16761_v30, %v16762_v34  ;;  %v14856_v38 = vadd.f32 %v14503_v29, %v13238_v12  ;;  %v8084_v1 = vpop.eup %8083  ;;  %v5707_v63 = vmul.f32 %v8547_v20, %v8082_v25  ;;  %v14872_v29 = vpop.f32.mrb[186].mxu1  ;;  %v8552_v20 = vld [vmem:[%s15513_s0 + $0xc68] sm:$0xff] }
 0x7e4   :  { %v4300_v43 = vmax.f32 %v16757_v62, %v16754_v45  ;;  %v4365_v52 = vmax.f32 %v4301_v15, %v4043_v5  ;;  %8103 = vpow2.f32 %v5302_v50  ;;  %v16766_v22 = vmax.f32 %v16764_v55, %v16765_v23  ;;  %v8086_v21 = vpop.eup %8085  ;;  %v8551_v62 = vld [vmem:[%s15513_s0 + $0xcc8] sm:$0xff] }
 0x7e5   :  { %v14852_v53 = vmax.f32 %v16763_v13, %v16760_v48  ;;  %v16769_v39 = vmax.f32 %v16767_v40, %v16768_v9  ;;  %v6281_v0 = vmul.f32 %v8084_v1, %v6217_v51  ;;  %v8088_v28 = vpop.eup %8087  ;;  %v5387_v17 = vadd.f32 %v8086_v21, %v8082_v25  ;;  %v8549_v51 = vld [vmem:[%s15513_s0 + $0xce0] sm:$0xff] }
 0x7e6   :  { %v14862_v54 = vmax.f32 %v4300_v43, %v14832_v56  ;;  %v4429_v60 = vsub.f32 %v16749_v42, %v4365_v52  ;;  %v4621_v11 = vsub.f32 %v16750_v33, %v4365_v52  ;;  %v4813_v59 = vsub.f32 %v16746_v16, %v4365_v52  ;;  %v8090_v8 = vpop.eup %8089 }
 0x7e7   :  { %v14870_v61 = vmax.f32 %v16769_v39, %v16766_v22  ;;  %v5771_v47 = vmul.f32 %v8548_v7, %v8086_v21  ;;  %v5005_v19 = vsub.f32 %v16747_v58, %v4365_v52  ;;  %v5197_v41 = vsub.f32 %v4043_v5, %v4365_v52  ;;  %6345 = vst [vmem:[%s15517_s5 + $0x158] sm:$0xff] %v6281_v0  ;;  %v8092_v42 = vpop.eup %8091  ;;  %v8550_v5 = vld [vmem:[%s15513_s0 + $0xcc0] sm:$0xff]  ;;  %v14898_v22 = vpop.f32.mrb[187].mxu1  ;;  %v8553_v0 = vld [vmem:[%s15513_s0 + $0xc88] sm:$0xff] }
 0x7e8   :  { %v5899_v24 = vmul.f32 %v8549_v51, %v8088_v28  ;;  %v4540_v50 = vmul.f32 1.442695, %v4429_v60  ;;  %v4732_v16 = vmul.f32 1.442695, %v4621_v11  ;;  %v4924_v46 = vmul.f32 1.442695, %v4813_v59  ;;  %v8094_v45 = vpop.eup %8093 }
 0x7e9   :  { %v5451_v33 = vadd.f32 %v8088_v28, %v5387_v17  ;;  %v5835_v27 = vadd.f32 %v5771_v47, %v5707_v63  ;;  %v6027_v58 = vmul.f32 %v8550_v5, %v8090_v8  ;;  %v5116_v15 = vmul.f32 1.442695, %v5005_v19  ;;  %v8096_v48 = vpop.eup %8095  ;;  %v8554_v17 = vld [vmem:[%s15513_s0 + $0xc98] sm:$0xff] }
 0x7ea   :  { %v6155_v43 = vmul.f32 %v8551_v62, %v8092_v42  ;;  %8105 = vpow2.f32 %v4540_v50  ;;  %v5308_v25 = vmul.f32 1.442695, %v5197_v41  ;;  %v4428_v52 = vsub.f32 %v16755_v3, %v14862_v54  ;;  %v8098_v39 = vpop.eup %8097  ;;  %v8555_v50 = vld [vmem:[%s15513_s0 + $0xc78] sm:$0xff] }
 0x7eb   :  { %v5515_v13 = vadd.f32 %v8090_v8, %v5451_v33  ;;  %v5963_v1 = vadd.f32 %v5899_v24, %v5835_v27  ;;  %v5706_v63 = vmul.f32 %v8552_v20, %v8094_v45  ;;  %8107 = vpow2.f32 %v4732_v16  ;;  %v8100_v11 = vpop.eup %8099  ;;  %v8556_v33 = vld [vmem:[%s15513_s0 + $0xc80] sm:$0xff] }
 0x7ec   :  { %v5386_v21 = vadd.f32 %v8096_v48, %v8094_v45  ;;  %v5770_v60 = vmul.f32 %v8553_v0, %v8096_v48  ;;  %8109 = vpow2.f32 %v4924_v46  ;;  %v4538_v3 = vmul.f32 1.442695, %v4428_v52  ;;  %v8102_v47 = vpop.eup %8101 }
 0x7ed   :  { %v5579_v59 = vadd.f32 %v8092_v42, %v5515_v13  ;;  %v6091_v28 = vadd.f32 %v6027_v58, %v5963_v1  ;;  %v5898_v7 = vmul.f32 %v8554_v17, %v8098_v39  ;;  %8111 = vpow2.f32 %v5116_v15 }
 0x7ee   :  { %v6280_v19 = vmul.f32 %v8100_v11, %v14834_v49  ;;  %v5450_v41 = vadd.f32 %v8098_v39, %v5386_v21  ;;  %v5834_v8 = vadd.f32 %v5770_v60, %v5706_v63  ;;  %8113 = vpow2.f32 %v5308_v25  ;;  %v8104_v51 = vpop.eup %8103  ;;  %v8559_v11 = vld [vmem:[%s15513_s0 + $0xd70] sm:$0xff] }
 0x7ef   :  { %8115 = vrcp.f32 %v5579_v59  ;;  %v6219_v24 = vadd.f32 %v6155_v43, %v6091_v28  ;;  %v6026_v16 = vmul.f32 %v8555_v50, %v8102_v47  ;;  %v4620_v46 = vsub.f32 %v16756_v18, %v14862_v54 }
 0x7f0   :  { %6344 = vst [vmem:[%s15517_s5 + $0x150] sm:$0xff] %v6280_v19  ;;  %v5514_v42 = vadd.f32 %v8102_v47, %v5450_v41  ;;  %v5962_v49 = vadd.f32 %v5898_v7, %v5834_v8  ;;  %v6154_v27 = vmul.f32 %v8556_v33, %v8104_v51  ;;  %8117 = vpow2.f32 %v4538_v3  ;;  %v8560_v47 = vld [vmem:[%s15513_s0 + $0xd50] sm:$0xff]  ;;  %v8561_v8 = vld [vmem:[%s15513_s0 + $0xd58] sm:$0xff] }
 0x7f1   :  { %v4730_v5 = vmul.f32 1.442695, %v4620_v46  ;;  %v4812_v58 = vsub.f32 %v16752_v2, %v14862_v54  ;;  %v5004_v15 = vsub.f32 %v16753_v35, %v14862_v54  ;;  %v5196_v18 = vsub.f32 %v14832_v56, %v14862_v54  ;;  %v14932_v54 = vpop.f32.mrb[188].mxu1 }
 0x7f2   :  { %v5578_v45 = vadd.f32 %v8104_v51, %v5514_v42  ;;  %v6090_v62 = vadd.f32 %v6026_v16, %v5962_v49  ;;  %v4367_v43 = vmax.f32 %v14852_v53, %v14844_v31  ;;  %v14928_v25 = vmax.f32 %v14870_v61, %v14856_v38  ;;  %v8557_v53 = vld [vmem:[%s15513_s0 + $0xd40] sm:$0xff] }
 0x7f3   :  { %8119 = vpow2.f32 %v4730_v5  ;;  %v4922_v52 = vmul.f32 1.442695, %v4812_v58  ;;  %v5114_v48 = vmul.f32 1.442695, %v5004_v15  ;;  %v5306_v13 = vmul.f32 1.442695, %v5196_v18 }
 0x7f4   :  { %v8106_v2 = vpop.eup %8105  ;;  %8121 = vrcp.f32 %v5578_v45  ;;  %v6218_v1 = vadd.f32 %v6154_v27, %v6090_v62  ;;  %v4431_v35 = vsub.f32 %v16761_v30, %v4367_v43  ;;  %v4623_v56 = vsub.f32 %v16762_v34, %v4367_v43  ;;  %v8558_v30 = vld [vmem:[%s15513_s0 + $0xd60] sm:$0xff]  ;;  %v8562_v27 = vld [vmem:[%s15513_s0 + $0xcf8] sm:$0xff] }
 0x7f5   :  { %v8108_v20 = vpop.eup %8107  ;;  %v5709_v61 = vmul.f32 %v8557_v53, %v8106_v2  ;;  %8123 = vpow2.f32 %v4922_v52  ;;  %v4815_v63 = vsub.f32 %v16758_v44, %v4367_v43  ;;  %v5007_v39 = vsub.f32 %v16759_v57, %v4367_v43 }
 0x7f6   :  { %v8110_v21 = vpop.eup %8109  ;;  %v5389_v0 = vadd.f32 %v8108_v20, %v8106_v2  ;;  %v5773_v34 = vmul.f32 %v8558_v30, %v8108_v20  ;;  %8125 = vpow2.f32 %v5114_v48  ;;  %v4544_v60 = vmul.f32 1.442695, %v4431_v35 }
 0x7f7   :  { %v8112_v3 = vpop.eup %8111  ;;  %v5901_v59 = vmul.f32 %v8559_v11, %v8110_v21  ;;  %8127 = vpow2.f32 %v5306_v13  ;;  %v4736_v28 = vmul.f32 1.442695, %v4623_v56  ;;  %v4928_v44 = vmul.f32 1.442695, %v4815_v63 }
 0x7f8   :  { %v8114_v17 = vpop.eup %8113  ;;  %v5453_v57 = vadd.f32 %v8110_v21, %v5389_v0  ;;  %v5837_v7 = vadd.f32 %v5773_v34, %v5709_v61  ;;  %v6029_v19 = vmul.f32 %v8560_v47, %v8112_v3  ;;  %8129 = vpow2.f32 %v4544_v60  ;;  %v14976_v21 = vpop.f32.mrb[189].mxu1  ;;  %v16770_v47 = vld [vmem:[#allocation250_spill] sm:$0xff] }
 0x7f9   :  { %v8116_v41 = vpop.eup %8115  ;;  %v6157_v51 = vmul.f32 %v8561_v8, %v8114_v17  ;;  %8131 = vpow2.f32 %v4736_v28  ;;  %v5120_v50 = vmul.f32 1.442695, %v5007_v39  ;;  %v5199_v16 = vsub.f32 %v14844_v31, %v4367_v43  ;;  %v8566_v28 = vld [vmem:[%s15513_s0 + $0xd10] sm:$0xff]  ;;  %v16774_v8 = vld [vmem:[#allocation127_spill] sm:$0xff] }
 0x7fa   :  { %v8118_v46 = vpop.eup %8117  ;;  %v6283_v42 = vmul.f32 %v8116_v41, %v6219_v24  ;;  %v5517_v49 = vadd.f32 %v8112_v3, %v5453_v57  ;;  %v5965_v33 = vadd.f32 %v5901_v59, %v5837_v7  ;;  %8133 = vpow2.f32 %v4928_v44  ;;  %v8567_v57 = vld [vmem:[%s15513_s0 + $0xdd0] sm:$0xff]  ;;  %v16773_v41 = vld [vmem:[#allocation126_spill] sm:$0xff] }
 0x7fb   :  { %v5708_v5 = vmul.f32 %v8562_v27, %v8118_v46  ;;  %8135 = vpow2.f32 %v5120_v50  ;;  %v5312_v58 = vmul.f32 1.442695, %v5199_v16  ;;  %v4430_v15 = vsub.f32 %v16767_v40, %v14928_v25  ;;  %v8568_v27 = vld [vmem:[%s15513_s0 + $0xdf0] sm:$0xff] }
 0x7fc   :  { %6347 = vst [vmem:[%s15517_s5 + $0x168] sm:$0xff] %v6283_v42  ;;  %v5581_v31 = vadd.f32 %v8114_v17, %v5517_v49  ;;  %v6093_v18 = vadd.f32 %v6029_v19, %v5965_v33  ;;  %v4622_v24 = vsub.f32 %v16768_v9, %v14928_v25  ;;  %v4814_v45 = vsub.f32 %v16764_v55, %v14928_v25  ;;  %v8563_v9 = vld [vmem:[%s15513_s0 + $0xd18] sm:$0xff]  ;;  %v16771_v19 = vld [vmem:[#allocation251_spill] sm:$0xff] }
 0x7fd   :  { %v8120_v62 = vpop.eup %8119  ;;  %8137 = vpow2.f32 %v5312_v58  ;;  %v4542_v43 = vmul.f32 1.442695, %v4430_v15  ;;  %v5006_v52 = vsub.f32 %v16765_v23, %v14928_v25  ;;  %v5198_v40 = vsub.f32 %v14856_v38, %v14928_v25  ;;  %v8564_v38 = vld [vmem:[%s15513_s0 + $0xd28] sm:$0xff]  ;;  %v8569_v15 = vld [vmem:[%s15513_s0 + $0xe00] sm:$0xff] }
 0x7fe   :  { %v8122_v48 = vpop.eup %8121  ;;  %8139 = vrcp.f32 %v5581_v31  ;;  %v14968_v13 = vadd.f32 %v6157_v51, %v6093_v18  ;;  %v5388_v2 = vadd.f32 %v8120_v62, %v8118_v46  ;;  %v5772_v35 = vmul.f32 %v8563_v9, %v8120_v62  ;;  %v16779_v62 = vld [vmem:[#allocation124_spill] sm:$0xff] }
 0x7ff   :  { %v8124_v55 = vpop.eup %8123  ;;  %v6282_v56 = vmul.f32 %v8122_v48, %v6218_v1  ;;  %8141 = vpow2.f32 %v4542_v43  ;;  %v4734_v20 = vmul.f32 1.442695, %v4622_v24  ;;  %v4926_v53 = vmul.f32 1.442695, %v4814_v45  ;;  %v8565_v1 = vld [vmem:[%s15513_s0 + $0xd08] sm:$0xff]  ;;  %v16777_v24 = vld [vmem:[#allocation249_spill] sm:$0xff] }
 0x800   :  { %v8126_v61 = vpop.eup %8125  ;;  %v5452_v23 = vadd.f32 %v8124_v55, %v5388_v2  ;;  %v5836_v63 = vadd.f32 %v5772_v35, %v5708_v5  ;;  %v5900_v25 = vmul.f32 %v8564_v38, %v8124_v55  ;;  %v5118_v39 = vmul.f32 1.442695, %v5006_v52  ;;  %v16780_v43 = vld [vmem:[#allocation125_spill] sm:$0xff]  ;;  %v8570_v55 = vld [vmem:[%s15513_s0 + $0xde0] sm:$0xff] }
 0x801   :  { %v8128_v0 = vpop.eup %8127  ;;  %6346 = vst [vmem:[%s15517_s5 + $0x160] sm:$0xff] %v6282_v56  ;;  %v6028_v30 = vmul.f32 %v8565_v1, %v8126_v61  ;;  %8143 = vpow2.f32 %v4734_v20  ;;  %v5310_v34 = vmul.f32 1.442695, %v5198_v40  ;;  %v14986_v60 = vadd.f32 %v14530_v32, %v13238_v12  ;;  %v15027_v1 = vpop.f32.mrb[190].mxu1 }
 0x802   :  { %v8130_v3 = vpop.eup %8129  ;;  %v5516_v11 = vadd.f32 %v8126_v61, %v5452_v23  ;;  %v5964_v59 = vadd.f32 %v5900_v25, %v5836_v63  ;;  %v6156_v44 = vmul.f32 %v8566_v28, %v8128_v0  ;;  %8145 = vpow2.f32 %v4926_v53  ;;  %v8571_v25 = vld [vmem:[%s15513_s0 + $0xde8] sm:$0xff] }
 0x803   :  { %v8132_v17 = vpop.eup %8131  ;;  %v5711_v7 = vmul.f32 %v8567_v57, %v8130_v3  ;;  %8147 = vpow2.f32 %v5118_v39  ;;  %v16772_v32 = vmax.f32 %v16770_v47, %v16771_v19  ;;  %v16775_v51 = vmax.f32 %v16773_v41, %v16774_v8 }
 0x804   :  { %v15002_v16 = vadd.f32 %v14584_v37, %v13238_v12  ;;  %v8134_v46 = vpop.eup %8133  ;;  %v5580_v42 = vadd.f32 %v8128_v0, %v5516_v11  ;;  %v6092_v49 = vadd.f32 %v6028_v30, %v5964_v59  ;;  %v5391_v33 = vadd.f32 %v8132_v17, %v8130_v3  ;;  %v16776_v37 = vld [vmem:[#allocation248_spill] sm:$0xff] }
 0x805   :  { %v4305_v50 = vmax.f32 %v16775_v51, %v16772_v32  ;;  %v5775_v5 = vmul.f32 %v8568_v27, %v8132_v17  ;;  %v8136_v58 = vpop.eup %8135  ;;  %v5903_v31 = vmul.f32 %v8569_v15, %v8134_v46  ;;  %8149 = vpow2.f32 %v5310_v34  ;;  %v8572_v17 = vld [vmem:[%s15513_s0 + $0xd88] sm:$0xff]  ;;  %v15049_v27 = vpop.f32.mrb[191].mxu1  ;;  %v8575_v15 = vld [vmem:[%s15513_s0 + $0xd98] sm:$0xff] }
 0x806   :  { %v16778_v45 = vmax.f32 %v16776_v37, %v16777_v24  ;;  %v16781_v52 = vmax.f32 %v16779_v62, %v16780_v43  ;;  %8151 = vrcp.f32 %v5580_v42  ;;  %v6220_v48 = vadd.f32 %v6156_v44, %v6092_v49 }
 0x807   :  { %v4369_v18 = vmax.f32 %v4305_v50, %v14986_v60  ;;  %v5455_v2 = vadd.f32 %v8134_v46, %v5391_v33  ;;  %v5839_v9 = vadd.f32 %v5775_v5, %v5711_v7  ;;  %v8138_v35 = vpop.eup %8137  ;;  %v6031_v56 = vmul.f32 %v8570_v55, %v8136_v58  ;;  %v8573_v50 = vld [vmem:[%s15513_s0 + $0xda8] sm:$0xff] }
 0x808   :  { %v4304_v40 = vmax.f32 %v16781_v52, %v16778_v45  ;;  %v8140_v23 = vpop.eup %8139  ;;  %v6159_v39 = vmul.f32 %v8571_v25, %v8138_v35  ;;  %v15040_v32 = vadd.f32 %v14615_v10, %v13238_v12 }
 0x809   :  { %v4433_v20 = vsub.f32 %v16773_v41, %v4369_v18  ;;  %v4625_v53 = vsub.f32 %v16774_v8, %v4369_v18  ;;  %v4817_v61 = vsub.f32 %v16770_v47, %v4369_v18  ;;  %v5519_v63 = vadd.f32 %v8136_v58, %v5455_v2  ;;  %v8142_v30 = vpop.eup %8141 }
 0x80a   :  { %v5967_v38 = vadd.f32 %v5903_v31, %v5839_v9  ;;  %v5009_v0 = vsub.f32 %v16771_v19, %v4369_v18  ;;  %v6285_v34 = vmul.f32 %v8140_v23, %v14968_v13  ;;  %v5710_v57 = vmul.f32 %v8572_v17, %v8142_v30 }
 0x80b   :  { %v4548_v3 = vmul.f32 1.442695, %v4433_v20  ;;  %v4740_v11 = vmul.f32 1.442695, %v4625_v53  ;;  %v4932_v59 = vmul.f32 1.442695, %v4817_v61  ;;  %v5583_v28 = vadd.f32 %v8138_v35, %v5519_v63  ;;  %v8144_v47 = vpop.eup %8143 }
 0x80c   :  { %v6095_v44 = vadd.f32 %v6031_v56, %v5967_v38  ;;  %v5124_v7 = vmul.f32 1.442695, %v5009_v0  ;;  %6349 = vst [vmem:[%s15517_s5 + $0x178] sm:$0xff] %v6285_v34  ;;  %v5201_v19 = vsub.f32 %v14986_v60, %v4369_v18  ;;  %v4368_v13 = vmax.f32 %v4304_v40, %v15002_v16  ;;  %v8146_v41 = vpop.eup %8145  ;;  %v8574_v60 = vld [vmem:[%s15513_s0 + $0xdb8] sm:$0xff]  ;;  %v8576_v35 = vld [vmem:[%s15513_s0 + $0xda0] sm:$0xff]  ;;  %v16783_v38 = vld [vmem:[#allocation255_spill] sm:$0xff] }
 0x80d   :  { %8153 = vpow2.f32 %v4548_v3  ;;  %v5390_v51 = vadd.f32 %v8144_v47, %v8142_v30  ;;  %v5774_v46 = vmul.f32 %v8573_v50, %v8144_v47  ;;  %v8148_v42 = vpop.eup %8147  ;;  %v5902_v49 = vmul.f32 %v8574_v60, %v8146_v41  ;;  %v16786_v0 = vld [vmem:[#allocation131_spill] sm:$0xff]  ;;  %v16788_v3 = vld [vmem:[#allocation252_spill] sm:$0xff] }
 0x80e   :  { %8155 = vrcp.f32 %v5583_v28  ;;  %v6223_v8 = vadd.f32 %v6159_v39, %v6095_v44  ;;  %v5316_v33 = vmul.f32 1.442695, %v5201_v19  ;;  %v4432_v10 = vsub.f32 %v16779_v62, %v4368_v13  ;;  %v16785_v39 = vld [vmem:[#allocation130_spill] sm:$0xff] }
 0x80f   :  { %8157 = vpow2.f32 %v4740_v11  ;;  %v5454_v5 = vadd.f32 %v8146_v41, %v5390_v51  ;;  %v5838_v58 = vadd.f32 %v5774_v46, %v5710_v57  ;;  %v6030_v31 = vmul.f32 %v8575_v15, %v8148_v42  ;;  %v8150_v18 = vpop.eup %8149  ;;  %v8577_v51 = vld [vmem:[%s15513_s0 + $0xe60] sm:$0xff]  ;;  %v16794_v46 = vld [vmem:[#allocation260_spill] sm:$0xff] }
 0x810   :  { %8159 = vpow2.f32 %v4932_v59  ;;  %v4546_v45 = vmul.f32 1.442695, %v4432_v10  ;;  %v4624_v52 = vsub.f32 %v16780_v43, %v4368_v13  ;;  %v4816_v40 = vsub.f32 %v16776_v37, %v4368_v13  ;;  %v8152_v2 = vpop.eup %8151  ;;  %v16782_v37 = vld [vmem:[#allocation254_spill] sm:$0xff]  ;;  %v16792_v59 = vld [vmem:[#allocation129_spill] sm:$0xff] }
 0x811   :  { %8161 = vpow2.f32 %v5124_v7  ;;  %v5518_v9 = vadd.f32 %v8148_v42, %v5454_v5  ;;  %v5966_v62 = vadd.f32 %v5902_v49, %v5838_v58  ;;  %v6158_v55 = vmul.f32 %v8576_v35, %v8150_v18  ;;  %v16795_v42 = vld [vmem:[#allocation261_spill] sm:$0xff]  ;;  %v16797_v49 = vld [vmem:[#allocation134_spill] sm:$0xff] }
 0x812   :  { %8163 = vpow2.f32 %v5316_v33  ;;  %v6284_v56 = vmul.f32 %v8152_v2, %v6220_v48  ;;  %v4738_v20 = vmul.f32 1.442695, %v4624_v52  ;;  %v4930_v53 = vmul.f32 1.442695, %v4816_v40  ;;  %v16798_v33 = vld [vmem:[#allocation135_spill] sm:$0xff]  ;;  %v8578_v40 = vld [vmem:[%s15513_s0 + $0xe80] sm:$0xff] }
 0x813   :  { %8165 = vpow2.f32 %v4546_v45  ;;  %v5582_v61 = vadd.f32 %v8150_v18, %v5518_v9  ;;  %v6094_v23 = vadd.f32 %v6030_v31, %v5966_v62  ;;  %v5008_v63 = vsub.f32 %v16777_v24, %v4368_v13  ;;  %v16789_v24 = vld [vmem:[#allocation253_spill] sm:$0xff] }
 0x814   :  { %v5200_v43 = vsub.f32 %v15002_v16, %v4368_v13  ;;  %6348 = vst [vmem:[%s15517_s5 + $0x170] sm:$0xff] %v6284_v56  ;;  %8167 = vpow2.f32 %v4738_v20  ;;  %v16784_v25 = vmax.f32 %v16782_v37, %v16783_v38  ;;  %v16787_v48 = vmax.f32 %v16785_v39, %v16786_v0  ;;  %v16791_v16 = vld [vmem:[#allocation128_spill] sm:$0xff] }
 0x815   :  { %v15072_v34 = vadd.f32 %v14658_v4, %v13238_v12  ;;  %v16790_v11 = vmax.f32 %v16788_v3, %v16789_v24  ;;  %v16793_v28 = vmax.f32 %v16791_v16, %v16792_v59  ;;  %8169 = vrcp.f32 %v5582_v61 }
 0x816   :  { %v4307_v30 = vmax.f32 %v16787_v48, %v16784_v25  ;;  %v6222_v17 = vadd.f32 %v6158_v55, %v6094_v23  ;;  %v5122_v57 = vmul.f32 1.442695, %v5008_v63  ;;  %v5314_v7 = vmul.f32 1.442695, %v5200_v43  ;;  %v8580_v63 = vld [vmem:[%s15513_s0 + $0xe70] sm:$0xff]  ;;  %v8581_v25 = vld [vmem:[%s15513_s0 + $0xe78] sm:$0xff] }
 0x817   :  { %v4306_v44 = vmax.f32 %v16793_v28, %v16790_v11  ;;  %v8154_v47 = vpop.eup %8153  ;;  %8171 = vpow2.f32 %v4930_v53  ;;  %v15086_v4 = vadd.f32 %v14687_v26, %v13238_v12  ;;  %v16796_v60 = vmax.f32 %v16794_v46, %v16795_v42  ;;  %v8582_v11 = vld [vmem:[%s15513_s0 + $0xe18] sm:$0xff] }
 0x818   :  { %v4371_v19 = vmax.f32 %v4307_v30, %v15040_v32  ;;  %v8156_v41 = vpop.eup %8155  ;;  %v5713_v50 = vmul.f32 %v8577_v51, %v8154_v47  ;;  %8173 = vpow2.f32 %v5122_v57  ;;  %v16799_v10 = vmax.f32 %v16797_v49, %v16798_v33 }
 0x819   :  { %v15082_v13 = vmax.f32 %v4306_v44, %v15072_v34  ;;  %v15101_v58 = vadd.f32 %v14726_v6, %v13238_v12  ;;  %v8158_v26 = vpop.eup %8157  ;;  %v6287_v15 = vmul.f32 %v8156_v41, %v6223_v8  ;;  %8175 = vpow2.f32 %v5314_v7  ;;  %v8579_v8 = vld [vmem:[%s15513_s0 + $0xe90] sm:$0xff] }
 0x81a   :  { %v15097_v5 = vmax.f32 %v16799_v10, %v16796_v60  ;;  %v4435_v31 = vsub.f32 %v16785_v39, %v4371_v19  ;;  %v4627_v18 = vsub.f32 %v16786_v0, %v4371_v19  ;;  %v8160_v45 = vpop.eup %8159  ;;  %v5393_v52 = vadd.f32 %v8158_v26, %v8154_v47  ;;  %v8583_v60 = vld [vmem:[%s15513_s0 + $0xe38] sm:$0xff] }
 0x81b   :  { %v5777_v2 = vmul.f32 %v8578_v40, %v8158_v26  ;;  %v4819_v9 = vsub.f32 %v16782_v37, %v4371_v19  ;;  %v5011_v62 = vsub.f32 %v16783_v38, %v4371_v19  ;;  %v8162_v6 = vpop.eup %8161  ;;  %6351 = vst [vmem:[%s15517_s5 + $0x188] sm:$0xff] %v6287_v15  ;;  %v5905_v35 = vmul.f32 %v8579_v8, %v8160_v45  ;;  %v8584_v40 = vld [vmem:[%s15513_s0 + $0xe48] sm:$0xff]  ;;  %v8586_v8 = vld [vmem:[%s15513_s0 + $0xe30] sm:$0xff] }
 0x81c   :  { %v4552_v55 = vmul.f32 1.442695, %v4435_v31  ;;  %v4744_v56 = vmul.f32 1.442695, %v4627_v18  ;;  %v5203_v20 = vsub.f32 %v15040_v32, %v4371_v19  ;;  %v8164_v53 = vpop.eup %8163  ;;  %v5457_v61 = vadd.f32 %v8160_v45, %v5393_v52 }
 0x81d   :  { %v5841_v23 = vadd.f32 %v5777_v2, %v5713_v50  ;;  %v6033_v43 = vmul.f32 %v8580_v63, %v8162_v6  ;;  %v4936_v37 = vmul.f32 1.442695, %v4819_v9  ;;  %v8166_v38 = vpop.eup %8165  ;;  %v6161_v39 = vmul.f32 %v8581_v25, %v8164_v53  ;;  %v16800_v63 = vld [vmem:[#allocation257_spill] sm:$0xff] }
 0x81e   :  { %8177 = vpow2.f32 %v4552_v55  ;;  %v5128_v0 = vmul.f32 1.442695, %v5011_v62  ;;  %v5320_v48 = vmul.f32 1.442695, %v5203_v20  ;;  %v5521_v30 = vadd.f32 %v8162_v6, %v5457_v61  ;;  %v8168_v44 = vpop.eup %8167  ;;  %v16804_v25 = vld [vmem:[#allocation133_spill] sm:$0xff] }
 0x81f   :  { %v5969_v32 = vadd.f32 %v5905_v35, %v5841_v23  ;;  %v5712_v28 = vmul.f32 %v8582_v11, %v8166_v38  ;;  %8179 = vpow2.f32 %v4744_v56  ;;  %v4434_v57 = vsub.f32 %v16791_v16, %v15082_v13  ;;  %v8170_v19 = vpop.eup %8169 }
 0x820   :  { %8181 = vpow2.f32 %v4936_v37  ;;  %v4626_v7 = vsub.f32 %v16792_v59, %v15082_v13  ;;  %v4818_v47 = vsub.f32 %v16788_v3, %v15082_v13  ;;  %v5585_v41 = vadd.f32 %v8164_v53, %v5521_v30 }
 0x821   :  { %v6097_v51 = vadd.f32 %v6033_v43, %v5969_v32  ;;  %v5392_v50 = vadd.f32 %v8168_v44, %v8166_v38  ;;  %v5776_v10 = vmul.f32 %v8583_v60, %v8168_v44  ;;  %v8172_v26 = vpop.eup %8171  ;;  %v6286_v15 = vmul.f32 %v8170_v19, %v6222_v17  ;;  %v8585_v17 = vld [vmem:[%s15513_s0 + $0xe28] sm:$0xff]  ;;  %v16801_v43 = vld [vmem:[#allocation258_spill] sm:$0xff]  ;;  %v16803_v38 = vld [vmem:[#allocation132_spill] sm:$0xff] }
 0x822   :  { %8183 = vpow2.f32 %v5128_v0  ;;  %v4550_v31 = vmul.f32 1.442695, %v4434_v57  ;;  %v4742_v16 = vmul.f32 1.442695, %v4626_v7  ;;  %v8174_v18 = vpop.eup %8173  ;;  %v5904_v2 = vmul.f32 %v8584_v40, %v8172_v26 }
 0x823   :  { %8185 = vrcp.f32 %v5585_v41  ;;  %v6225_v59 = vadd.f32 %v6161_v39, %v6097_v51  ;;  %v5456_v45 = vadd.f32 %v8172_v26, %v5392_v50  ;;  %v5840_v52 = vadd.f32 %v5776_v10, %v5712_v28  ;;  %v8176_v3 = vpop.eup %8175  ;;  %6350 = vst [vmem:[%s15517_s5 + $0x180] sm:$0xff] %v6286_v15 }
 0x824   :  { %v6032_v9 = vmul.f32 %v8585_v17, %v8174_v18  ;;  %8187 = vpow2.f32 %v5320_v48  ;;  %v4934_v62 = vmul.f32 1.442695, %v4818_v47  ;;  %v6160_v35 = vmul.f32 %v8586_v8, %v8176_v3 }
 0x825   :  { %v5520_v6 = vadd.f32 %v8174_v18, %v5456_v45  ;;  %8189 = vpow2.f32 %v4550_v31  ;;  %v5010_v55 = vsub.f32 %v16789_v24, %v15082_v13  ;;  %v5968_v56 = vadd.f32 %v5904_v2, %v5840_v52  ;;  %v8590_v31 = vld [vmem:[%s15513_s0 + $0xf00] sm:$0xff] }
 0x826   :  { %8191 = vpow2.f32 %v4742_v16  ;;  %v5202_v20 = vsub.f32 %v15072_v34, %v15082_v13  ;;  %v4373_v53 = vmax.f32 %v15097_v5, %v15086_v4  ;;  %v16802_v37 = vmax.f32 %v16800_v63, %v16801_v43  ;;  %v8587_v5 = vld [vmem:[%s15513_s0 + $0xef0] sm:$0xff] }
 0x827   :  { %v5584_v61 = vadd.f32 %v8176_v3, %v5520_v6  ;;  %8193 = vpow2.f32 %v4934_v62  ;;  %v5126_v23 = vmul.f32 1.442695, %v5010_v55  ;;  %v16805_v39 = vmax.f32 %v16803_v38, %v16804_v25  ;;  %v8592_v55 = vld [vmem:[%s15513_s0 + $0xea8] sm:$0xff] }
 0x828   :  { %v8178_v48 = vpop.eup %8177  ;;  %v6096_v24 = vadd.f32 %v6032_v9, %v5968_v56  ;;  %v5318_v30 = vmul.f32 1.442695, %v5202_v20  ;;  %v4437_v32 = vsub.f32 %v16797_v49, %v4373_v53  ;;  %v4629_v34 = vsub.f32 %v16798_v33, %v4373_v53  ;;  %v8588_v49 = vld [vmem:[%s15513_s0 + $0xf10] sm:$0xff]  ;;  %v8589_v33 = vld [vmem:[%s15513_s0 + $0xf20] sm:$0xff]  ;;  %v8591_v9 = vld [vmem:[%s15513_s0 + $0xf08] sm:$0xff] }
 0x829   :  { %v4308_v0 = vmax.f32 %v16805_v39, %v16802_v37  ;;  %v8180_v13 = vpop.eup %8179  ;;  %8195 = vrcp.f32 %v5584_v61  ;;  %v5715_v11 = vmul.f32 %v8587_v5, %v8178_v48  ;;  %v4821_v28 = vsub.f32 %v16794_v46, %v4373_v53  ;;  %v8593_v61 = vld [vmem:[%s15513_s0 + $0xec8] sm:$0xff]  ;;  %v8594_v39 = vld [vmem:[%s15513_s0 + $0xed8] sm:$0xff] }
 0x82a   :  { %v5013_v44 = vsub.f32 %v16795_v42, %v4373_v53  ;;  %v8182_v57 = vpop.eup %8181  ;;  %v6224_v7 = vadd.f32 %v6160_v35, %v6096_v24  ;;  %v5395_v47 = vadd.f32 %v8180_v13, %v8178_v48  ;;  %v5779_v19 = vmul.f32 %v8588_v49, %v8180_v13 }
 0x82b   :  { %8197 = vpow2.f32 %v5126_v23  ;;  %v5907_v41 = vmul.f32 %v8589_v33, %v8182_v57  ;;  %v4556_v51 = vmul.f32 1.442695, %v4437_v32  ;;  %v4748_v50 = vmul.f32 1.442695, %v4629_v34 }
 0x82c   :  { %8199 = vpow2.f32 %v5318_v30  ;;  %v8184_v46 = vpop.eup %8183  ;;  %v5459_v60 = vadd.f32 %v8182_v57, %v5395_v47  ;;  %v5843_v42 = vadd.f32 %v5779_v19, %v5715_v11  ;;  %v4940_v10 = vmul.f32 1.442695, %v4821_v28 }
 0x82d   :  { %v5132_v26 = vmul.f32 1.442695, %v5013_v44  ;;  %v8186_v15 = vpop.eup %8185  ;;  %v6035_v16 = vmul.f32 %v8590_v31, %v8184_v46  ;;  %8201 = vpow2.f32 %v4556_v51  ;;  %v5205_v18 = vsub.f32 %v15086_v4, %v4373_v53 }
 0x82e   :  { %v4372_v45 = vmax.f32 %v4308_v0, %v15101_v58  ;;  %v8188_v52 = vpop.eup %8187  ;;  %v6289_v3 = vmul.f32 %v8186_v15, %v6225_v59  ;;  %v5523_v40 = vadd.f32 %v8184_v46, %v5459_v60  ;;  %v5971_v2 = vadd.f32 %v5907_v41, %v5843_v42  ;;  %v8597_v42 = vld [vmem:[%s15513_s0 + $0xf80] sm:$0xff]  ;;  %v16807_v15 = vld [vmem:[#allocation265_spill] sm:$0xff] }
 0x82f   :  { %8203 = vpow2.f32 %v4748_v50  ;;  %v8190_v17 = vpop.eup %8189  ;;  %v6163_v62 = vmul.f32 %v8591_v9, %v8188_v52  ;;  %v5324_v6 = vmul.f32 1.442695, %v5205_v18  ;;  %v4093_v46 = vadd.f32 %v14769_v14, %v13238_v12  ;;  %v16810_v18 = vld [vmem:[#allocation139_spill] sm:$0xff] }
 0x830   :  { %8205 = vpow2.f32 %v4940_v10  ;;  %v4436_v8 = vsub.f32 %v16803_v38, %v4372_v45  ;;  %v8192_v35 = vpop.eup %8191  ;;  %6353 = vst [vmem:[%s15517_s5 + $0x198] sm:$0xff] %v6289_v3  ;;  %v5587_v4 = vadd.f32 %v8188_v52, %v5523_v40  ;;  %v6099_v59 = vadd.f32 %v6035_v16, %v5971_v2  ;;  %v16809_v16 = vld [vmem:[#allocation138_spill] sm:$0xff] }
 0x831   :  { %v5714_v56 = vmul.f32 %v8592_v55, %v8190_v17  ;;  %8207 = vpow2.f32 %v5132_v26  ;;  %v8194_v20 = vpop.eup %8193  ;;  %v5394_v53 = vadd.f32 %v8192_v35, %v8190_v17  ;;  %v5778_v23 = vmul.f32 %v8593_v61, %v8192_v35  ;;  %v16806_v26 = vld [vmem:[#allocation264_spill] sm:$0xff]  ;;  %v8598_v17 = vld [vmem:[%s15513_s0 + $0xfa0] sm:$0xff] }
 0x832   :  { %8209 = vpow2.f32 %v5324_v6  ;;  %v4554_v37 = vmul.f32 1.442695, %v4436_v8  ;;  %v6227_v38 = vadd.f32 %v6163_v62, %v6099_v59  ;;  %v5906_v0 = vmul.f32 %v8594_v39, %v8194_v20  ;;  %v8599_v6 = vld [vmem:[%s15513_s0 + $0xfb0] sm:$0xff] }
 0x833   :  { %8211 = vrcp.f32 %v5587_v4  ;;  %v4628_v48 = vsub.f32 %v16804_v25, %v4372_v45  ;;  %v8196_v24 = vpop.eup %8195  ;;  %v5458_v30 = vadd.f32 %v8194_v20, %v5394_v53  ;;  %v5842_v32 = vadd.f32 %v5778_v23, %v5714_v56  ;;  %v8595_v25 = vld [vmem:[%s15513_s0 + $0xeb8] sm:$0xff]  ;;  %v16812_v4 = vld [vmem:[#allocation262_spill] sm:$0xff]  ;;  %v16815_v55 = vld [vmem:[#allocation136_spill] sm:$0xff] }
 0x834   :  { %8213 = vpow2.f32 %v4554_v37  ;;  %v4820_v34 = vsub.f32 %v16800_v63, %v4372_v45  ;;  %v6288_v5 = vmul.f32 %v8196_v24, %v6224_v7  ;;  %v5012_v28 = vsub.f32 %v16801_v43, %v4372_v45  ;;  %v8596_v63 = vld [vmem:[%s15513_s0 + $0xec0] sm:$0xff]  ;;  %v16816_v56 = vld [vmem:[#allocation137_spill] sm:$0xff]  ;;  %v8600_v39 = vld [vmem:[%s15513_s0 + $0xf90] sm:$0xff] }
 0x835   :  { %v8198_v13 = vpop.eup %8197  ;;  %v4746_v11 = vmul.f32 1.442695, %v4628_v48  ;;  %v5204_v44 = vsub.f32 %v15101_v58, %v4372_v45  ;;  %v5970_v49 = vadd.f32 %v5906_v0, %v5842_v32  ;;  %v16808_v31 = vmax.f32 %v16806_v26, %v16807_v15 }
 0x836   :  { %v8200_v57 = vpop.eup %8199  ;;  %v5522_v47 = vadd.f32 %v8198_v13, %v5458_v30  ;;  %v6034_v19 = vmul.f32 %v8595_v25, %v8198_v13  ;;  %v4938_v33 = vmul.f32 1.442695, %v4820_v34  ;;  %6352 = vst [vmem:[%s15517_s5 + $0x190] sm:$0xff] %v6288_v5  ;;  %v5130_v58 = vmul.f32 1.442695, %v5012_v28  ;;  %v8601_v30 = vld [vmem:[%s15513_s0 + $0xf98] sm:$0xff] }
 0x837   :  { %v6162_v43 = vmul.f32 %v8596_v63, %v8200_v57  ;;  %8215 = vpow2.f32 %v4746_v11  ;;  %v5322_v7 = vmul.f32 1.442695, %v5204_v44  ;;  %v8202_v41 = vpop.eup %8201  ;;  %v16811_v45 = vmax.f32 %v16809_v16, %v16810_v18 }
 0x838   :  { %v5586_v51 = vadd.f32 %v8200_v57, %v5522_v47  ;;  %v6098_v50 = vadd.f32 %v6034_v19, %v5970_v49  ;;  %8217 = vpow2.f32 %v4938_v33  ;;  %v5717_v10 = vmul.f32 %v8597_v42, %v8202_v41  ;;  %v16821_v42 = vld [vmem:[#allocation142_spill] sm:$0xff] }
 0x839   :  { %v8204_v60 = vpop.eup %8203  ;;  %8219 = vpow2.f32 %v5130_v58  ;;  %v4311_v52 = vmax.f32 %v16811_v45, %v16808_v31  ;;  %v15219_v3 = vadd.f32 %v14812_v36, %v13238_v12  ;;  %v16813_v36 = vld [vmem:[#allocation263_spill] sm:$0xff]  ;;  %v16817_v20 = vmax.f32 %v16815_v55, %v16816_v56 }
 0x83a   :  { %v8206_v40 = vpop.eup %8205  ;;  %8221 = vrcp.f32 %v5586_v51  ;;  %v6226_v14 = vadd.f32 %v6162_v43, %v6098_v50  ;;  %v5397_v2 = vadd.f32 %v8204_v60, %v8202_v41  ;;  %v5781_v9 = vmul.f32 %v8598_v17, %v8204_v60  ;;  %v16818_v51 = vld [vmem:[#allocation268_spill] sm:$0xff]  ;;  %v16819_v50 = vld [vmem:[#allocation271_spill] sm:$0xff] }
 0x83b   :  { %v8208_v62 = vpop.eup %8207  ;;  %v5909_v8 = vmul.f32 %v8599_v6, %v8206_v40  ;;  %8223 = vpow2.f32 %v5322_v7  ;;  %v4375_v35 = vmax.f32 %v4311_v52, %v4093_v46  ;;  %v16814_v59 = vmax.f32 %v16812_v4, %v16813_v36 }
 0x83c   :  { %v8210_v61 = vpop.eup %8209  ;;  %v5461_v23 = vadd.f32 %v8206_v40, %v5397_v2  ;;  %v5845_v37 = vadd.f32 %v5781_v9, %v5717_v10  ;;  %v6037_v0 = vmul.f32 %v8600_v39, %v8208_v62  ;;  %v15238_v48 = vadd.f32 %v14872_v29, %v13238_v12  ;;  %v8602_v29 = vld [vmem:[%s15513_s0 + $0xf38] sm:$0xff]  ;;  %v16822_v10 = vld [vmem:[#allocation143_spill] sm:$0xff] }
 0x83d   :  { %v4310_v53 = vmax.f32 %v16817_v20, %v16814_v59  ;;  %v8212_v24 = vpop.eup %8211  ;;  %v6165_v32 = vmul.f32 %v8601_v30, %v8210_v61  ;;  %v4439_v34 = vsub.f32 %v16809_v16, %v4375_v35  ;;  %v4631_v13 = vsub.f32 %v16810_v18, %v4375_v35  ;;  %v8604_v2 = vld [vmem:[%s15513_s0 + $0xf68] sm:$0xff] }
 0x83e   :  { %v4823_v5 = vsub.f32 %v16806_v26, %v4375_v35  ;;  %v8214_v11 = vpop.eup %8213  ;;  %v6291_v28 = vmul.f32 %v8212_v24, %v6227_v38  ;;  %v5525_v44 = vadd.f32 %v8208_v62, %v5461_v23  ;;  %v5973_v57 = vadd.f32 %v5909_v8, %v5845_v37 }
 0x83f   :  { %v5015_v47 = vsub.f32 %v16807_v15, %v4375_v35  ;;  %v5716_v49 = vmul.f32 %v8602_v29, %v8214_v11  ;;  %v4560_v25 = vmul.f32 1.442695, %v4439_v34  ;;  %v4752_v19 = vmul.f32 1.442695, %v4631_v13  ;;  %v16828_v29 = vld [vmem:[#allocation141_spill] sm:$0xff] }
 0x840   :  { %v4944_v33 = vmul.f32 1.442695, %v4823_v5  ;;  %6355 = vst [vmem:[%s15517_s5 + $0x1a8] sm:$0xff] %v6291_v28  ;;  %v5589_v63 = vadd.f32 %v8210_v61, %v5525_v44  ;;  %v6101_v43 = vadd.f32 %v6037_v0, %v5973_v57  ;;  %v5207_v38 = vsub.f32 %v4093_v46, %v4375_v35  ;;  %v8603_v46 = vld [vmem:[%s15513_s0 + $0xf58] sm:$0xff]  ;;  %v8605_v35 = vld [vmem:[%s15513_s0 + $0xf48] sm:$0xff]  ;;  %v16824_v28 = vld [vmem:[#allocation266_spill] sm:$0xff] }
 0x841   :  { %v5136_v58 = vmul.f32 1.442695, %v5015_v47  ;;  %v8216_v7 = vpop.eup %8215  ;;  %8225 = vpow2.f32 %v4560_v25  ;;  %v4374_v41 = vmax.f32 %v4310_v53, %v15219_v3  ;;  %v16820_v60 = vmax.f32 %v16818_v51, %v16819_v50  ;;  %v16825_v44 = vld [vmem:[#allocation267_spill] sm:$0xff]  ;;  %v16827_v47 = vld [vmem:[#allocation140_spill] sm:$0xff] }
 0x842   :  { %v16823_v26 = vmax.f32 %v16821_v42, %v16822_v10  ;;  %v15262_v31 = vadd.f32 %v14898_v22, %v13238_v12  ;;  %v8218_v16 = vpop.eup %8217  ;;  %8227 = vrcp.f32 %v5589_v63  ;;  %v6229_v18 = vadd.f32 %v6165_v32, %v6101_v43 }
 0x843   :  { %v5396_v45 = vadd.f32 %v8216_v7, %v8214_v11  ;;  %v5780_v52 = vmul.f32 %v8603_v46, %v8216_v7  ;;  %v8220_v40 = vpop.eup %8219  ;;  %v5908_v17 = vmul.f32 %v8604_v2, %v8218_v16  ;;  %8229 = vpow2.f32 %v4752_v19 }
 0x844   :  { %v4313_v15 = vmax.f32 %v16823_v26, %v16820_v60  ;;  %v5328_v9 = vmul.f32 1.442695, %v5207_v38  ;;  %v4438_v22 = vsub.f32 %v16815_v55, %v4374_v41  ;;  %v8222_v62 = vpop.eup %8221  ;;  %v6036_v59 = vmul.f32 %v8605_v35, %v8220_v40  ;;  %v8606_v55 = vld [vmem:[%s15513_s0 + $0xf50] sm:$0xff]  ;;  %v8611_v35 = vld [vmem:[%s15513_s0 + $0x1028] sm:$0xff] }
 0x845   :  { %v5460_v6 = vadd.f32 %v8218_v16, %v5396_v45  ;;  %v5844_v8 = vadd.f32 %v5780_v52, %v5716_v49  ;;  %8231 = vpow2.f32 %v4944_v33  ;;  %v8224_v20 = vpop.eup %8223  ;;  %v6290_v53 = vmul.f32 %v8222_v62, %v6226_v14  ;;  %v8607_v38 = vld [vmem:[%s15513_s0 + $0x1010] sm:$0xff]  ;;  %v8610_v62 = vld [vmem:[%s15513_s0 + $0x1020] sm:$0xff] }
 0x846   :  { %8233 = vpow2.f32 %v5136_v58  ;;  %v4558_v61 = vmul.f32 1.442695, %v4438_v22  ;;  %v4630_v23 = vsub.f32 %v16816_v56, %v4374_v41  ;;  %v6164_v0 = vmul.f32 %v8606_v55, %v8224_v20 }
 0x847   :  { %v5524_v37 = vadd.f32 %v8220_v40, %v5460_v6  ;;  %v5972_v39 = vadd.f32 %v5908_v17, %v5844_v8  ;;  %8235 = vpow2.f32 %v5328_v9  ;;  %6354 = vst [vmem:[%s15517_s5 + $0x1a0] sm:$0xff] %v6290_v53  ;;  %v4822_v14 = vsub.f32 %v16812_v4, %v4374_v41 }
 0x848   :  { %8237 = vpow2.f32 %v4558_v61  ;;  %v4750_v24 = vmul.f32 1.442695, %v4630_v23  ;;  %v5014_v30 = vsub.f32 %v16813_v36, %v4374_v41  ;;  %v5206_v34 = vsub.f32 %v15219_v3, %v4374_v41 }
 0x849   :  { %v5588_v32 = vadd.f32 %v8224_v20, %v5524_v37  ;;  %v6100_v56 = vadd.f32 %v6036_v59, %v5972_v39  ;;  %v4377_v13 = vmax.f32 %v4313_v15, %v15238_v48  ;;  %v4942_v5 = vmul.f32 1.442695, %v4822_v14  ;;  %v8612_v37 = vld [vmem:[%s15513_s0 + $0xfc8] sm:$0xff] }
 0x84a   :  { %8239 = vpow2.f32 %v4750_v24  ;;  %v5134_v11 = vmul.f32 1.442695, %v5014_v30  ;;  %v16826_v57 = vmax.f32 %v16824_v28, %v16825_v44  ;;  %v16829_v49 = vmax.f32 %v16827_v47, %v16828_v29 }
 0x84b   :  { %8241 = vrcp.f32 %v5588_v32  ;;  %v6228_v4 = vadd.f32 %v6164_v0, %v6100_v56  ;;  %v5326_v19 = vmul.f32 1.442695, %v5206_v34  ;;  %v4441_v36 = vsub.f32 %v16821_v42, %v4377_v13  ;;  %v8226_v33 = vpop.eup %8225 }
 0x84c   :  { %v4312_v25 = vmax.f32 %v16829_v49, %v16826_v57  ;;  %8243 = vpow2.f32 %v4942_v5  ;;  %v4633_v3 = vsub.f32 %v16822_v10, %v4377_v13  ;;  %v4825_v63 = vsub.f32 %v16818_v51, %v4377_v13  ;;  %v8228_v58 = vpop.eup %8227  ;;  %v8608_v51 = vld [vmem:[%s15513_s0 + $0x1030] sm:$0xff]  ;;  %v8613_v5 = vld [vmem:[%s15513_s0 + $0xfe8] sm:$0xff] }
 0x84d   :  { %v5017_v43 = vsub.f32 %v16819_v50, %v4377_v13  ;;  %v5719_v7 = vmul.f32 %v8607_v38, %v8226_v33  ;;  %8245 = vpow2.f32 %v5134_v11  ;;  %v4564_v41 = vmul.f32 1.442695, %v4441_v36  ;;  %v8230_v26 = vpop.eup %8229 }
 0x84e   :  { %v5209_v60 = vsub.f32 %v15238_v48, %v4377_v13  ;;  %v6293_v42 = vmul.f32 %v8228_v58, %v6229_v18  ;;  %8247 = vpow2.f32 %v5326_v19  ;;  %v4756_v15 = vmul.f32 1.442695, %v4633_v3  ;;  %v8609_v48 = vld [vmem:[%s15513_s0 + $0x1040] sm:$0xff] }
 0x84f   :  { %v4948_v16 = vmul.f32 1.442695, %v4825_v63  ;;  %v8232_v10 = vpop.eup %8231  ;;  %v5399_v45 = vadd.f32 %v8230_v26, %v8226_v33  ;;  %v5783_v50 = vmul.f32 %v8608_v51, %v8230_v26  ;;  %8249 = vpow2.f32 %v4564_v41  ;;  %v8614_v33 = vld [vmem:[%s15513_s0 + $0xff8] sm:$0xff] }
 0x850   :  { %v5140_v46 = vmul.f32 1.442695, %v5017_v43  ;;  %v8234_v52 = vpop.eup %8233  ;;  %6357 = vst [vmem:[%s15517_s5 + $0x1b8] sm:$0xff] %v6293_v42  ;;  %v5911_v18 = vmul.f32 %v8609_v48, %v8232_v10  ;;  %8251 = vpow2.f32 %v4756_v15  ;;  %v5332_v40 = vmul.f32 1.442695, %v5209_v60  ;;  %v8617_v15 = vld [vmem:[%s15513_s0 + $0x10a0] sm:$0xff] }
 0x851   :  { %v4376_v2 = vmax.f32 %v4312_v25, %v15262_v31  ;;  %v8236_v17 = vpop.eup %8235  ;;  %v5463_v9 = vadd.f32 %v8232_v10, %v5399_v45  ;;  %v5847_v22 = vadd.f32 %v5783_v50, %v5719_v7  ;;  %v6039_v6 = vmul.f32 %v8610_v62, %v8234_v52  ;;  %v8616_v7 = vld [vmem:[%s15513_s0 + $0xfe0] sm:$0xff]  ;;  %v16831_v48 = vld [vmem:[#allocation275_spill] sm:$0xff]  ;;  %v8619_v62 = vld [vmem:[%s15513_s0 + $0x10d0] sm:$0xff] }
 0x852   :  { %8253 = vpow2.f32 %v4948_v16  ;;  %v8238_v8 = vpop.eup %8237  ;;  %v6167_v59 = vmul.f32 %v8611_v35, %v8236_v17  ;;  %v4113_v60 = vadd.f32 %v14932_v54, %v13238_v12  ;;  %v8618_v50 = vld [vmem:[%s15513_s0 + $0x10c0] sm:$0xff] }
 0x853   :  { %8255 = vpow2.f32 %v5140_v46  ;;  %v4440_v20 = vsub.f32 %v16827_v47, %v4376_v2  ;;  %v4632_v53 = vsub.f32 %v16828_v29, %v4376_v2  ;;  %v5527_v61 = vadd.f32 %v8234_v52, %v5463_v9  ;;  %v16830_v52 = vld [vmem:[#allocation274_spill] sm:$0xff] }
 0x854   :  { %v5975_v23 = vadd.f32 %v5911_v18, %v5847_v22  ;;  %v5718_v39 = vmul.f32 %v8612_v37, %v8238_v8  ;;  %8257 = vpow2.f32 %v5332_v40  ;;  %v8240_v55 = vpop.eup %8239  ;;  %v4824_v14 = vsub.f32 %v16824_v28, %v4376_v2  ;;  %v16833_v18 = vld [vmem:[#allocation146_spill] sm:$0xff]  ;;  %v16834_v40 = vld [vmem:[#allocation147_spill] sm:$0xff]  ;;  %v8621_v37 = vld [vmem:[%s15513_s0 + $0x10b8] sm:$0xff] }
 0x855   :  { %v4562_v0 = vmul.f32 1.442695, %v4440_v20  ;;  %v4754_v24 = vmul.f32 1.442695, %v4632_v53  ;;  %v5016_v30 = vsub.f32 %v16825_v44, %v4376_v2  ;;  %v8242_v32 = vpop.eup %8241  ;;  %v5591_v56 = vadd.f32 %v8236_v17, %v5527_v61  ;;  %v8620_v53 = vld [vmem:[%s15513_s0 + $0x10b0] sm:$0xff] }
 0x856   :  { %v6103_v34 = vadd.f32 %v6039_v6, %v5975_v23  ;;  %v5398_v13 = vadd.f32 %v8240_v55, %v8238_v8  ;;  %v5782_v11 = vmul.f32 %v8613_v5, %v8240_v55  ;;  %v8244_v57 = vpop.eup %8243  ;;  %v6292_v47 = vmul.f32 %v8242_v32, %v6228_v4  ;;  %v8615_v4 = vld [vmem:[%s15513_s0 + $0xfd8] sm:$0xff] }
 0x857   :  { %8259 = vpow2.f32 %v4562_v0  ;;  %v4946_v29 = vmul.f32 1.442695, %v4824_v14  ;;  %v5138_v49 = vmul.f32 1.442695, %v5016_v30  ;;  %v8246_v25 = vpop.eup %8245  ;;  %v5910_v3 = vmul.f32 %v8614_v33, %v8244_v57  ;;  %v16836_v0 = vld [vmem:[#allocation272_spill] sm:$0xff]  ;;  %v16840_v30 = vld [vmem:[#allocation145_spill] sm:$0xff] }
 0x858   :  { %8261 = vrcp.f32 %v5591_v56  ;;  %v6231_v19 = vadd.f32 %v6167_v59, %v6103_v34  ;;  %v5462_v28 = vadd.f32 %v8244_v57, %v5398_v13  ;;  %v5846_v36 = vadd.f32 %v5782_v11, %v5718_v39  ;;  %v8248_v44 = vpop.eup %8247  ;;  %6356 = vst [vmem:[%s15517_s5 + $0x1b0] sm:$0xff] %v6292_v47  ;;  %v16839_v14 = vld [vmem:[#allocation144_spill] sm:$0xff]  ;;  %v16842_v11 = vld [vmem:[#allocation277_spill] sm:$0xff]  ;;  %v16843_v57 = vld [vmem:[#allocation151_spill] sm:$0xff] }
 0x859   :  { %v6038_v63 = vmul.f32 %v8615_v4, %v8246_v25  ;;  %8263 = vpow2.f32 %v4754_v24  ;;  %v5208_v43 = vsub.f32 %v15262_v31, %v4376_v2  ;;  %v8250_v58 = vpop.eup %8249  ;;  %v6166_v41 = vmul.f32 %v8616_v7, %v8248_v44  ;;  %v16837_v24 = vld [vmem:[#allocation273_spill] sm:$0xff] }
 0x85a   :  { %v5526_v38 = vadd.f32 %v8246_v25, %v5462_v28  ;;  %8265 = vpow2.f32 %v4946_v29  ;;  %v8252_v26 = vpop.eup %8251  ;;  %v5974_v42 = vadd.f32 %v5910_v3, %v5846_v36  ;;  %v5721_v16 = vmul.f32 %v8617_v15, %v8250_v58  ;;  %v16845_v29 = vld [vmem:[#allocation150_spill] sm:$0xff] }
 0x85b   :  { %8267 = vpow2.f32 %v5138_v49  ;;  %v5330_v31 = vmul.f32 1.442695, %v5208_v43  ;;  %v5401_v51 = vadd.f32 %v8252_v26, %v8250_v58  ;;  %v5785_v46 = vmul.f32 %v8618_v50, %v8252_v26  ;;  %v16846_v49 = vld [vmem:[#allocation152_spill] sm:$0xff]  ;;  %v8622_v58 = vld [vmem:[%s15513_s0 + $0x1058] sm:$0xff] }
 0x85c   :  { %v8254_v10 = vpop.eup %8253  ;;  %v5590_v45 = vadd.f32 %v8248_v44, %v5526_v38  ;;  %v16832_v54 = vmax.f32 %v16830_v52, %v16831_v48  ;;  %v16835_v2 = vmax.f32 %v16833_v18, %v16834_v40  ;;  %v6102_v22 = vadd.f32 %v6038_v63, %v5974_v42 }
 0x85d   :  { %v8256_v9 = vpop.eup %8255  ;;  %v5913_v6 = vmul.f32 %v8619_v62, %v8254_v10  ;;  %8269 = vpow2.f32 %v5330_v31  ;;  %v15357_v8 = vadd.f32 %v14976_v21, %v13238_v12  ;;  %v5465_v59 = vadd.f32 %v8254_v10, %v5401_v51  ;;  %v8623_v51 = vld [vmem:[%s15513_s0 + $0x1078] sm:$0xff] }
 0x85e   :  { %v4315_v17 = vmax.f32 %v16835_v2, %v16832_v54  ;;  %v8258_v35 = vpop.eup %8257  ;;  %8271 = vrcp.f32 %v5590_v45  ;;  %v5849_v20 = vadd.f32 %v5785_v46, %v5721_v16  ;;  %v6041_v61 = vmul.f32 %v8620_v53, %v8256_v9 }
 0x85f   :  { %v6230_v23 = vadd.f32 %v6166_v41, %v6102_v22  ;;  %v6169_v39 = vmul.f32 %v8621_v37, %v8258_v35  ;;  %v16838_v21 = vmax.f32 %v16836_v0, %v16837_v24  ;;  %v16841_v32 = vmax.f32 %v16839_v14, %v16840_v30 }
 0x860   :  { %v4379_v55 = vmax.f32 %v4315_v17, %v4113_v60  ;;  %v5529_v34 = vadd.f32 %v8256_v9, %v5465_v59  ;;  %v5977_v13 = vadd.f32 %v5913_v6, %v5849_v20  ;;  %v15373_v5 = vadd.f32 %v15027_v1, %v13238_v12  ;;  %v8626_v20 = vld [vmem:[%s15513_s0 + $0x1070] sm:$0xff] }
 0x861   :  { %v4314_v56 = vmax.f32 %v16841_v32, %v16838_v21  ;;  %v16844_v47 = vmax.f32 %v16842_v11, %v16843_v57  ;;  %v16847_v25 = vmax.f32 %v16845_v29, %v16846_v49  ;;  %v8260_v36 = vpop.eup %8259  ;;  %v15404_v62 = vadd.f32 %v15049_v27, %v13238_v12 }
 0x862   :  { %v4443_v44 = vsub.f32 %v16833_v18, %v4379_v55  ;;  %v4635_v33 = vsub.f32 %v16834_v40, %v4379_v55  ;;  %v4827_v3 = vsub.f32 %v16830_v52, %v4379_v55  ;;  %v5019_v4 = vsub.f32 %v16831_v48, %v4379_v55  ;;  %v8262_v63 = vpop.eup %8261  ;;  %v8625_v40 = vld [vmem:[%s15513_s0 + $0x1068] sm:$0xff] }
 0x863   :  { %v4317_v28 = vmax.f32 %v16847_v25, %v16844_v47  ;;  %v5593_v43 = vadd.f32 %v8258_v35, %v5529_v34  ;;  %v6105_v1 = vadd.f32 %v6041_v61, %v5977_v13  ;;  %v5720_v38 = vmul.f32 %v8622_v58, %v8260_v36  ;;  %v8264_v41 = vpop.eup %8263 }
 0x864   :  { %v5211_v7 = vsub.f32 %v4113_v60, %v4379_v55  ;;  %v6295_v26 = vmul.f32 %v8262_v63, %v6231_v19  ;;  %v4568_v42 = vmul.f32 1.442695, %v4443_v44  ;;  %v4760_v15 = vmul.f32 1.442695, %v4635_v33  ;;  %v8266_v31 = vpop.eup %8265  ;;  %v8624_v19 = vld [vmem:[%s15513_s0 + $0x1088] sm:$0xff] }
 0x865   :  { %v4952_v16 = vmul.f32 1.442695, %v4827_v3  ;;  %8273 = vrcp.f32 %v5593_v43  ;;  %v6233_v10 = vadd.f32 %v6169_v39, %v6105_v1  ;;  %v5400_v45 = vadd.f32 %v8264_v41, %v8260_v36  ;;  %v8268_v46 = vpop.eup %8267  ;;  %v16848_v3 = vld [vmem:[#allocation276_spill] sm:$0xff]  ;;  %v16852_v1 = vld [vmem:[#allocation149_spill] sm:$0xff] }
 0x866   :  { %v5784_v50 = vmul.f32 %v8623_v51, %v8264_v41  ;;  %6359 = vst [vmem:[%s15517_s5 + $0x1c8] sm:$0xff] %v6295_v26  ;;  %v5912_v60 = vmul.f32 %v8624_v19, %v8266_v31  ;;  %8275 = vpow2.f32 %v4568_v42  ;;  %v5144_v52 = vmul.f32 1.442695, %v5019_v4  ;;  %v16849_v4 = vld [vmem:[#allocation2_spill] sm:$0xff]  ;;  %v16851_v43 = vld [vmem:[#allocation148_spill] sm:$0xff] }
 0x867   :  { %v5336_v48 = vmul.f32 1.442695, %v5211_v7  ;;  %v5464_v54 = vadd.f32 %v8266_v31, %v5400_v45  ;;  %v6040_v2 = vmul.f32 %v8625_v40, %v8268_v46  ;;  %8277 = vpow2.f32 %v4760_v15  ;;  %v8270_v17 = vpop.eup %8269  ;;  %v8628_v26 = vld [vmem:[%s15513_s0 + $0x1150] sm:$0xff]  ;;  %v8629_v31 = vld [vmem:[%s15513_s0 + $0x1160] sm:$0xff] }
 0x868   :  { %v5848_v18 = vadd.f32 %v5784_v50, %v5720_v38  ;;  %8279 = vpow2.f32 %v4952_v16  ;;  %v4378_v9 = vmax.f32 %v4314_v56, %v15357_v8  ;;  %v4381_v22 = vmax.f32 %v4317_v28, %v15373_v5  ;;  %v8272_v6 = vpop.eup %8271 }
 0x869   :  { %v5528_v35 = vadd.f32 %v8268_v46, %v5464_v54  ;;  %v6168_v53 = vmul.f32 %v8626_v20, %v8270_v17  ;;  %8281 = vpow2.f32 %v5144_v52  ;;  %v6294_v61 = vmul.f32 %v8272_v6, %v6230_v23 }
 0x86a   :  { %v5976_v59 = vadd.f32 %v5912_v60, %v5848_v18  ;;  %8283 = vpow2.f32 %v5336_v48  ;;  %v4442_v37 = vsub.f32 %v16839_v14, %v4378_v9  ;;  %v4634_v39 = vsub.f32 %v16840_v30, %v4378_v9  ;;  %v8630_v60 = vld [vmem:[%s15513_s0 + $0x1140] sm:$0xff]  ;;  %v8631_v48 = vld [vmem:[%s15513_s0 + $0x1148] sm:$0xff] }
 0x86b   :  { %v5592_v55 = vadd.f32 %v8270_v17, %v5528_v35  ;;  %v4826_v12 = vsub.f32 %v16836_v0, %v4378_v9  ;;  %v5018_v27 = vsub.f32 %v16837_v24, %v4378_v9  ;;  %6358 = vst [vmem:[%s15517_s5 + $0x1c0] sm:$0xff] %v6294_v61  ;;  %v5210_v34 = vsub.f32 %v15357_v8, %v4378_v9 }
 0x86c   :  { %v6104_v21 = vadd.f32 %v6040_v2, %v5976_v59  ;;  %v4566_v32 = vmul.f32 1.442695, %v4442_v37  ;;  %v4758_v56 = vmul.f32 1.442695, %v4634_v39  ;;  %v4445_v23 = vsub.f32 %v16845_v29, %v4381_v22 }
 0x86d   :  { %8285 = vrcp.f32 %v5592_v55  ;;  %v4950_v13 = vmul.f32 1.442695, %v4826_v12  ;;  %v5142_v30 = vmul.f32 1.442695, %v5018_v27  ;;  %v5334_v47 = vmul.f32 1.442695, %v5210_v34 }
 0x86e   :  { %v6232_v14 = vadd.f32 %v6168_v53, %v6104_v21  ;;  %8287 = vpow2.f32 %v4566_v32  ;;  %v4572_v25 = vmul.f32 1.442695, %v4445_v23  ;;  %v4637_v0 = vsub.f32 %v16846_v49, %v4381_v22  ;;  %v8632_v21 = vld [vmem:[%s15513_s0 + $0x10e8] sm:$0xff] }
 0x86f   :  { %v8274_v24 = vpop.eup %8273  ;;  %8289 = vpow2.f32 %v4758_v56  ;;  %v4829_v28 = vsub.f32 %v16842_v11, %v4381_v22  ;;  %v5021_v36 = vsub.f32 %v16843_v57, %v4381_v22  ;;  %v5213_v44 = vsub.f32 %v15373_v5, %v4381_v22  ;;  %v8627_v11 = vld [vmem:[%s15513_s0 + $0x1130] sm:$0xff] }
 0x870   :  { %v8276_v8 = vpop.eup %8275  ;;  %v6297_v33 = vmul.f32 %v8274_v24, %v6233_v10  ;;  %8291 = vpow2.f32 %v4950_v13  ;;  %v4764_v29 = vmul.f32 1.442695, %v4637_v0  ;;  %v16850_v63 = vmax.f32 %v16848_v3, %v16849_v4 }
 0x871   :  { %v16853_v58 = vmax.f32 %v16851_v43, %v16852_v1  ;;  %v8278_v49 = vpop.eup %8277  ;;  %v5723_v7 = vmul.f32 %v8627_v11, %v8276_v8  ;;  %8293 = vpow2.f32 %v5142_v30  ;;  %v4956_v57 = vmul.f32 1.442695, %v4829_v28 }
 0x872   :  { %v8280_v5 = vpop.eup %8279  ;;  %6361 = vst [vmem:[%s15517_s5 + $0x1d8] sm:$0xff] %v6297_v33  ;;  %v5403_v41 = vadd.f32 %v8278_v49, %v8276_v8  ;;  %v5787_v42 = vmul.f32 %v8628_v26, %v8278_v49  ;;  %8295 = vpow2.f32 %v5334_v47  ;;  %v5148_v15 = vmul.f32 1.442695, %v5021_v36 }
 0x873   :  { %v4316_v38 = vmax.f32 %v16853_v58, %v16850_v63  ;;  %v8282_v16 = vpop.eup %8281  ;;  %v5915_v10 = vmul.f32 %v8629_v31, %v8280_v5  ;;  %8297 = vpow2.f32 %v4572_v25  ;;  %v5340_v45 = vmul.f32 1.442695, %v5213_v44  ;;  %v8637_v58 = vld [vmem:[%s15513_s0 + $0x11e0] sm:$0xff] }
 0x874   :  { %v8284_v50 = vpop.eup %8283  ;;  %v5467_v46 = vadd.f32 %v8280_v5, %v5403_v41  ;;  %v5851_v19 = vadd.f32 %v5787_v42, %v5723_v7  ;;  %v6043_v52 = vmul.f32 %v8630_v60, %v8282_v16  ;;  %8299 = vpow2.f32 %v4764_v29  ;;  %v8635_v29 = vld [vmem:[%s15513_s0 + $0x10f8] sm:$0xff] }
 0x875   :  { %v4380_v51 = vmax.f32 %v4316_v38, %v15404_v62  ;;  %v6171_v54 = vmul.f32 %v8631_v48, %v8284_v50  ;;  %8301 = vpow2.f32 %v4956_v57  ;;  %v8638_v57 = vld [vmem:[%s15513_s0 + $0x1100] sm:$0xff]  ;;  %v8641_v60 = vld [vmem:[%s15513_s0 + $0x1178] sm:$0xff] }
 0x876   :  { %v5531_v2 = vadd.f32 %v8282_v16, %v5467_v46  ;;  %v5979_v17 = vadd.f32 %v5915_v10, %v5851_v19  ;;  %8303 = vpow2.f32 %v5148_v15  ;;  %v8639_v15 = vld [vmem:[%s15513_s0 + $0x11f0] sm:$0xff] }
 0x877   :  { %v4444_v18 = vsub.f32 %v16851_v43, %v4380_v51  ;;  %v4636_v40 = vsub.f32 %v16852_v1, %v4380_v51  ;;  %v4828_v9 = vsub.f32 %v16848_v3, %v4380_v51  ;;  %v8286_v22 = vpop.eup %8285  ;;  %8305 = vpow2.f32 %v5340_v45 }
 0x878   :  { %v5020_v59 = vsub.f32 %v16849_v4, %v4380_v51  ;;  %v8288_v20 = vpop.eup %8287  ;;  %v6296_v53 = vmul.f32 %v8286_v22, %v6232_v14  ;;  %v5595_v61 = vadd.f32 %v8284_v50, %v5531_v2  ;;  %v6107_v37 = vadd.f32 %v6043_v52, %v5979_v17  ;;  %v8633_v14 = vld [vmem:[%s15513_s0 + $0x1108] sm:$0xff]  ;;  %v8636_v4 = vld [vmem:[%s15513_s0 + $0x11c0] sm:$0xff]  ;;  %v8640_v50 = vld [vmem:[%s15513_s0 + $0x11d0] sm:$0xff] }
 0x879   :  { %v4570_v6 = vmul.f32 1.442695, %v4444_v18  ;;  %v4762_v35 = vmul.f32 1.442695, %v4636_v40  ;;  %v4954_v39 = vmul.f32 1.442695, %v4828_v9  ;;  %v8290_v55 = vpop.eup %8289  ;;  %v5722_v12 = vmul.f32 %v8632_v21, %v8288_v20 }
 0x87a   :  { %v5146_v27 = vmul.f32 1.442695, %v5020_v59  ;;  %v5212_v32 = vsub.f32 %v15404_v62, %v4380_v51  ;;  %v8292_v56 = vpop.eup %8291  ;;  %6360 = vst [vmem:[%s15517_s5 + $0x1d0] sm:$0xff] %v6296_v53  ;;  %v6235_v34 = vadd.f32 %v6171_v54, %v6107_v37  ;;  %v5402_v23 = vadd.f32 %v8290_v55, %v8288_v20  ;;  %v8634_v62 = vld [vmem:[%s15513_s0 + $0x1118] sm:$0xff]  ;;  %v8644_v37 = vld [vmem:[%s15513_s0 + $0x11a8] sm:$0xff] }
 0x87b   :  { %8307 = vpow2.f32 %v4570_v6  ;;  %v5786_v13 = vmul.f32 %v8633_v14, %v8290_v55  ;;  %v8294_v30 = vpop.eup %8293  ;;  %v5914_v28 = vmul.f32 %v8634_v62, %v8292_v56  ;;  %v8642_v2 = vld [vmem:[%s15513_s0 + $0x11d8] sm:$0xff]  ;;  %v8646_v14 = vld [vmem:[%s15513_s0 + $0x1190] sm:$0xff] }
 0x87c   :  { %8309 = vrcp.f32 %v5595_v61  ;;  %v5338_v47 = vmul.f32 1.442695, %v5212_v32  ;;  %v8296_v25 = vpop.eup %8295  ;;  %v5466_v0 = vadd.f32 %v8292_v56, %v5402_v23  ;;  %v6042_v3 = vmul.f32 %v8635_v29, %v8294_v30  ;;  %v8643_v6 = vld [vmem:[%s15513_s0 + $0x1198] sm:$0xff] }
 0x87d   :  { %8311 = vpow2.f32 %v4762_v35  ;;  %v5850_v24 = vadd.f32 %v5786_v13, %v5722_v12  ;;  %v8298_v36 = vpop.eup %8297  ;;  %v6170_v5 = vmul.f32 %v8638_v57, %v8296_v25 }
 0x87e   :  { %8313 = vpow2.f32 %v4954_v39  ;;  %v8300_v44 = vpop.eup %8299  ;;  %v5530_v8 = vadd.f32 %v8294_v30, %v5466_v0  ;;  %v5725_v63 = vmul.f32 %v8636_v4, %v8298_v36 }
 0x87f   :  { %8315 = vpow2.f32 %v5146_v27  ;;  %v5978_v33 = vadd.f32 %v5914_v28, %v5850_v24  ;;  %v8302_v43 = vpop.eup %8301  ;;  %v5405_v1 = vadd.f32 %v8300_v44, %v8298_v36  ;;  %v5789_v38 = vmul.f32 %v8637_v58, %v8300_v44  ;;  %v8645_v27 = vld [vmem:[%s15513_s0 + $0x1188] sm:$0xff] }
 0x880   :  { %8317 = vpow2.f32 %v5338_v47  ;;  %v8304_v49 = vpop.eup %8303  ;;  %v5594_v11 = vadd.f32 %v8296_v25, %v5530_v8  ;;  %v5917_v16 = vmul.f32 %v8639_v15, %v8302_v43 }
 0x881   :  { %v6106_v7 = vadd.f32 %v6042_v3, %v5978_v33  ;;  %v8306_v41 = vpop.eup %8305  ;;  %v5469_v26 = vadd.f32 %v8302_v43, %v5405_v1  ;;  %v5853_v42 = vadd.f32 %v5789_v38, %v5725_v63  ;;  %v6045_v46 = vmul.f32 %v8640_v50, %v8304_v49 }
 0x882   :  { %8319 = vrcp.f32 %v5594_v11  ;;  %v6173_v17 = vmul.f32 %v8642_v2, %v8306_v41 }
 0x883   :  { %v6234_v31 = vadd.f32 %v6170_v5, %v6106_v7  ;;  %v5533_v45 = vadd.f32 %v8304_v49, %v5469_v26  ;;  %v5981_v51 = vadd.f32 %v5917_v16, %v5853_v42 }
 0x885   :  { %v8308_v10 = vpop.eup %8307  ;;  %v5597_v18 = vadd.f32 %v8306_v41, %v5533_v45  ;;  %v6109_v40 = vadd.f32 %v6045_v46, %v5981_v51 }
 0x886   :  { %v8310_v19 = vpop.eup %8309  ;;  %v5724_v52 = vmul.f32 %v8641_v60, %v8308_v10 }
 0x887   :  { %v8312_v48 = vpop.eup %8311  ;;  %v6299_v54 = vmul.f32 %v8310_v19, %v6235_v34  ;;  %8321 = vrcp.f32 %v5597_v18  ;;  %v6237_v20 = vadd.f32 %v6173_v17, %v6109_v40 }
 0x888   :  { %v8314_v9 = vpop.eup %8313  ;;  %v5404_v22 = vadd.f32 %v8312_v48, %v8308_v10  ;;  %v5788_v35 = vmul.f32 %v8643_v6, %v8312_v48 }
 0x889   :  { %v8316_v59 = vpop.eup %8315  ;;  %6363 = vst [vmem:[%s15517_s5 + $0x1e8] sm:$0xff] %v6299_v54  ;;  %v5916_v39 = vmul.f32 %v8644_v37, %v8314_v9 }
 0x88a   :  { %v5468_v53 = vadd.f32 %v8314_v9, %v5404_v22  ;;  %v5852_v61 = vadd.f32 %v5788_v35, %v5724_v52  ;;  %v8318_v55 = vpop.eup %8317  ;;  %v6044_v32 = vmul.f32 %v8645_v27, %v8316_v59 }
 0x88b   :  { %v6172_v13 = vmul.f32 %v8646_v14, %v8318_v55 }
 0x88c   :  { %v5532_v21 = vadd.f32 %v8316_v59, %v5468_v53  ;;  %v5980_v12 = vadd.f32 %v5916_v39, %v5852_v61  ;;  %v8320_v56 = vpop.eup %8319 }
 0x88d   :  { %v6298_v30 = vmul.f32 %v8320_v56, %v6234_v31 }
 0x88e   :  { %v5596_v34 = vadd.f32 %v8318_v55, %v5532_v21  ;;  %v6108_v23 = vadd.f32 %v6044_v32, %v5980_v12 }
 0x88f   :  { %6362 = vst [vmem:[%s15517_s5 + $0x1e0] sm:$0xff] %v6298_v30 }
 0x890   :  { %8323 = vrcp.f32 %v5596_v34  ;;  %v6236_v47 = vadd.f32 %v6172_v13, %v6108_v23 }
 0x891   :  { %v8322_v25 = vpop.eup %8321 }
 0x892   :  { %v6301_v0 = vmul.f32 %v8322_v25, %v6237_v20 }
 0x894   :  { %6365 = vst [vmem:[%s15517_s5 + $0x1f8] sm:$0xff] %v6301_v0 }
 0x89a   :  { %v8324_v24 = vpop.eup %8323 }
 0x89b   :  { %v6300_v62 = vmul.f32 %v8324_v24, %v6236_v47 }
 0x89d   :  { %6364 = vst [vmem:[%s15517_s5 + $0x1f0] sm:$0xff] %v6300_v62 }

</bundles_post_ra>
